<compile_context>
chip_gen: v7x
topology: tpu7x:2x2x1
jax: 0.10.0
libtpu: 0.0.40
codegen_flags: <defaults>
</compile_context>

<pallas_src>
import jax
import jax.numpy as jnp
from jax.experimental import pallas as pl
from jax.experimental.pallas import tpu as pltpu


# ----------------------------------------------------------------------------
# Kernel
# ----------------------------------------------------------------------------
def gru_kernel(x_ref, wixt_ref, whht_ref, giadd_ref, bhn_ref, hout_ref, gi_scr):
    """Single-layer GRU (PyTorch gate order r, z, n) over one batch block.

    x_ref:     (T, BB, Din)   input features (time-major), matmul dtype
    wixt_ref:  (Din, 3*Hp)    fused, transposed, lane-padded input weights
    whht_ref:  (Hp, 3*Hp)     fused, transposed, lane-padded hidden weights
    giadd_ref: (BB, 3*Hp)     time-invariant gate term (embed proj + biases), f32
    bhn_ref:   (1, Hp)        b_hn (must stay inside r * (W_hn h + b_hn)), f32
    hout_ref:  (BB, Hp)       last hidden state (lane-dense, padded), f32
    gi_scr:    (T, BB, 3*Hp)  VMEM scratch for the hoisted input projection, f32
    """
    T, BB, Din = x_ref.shape
    Hp3 = whht_ref.shape[-1]
    Hp = Hp3 // 3
    f32 = jnp.float32

    # ---- Hoisted, gate-fused input projection: ONE matmul, one lane-dense
    #      (3*Hp wide) store; the time-invariant term is added here, outside
    #      the serial recurrence.
    x_flat = x_ref[...].reshape(T * BB, Din)          # layout-preserving (BB%8==0)
    proj = jnp.dot(x_flat, wixt_ref[...], preferred_element_type=f32)
    gi_scr[...] = proj.reshape(T, BB, Hp3) + giadd_ref[...][None, :, :]

    # ---- Loop-invariant operands hoisted out of the time loop.
    whh = whht_ref[...]                               # (Hp, 3*Hp)
    bhn_b = jnp.broadcast_to(bhn_ref[...], (BB, Hp))  # hoisted broadcast

    def step(t, h):
        gi = gi_scr[t]                                              # (BB, 3*Hp)
        gh = jnp.dot(h.astype(whh.dtype), whh,
                     preferred_element_type=f32)                    # 1 MXU op/step
        r = jax.nn.sigmoid(gi[:, :Hp] + gh[:, :Hp])
        z = jax.nn.sigmoid(gi[:, Hp:2 * Hp] + gh[:, Hp:2 * Hp])
        n = jnp.tanh(gi[:, 2 * Hp:] + r * (gh[:, 2 * Hp:] + bhn_b))
        return (1.0 - z) * n + z * h

    h0 = jnp.zeros((BB, Hp), f32)
    unroll = True if T <= 16 else 8                   # cap unroll at large T
    h_last = jax.lax.fori_loop(0, T, step, h0, unroll=unroll)
    hout_ref[...] = h_last                            # full 128-lane store


# ----------------------------------------------------------------------------
# Parameter re-layout (one-time)
# ----------------------------------------------------------------------------
def prepare_params(raw, input_size, *, matmul_dtype=jnp.float32, lane=128):
    """Fuse the 3 GRU gates, transpose, and zero-pad H to a multiple of 128."""
    H = raw["w_hh"].shape[1]
    Hp = ((H + lane - 1) // lane) * lane
    Hp = max(Hp, lane)

    wih = raw["w_ih"].reshape(3, H, -1)               # gate order [r, z, n]
    whh = raw["w_hh"].reshape(3, H, H)
    bih = raw["b_ih"].reshape(3, H)
    bhh = raw["b_hh"].reshape(3, H)

    wih_t = jnp.transpose(wih, (0, 2, 1))             # (3, Din+E, H)
    whh_t = jnp.transpose(whh, (0, 2, 1))             # (3, H, H)

    def fuse_cols(w_t):                               # (3, K, H) -> (K, 3*Hp)
        K = w_t.shape[1]
        out = jnp.zeros((K, 3 * Hp), jnp.float32)
        for g in range(3):
            out = out.at[:, g * Hp:g * Hp + H].set(w_t[g])
        return out

    w_ih_x_t = fuse_cols(wih_t[:, :input_size, :])    # (Din, 3*Hp)
    w_ih_e_t = fuse_cols(wih_t[:, input_size:, :])    # (E,   3*Hp)  (wrapper use)

    w_hh_fused = jnp.zeros((Hp, 3 * Hp), jnp.float32)
    for g in range(3):
        w_hh_fused = w_hh_fused.at[:H, g * Hp:g * Hp + H].set(whh_t[g])

    # b_hr / b_hz fold into the time-invariant gate bias; b_hn cannot.
    gi_bias = jnp.zeros((3 * Hp,), jnp.float32)
    gi_bias = gi_bias.at[0 * Hp:0 * Hp + H].set(bih[0] + bhh[0])
    gi_bias = gi_bias.at[1 * Hp:1 * Hp + H].set(bih[1] + bhh[1])
    gi_bias = gi_bias.at[2 * Hp:2 * Hp + H].set(bih[2])

    b_hn = jnp.zeros((1, Hp), jnp.float32).at[0, :H].set(bhh[2])
    fc_w = jnp.zeros((1, Hp), jnp.float32).at[:, :H].set(raw["fc_w"])

    return {
        "H": H, "Hp": Hp,
        "embedding": raw["embedding"].astype(jnp.float32),
        "w_ih_x_t": w_ih_x_t.astype(matmul_dtype),    # kernel matmul operand
        "w_hh_t": w_hh_fused.astype(matmul_dtype),    # kernel matmul operand
        "w_ih_e_t": w_ih_e_t,                         # f32, wrapper-side
        "gi_bias": gi_bias,                           # f32
        "b_hn": b_hn,                                 # f32
        "fc_w": fc_w,                                 # f32, wrapper-side
        "fc_b": raw["fc_b"].astype(jnp.float32),
        "matmul_dtype": matmul_dtype,
    }


def _tensorcores_per_chip():
    """Best-effort TC count per chip (2 on v7x); safe fallback = 1."""
    try:
        d = jax.devices()[0]
        n = getattr(d, "num_cores", None)
        if n is not None and int(n) >= 1:
            return int(n)
        kind = str(getattr(d, "device_kind", "")).lower()
        if "v7" in kind or "7x" in kind:
            return 2
    except Exception:
        pass
    return 1


def _default_block_b(B):
    # v5e/v6e (1 TC): single block -> no per-grid-step overhead.
    # v7x (2 TCs): split the batch across both cores (also halves the scratch).
    n_tc = _tensorcores_per_chip()
    if n_tc >= 2 and B % 2 == 0 and (B // 2) % 8 == 0:
        return B // 2
    return B


# ----------------------------------------------------------------------------
# Forward wrapper
# ----------------------------------------------------------------------------
def crypto_gru_forward(x, crypto_type, p, *, block_b=None):
    """x: (B, T, input_size) f32; crypto_type: (B,) int32 -> (B,) f32."""
    B, T, Din = x.shape
    Hp = p["Hp"]
    Hp3 = 3 * Hp
    mm_dtype = p["matmul_dtype"]

    if block_b is None:
        block_b = _default_block_b(B)
    assert B % block_b == 0, "batch must divide evenly into batch blocks"
    assert block_b == B or block_b % 8 == 0, "batch block must be a multiple of 8"

    # Time-invariant gate term (embedding projection + folded biases), f32.
    embed = p["embedding"][crypto_type]                               # (B, E)
    gi_add = (embed @ p["w_ih_e_t"] + p["gi_bias"][None, :]).astype(jnp.float32)

    # Time-major x (cheap: lane-width-4 data) so per-step scratch reads are
    # dense leading-dim loads inside the serial recurrence.
    x_tbd = jnp.transpose(x.astype(jnp.float32), (1, 0, 2)).astype(mm_dtype)

    # VMEM budget: fused scratch + double-buffered input/output blocks + headroom.
    esize = jnp.finfo(mm_dtype).bits // 8
    in_bytes = (T * block_b * Din * esize        # x block
                + Din * Hp3 * esize              # w_ih_x_t
                + Hp * Hp3 * esize               # w_hh_t
                + block_b * Hp3 * 4              # gi_add block
                + Hp * 4)                        # b_hn
    out_bytes = block_b * Hp * 4
    scratch_bytes = T * block_b * Hp3 * 4
    vmem_limit = int(min(max(scratch_bytes + 2 * (in_bytes + out_bytes) + (8 << 20),
                             32 << 20), 64 << 20))

    h_last = pl.pallas_call(
        gru_kernel,
        out_shape=jax.ShapeDtypeStruct((B, Hp), jnp.float32),
        grid=(B // block_b,),
        in_specs=[
            pl.BlockSpec((T, block_b, Din), lambda b: (0, b, 0)),   # x
            pl.BlockSpec((Din, Hp3), lambda b: (0, 0)),             # w_ih_x_t
            pl.BlockSpec((Hp, Hp3), lambda b: (0, 0)),              # w_hh_t
            pl.BlockSpec((block_b, Hp3), lambda b: (b, 0)),         # gi_add
            pl.BlockSpec((1, Hp), lambda b: (0, 0)),                # b_hn
        ],
        out_specs=pl.BlockSpec((block_b, Hp), lambda b: (b, 0)),
        scratch_shapes=[pltpu.VMEM((T, block_b, Hp3), jnp.float32)],
        compiler_params=pltpu.CompilerParams(
            dimension_semantics=("parallel",),
            vmem_limit_bytes=vmem_limit),
    )(x_tbd, p["w_ih_x_t"], p["w_hh_t"], gi_add, p["b_hn"])

    # Final 1-wide Linear in plain XLA (zero-padded fc_w -> padded lanes inert).
    pred = h_last @ p["fc_w"].T + p["fc_b"]                           # (B, 1)
    return pred.reshape(B)


# ----------------------------------------------------------------------------
# Synthetic init + pure-JAX reference (mirrors the PyTorch module)
# ----------------------------------------------------------------------------
def init_params(key, input_size=4, embed_dim=4, hidden_size=32, num_crypto=4):
    D = input_size + embed_dim
    H = hidden_size
    k = 1.0 / jnp.sqrt(jnp.float32(H))
    ks = jax.random.split(key, 7)
    u = lambda kk, shape: jax.random.uniform(kk, shape, jnp.float32, -k, k)
    return {
        "embedding": jax.random.normal(ks[0], (num_crypto, embed_dim), jnp.float32),
        "w_ih": u(ks[1], (3 * H, D)),
        "w_hh": u(ks[2], (3 * H, H)),
        "b_ih": u(ks[3], (3 * H,)),
        "b_hh": u(ks[4], (3 * H,)),
        "fc_w": u(ks[5], (1, H)),
        "fc_b": u(ks[6], (1,)),
    }


def reference_forward(x, crypto_type, raw):
    B, T, _ = x.shape
    H = raw["w_hh"].shape[1]
    E = raw["embedding"].shape[1]
    embed = raw["embedding"][crypto_type]
    xc = jnp.concatenate(
        [x, jnp.broadcast_to(embed[:, None, :], (B, T, E))], axis=-1)
    h = jnp.zeros((B, H), jnp.float32)
    for t in range(T):
        gi = xc[:, t] @ raw["w_ih"].T + raw["b_ih"]
        gh = h @ raw["w_hh"].T + raw["b_hh"]
        r = jax.nn.sigmoid(gi[:, :H] + gh[:, :H])
        z = jax.nn.sigmoid(gi[:, H:2 * H] + gh[:, H:2 * H])
        n = jnp.tanh(gi[:, 2 * H:] + r * gh[:, 2 * H:])
        h = (1.0 - z) * n + z * h
    return (h @ raw["fc_w"].T + raw["fc_b"]).reshape(B)


if __name__ == "__main__":
    # Full-precision XLA matmuls so the reference comparison measures kernel
    # correctness, not XLA's default bf16 matmul passes.
    jax.config.update("jax_default_matmul_precision", "highest")

    B, T = 16, 8
    input_size, embed_dim, hidden_size, num_crypto = 4, 4, 32, 4

    root = jax.random.PRNGKey(0)
    k_params, k_x, k_ct = jax.random.split(root, 3)

    raw = init_params(k_params, input_size, embed_dim, hidden_size, num_crypto)
    x = jax.random.normal(k_x, (B, T, input_size), jnp.float32)
    crypto_type = jax.random.randint(k_ct, (B,), 0, num_crypto, jnp.int32)

    ref = reference_forward(x, crypto_type, raw)

    # f32 kernel, auto block_b (grid of 1 on v5e/v6e, 2 on v7x).
    params = prepare_params(raw, input_size)
    out_auto = crypto_gru_forward(x, crypto_type, params, block_b=None)
    jax.block_until_ready(out_auto)
    assert out_auto.shape == (B,), out_auto.shape
    err = float(jnp.max(jnp.abs(out_auto - ref)))
    assert jnp.allclose(out_auto, ref, atol=1e-4, rtol=1e-4), f"auto max_err={err}"

    # f32 kernel, explicit batch blocking (exercises grid=(2,) indexing path).
    out_blk = crypto_gru_forward(x, crypto_type, params, block_b=8)
    jax.block_until_ready(out_blk)
    err = float(jnp.max(jnp.abs(out_blk - ref)))
    assert jnp.allclose(out_blk, ref, atol=1e-4, rtol=1e-4), f"blk max_err={err}"

    # bf16 matmul operands (f32 accumulate / gate math) — loose tolerance since
    # the T-step recurrence compounds rounding.
    params_bf16 = prepare_params(raw, input_size, matmul_dtype=jnp.bfloat16)
    out_bf16 = crypto_gru_forward(x, crypto_type, params_bf16, block_b=None)
    jax.block_until_ready(out_bf16)
    err = float(jnp.max(jnp.abs(out_bf16 - ref)))
    assert jnp.allclose(out_bf16, ref, atol=1e-1, rtol=1e-1), f"bf16 max_err={err}"

    print("KERNEL_OK")
</pallas_src>

<mosaic_0001>
module attributes {stable_mosaic.version = 11 : i64} {
  func.func @gru_kernel(%arg0: i32, %arg1: memref<8x16x4xf32, #tpu.memory_space<vmem>>, %arg2: memref<4x384xf32, #tpu.memory_space<vmem>>, %arg3: memref<128x384xf32, #tpu.memory_space<vmem>>, %arg4: memref<16x384xf32, #tpu.memory_space<vmem>>, %arg5: memref<1x128xf32, #tpu.memory_space<vmem>>, %arg6: memref<16x128xf32, #tpu.memory_space<vmem>>, %arg7: memref<8x16x384xf32, #tpu.memory_space<vmem>>) attributes {dimension_semantics = [#tpu.dimension_semantics<parallel>], iteration_bounds = array<i64: 1>, scalar_prefetch = 0 : i64, scratch_operands = 1 : i64, tpu.core_type = #tpu.core_type<tc>, window_params = [{transform_indices = @transform_0, window_bounds = array<i64: 8, 16, 4>}, {pipeline_mode = #tpu.pipeline_mode<synchronous>, transform_indices = @transform_1, window_bounds = array<i64: 4, 384>}, {pipeline_mode = #tpu.pipeline_mode<synchronous>, transform_indices = @transform_2, window_bounds = array<i64: 128, 384>}, {transform_indices = @transform_3, window_bounds = array<i64: 16, 384>}, {pipeline_mode = #tpu.pipeline_mode<synchronous>, transform_indices = @transform_4, window_bounds = array<i64: 1, 128>}, {transform_indices = @transform_5, window_bounds = array<i64: 16, 128>}]} {
    %c0 = arith.constant 0 : index
    %c0_0 = arith.constant 0 : index
    %c0_1 = arith.constant 0 : index
    %0 = vector.load %arg1[%c0, %c0_0, %c0_1] : memref<8x16x4xf32, #tpu.memory_space<vmem>>, vector<8x16x4xf32>
    %1 = vector.shape_cast %0 : vector<8x16x4xf32> to vector<128x4xf32>
    %c0_2 = arith.constant 0 : index
    %c0_3 = arith.constant 0 : index
    %2 = vector.load %arg2[%c0_2, %c0_3] : memref<4x384xf32, #tpu.memory_space<vmem>>, vector<4x384xf32>
    %cst = arith.constant dense<0.000000e+00> : vector<128x384xf32>
    %3 = tpu.matmul %1, %2, %cst {dimension_numbers = #tpu.dot_dimension_numbers<[1], [0], [0], [1], [0, 0, 1, 1], [], []>, precision = #tpu.contract_precision<fp32>} : vector<128x4xf32>, vector<4x384xf32>, vector<128x384xf32> -> vector<128x384xf32>
    %4 = vector.shape_cast %3 : vector<128x384xf32> to vector<8x16x384xf32>
    %c0_4 = arith.constant 0 : index
    %c0_5 = arith.constant 0 : index
    %5 = vector.load %arg4[%c0_4, %c0_5] : memref<16x384xf32, #tpu.memory_space<vmem>>, vector<16x384xf32>
    %6 = vector.shape_cast %5 : vector<16x384xf32> to vector<1x16x384xf32>
    %7 = vector.broadcast %6 : vector<1x16x384xf32> to vector<8x16x384xf32>
    %8 = arith.addf %4, %7 : vector<8x16x384xf32>
    %c0_6 = arith.constant 0 : index
    %c0_7 = arith.constant 0 : index
    %c0_8 = arith.constant 0 : index
    %9 = vector.load %arg7[%c0_6, %c0_7, %c0_8] : memref<8x16x384xf32, #tpu.memory_space<vmem>>, vector<8x16x384xf32>
    tpu.vector_store %arg7[%c0_6, %c0_7, %c0_8], %8 {strides = array<i32>} : memref<8x16x384xf32, #tpu.memory_space<vmem>>, vector<8x16x384xf32>,
    %c0_9 = arith.constant 0 : index
    %c0_10 = arith.constant 0 : index
    %10 = vector.load %arg3[%c0_9, %c0_10] : memref<128x384xf32, #tpu.memory_space<vmem>>, vector<128x384xf32>
    %c0_11 = arith.constant 0 : index
    %c0_12 = arith.constant 0 : index
    %11 = vector.load %arg5[%c0_11, %c0_12] : memref<1x128xf32, #tpu.memory_space<vmem>>, vector<1x128xf32>
    %12 = vector.shape_cast %11 : vector<1x128xf32> to vector<1x128xf32>
    %13 = vector.broadcast %12 : vector<1x128xf32> to vector<16x128xf32>
    %cst_13 = arith.constant 0.000000e+00 : f32
    %14 = vector.broadcast %cst_13 : f32 to vector<16x128xf32>
    %c0_i32 = arith.constant 0 : i32
    %15 = arith.index_cast %c0_i32 : i32 to index
    %c0_14 = arith.constant 0 : index
    %c0_15 = arith.constant 0 : index
    %16 = vector.load %arg7[%15, %c0_14, %c0_15] : memref<8x16x384xf32, #tpu.memory_space<vmem>>, vector<1x16x384xf32>
    %17 = vector.shape_cast %16 : vector<1x16x384xf32> to vector<16x384xf32>
    %cst_16 = arith.constant dense<0.000000e+00> : vector<16x384xf32>
    %18 = tpu.matmul %14, %10, %cst_16 {dimension_numbers = #tpu.dot_dimension_numbers<[1], [0], [0], [1], [0, 0, 1, 1], [], []>, precision = #tpu.contract_precision<fp32>} : vector<16x128xf32>, vector<128x384xf32>, vector<16x384xf32> -> vector<16x384xf32>
    %19 = vector.extract_strided_slice %17 {offsets = [0, 0], sizes = [16, 128], strides = [1, 1]} : vector<16x384xf32> to vector<16x128xf32>
    %20 = vector.extract_strided_slice %18 {offsets = [0, 0], sizes = [16, 128], strides = [1, 1]} : vector<16x384xf32> to vector<16x128xf32>
    %21 = arith.addf %19, %20 : vector<16x128xf32>
    %22 = arith.negf %21 : vector<16x128xf32>
    %23 = math.exp %22 : vector<16x128xf32>
    %cst_17 = arith.constant 1.000000e+00 : f32
    %24 = vector.broadcast %cst_17 : f32 to vector<16x128xf32>
    %25 = arith.addf %24, %23 : vector<16x128xf32>
    %26 = arith.divf %24, %25 : vector<16x128xf32>
    %27 = vector.extract_strided_slice %17 {offsets = [0, 128], sizes = [16, 128], strides = [1, 1]} : vector<16x384xf32> to vector<16x128xf32>
    %28 = vector.extract_strided_slice %18 {offsets = [0, 128], sizes = [16, 128], strides = [1, 1]} : vector<16x384xf32> to vector<16x128xf32>
    %29 = arith.addf %27, %28 : vector<16x128xf32>
    %30 = arith.negf %29 : vector<16x128xf32>
    %31 = math.exp %30 : vector<16x128xf32>
    %cst_18 = arith.constant 1.000000e+00 : f32
    %32 = vector.broadcast %cst_18 : f32 to vector<16x128xf32>
    %33 = arith.addf %32, %31 : vector<16x128xf32>
    %34 = arith.divf %32, %33 : vector<16x128xf32>
    %35 = vector.extract_strided_slice %17 {offsets = [0, 256], sizes = [16, 128], strides = [1, 1]} : vector<16x384xf32> to vector<16x128xf32>
    %36 = vector.extract_strided_slice %18 {offsets = [0, 256], sizes = [16, 128], strides = [1, 1]} : vector<16x384xf32> to vector<16x128xf32>
    %37 = arith.addf %36, %13 : vector<16x128xf32>
    %38 = arith.mulf %26, %37 : vector<16x128xf32>
    %39 = arith.addf %35, %38 : vector<16x128xf32>
    %40 = math.tanh %39 : vector<16x128xf32>
    %cst_19 = arith.constant 1.000000e+00 : f32
    %41 = vector.broadcast %cst_19 : f32 to vector<16x128xf32>
    %42 = arith.subf %41, %34 : vector<16x128xf32>
    %43 = arith.mulf %42, %40 : vector<16x128xf32>
    %44 = arith.mulf %34, %14 : vector<16x128xf32>
    %45 = arith.addf %43, %44 : vector<16x128xf32>
    %c1_i32 = arith.constant 1 : i32
    %46 = arith.index_cast %c1_i32 : i32 to index
    %c0_20 = arith.constant 0 : index
    %c0_21 = arith.constant 0 : index
    %47 = vector.load %arg7[%46, %c0_20, %c0_21] : memref<8x16x384xf32, #tpu.memory_space<vmem>>, vector<1x16x384xf32>
    %48 = vector.shape_cast %47 : vector<1x16x384xf32> to vector<16x384xf32>
    %cst_22 = arith.constant dense<0.000000e+00> : vector<16x384xf32>
    %49 = tpu.matmul %45, %10, %cst_22 {dimension_numbers = #tpu.dot_dimension_numbers<[1], [0], [0], [1], [0, 0, 1, 1], [], []>, precision = #tpu.contract_precision<fp32>} : vector<16x128xf32>, vector<128x384xf32>, vector<16x384xf32> -> vector<16x384xf32>
    %50 = vector.extract_strided_slice %48 {offsets = [0, 0], sizes = [16, 128], strides = [1, 1]} : vector<16x384xf32> to vector<16x128xf32>
    %51 = vector.extract_strided_slice %49 {offsets = [0, 0], sizes = [16, 128], strides = [1, 1]} : vector<16x384xf32> to vector<16x128xf32>
    %52 = arith.addf %50, %51 : vector<16x128xf32>
    %53 = arith.negf %52 : vector<16x128xf32>
    %54 = math.exp %53 : vector<16x128xf32>
    %cst_23 = arith.constant 1.000000e+00 : f32
    %55 = vector.broadcast %cst_23 : f32 to vector<16x128xf32>
    %56 = arith.addf %55, %54 : vector<16x128xf32>
    %57 = arith.divf %55, %56 : vector<16x128xf32>
    %58 = vector.extract_strided_slice %48 {offsets = [0, 128], sizes = [16, 128], strides = [1, 1]} : vector<16x384xf32> to vector<16x128xf32>
    %59 = vector.extract_strided_slice %49 {offsets = [0, 128], sizes = [16, 128], strides = [1, 1]} : vector<16x384xf32> to vector<16x128xf32>
    %60 = arith.addf %58, %59 : vector<16x128xf32>
    %61 = arith.negf %60 : vector<16x128xf32>
    %62 = math.exp %61 : vector<16x128xf32>
    %cst_24 = arith.constant 1.000000e+00 : f32
    %63 = vector.broadcast %cst_24 : f32 to vector<16x128xf32>
    %64 = arith.addf %63, %62 : vector<16x128xf32>
    %65 = arith.divf %63, %64 : vector<16x128xf32>
    %66 = vector.extract_strided_slice %48 {offsets = [0, 256], sizes = [16, 128], strides = [1, 1]} : vector<16x384xf32> to vector<16x128xf32>
    %67 = vector.extract_strided_slice %49 {offsets = [0, 256], sizes = [16, 128], strides = [1, 1]} : vector<16x384xf32> to vector<16x128xf32>
    %68 = arith.addf %67, %13 : vector<16x128xf32>
    %69 = arith.mulf %57, %68 : vector<16x128xf32>
    %70 = arith.addf %66, %69 : vector<16x128xf32>
    %71 = math.tanh %70 : vector<16x128xf32>
    %cst_25 = arith.constant 1.000000e+00 : f32
    %72 = vector.broadcast %cst_25 : f32 to vector<16x128xf32>
    %73 = arith.subf %72, %65 : vector<16x128xf32>
    %74 = arith.mulf %73, %71 : vector<16x128xf32>
    %75 = arith.mulf %65, %45 : vector<16x128xf32>
    %76 = arith.addf %74, %75 : vector<16x128xf32>
    %c2_i32 = arith.constant 2 : i32
    %77 = arith.index_cast %c2_i32 : i32 to index
    %c0_26 = arith.constant 0 : index
    %c0_27 = arith.constant 0 : index
    %78 = vector.load %arg7[%77, %c0_26, %c0_27] : memref<8x16x384xf32, #tpu.memory_space<vmem>>, vector<1x16x384xf32>
    %79 = vector.shape_cast %78 : vector<1x16x384xf32> to vector<16x384xf32>
    %cst_28 = arith.constant dense<0.000000e+00> : vector<16x384xf32>
    %80 = tpu.matmul %76, %10, %cst_28 {dimension_numbers = #tpu.dot_dimension_numbers<[1], [0], [0], [1], [0, 0, 1, 1], [], []>, precision = #tpu.contract_precision<fp32>} : vector<16x128xf32>, vector<128x384xf32>, vector<16x384xf32> -> vector<16x384xf32>
    %81 = vector.extract_strided_slice %79 {offsets = [0, 0], sizes = [16, 128], strides = [1, 1]} : vector<16x384xf32> to vector<16x128xf32>
    %82 = vector.extract_strided_slice %80 {offsets = [0, 0], sizes = [16, 128], strides = [1, 1]} : vector<16x384xf32> to vector<16x128xf32>
    %83 = arith.addf %81, %82 : vector<16x128xf32>
    %84 = arith.negf %83 : vector<16x128xf32>
    %85 = math.exp %84 : vector<16x128xf32>
    %cst_29 = arith.constant 1.000000e+00 : f32
    %86 = vector.broadcast %cst_29 : f32 to vector<16x128xf32>
    %87 = arith.addf %86, %85 : vector<16x128xf32>
    %88 = arith.divf %86, %87 : vector<16x128xf32>
    %89 = vector.extract_strided_slice %79 {offsets = [0, 128], sizes = [16, 128], strides = [1, 1]} : vector<16x384xf32> to vector<16x128xf32>
    %90 = vector.extract_strided_slice %80 {offsets = [0, 128], sizes = [16, 128], strides = [1, 1]} : vector<16x384xf32> to vector<16x128xf32>
    %91 = arith.addf %89, %90 : vector<16x128xf32>
    %92 = arith.negf %91 : vector<16x128xf32>
    %93 = math.exp %92 : vector<16x128xf32>
    %cst_30 = arith.constant 1.000000e+00 : f32
    %94 = vector.broadcast %cst_30 : f32 to vector<16x128xf32>
    %95 = arith.addf %94, %93 : vector<16x128xf32>
    %96 = arith.divf %94, %95 : vector<16x128xf32>
    %97 = vector.extract_strided_slice %79 {offsets = [0, 256], sizes = [16, 128], strides = [1, 1]} : vector<16x384xf32> to vector<16x128xf32>
    %98 = vector.extract_strided_slice %80 {offsets = [0, 256], sizes = [16, 128], strides = [1, 1]} : vector<16x384xf32> to vector<16x128xf32>
    %99 = arith.addf %98, %13 : vector<16x128xf32>
    %100 = arith.mulf %88, %99 : vector<16x128xf32>
    %101 = arith.addf %97, %100 : vector<16x128xf32>
    %102 = math.tanh %101 : vector<16x128xf32>
    %cst_31 = arith.constant 1.000000e+00 : f32
    %103 = vector.broadcast %cst_31 : f32 to vector<16x128xf32>
    %104 = arith.subf %103, %96 : vector<16x128xf32>
    %105 = arith.mulf %104, %102 : vector<16x128xf32>
    %106 = arith.mulf %96, %76 : vector<16x128xf32>
    %107 = arith.addf %105, %106 : vector<16x128xf32>
    %c3_i32 = arith.constant 3 : i32
    %108 = arith.index_cast %c3_i32 : i32 to index
    %c0_32 = arith.constant 0 : index
    %c0_33 = arith.constant 0 : index
    %109 = vector.load %arg7[%108, %c0_32, %c0_33] : memref<8x16x384xf32, #tpu.memory_space<vmem>>, vector<1x16x384xf32>
    %110 = vector.shape_cast %109 : vector<1x16x384xf32> to vector<16x384xf32>
    %cst_34 = arith.constant dense<0.000000e+00> : vector<16x384xf32>
    %111 = tpu.matmul %107, %10, %cst_34 {dimension_numbers = #tpu.dot_dimension_numbers<[1], [0], [0], [1], [0, 0, 1, 1], [], []>, precision = #tpu.contract_precision<fp32>} : vector<16x128xf32>, vector<128x384xf32>, vector<16x384xf32> -> vector<16x384xf32>
    %112 = vector.extract_strided_slice %110 {offsets = [0, 0], sizes = [16, 128], strides = [1, 1]} : vector<16x384xf32> to vector<16x128xf32>
    %113 = vector.extract_strided_slice %111 {offsets = [0, 0], sizes = [16, 128], strides = [1, 1]} : vector<16x384xf32> to vector<16x128xf32>
    %114 = arith.addf %112, %113 : vector<16x128xf32>
    %115 = arith.negf %114 : vector<16x128xf32>
    %116 = math.exp %115 : vector<16x128xf32>
    %cst_35 = arith.constant 1.000000e+00 : f32
    %117 = vector.broadcast %cst_35 : f32 to vector<16x128xf32>
    %118 = arith.addf %117, %116 : vector<16x128xf32>
    %119 = arith.divf %117, %118 : vector<16x128xf32>
    %120 = vector.extract_strided_slice %110 {offsets = [0, 128], sizes = [16, 128], strides = [1, 1]} : vector<16x384xf32> to vector<16x128xf32>
    %121 = vector.extract_strided_slice %111 {offsets = [0, 128], sizes = [16, 128], strides = [1, 1]} : vector<16x384xf32> to vector<16x128xf32>
    %122 = arith.addf %120, %121 : vector<16x128xf32>
    %123 = arith.negf %122 : vector<16x128xf32>
    %124 = math.exp %123 : vector<16x128xf32>
    %cst_36 = arith.constant 1.000000e+00 : f32
    %125 = vector.broadcast %cst_36 : f32 to vector<16x128xf32>
    %126 = arith.addf %125, %124 : vector<16x128xf32>
    %127 = arith.divf %125, %126 : vector<16x128xf32>
    %128 = vector.extract_strided_slice %110 {offsets = [0, 256], sizes = [16, 128], strides = [1, 1]} : vector<16x384xf32> to vector<16x128xf32>
    %129 = vector.extract_strided_slice %111 {offsets = [0, 256], sizes = [16, 128], strides = [1, 1]} : vector<16x384xf32> to vector<16x128xf32>
    %130 = arith.addf %129, %13 : vector<16x128xf32>
    %131 = arith.mulf %119, %130 : vector<16x128xf32>
    %132 = arith.addf %128, %131 : vector<16x128xf32>
    %133 = math.tanh %132 : vector<16x128xf32>
    %cst_37 = arith.constant 1.000000e+00 : f32
    %134 = vector.broadcast %cst_37 : f32 to vector<16x128xf32>
    %135 = arith.subf %134, %127 : vector<16x128xf32>
    %136 = arith.mulf %135, %133 : vector<16x128xf32>
    %137 = arith.mulf %127, %107 : vector<16x128xf32>
    %138 = arith.addf %136, %137 : vector<16x128xf32>
    %c4_i32 = arith.constant 4 : i32
    %139 = arith.index_cast %c4_i32 : i32 to index
    %c0_38 = arith.constant 0 : index
    %c0_39 = arith.constant 0 : index
    %140 = vector.load %arg7[%139, %c0_38, %c0_39] : memref<8x16x384xf32, #tpu.memory_space<vmem>>, vector<1x16x384xf32>
    %141 = vector.shape_cast %140 : vector<1x16x384xf32> to vector<16x384xf32>
    %cst_40 = arith.constant dense<0.000000e+00> : vector<16x384xf32>
    %142 = tpu.matmul %138, %10, %cst_40 {dimension_numbers = #tpu.dot_dimension_numbers<[1], [0], [0], [1], [0, 0, 1, 1], [], []>, precision = #tpu.contract_precision<fp32>} : vector<16x128xf32>, vector<128x384xf32>, vector<16x384xf32> -> vector<16x384xf32>
    %143 = vector.extract_strided_slice %141 {offsets = [0, 0], sizes = [16, 128], strides = [1, 1]} : vector<16x384xf32> to vector<16x128xf32>
    %144 = vector.extract_strided_slice %142 {offsets = [0, 0], sizes = [16, 128], strides = [1, 1]} : vector<16x384xf32> to vector<16x128xf32>
    %145 = arith.addf %143, %144 : vector<16x128xf32>
    %146 = arith.negf %145 : vector<16x128xf32>
    %147 = math.exp %146 : vector<16x128xf32>
    %cst_41 = arith.constant 1.000000e+00 : f32
    %148 = vector.broadcast %cst_41 : f32 to vector<16x128xf32>
    %149 = arith.addf %148, %147 : vector<16x128xf32>
    %150 = arith.divf %148, %149 : vector<16x128xf32>
    %151 = vector.extract_strided_slice %141 {offsets = [0, 128], sizes = [16, 128], strides = [1, 1]} : vector<16x384xf32> to vector<16x128xf32>
    %152 = vector.extract_strided_slice %142 {offsets = [0, 128], sizes = [16, 128], strides = [1, 1]} : vector<16x384xf32> to vector<16x128xf32>
    %153 = arith.addf %151, %152 : vector<16x128xf32>
    %154 = arith.negf %153 : vector<16x128xf32>
    %155 = math.exp %154 : vector<16x128xf32>
    %cst_42 = arith.constant 1.000000e+00 : f32
    %156 = vector.broadcast %cst_42 : f32 to vector<16x128xf32>
    %157 = arith.addf %156, %155 : vector<16x128xf32>
    %158 = arith.divf %156, %157 : vector<16x128xf32>
    %159 = vector.extract_strided_slice %141 {offsets = [0, 256], sizes = [16, 128], strides = [1, 1]} : vector<16x384xf32> to vector<16x128xf32>
    %160 = vector.extract_strided_slice %142 {offsets = [0, 256], sizes = [16, 128], strides = [1, 1]} : vector<16x384xf32> to vector<16x128xf32>
    %161 = arith.addf %160, %13 : vector<16x128xf32>
    %162 = arith.mulf %150, %161 : vector<16x128xf32>
    %163 = arith.addf %159, %162 : vector<16x128xf32>
    %164 = math.tanh %163 : vector<16x128xf32>
    %cst_43 = arith.constant 1.000000e+00 : f32
    %165 = vector.broadcast %cst_43 : f32 to vector<16x128xf32>
    %166 = arith.subf %165, %158 : vector<16x128xf32>
    %167 = arith.mulf %166, %164 : vector<16x128xf32>
    %168 = arith.mulf %158, %138 : vector<16x128xf32>
    %169 = arith.addf %167, %168 : vector<16x128xf32>
    %c5_i32 = arith.constant 5 : i32
    %170 = arith.index_cast %c5_i32 : i32 to index
    %c0_44 = arith.constant 0 : index
    %c0_45 = arith.constant 0 : index
    %171 = vector.load %arg7[%170, %c0_44, %c0_45] : memref<8x16x384xf32, #tpu.memory_space<vmem>>, vector<1x16x384xf32>
    %172 = vector.shape_cast %171 : vector<1x16x384xf32> to vector<16x384xf32>
    %cst_46 = arith.constant dense<0.000000e+00> : vector<16x384xf32>
    %173 = tpu.matmul %169, %10, %cst_46 {dimension_numbers = #tpu.dot_dimension_numbers<[1], [0], [0], [1], [0, 0, 1, 1], [], []>, precision = #tpu.contract_precision<fp32>} : vector<16x128xf32>, vector<128x384xf32>, vector<16x384xf32> -> vector<16x384xf32>
    %174 = vector.extract_strided_slice %172 {offsets = [0, 0], sizes = [16, 128], strides = [1, 1]} : vector<16x384xf32> to vector<16x128xf32>
    %175 = vector.extract_strided_slice %173 {offsets = [0, 0], sizes = [16, 128], strides = [1, 1]} : vector<16x384xf32> to vector<16x128xf32>
    %176 = arith.addf %174, %175 : vector<16x128xf32>
    %177 = arith.negf %176 : vector<16x128xf32>
    %178 = math.exp %177 : vector<16x128xf32>
    %cst_47 = arith.constant 1.000000e+00 : f32
    %179 = vector.broadcast %cst_47 : f32 to vector<16x128xf32>
    %180 = arith.addf %179, %178 : vector<16x128xf32>
    %181 = arith.divf %179, %180 : vector<16x128xf32>
    %182 = vector.extract_strided_slice %172 {offsets = [0, 128], sizes = [16, 128], strides = [1, 1]} : vector<16x384xf32> to vector<16x128xf32>
    %183 = vector.extract_strided_slice %173 {offsets = [0, 128], sizes = [16, 128], strides = [1, 1]} : vector<16x384xf32> to vector<16x128xf32>
    %184 = arith.addf %182, %183 : vector<16x128xf32>
    %185 = arith.negf %184 : vector<16x128xf32>
    %186 = math.exp %185 : vector<16x128xf32>
    %cst_48 = arith.constant 1.000000e+00 : f32
    %187 = vector.broadcast %cst_48 : f32 to vector<16x128xf32>
    %188 = arith.addf %187, %186 : vector<16x128xf32>
    %189 = arith.divf %187, %188 : vector<16x128xf32>
    %190 = vector.extract_strided_slice %172 {offsets = [0, 256], sizes = [16, 128], strides = [1, 1]} : vector<16x384xf32> to vector<16x128xf32>
    %191 = vector.extract_strided_slice %173 {offsets = [0, 256], sizes = [16, 128], strides = [1, 1]} : vector<16x384xf32> to vector<16x128xf32>
    %192 = arith.addf %191, %13 : vector<16x128xf32>
    %193 = arith.mulf %181, %192 : vector<16x128xf32>
    %194 = arith.addf %190, %193 : vector<16x128xf32>
    %195 = math.tanh %194 : vector<16x128xf32>
    %cst_49 = arith.constant 1.000000e+00 : f32
    %196 = vector.broadcast %cst_49 : f32 to vector<16x128xf32>
    %197 = arith.subf %196, %189 : vector<16x128xf32>
    %198 = arith.mulf %197, %195 : vector<16x128xf32>
    %199 = arith.mulf %189, %169 : vector<16x128xf32>
    %200 = arith.addf %198, %199 : vector<16x128xf32>
    %c6_i32 = arith.constant 6 : i32
    %201 = arith.index_cast %c6_i32 : i32 to index
    %c0_50 = arith.constant 0 : index
    %c0_51 = arith.constant 0 : index
    %202 = vector.load %arg7[%201, %c0_50, %c0_51] : memref<8x16x384xf32, #tpu.memory_space<vmem>>, vector<1x16x384xf32>
    %203 = vector.shape_cast %202 : vector<1x16x384xf32> to vector<16x384xf32>
    %cst_52 = arith.constant dense<0.000000e+00> : vector<16x384xf32>
    %204 = tpu.matmul %200, %10, %cst_52 {dimension_numbers = #tpu.dot_dimension_numbers<[1], [0], [0], [1], [0, 0, 1, 1], [], []>, precision = #tpu.contract_precision<fp32>} : vector<16x128xf32>, vector<128x384xf32>, vector<16x384xf32> -> vector<16x384xf32>
    %205 = vector.extract_strided_slice %203 {offsets = [0, 0], sizes = [16, 128], strides = [1, 1]} : vector<16x384xf32> to vector<16x128xf32>
    %206 = vector.extract_strided_slice %204 {offsets = [0, 0], sizes = [16, 128], strides = [1, 1]} : vector<16x384xf32> to vector<16x128xf32>
    %207 = arith.addf %205, %206 : vector<16x128xf32>
    %208 = arith.negf %207 : vector<16x128xf32>
    %209 = math.exp %208 : vector<16x128xf32>
    %cst_53 = arith.constant 1.000000e+00 : f32
    %210 = vector.broadcast %cst_53 : f32 to vector<16x128xf32>
    %211 = arith.addf %210, %209 : vector<16x128xf32>
    %212 = arith.divf %210, %211 : vector<16x128xf32>
    %213 = vector.extract_strided_slice %203 {offsets = [0, 128], sizes = [16, 128], strides = [1, 1]} : vector<16x384xf32> to vector<16x128xf32>
    %214 = vector.extract_strided_slice %204 {offsets = [0, 128], sizes = [16, 128], strides = [1, 1]} : vector<16x384xf32> to vector<16x128xf32>
    %215 = arith.addf %213, %214 : vector<16x128xf32>
    %216 = arith.negf %215 : vector<16x128xf32>
    %217 = math.exp %216 : vector<16x128xf32>
    %cst_54 = arith.constant 1.000000e+00 : f32
    %218 = vector.broadcast %cst_54 : f32 to vector<16x128xf32>
    %219 = arith.addf %218, %217 : vector<16x128xf32>
    %220 = arith.divf %218, %219 : vector<16x128xf32>
    %221 = vector.extract_strided_slice %203 {offsets = [0, 256], sizes = [16, 128], strides = [1, 1]} : vector<16x384xf32> to vector<16x128xf32>
    %222 = vector.extract_strided_slice %204 {offsets = [0, 256], sizes = [16, 128], strides = [1, 1]} : vector<16x384xf32> to vector<16x128xf32>
    %223 = arith.addf %222, %13 : vector<16x128xf32>
    %224 = arith.mulf %212, %223 : vector<16x128xf32>
    %225 = arith.addf %221, %224 : vector<16x128xf32>
    %226 = math.tanh %225 : vector<16x128xf32>
    %cst_55 = arith.constant 1.000000e+00 : f32
    %227 = vector.broadcast %cst_55 : f32 to vector<16x128xf32>
    %228 = arith.subf %227, %220 : vector<16x128xf32>
    %229 = arith.mulf %228, %226 : vector<16x128xf32>
    %230 = arith.mulf %220, %200 : vector<16x128xf32>
    %231 = arith.addf %229, %230 : vector<16x128xf32>
    %c7_i32 = arith.constant 7 : i32
    %232 = arith.index_cast %c7_i32 : i32 to index
    %c0_56 = arith.constant 0 : index
    %c0_57 = arith.constant 0 : index
    %233 = vector.load %arg7[%232, %c0_56, %c0_57] : memref<8x16x384xf32, #tpu.memory_space<vmem>>, vector<1x16x384xf32>
    %234 = vector.shape_cast %233 : vector<1x16x384xf32> to vector<16x384xf32>
    %cst_58 = arith.constant dense<0.000000e+00> : vector<16x384xf32>
    %235 = tpu.matmul %231, %10, %cst_58 {dimension_numbers = #tpu.dot_dimension_numbers<[1], [0], [0], [1], [0, 0, 1, 1], [], []>, precision = #tpu.contract_precision<fp32>} : vector<16x128xf32>, vector<128x384xf32>, vector<16x384xf32> -> vector<16x384xf32>
    %236 = vector.extract_strided_slice %234 {offsets = [0, 0], sizes = [16, 128], strides = [1, 1]} : vector<16x384xf32> to vector<16x128xf32>
    %237 = vector.extract_strided_slice %235 {offsets = [0, 0], sizes = [16, 128], strides = [1, 1]} : vector<16x384xf32> to vector<16x128xf32>
    %238 = arith.addf %236, %237 : vector<16x128xf32>
    %239 = arith.negf %238 : vector<16x128xf32>
    %240 = math.exp %239 : vector<16x128xf32>
    %cst_59 = arith.constant 1.000000e+00 : f32
    %241 = vector.broadcast %cst_59 : f32 to vector<16x128xf32>
    %242 = arith.addf %241, %240 : vector<16x128xf32>
    %243 = arith.divf %241, %242 : vector<16x128xf32>
    %244 = vector.extract_strided_slice %234 {offsets = [0, 128], sizes = [16, 128], strides = [1, 1]} : vector<16x384xf32> to vector<16x128xf32>
    %245 = vector.extract_strided_slice %235 {offsets = [0, 128], sizes = [16, 128], strides = [1, 1]} : vector<16x384xf32> to vector<16x128xf32>
    %246 = arith.addf %244, %245 : vector<16x128xf32>
    %247 = arith.negf %246 : vector<16x128xf32>
    %248 = math.exp %247 : vector<16x128xf32>
    %cst_60 = arith.constant 1.000000e+00 : f32
    %249 = vector.broadcast %cst_60 : f32 to vector<16x128xf32>
    %250 = arith.addf %249, %248 : vector<16x128xf32>
    %251 = arith.divf %249, %250 : vector<16x128xf32>
    %252 = vector.extract_strided_slice %234 {offsets = [0, 256], sizes = [16, 128], strides = [1, 1]} : vector<16x384xf32> to vector<16x128xf32>
    %253 = vector.extract_strided_slice %235 {offsets = [0, 256], sizes = [16, 128], strides = [1, 1]} : vector<16x384xf32> to vector<16x128xf32>
    %254 = arith.addf %253, %13 : vector<16x128xf32>
    %255 = arith.mulf %243, %254 : vector<16x128xf32>
    %256 = arith.addf %252, %255 : vector<16x128xf32>
    %257 = math.tanh %256 : vector<16x128xf32>
    %cst_61 = arith.constant 1.000000e+00 : f32
    %258 = vector.broadcast %cst_61 : f32 to vector<16x128xf32>
    %259 = arith.subf %258, %251 : vector<16x128xf32>
    %260 = arith.mulf %259, %257 : vector<16x128xf32>
    %261 = arith.mulf %251, %231 : vector<16x128xf32>
    %262 = arith.addf %260, %261 : vector<16x128xf32>
    %c8_i32 = arith.constant 8 : i32
    %c0_62 = arith.constant 0 : index
    %c0_63 = arith.constant 0 : index
    %263 = vector.load %arg6[%c0_62, %c0_63] : memref<16x128xf32, #tpu.memory_space<vmem>>, vector<16x128xf32>
    tpu.vector_store %arg6[%c0_62, %c0_63], %262 {strides = array<i32>} : memref<16x128xf32, #tpu.memory_space<vmem>>, vector<16x128xf32>,
    return
  }
  func.func @transform_0(%arg0: i32) -> (i32, i32, i32) {
    %c0_i32 = arith.constant 0 : i32
    %c0_i32_0 = arith.constant 0 : i32
    %c0_i32_1 = arith.constant 0 : i32
    return %c0_i32, %arg0, %c0_i32_0 : i32, i32, i32
  }
  func.func @transform_1(%arg0: i32) -> (i32, i32) {
    %c0_i32 = arith.constant 0 : i32
    %c0_i32_0 = arith.constant 0 : i32
    %c0_i32_1 = arith.constant 0 : i32
    return %c0_i32, %c0_i32_0 : i32, i32
  }
  func.func @transform_2(%arg0: i32) -> (i32, i32) {
    %c0_i32 = arith.constant 0 : i32
    %c0_i32_0 = arith.constant 0 : i32
    %c0_i32_1 = arith.constant 0 : i32
    return %c0_i32, %c0_i32_0 : i32, i32
  }
  func.func @transform_3(%arg0: i32) -> (i32, i32) {
    %c0_i32 = arith.constant 0 : i32
    %c0_i32_0 = arith.constant 0 : i32
    return %arg0, %c0_i32 : i32, i32
  }
  func.func @transform_4(%arg0: i32) -> (i32, i32) {
    %c0_i32 = arith.constant 0 : i32
    %c0_i32_0 = arith.constant 0 : i32
    %c0_i32_1 = arith.constant 0 : i32
    return %c0_i32, %c0_i32_0 : i32, i32
  }
  func.func @transform_5(%arg0: i32) -> (i32, i32) {
    %c0_i32 = arith.constant 0 : i32
    %c0_i32_0 = arith.constant 0 : i32
    return %arg0, %c0_i32 : i32, i32
  }
}

</mosaic_0001>

<bundles_post_ra>
// kernel: tpu_custom_call.1
= control target key start
LH: loop header
LB: loop body
LE: loop exit
PB: predicated region body
PF: predicated region fallthrough
CT: control target
= control target key end

     0   :  { %10 = vsyncpa [#allocation4], 0  ;;  %s26280_s0 = inlined_call_operand.vmem [shape: f32[8,16,4], index: 0, kind: input, shape index: {}]   ;;  %s26281_s1 = inlined_call_operand.vmem [shape: f32[4,384], index: 1, kind: input, shape index: {}]   ;;  %s26282_s2 = inlined_call_operand.hbm [shape: f32[128,384], index: 2, kind: input, shape index: {}]   ;;  %s26283_s3 = inlined_call_operand.vmem [shape: f32[16,384], index: 3, kind: input, shape index: {}]   ;;  %s26284_s4 = inlined_call_operand.vmem [shape: f32[1,128], index: 4, kind: input, shape index: {}]   ;;  %s26285_s5 = inlined_call_operand.hbm [shape: f32[16,128], index: 5, kind: output, shape index: {}]  }
   0x1   :  { %11 = vsyncpa [#allocation5], 0  ;;  %s22322_s18 = smov [#allocation3]   ;;  %s22274_s22 = scalar_lea.hbm %s26282_s2, 6144 }
   0x2   :  { %s21_s19 = sshll.u32 %s22322_s18, 4  ;;  %p22275_p0 = scmp.ne.s32.totalorder %s26282_s2, %s22274_s22  ;;  %s22_s19 = int_to_ptr.vmem [resolvable:$true] %s21_s19 }
   0x3   :  { %p22278_p1 = scmp.lt.u32.totalorder %s22274_s22, %s26282_s2 }
   0x5   :  { %p22280_p2 = pnand %p22278_p1, %p22275_p0 }
   0x7   :  { %22283 = shalt.err (!%p22280_p2)
}
   0x8   :  { %s22284_s27 = scalar_lea.vmem %s22_s19, 6144  ;;  %p22289_p4 = scmp.lt.s32.totalorder %s22_s19, %s22_s19 }
   0x9   :  { %p22285_p3 = scmp.ne.s32.totalorder %s22_s19, %s22284_s27  ;;  %p22290_p5 = scmp.lt.s32.totalorder %s22284_s27, %s22284_s27 }
   0xb   :  { %p22291_p6 = por %p22290_p5, %p22289_p4 }
   0xd   :  { %p22292_p7 = pnand %p22291_p6, %p22285_p3 }
   0xf   :  { %22295 = shalt.err (!%p22292_p7)
}
  0x10   :  { %s22323_s28 = smov 384   ;;  %s22324_s29 = smov 24  }
  0x11   :  { %27 = dma.hbm_to_vmem [thread:$0]  %s26282_s2, 6144, %s22_s19, [#allocation4], %s22323_s28, %s22323_s28, %s22324_s29  }
  0x12   :  { %22318 = dma.done.wait [#allocation4], 6144  }
  0x13   :  { %22319 = vsyncadd [#allocation4], 4294961152  ;;  %v26288_v0 = vmov 0.0   ;;  %vm105_vm0 = vcmask 1043456   ;;  %vm56_vm1 = vcmask 31744   ;;  %v51_v1 = vld [vmem:[%s26281_s1] sm:$0xff] }
  0x14   :  { %178 = vmatprep.mubr.f32.mxu1 %v26288_v0  ;;  %429 = vmatprep.mubr.f32.mxu0 %v26288_v0  ;;  %v35_v2 = vld [vmem:[%s26280_s0] sm:$0xff]  ;;  %v55_v3 = vcombine.high %v51_v1, %v51_v1  ;;  %v106_v4 = vsel %vm105_vm0, %v51_v1, 0  ;;  %v36_v6 = vld [vmem:[%s26280_s0 + $0x8] sm:$0xff]  ;;  %v37_v7 = vld [vmem:[%s26280_s0 + $0x10] sm:$0xff] }
  0x15   :  { %v58_v5 = vsel %vm56_vm1, %v35_v2, 0  ;;  %v38_v8 = vld [vmem:[%s26280_s0 + $0x18] sm:$0xff]  ;;  %v22390_v9 = vand.u32 4294901760, %v106_v4  ;;  %v61_v11 = vsel %vm56_vm1, %v36_v6, 0  ;;  %v39_v12 = vld [vmem:[%s26280_s0 + $0x20] sm:$0xff]  ;;  %v64_v15 = vsel %vm56_vm1, %v37_v7, 0 }
  0x16   :  { %v22392_v10 = vand.u32 4294901760, %v58_v5  ;;  %v108_v13 = vsel %vm105_vm0, %v55_v3, 0  ;;  %v22399_v14 = vand.u32 4294901760, %v61_v11  ;;  %v67_v16 = vsel %vm56_vm1, %v38_v8, 0  ;;  %v40_v21 = vld [vmem:[%s26280_s0 + $0x28] sm:$0xff]  ;;  %v41_v41 = vld [vmem:[%s26280_s0 + $0x30] sm:$0xff] }
  0x17   :  { %26739 = vst [vmem:[#allocation9_spill] sm:$0xff] %v22390_v9  ;;  %v22403_v17 = vand.u32 4294901760, %v108_v13  ;;  %v22409_v19 = vsub.f32 %v106_v4, %v22390_v9  ;;  %v22411_v20 = vand.u32 4294901760, %v64_v15  ;;  %v22419_v23 = vand.u32 4294901760, %v67_v16  ;;  %v52_v33 = vld [vmem:[%s26281_s1 + $0x8] sm:$0xf] }
  0x18   :  { %v22406_v18 = vsub.f32 %v58_v5, %v22392_v10  ;;  %v22417_v22 = vsub.f32 %v61_v11, %v22399_v14  ;;  %v70_v24 = vsel %vm56_vm1, %v39_v12, 0  ;;  %v73_v32 = vsel %vm56_vm1, %v40_v21, 0  ;;  %v42_v51 = vld [vmem:[%s26280_s0 + $0x38] sm:$0xff]  ;;  %v43_v59 = vld [vmem:[%s26280_s0 + $0x40] sm:$0xff]  ;;  %v44_v3 = vld [vmem:[%s26280_s0 + $0x48] sm:$0xff] }
  0x19   :  { %113 = vmatprep.subr.mxu1 %v22403_v17  ;;  %v22427_v26 = vsub.f32 %v108_v13, %v22403_v17  ;;  %v26286_v27 = vand.u32 4294901760, %v22409_v19  ;;  %v22431_v28 = vsub.f32 %v64_v15, %v22411_v20  ;;  %v22438_v30 = vsub.f32 %v67_v16, %v22419_v23  ;;  %v45_v11 = vld [vmem:[%s26280_s0 + $0x50] sm:$0xff] }
  0x1a   :  { %26740 = vst [vmem:[#allocation10_spill] sm:$0xff] %v22406_v18  ;;  %26741 = vst [vmem:[#allocation11_spill] sm:$0xff] %v22417_v22  ;;  %v22424_v25 = vand.u32 4294901760, %v22406_v18  ;;  %115 = vmatpush1.msra.mxu1 %v22390_v9  ;;  %v22435_v29 = vand.u32 4294901760, %v22417_v22  ;;  %v22440_v31 = vand.u32 4294901760, %v70_v24  ;;  %v22466_v42 = vsel %vm105_vm0, %v52_v33, 0 }
  0x1b   :  { %26742 = vst [vmem:[#allocation12_spill] sm:$0xff] %v22431_v28  ;;  %26743 = vst [vmem:[#allocation13_spill] sm:$0xff] %v22438_v30  ;;  %v26287_v35 = vand.u32 4294901760, %v22427_v26  ;;  %v364_v36 = vsub.f32 %v22409_v19, %v26286_v27  ;;  %v22453_v37 = vand.u32 4294901760, %v22431_v28  ;;  %v22469_v44 = vand.u32 4294901760, %v22438_v30  ;;  %v46_v33 = vld [vmem:[%s26280_s0 + $0x58] sm:$0xff] }
  0x1c   :  { %v182_v34 = vsub.f32 %v22406_v18, %v22424_v25  ;;  %v193_v38 = vsub.f32 %v22417_v22, %v22435_v29  ;;  %v22471_v45 = vand.u32 4294901760, %v73_v32  ;;  %v22479_v49 = vsub.f32 %v70_v24, %v22440_v31 }
  0x1d   :  { %v358_v40 = vsub.f32 %v22427_v26, %v26287_v35  ;;  %v365_v43 = vand.u32 4294901760, %v364_v36  ;;  %v204_v48 = vsub.f32 %v22431_v28, %v22453_v37  ;;  %v76_v50 = vsel %vm56_vm1, %v41_v41, 0 }
  0x1e   :  { %v22457_v39 = vand.u32 4294901760, %v182_v34  ;;  %v22474_v47 = vand.u32 4294901760, %v193_v38  ;;  %26744 = vst [vmem:[#allocation14_spill] sm:$0xff] %v22479_v49  ;;  %v22487_v52 = vand.u32 4294901760, %v22466_v42  ;;  %v22490_v53 = vsub.f32 %v73_v32, %v22471_v45 }
  0x1f   :  { %v359_v46 = vand.u32 4294901760, %v358_v40  ;;  %v22494_v54 = vand.u32 4294901760, %v204_v48  ;;  %v215_v55 = vsub.f32 %v22438_v30, %v22469_v44  ;;  %v22499_v56 = vand.u32 4294901760, %v22479_v49 }
  0x20   :  { %184 = vmatmul.mubr.f32.vlgmr.msra.gmra.mrb[0].mxu1 %v22457_v39  ;;  %v22501_v57 = vand.u32 4294901760, %v76_v50  ;;  %v79_v58 = vsel %vm56_vm1, %v42_v51, 0  ;;  %v22512_v60 = vand.u32 4294901760, %v22490_v53  ;;  %v82_v2 = vsel %vm56_vm1, %v43_v59, 0 }
  0x21   :  { %189 = vmatprep.mubr.f32.mxu1 %v26288_v0  ;;  %360 = vmatprep.subr.mxu0 %v359_v46  ;;  %v22518_v61 = vand.u32 4294901760, %v215_v55  ;;  %v226_v62 = vsub.f32 %v22479_v49, %v22499_v56  ;;  %v22525_v1 = vand.u32 4294901760, %v79_v58  ;;  %v22545_v8 = vand.u32 4294901760, %v82_v2 }
  0x22   :  { %21545 = vmatprep.subr.mxu1 %v359_v46  ;;  %366 = vmatpush1.msra.mxu0 %v365_v43  ;;  %v22523_v63 = vsub.f32 %v76_v50, %v22501_v57  ;;  %v237_v4 = vsub.f32 %v22490_v53, %v22512_v60  ;;  %v85_v12 = vsel %vm56_vm1, %v44_v3, 0  ;;  %v88_v15 = vsel %vm56_vm1, %v45_v11, 0  ;;  %v47_v46 = vld [vmem:[%s26280_s0 + $0x60] sm:$0xff] }
  0x23   :  { %21546 = vmatpush1.msra.mxu1 %v365_v43  ;;  %431 = vmatmul.mubr.f32.vlgmr.msra.gmra.mrb[0].mxu0 %v22392_v10  ;;  %26745 = vst [vmem:[#allocation15_spill] sm:$0xff] %v22525_v1  ;;  %v22537_v5 = vand.u32 4294901760, %v226_v62  ;;  %v22543_v7 = vsub.f32 %v79_v58, %v22525_v1  ;;  %v22564_v24 = vsub.f32 %v82_v2, %v22545_v8  ;;  %v22566_v32 = vand.u32 4294901760, %v85_v12  ;;  %v48_v62 = vld [vmem:[%s26280_s0 + $0x68] sm:$0xff] }
  0x24   :  { %195 = vmatmul.mubr.f32.gmra.mrb[2].mxu1 %v22474_v47  ;;  %544 = vmatprep.subr.mxu0 %v22427_v26  ;;  %v22540_v6 = vand.u32 4294901760, %v22523_v63  ;;  %v22553_v13 = vand.u32 4294901760, %v237_v4  ;;  %v22573_v34 = vand.u32 4294901760, %v88_v15  ;;  %v91_v36 = vsel %vm56_vm1, %v46_v33, 0 }
  0x25   :  { %200 = vmatprep.mubr.f32.mxu1 %v26288_v0  ;;  %547 = vmatpush1.msra.mxu0 %v22409_v19  ;;  %v22561_v21 = vand.u32 4294901760, %v22543_v7  ;;  %v22583_v41 = vand.u32 4294901760, %v22564_v24  ;;  %v22586_v43 = vsub.f32 %v85_v12, %v22566_v32  ;;  %v22593_v48 = vand.u32 4294901760, %v91_v36 }
  0x26   :  { %436 = vmatprep.mubr.f32.mxu0 %v26288_v0  ;;  %740 = vmatprep.subr.mxu0 %v22403_v17  ;;  %v248_v16 = vsub.f32 %v22523_v63, %v22540_v6  ;;  %v94_v50 = vsel %vm56_vm1, %v47_v46, 0  ;;  %v22606_v59 = vsub.f32 %v88_v15, %v22573_v34  ;;  %v97_v15 = vsel %vm56_vm1, %v48_v62, 0  ;;  %v50_v62 = vld [vmem:[%s26280_s0 + $0x78] sm:$0xff] }
  0x27   :  { %16637 = vmatprep.subr.mxu1 %v22487_v52  ;;  %438 = vmatmul.mubr.f32.gmra.mrb[2].mxu0 %v22399_v14  ;;  %v259_v40 = vsub.f32 %v22543_v7, %v22561_v21  ;;  %v270_v55 = vsub.f32 %v22564_v24, %v22583_v41  ;;  %v22603_v58 = vand.u32 4294901760, %v22586_v43  ;;  %v22613_v2 = vand.u32 4294901760, %v94_v50 }
  0x28   :  { %206 = vmatmul.mubr.f32.gmra.mrb[4].mxu1 %v22494_v54  ;;  %443 = vmatprep.mubr.f32.mxu0 %v26288_v0  ;;  %v22578_v38 = vand.u32 4294901760, %v248_v16  ;;  %v22622_v11 = vand.u32 4294901760, %v22606_v59  ;;  %v22625_v12 = vsub.f32 %v91_v36, %v22593_v48  ;;  %v49_v16 = vld [vmem:[%s26280_s0 + $0x70] sm:$0xff] }
  0x29   :  { %211 = vmatprep.mubr.f32.mxu1 %v26288_v0  ;;  %v22598_v51 = vand.u32 4294901760, %v259_v40  ;;  %v22617_v3 = vand.u32 4294901760, %v270_v55  ;;  %v281_v4 = vsub.f32 %v22586_v43, %v22603_v58  ;;  %v22634_v33 = vsub.f32 %v94_v50, %v22613_v2 }
  0x2a   :  { %26746 = vst [vmem:[#allocation16_spill] sm:$0xff] %v22622_v11  ;;  %v292_v36 = vsub.f32 %v22606_v59, %v22622_v11  ;;  %v22643_v46 = vand.u32 4294901760, %v22625_v12  ;;  %v22645_v55 = vand.u32 4294901760, %v97_v15  ;;  %v100_v50 = vsel %vm56_vm1, %v49_v16, 0 }
  0x2b   :  { %445 = vmatmul.mubr.f32.gmra.mrb[4].mxu0 %v22411_v20  ;;  %v22638_v40 = vand.u32 4294901760, %v281_v4  ;;  %v22654_v4 = vand.u32 4294901760, %v22634_v33  ;;  %v22665_v16 = vand.u32 4294901760, %v100_v50  ;;  %v103_v11 = vsel %vm56_vm1, %v50_v62, 0 }
  0x2c   :  { %217 = vmatmul.mubr.f32.gmra.mrb[6].mxu1 %v22518_v61  ;;  %450 = vmatprep.mubr.f32.mxu0 %v26288_v0  ;;  %26747 = vst [vmem:[#allocation17_spill] sm:$0xff] %v22643_v46  ;;  %v22658_v27 = vand.u32 4294901760, %v292_v36  ;;  %v303_v35 = vsub.f32 %v22625_v12, %v22643_v46  ;;  %v22685_v62 = vand.u32 4294901760, %v103_v11 }
  0x2d   :  { %222 = vmatprep.mubr.f32.mxu1 %v26288_v0  ;;  %v314_v36 = vsub.f32 %v22634_v33, %v22654_v4  ;;  %v22683_v46 = vsub.f32 %v100_v50, %v22665_v16 }
  0x2e   :  { %v22699_v50 = vsub.f32 %v103_v11, %v22685_v62  ;;  %v22716_v11 = vsub.f32 %v22466_v42, %v22487_v52 }
  0x2f   :  { %452 = vmatmul.mubr.f32.gmra.mrb[6].mxu0 %v22419_v23 }
  0x30   :  { %228 = vmatmul.mubr.f32.gmra.mrb[8].mxu1 %v22537_v5  ;;  %457 = vmatprep.mubr.f32.mxu0 %v26288_v0 }
  0x31   :  { %233 = vmatprep.mubr.f32.mxu1 %v26288_v0 }
  0x33   :  { %459 = vmatmul.mubr.f32.gmra.mrb[8].mxu0 %v22440_v31 }
  0x34   :  { %239 = vmatmul.mubr.f32.gmra.mrb[10].mxu1 %v22553_v13  ;;  %464 = vmatprep.mubr.f32.mxu0 %v26288_v0 }
  0x35   :  { %244 = vmatprep.mubr.f32.mxu1 %v26288_v0 }
  0x37   :  { %466 = vmatmul.mubr.f32.gmra.mrb[10].mxu0 %v22471_v45 }
  0x38   :  { %250 = vmatmul.mubr.f32.gmra.mrb[12].mxu1 %v22578_v38  ;;  %471 = vmatprep.mubr.f32.mxu0 %v26288_v0 }
  0x39   :  { %255 = vmatprep.mubr.f32.mxu1 %v26288_v0 }
  0x3b   :  { %473 = vmatmul.mubr.f32.gmra.mrb[12].mxu0 %v22501_v57 }
  0x3c   :  { %261 = vmatmul.mubr.f32.gmra.mrb[14].mxu1 %v22598_v51  ;;  %478 = vmatprep.mubr.f32.mxu0 %v26288_v0 }
  0x3d   :  { %266 = vmatprep.mubr.f32.mxu1 %v26288_v0 }
  0x3f   :  { %480 = vmatmul.mubr.f32.gmra.mrb[14].mxu0 %v22525_v1  ;;  %v26748_v1 = vmov 0.0  }
  0x40   :  { %272 = vmatmul.mubr.f32.gmra.mrb[16].mxu1 %v22617_v3  ;;  %610 = vmatprep.mubr.f32.mxu0 %v26288_v0 }
  0x41   :  { %277 = vmatprep.mubr.f32.mxu1 %v26288_v0  ;;  %v22663_v0 = vsub.f32 %v97_v15, %v22645_v55  ;;  %v22677_v15 = vand.u32 4294901760, %v303_v35  ;;  %v22696_v35 = vand.u32 4294901760, %v22683_v46 }
  0x43   :  { %613 = vmatmul.mubr.f32.vlgmr.msra.gmra.mrb[0].mxu0 %v22406_v18  ;;  %v26749_v18 = vand.u32 4294901760, %v22427_v26  ;;  %26750 = vst [vmem:[#allocation18_spill] sm:$0xff] %v22696_v35 }
  0x44   :  { %283 = vmatmul.mubr.f32.gmra.mrb[18].mxu1 %v22638_v40  ;;  %742 = vmatpush1.msra.mxu0 %v22390_v9  ;;  %v22680_v9 = vand.u32 4294901760, %v22663_v0 }
  0x45   :  { %288 = vmatprep.mubr.f32.mxu1 %v26748_v1  ;;  %618 = vmatprep.mubr.f32.mxu0 %v26748_v1 }
  0x46   :  { %953 = vmatprep.subr.mxu0 %v26749_v18  ;;  %v22691_v18 = vand.u32 4294901760, %v314_v36  ;;  %v325_v26 = vsub.f32 %v22663_v0, %v22680_v9  ;;  %v336_v36 = vsub.f32 %v22683_v46, %v22696_v35  ;;  %v22727_v35 = vand.u32 4294901760, %v22716_v11 }
  0x47   :  { %621 = vmatmul.mubr.f32.gmra.mrb[2].mxu0 %v22417_v22  ;;  %v22710_v22 = vand.u32 4294901760, %v22699_v50 }
  0x48   :  { %294 = vmatmul.mubr.f32.gmra.mrb[20].mxu1 %v22658_v27  ;;  %626 = vmatprep.mubr.f32.mxu0 %v26748_v1 }
  0x49   :  { %299 = vmatprep.mubr.f32.mxu1 %v26748_v1 }
  0x4b   :  { %629 = vmatmul.mubr.f32.gmra.mrb[4].mxu0 %v22431_v28  ;;  %v22705_v28 = vand.u32 4294901760, %v325_v26  ;;  %v22720_v26 = vand.u32 4294901760, %v336_v36  ;;  %v1542_v36 = vsub.f32 %v22716_v11, %v22727_v35 }
  0x4c   :  { %305 = vmatmul.mubr.f32.gmra.mrb[22].mxu1 %v22677_v15  ;;  %634 = vmatprep.mubr.f32.mxu0 %v26748_v1 }
  0x4d   :  { %310 = vmatprep.mubr.f32.mxu1 %v26748_v1 }
  0x4f   :  { %637 = vmatmul.mubr.f32.gmra.mrb[6].mxu0 %v22438_v30  ;;  %v347_v30 = vsub.f32 %v22699_v50, %v22710_v22 }
  0x50   :  { %316 = vmatmul.mubr.f32.gmra.mrb[24].mxu1 %v22691_v18  ;;  %642 = vmatprep.mubr.f32.mxu0 %v26748_v1 }
  0x51   :  { %321 = vmatprep.mubr.f32.mxu1 %v26748_v1  ;;  %v22731_v42 = vand.u32 4294901760, %v347_v30  ;;  %v26751_v30 = vand.u32 4294901760, %v22409_v19  ;;  %v26753_v19 = vld [vmem:[#allocation15_spill] sm:$0xff] }
  0x53   :  { %645 = vmatmul.mubr.f32.gmra.mrb[8].mxu0 %v22479_v49  ;;  %v1543_v49 = vand.u32 4294901760, %v1542_v36 }
  0x54   :  { %327 = vmatmul.mubr.f32.gmra.mrb[26].mxu1 %v22705_v28  ;;  %650 = vmatprep.mubr.f32.mxu0 %v26748_v1 }
  0x55   :  { %332 = vmatprep.mubr.f32.mxu1 %v26748_v1 }
  0x57   :  { %653 = vmatmul.mubr.f32.gmra.mrb[10].mxu0 %v22490_v53 }
  0x58   :  { %338 = vmatmul.mubr.f32.gmra.mrb[28].mxu1 %v22720_v26  ;;  %658 = vmatprep.mubr.f32.mxu0 %v26748_v1 }
  0x59   :  { %343 = vmatprep.mubr.f32.mxu1 %v26748_v1 }
  0x5b   :  { %661 = vmatmul.mubr.f32.gmra.mrb[12].mxu0 %v22523_v63 }
  0x5c   :  { %349 = vmatmul.mubr.f32.gmra.mrb[30].mxu1 %v22731_v42  ;;  %666 = vmatprep.mubr.f32.mxu0 %v26748_v1 }
  0x5d   :  { %485 = vmatprep.mubr.f32.mxu1 %v26748_v1 }
  0x5f   :  { %669 = vmatmul.mubr.f32.gmra.mrb[14].mxu0 %v22543_v7 }
  0x60   :  { %487 = vmatmul.mubr.f32.vlgmr.msra.gmra.mrb[16].mxu1 %v22545_v8  ;;  %674 = vmatprep.mubr.f32.mxu0 %v26748_v1 }
  0x61   :  { %492 = vmatprep.mubr.f32.mxu1 %v26748_v1  ;;  %16638 = vmatpush3.msra.mxu1 %v22487_v52 }
  0x62   :  { %16663 = vmatprep.subr.mxu1 %v1543_v49 }
  0x63   :  { %677 = vmatmul.mubr.f32.gmra.mrb[16].mxu0 %v22564_v24 }
  0x64   :  { %494 = vmatmul.mubr.f32.gmra.mrb[18].mxu1 %v22566_v32  ;;  %682 = vmatprep.mubr.f32.mxu0 %v26748_v1 }
  0x65   :  { %499 = vmatprep.mubr.f32.mxu1 %v26748_v1 }
  0x67   :  { %685 = vmatmul.mubr.f32.gmra.mrb[18].mxu0 %v22586_v43 }
  0x68   :  { %501 = vmatmul.mubr.f32.gmra.mrb[20].mxu1 %v22573_v34  ;;  %690 = vmatprep.mubr.f32.mxu0 %v26748_v1 }
  0x69   :  { %506 = vmatprep.mubr.f32.mxu1 %v26748_v1 }
  0x6b   :  { %693 = vmatmul.mubr.f32.gmra.mrb[20].mxu0 %v22606_v59 }
  0x6c   :  { %508 = vmatmul.mubr.f32.gmra.mrb[22].mxu1 %v22593_v48  ;;  %698 = vmatprep.mubr.f32.mxu0 %v26748_v1 }
  0x6d   :  { %513 = vmatprep.mubr.f32.mxu1 %v26748_v1 }
  0x6f   :  { %701 = vmatmul.mubr.f32.gmra.mrb[22].mxu0 %v22625_v12 }
  0x70   :  { %515 = vmatmul.mubr.f32.gmra.mrb[24].mxu1 %v22613_v2  ;;  %706 = vmatprep.mubr.f32.mxu0 %v26748_v1 }
  0x71   :  { %520 = vmatprep.mubr.f32.mxu1 %v26748_v1 }
  0x73   :  { %709 = vmatmul.mubr.f32.gmra.mrb[24].mxu0 %v22634_v33 }
  0x74   :  { %522 = vmatmul.mubr.f32.gmra.mrb[26].mxu1 %v22645_v55  ;;  %714 = vmatprep.mubr.f32.mxu0 %v26748_v1 }
  0x75   :  { %527 = vmatprep.mubr.f32.mxu1 %v26748_v1 }
  0x77   :  { %717 = vmatmul.mubr.f32.gmra.mrb[26].mxu0 %v22663_v0 }
  0x78   :  { %529 = vmatmul.mubr.f32.gmra.mrb[28].mxu1 %v22665_v16  ;;  %722 = vmatprep.mubr.f32.mxu0 %v26748_v1 }
  0x79   :  { %534 = vmatprep.mubr.f32.mxu1 %v26748_v1 }
  0x7b   :  { %725 = vmatmul.mubr.f32.gmra.mrb[28].mxu0 %v22683_v46 }
  0x7c   :  { %536 = vmatmul.mubr.f32.gmra.mrb[30].mxu1 %v22685_v62  ;;  %730 = vmatprep.mubr.f32.mxu0 %v26748_v1 }
  0x7d   :  { %16639 = vmatprep.mubr.f32.mxu1 %v22457_v39  ;;  %v2509_v39 = vld [vmem:[#allocation3 + $0x20] sm:$0xff] }
  0x7f   :  { %733 = vmatmul.mubr.f32.gmra.mrb[30].mxu0 %v22699_v50 }
  0x80   :  { %16640 = vmatmul.mubr.f32.vlgmr.msra.gmra.mrb[32].mxu1 %v22474_v47  ;;  %805 = vmatprep.mubr.f32.mxu0 %v26748_v1 }
  0x81   :  { %16642 = vmatprep.mubr.f32.mxu1 %v22494_v54  ;;  %16664 = vmatpush3.msra.mxu1 %v1543_v49  ;;  %v2570_v49 = vand.u32 4294901760, %v2509_v39 }
  0x82   :  { %16689 = vmatprep.subr.mxu1 %v22716_v11 }
  0x83   :  { %809 = vmatmul.mubr.f32.vlgmr.msra.gmra.mrb[0].mxu0 %v22424_v25 }
  0x84   :  { %16643 = vmatmul.mubr.f32.gmra.mrb[34].mxu1 %v22518_v61  ;;  %957 = vmatpush1.msra.mxu0 %v26751_v30  ;;  %v22842_v61 = vsub.f32 %v2509_v39, %v2570_v49  ;;  %v26763_v30 = vld [vmem:[#allocation13_spill] sm:$0xff]  ;;  %v26765_v39 = vld [vmem:[#allocation14_spill] sm:$0xff] }
  0x85   :  { %814 = vmatprep.mubr.f32.mxu0 %v26748_v1  ;;  %16645 = vmatprep.mubr.f32.mxu1 %v22537_v5  ;;  %v26757_v5 = vld [vmem:[#allocation18_spill] sm:$0xff] }
  0x86   :  { %1134 = vmatprep.subr.mxu0 %v22403_v17  ;;  %v26752_v17 = vld [vmem:[#allocation16_spill] sm:$0xff]  ;;  %26756 = vst [vmem:[#allocation15_spill] sm:$0xff] %v22842_v61 }
  0x87   :  { %818 = vmatmul.mubr.f32.gmra.mrb[2].mxu0 %v22435_v29 }
  0x88   :  { %16646 = vmatmul.mubr.f32.gmra.mrb[36].mxu1 %v22553_v13  ;;  %823 = vmatprep.mubr.f32.mxu0 %v26748_v1 }
  0x89   :  { %16648 = vmatprep.mubr.f32.mxu1 %v22578_v38  ;;  %v26304_v38 = vand.u32 4294901760, %v22842_v61 }
  0x8b   :  { %827 = vmatmul.mubr.f32.gmra.mrb[4].mxu0 %v22453_v37 }
  0x8c   :  { %16649 = vmatmul.mubr.f32.gmra.mrb[38].mxu1 %v22598_v51  ;;  %832 = vmatprep.mubr.f32.mxu0 %v26748_v1  ;;  %v26758_v51 = vld [vmem:[#allocation10_spill] sm:$0xff] }
  0x8d   :  { %16651 = vmatprep.mubr.f32.mxu1 %v22617_v3 }
  0x8f   :  { %836 = vmatmul.mubr.f32.gmra.mrb[6].mxu0 %v22469_v44 }
  0x90   :  { %16652 = vmatmul.mubr.f32.gmra.mrb[40].mxu1 %v22638_v40  ;;  %841 = vmatprep.mubr.f32.mxu0 %v26748_v1  ;;  %v2690_v40 = vsub.f32 %v22842_v61, %v26304_v38 }
  0x91   :  { %16654 = vmatprep.mubr.f32.mxu1 %v22658_v27  ;;  %v26754_v27 = vld [vmem:[#allocation17_spill] sm:$0xff] }
  0x93   :  { %845 = vmatmul.mubr.f32.gmra.mrb[8].mxu0 %v22499_v56 }
  0x94   :  { %16655 = vmatmul.mubr.f32.gmra.mrb[42].mxu1 %v22677_v15  ;;  %850 = vmatprep.mubr.f32.mxu0 %v26748_v1  ;;  %v26759_v15 = vld [vmem:[#allocation11_spill] sm:$0xff] }
  0x95   :  { %16657 = vmatprep.mubr.f32.mxu1 %v22691_v18 }
  0x97   :  { %854 = vmatmul.mubr.f32.gmra.mrb[10].mxu0 %v22512_v60 }
  0x98   :  { %16658 = vmatmul.mubr.f32.gmra.mrb[44].mxu1 %v22705_v28  ;;  %859 = vmatprep.mubr.f32.mxu0 %v26748_v1  ;;  %v2506_v28 = vld [vmem:[#allocation3 + $0x8] sm:$0xff] }
  0x99   :  { %16660 = vmatprep.mubr.f32.mxu1 %v22720_v26  ;;  %v2566_v47 = vand.u32 4294901760, %v2506_v28  ;;  %v26760_v26 = vld [vmem:[#allocation12_spill] sm:$0xff] }
  0x9b   :  { %863 = vmatmul.mubr.f32.gmra.mrb[12].mxu0 %v22540_v6  ;;  %v22840_v54 = vsub.f32 %v2506_v28, %v2566_v47  ;;  %v26764_v28 = vld [vmem:[#allocation9_spill] sm:$0xff] }
  0x9c   :  { %16661 = vmatmul.mubr.f32.gmra.mrb[46].mxu1 %v22731_v42  ;;  %868 = vmatprep.mubr.f32.mxu0 %v26748_v1  ;;  %v22861_v42 = vpack.c.bf16 %v2570_v49, %v2566_v47 }
  0x9d   :  { %16665 = vmatprep.mubr.f32.mxu1 %v22392_v10  ;;  %26755 = vst [vmem:[#allocation16_spill] sm:$0xff] %v22840_v54  ;;  %v26305_v13 = vand.u32 4294901760, %v22840_v54 }
  0x9e   :  { %26761 = vst [vmem:[#allocation17_spill] sm:$0xff] %v22861_v42 }
  0x9f   :  { %872 = vmatmul.mubr.f32.gmra.mrb[14].mxu0 %v22561_v21  ;;  %v2678_v3 = vsub.f32 %v22840_v54, %v26305_v13 }
  0xa0   :  { %16666 = vmatmul.mubr.f32.vlgmr.msra.gmra.mrb[32].mxu1 %v22399_v14  ;;  %877 = vmatprep.mubr.f32.mxu0 %v26748_v1 }
  0xa1   :  { %16668 = vmatprep.mubr.f32.mxu1 %v22411_v20  ;;  %16690 = vmatpush3.msra.mxu1 %v22716_v11  ;;  %v2679_v18 = vand.u32 4294901760, %v2678_v3  ;;  %v2691_v11 = vand.u32 4294901760, %v2690_v40  ;;  %v23003_v40 = vld [vmem:[#allocation3 + $0x60] sm:$0xff] }
  0xa2   :  { %16715 = vmatprep.subr.mxu1 %v22487_v52 }
  0xa3   :  { %881 = vmatmul.mubr.f32.gmra.mrb[16].mxu0 %v22583_v41  ;;  %v22863_v36 = vpack.c.bf16 %v2691_v11, %v2679_v18  ;;  %v23012_v11 = vld [vmem:[#allocation3 + $0x98] sm:$0xff] }
  0xa4   :  { %16669 = vmatmul.mubr.f32.gmra.mrb[34].mxu1 %v22419_v23  ;;  %886 = vmatprep.mubr.f32.mxu0 %v26748_v1  ;;  %v26319_v13 = vand.u32 4294901760, %v23012_v11 }
  0xa5   :  { %16671 = vmatprep.mubr.f32.mxu1 %v22440_v31  ;;  %26762 = vst [vmem:[#allocation18_spill] sm:$0xff] %v22863_v36 }
  0xa7   :  { %890 = vmatmul.mubr.f32.gmra.mrb[18].mxu0 %v22603_v58 }
  0xa8   :  { %16672 = vmatmul.mubr.f32.gmra.mrb[36].mxu1 %v22471_v45  ;;  %895 = vmatprep.mubr.f32.mxu0 %v26748_v1 }
  0xa9   :  { %16674 = vmatprep.mubr.f32.mxu1 %v22501_v57 }
  0xab   :  { %899 = vmatmul.mubr.f32.gmra.mrb[20].mxu0 %v26752_v17 }
  0xac   :  { %16675 = vmatmul.mubr.f32.gmra.mrb[38].mxu1 %v26753_v19  ;;  %904 = vmatprep.mubr.f32.mxu0 %v26748_v1 }
  0xad   :  { %16677 = vmatprep.mubr.f32.mxu1 %v22545_v8 }
  0xaf   :  { %908 = vmatmul.mubr.f32.gmra.mrb[22].mxu0 %v26754_v27 }
  0xb0   :  { %16678 = vmatmul.mubr.f32.gmra.mrb[40].mxu1 %v22566_v32  ;;  %913 = vmatprep.mubr.f32.mxu0 %v26748_v1 }
  0xb1   :  { %16680 = vmatprep.mubr.f32.mxu1 %v22573_v34 }
  0xb3   :  { %917 = vmatmul.mubr.f32.gmra.mrb[24].mxu0 %v22654_v4 }
  0xb4   :  { %16681 = vmatmul.mubr.f32.gmra.mrb[42].mxu1 %v22593_v48  ;;  %922 = vmatprep.mubr.f32.mxu0 %v26748_v1 }
  0xb5   :  { %16683 = vmatprep.mubr.f32.mxu1 %v22613_v2 }
  0xb7   :  { %926 = vmatmul.mubr.f32.gmra.mrb[26].mxu0 %v22680_v9 }
  0xb8   :  { %16684 = vmatmul.mubr.f32.gmra.mrb[44].mxu1 %v22645_v55  ;;  %931 = vmatprep.mubr.f32.mxu0 %v26748_v1 }
  0xb9   :  { %16686 = vmatprep.mubr.f32.mxu1 %v22665_v16 }
  0xbb   :  { %935 = vmatmul.mubr.f32.gmra.mrb[28].mxu0 %v26757_v5 }
  0xbc   :  { %16687 = vmatmul.mubr.f32.gmra.mrb[46].mxu1 %v22685_v62  ;;  %940 = vmatprep.mubr.f32.mxu0 %v26748_v1 }
  0xbd   :  { %16691 = vmatprep.mubr.f32.mxu1 %v26758_v51 }
  0xbf   :  { %944 = vmatmul.mubr.f32.gmra.mrb[30].mxu0 %v22710_v22 }
  0xc0   :  { %16692 = vmatmul.mubr.f32.vlgmr.msra.gmra.mrb[32].mxu1 %v26759_v15  ;;  %1020 = vmatprep.mubr.f32.mxu0 %v26748_v1  ;;  %v23005_v15 = vld [vmem:[#allocation3 + $0x78] sm:$0xff] }
  0xc1   :  { %16694 = vmatprep.mubr.f32.mxu1 %v26760_v26  ;;  %16716 = vmatpush3.msra.mxu1 %v22487_v52  ;;  %v23014_v26 = vld [vmem:[#allocation3 + $0xb0] sm:$0xff] }
  0xc2   :  { %16741 = vmatprep.subr.mxu1 %v22727_v35 }
  0xc3   :  { %1022 = vmatmul.mubr.f32.vlgmr.msra.gmra.mrb[0].mxu0 %v22392_v10 }
  0xc4   :  { %16695 = vmatmul.mubr.f32.gmra.mrb[34].mxu1 %v26763_v30  ;;  %1136 = vmatpush1.msra.mxu0 %v26764_v28  ;;  %v26317_v28 = vand.u32 4294901760, %v23003_v40 }
  0xc5   :  { %1027 = vmatprep.mubr.f32.mxu0 %v26748_v1  ;;  %16697 = vmatprep.mubr.f32.mxu1 %v26765_v39  ;;  %v26316_v39 = vand.u32 4294901760, %v23005_v15 }
  0xc6   :  { %18474 = vmatprep.subr.bf16.mxu0 %v22861_v42 }
  0xc7   :  { %1029 = vmatmul.mubr.f32.gmra.mrb[2].mxu0 %v22399_v14 }
  0xc8   :  { %16698 = vmatmul.mubr.f32.gmra.mrb[36].mxu1 %v22490_v53  ;;  %1034 = vmatprep.mubr.f32.mxu0 %v26748_v1  ;;  %v22936_v53 = vld [vmem:[#allocation3 + $0x10] sm:$0xff] }
  0xc9   :  { %16700 = vmatprep.mubr.f32.mxu1 %v22523_v63  ;;  %v22944_v63 = vld [vmem:[#allocation3 + $0x18] sm:$0xff] }
  0xcb   :  { %1036 = vmatmul.mubr.f32.gmra.mrb[4].mxu0 %v22411_v20 }
  0xcc   :  { %16701 = vmatmul.mubr.f32.gmra.mrb[38].mxu1 %v22543_v7  ;;  %1041 = vmatprep.mubr.f32.mxu0 %v26748_v1  ;;  %v22948_v7 = vld [vmem:[#allocation3 + $0x50] sm:$0xff] }
  0xcd   :  { %16703 = vmatprep.mubr.f32.mxu1 %v22564_v24 }
  0xcf   :  { %1043 = vmatmul.mubr.f32.gmra.mrb[6].mxu0 %v22419_v23 }
  0xd0   :  { %16704 = vmatmul.mubr.f32.gmra.mrb[40].mxu1 %v22586_v43  ;;  %1048 = vmatprep.mubr.f32.mxu0 %v26748_v1 }
  0xd1   :  { %16706 = vmatprep.mubr.f32.mxu1 %v22606_v59 }
  0xd3   :  { %1050 = vmatmul.mubr.f32.gmra.mrb[8].mxu0 %v22440_v31 }
  0xd4   :  { %16707 = vmatmul.mubr.f32.gmra.mrb[42].mxu1 %v22625_v12  ;;  %1055 = vmatprep.mubr.f32.mxu0 %v26748_v1  ;;  %v26306_v12 = vand.u32 4294901760, %v22948_v7 }
  0xd5   :  { %16709 = vmatprep.mubr.f32.mxu1 %v22634_v33  ;;  %v22964_v33 = vld [vmem:[#allocation3 + $0x30] sm:$0xff] }
  0xd6   :  { %v26310_v49 = vand.u32 4294901760, %v22964_v33 }
  0xd7   :  { %1057 = vmatmul.mubr.f32.gmra.mrb[10].mxu0 %v22471_v45 }
  0xd8   :  { %16710 = vmatmul.mubr.f32.gmra.mrb[44].mxu1 %v22663_v0  ;;  %1062 = vmatprep.mubr.f32.mxu0 %v26748_v1  ;;  %v22916_v0 = vpack.c.bf16 %v22842_v61, %v22840_v54 }
  0xd9   :  { %16712 = vmatprep.mubr.f32.mxu1 %v22683_v46  ;;  %v22966_v46 = vld [vmem:[#allocation3 + $0x48] sm:$0xff] }
  0xda   :  { %26766 = vst [vmem:[#allocation10_spill] sm:$0xff] %v22916_v0 }
  0xdb   :  { %1064 = vmatmul.mubr.f32.gmra.mrb[12].mxu0 %v22501_v57 }
  0xdc   :  { %16713 = vmatmul.mubr.f32.gmra.mrb[46].mxu1 %v22699_v50  ;;  %1069 = vmatprep.mubr.f32.mxu0 %v26748_v1  ;;  %v22980_v50 = vld [vmem:[#allocation3 + $0x80] sm:$0xff] }
  0xdd   :  { %16717 = vmatprep.mubr.f32.mxu1 %v22424_v25  ;;  %v26312_v3 = vand.u32 4294901760, %v22980_v50 }
  0xdf   :  { %1071 = vmatmul.mubr.f32.gmra.mrb[14].mxu0 %v26753_v19 }
  0xe0   :  { %16718 = vmatmul.mubr.f32.vlgmr.msra.gmra.mrb[32].mxu1 %v22435_v29  ;;  %1076 = vmatprep.mubr.f32.mxu0 %v26748_v1 }
  0xe1   :  { %16720 = vmatprep.mubr.f32.mxu1 %v22453_v37  ;;  %16742 = vmatpush3.msra.mxu1 %v22727_v35  ;;  %v22978_v35 = vld [vmem:[#allocation3 + $0x68] sm:$0xff] }
  0xe2   :  { %16767 = vmatprep.subr.mxu1 %v22487_v52  ;;  %v26313_v51 = vand.u32 4294901760, %v22978_v35 }
  0xe3   :  { %1078 = vmatmul.mubr.f32.gmra.mrb[16].mxu0 %v22545_v8 }
  0xe4   :  { %16721 = vmatmul.mubr.f32.gmra.mrb[34].mxu1 %v22469_v44  ;;  %1083 = vmatprep.mubr.f32.mxu0 %v26748_v1  ;;  %v23034_v38 = vpack.c.bf16 %v26312_v3, %v26313_v51  ;;  %v23059_v51 = vpack.c.bf16 %v26316_v39, %v26317_v28  ;;  %v23074_v39 = vld [vmem:[#allocation3 + $0xd8] sm:$0xff] }
  0xe5   :  { %16723 = vmatprep.mubr.f32.mxu1 %v22499_v56  ;;  %v22938_v56 = vld [vmem:[#allocation3 + $0x28] sm:$0xff] }
  0xe6   :  { %v26314_v24 = vand.u32 4294901760, %v22938_v56  ;;  %26781 = vst [vmem:[#allocation28_spill] sm:$0xff] %v23034_v38  ;;  %26784 = vst [vmem:[#allocation31_spill] sm:$0xff] %v23059_v51 }
  0xe7   :  { %1085 = vmatmul.mubr.f32.gmra.mrb[18].mxu0 %v22566_v32 }
  0xe8   :  { %16724 = vmatmul.mubr.f32.gmra.mrb[36].mxu1 %v22512_v60  ;;  %1090 = vmatprep.mubr.f32.mxu0 %v26748_v1  ;;  %v22942_v60 = vld [vmem:[#allocation3] sm:$0xff] }
  0xe9   :  { %16726 = vmatprep.mubr.f32.mxu1 %v22540_v6  ;;  %v22946_v6 = vld [vmem:[#allocation3 + $0x38] sm:$0xff]  ;;  %v26311_v43 = vand.u32 4294901760, %v22942_v60 }
  0xea   :  { %v26307_v59 = vand.u32 4294901760, %v22946_v6 }
  0xeb   :  { %1092 = vmatmul.mubr.f32.gmra.mrb[20].mxu0 %v22573_v34 }
  0xec   :  { %16727 = vmatmul.mubr.f32.gmra.mrb[38].mxu1 %v22561_v21  ;;  %1097 = vmatprep.mubr.f32.mxu0 %v26748_v1  ;;  %v22996_v47 = vpack.c.bf16 %v26306_v12, %v26307_v59  ;;  %v26318_v12 = vand.u32 4294901760, %v23014_v26  ;;  %v23038_v59 = vld [vmem:[#allocation3 + $0x90] sm:$0xff] }
  0xed   :  { %16729 = vmatprep.mubr.f32.mxu1 %v22583_v41 }
  0xee   :  { %26777 = vst [vmem:[#allocation24_spill] sm:$0xff] %v22996_v47 }
  0xef   :  { %1099 = vmatmul.mubr.f32.gmra.mrb[22].mxu0 %v22593_v48 }
  0xf0   :  { %16730 = vmatmul.mubr.f32.gmra.mrb[40].mxu1 %v22603_v58  ;;  %1104 = vmatprep.mubr.f32.mxu0 %v26748_v1  ;;  %v26308_v58 = vand.u32 4294901760, %v22944_v63 }
  0xf1   :  { %16732 = vmatprep.mubr.f32.mxu1 %v26752_v17 }
  0xf3   :  { %v22922_v25 = vpop.f32.mrb[0].mxu1  ;;  %1106 = vmatmul.mubr.f32.gmra.mrb[24].mxu0 %v22613_v2 }
  0xf4   :  { %26767 = vst [vmem:[#allocation11_spill] sm:$0xff] %v22922_v25  ;;  %16733 = vmatmul.mubr.f32.gmra.mrb[42].mxu1 %v26754_v27  ;;  %v22926_v29 = vpop.f32.mrb[1].mxu1  ;;  %1111 = vmatprep.mubr.f32.mxu0 %v26748_v1  ;;  %v22990_v27 = vpack.c.bf16 %v26308_v58, %v26311_v43  ;;  %v23040_v58 = vld [vmem:[#allocation3 + $0xa8] sm:$0xff]  ;;  %v23048_v43 = vld [vmem:[#allocation3 + $0xe0] sm:$0xff]  ;;  %v2516_v25 = vld [vmem:[#allocation3 + $0x58] sm:$0xff] }
  0xf5   :  { %26768 = vst [vmem:[#allocation12_spill] sm:$0xff] %v22926_v29  ;;  %16735 = vmatprep.mubr.f32.mxu1 %v22654_v4 }
  0xf6   :  { %26776 = vst [vmem:[#allocation23_spill] sm:$0xff] %v22990_v27 }
  0xf7   :  { %v22930_v37 = vpop.f32.mrb[2].mxu1  ;;  %1113 = vmatmul.mubr.f32.gmra.mrb[26].mxu0 %v22645_v55 }
  0xf8   :  { %26769 = vst [vmem:[#allocation13_spill] sm:$0xff] %v22930_v37  ;;  %16736 = vmatmul.mubr.f32.gmra.mrb[44].mxu1 %v22680_v9  ;;  %v22934_v44 = vpop.f32.mrb[3].mxu1  ;;  %1118 = vmatprep.mubr.f32.mxu0 %v26748_v1  ;;  %v26315_v9 = vand.u32 4294901760, %v22936_v53 }
  0xf9   :  { %26770 = vst [vmem:[#allocation9_spill] sm:$0xff] %v22934_v44  ;;  %16738 = vmatprep.mubr.f32.mxu1 %v26757_v5  ;;  %v26309_v5 = vand.u32 4294901760, %v22966_v46  ;;  %v26801_v44 = vand.u32 4294901760, %v23074_v39 }
  0xfb   :  { %v22950_v21 = vpop.f32.mrb[4].mxu1  ;;  %1120 = vmatmul.mubr.f32.gmra.mrb[28].mxu0 %v22665_v16  ;;  %v23026_v30 = vpack.c.bf16 %v26309_v5, %v26310_v49  ;;  %v23046_v49 = vld [vmem:[#allocation3 + $0xc8] sm:$0xff] }
  0xfc   :  { %26771 = vst [vmem:[#allocation14_spill] sm:$0xff] %v22950_v21  ;;  %16739 = vmatmul.mubr.f32.gmra.mrb[46].mxu1 %v22710_v22  ;;  %v22956_v41 = vpop.f32.mrb[5].mxu1  ;;  %1125 = vmatprep.mubr.f32.mxu0 %v26748_v1  ;;  %v22974_v22 = vpack.c.bf16 %v26314_v24, %v26315_v9  ;;  %v23082_v24 = vld [vmem:[#allocation3 + $0xf8] sm:$0xff] }
  0xfd   :  { %26772 = vst [vmem:[#allocation19_spill] sm:$0xff] %v22956_v41  ;;  %16743 = vmatprep.mubr.f32.mxu1 %v22392_v10  ;;  %26780 = vst [vmem:[#allocation27_spill] sm:$0xff] %v23026_v30  ;;  %v26803_v61 = vand.u32 4294901760, %v23082_v24 }
  0xfe   :  { %26774 = vst [vmem:[#allocation21_spill] sm:$0xff] %v22974_v22 }
  0xff   :  { %v22968_v4 = vpop.f32.mrb[6].mxu1  ;;  %1127 = vmatmul.mubr.f32.gmra.mrb[30].mxu0 %v22685_v62 }
 0x100   :  { %26773 = vst [vmem:[#allocation20_spill] sm:$0xff] %v22968_v4  ;;  %16744 = vmatmul.mubr.f32.vlgmr.msra.gmra.mrb[32].mxu1 %v22399_v14  ;;  %v22982_v17 = vpop.f32.mrb[7].mxu1  ;;  %1199 = vmatprep.mubr.f32.mxu0 %v26748_v1  ;;  %v26792_v4 = vand.u32 4294901760, %v23048_v43 }
 0x101   :  { %26775 = vst [vmem:[#allocation22_spill] sm:$0xff] %v22982_v17  ;;  %16746 = vmatprep.mubr.f32.mxu1 %v22411_v20  ;;  %16768 = vmatpush3.msra.mxu1 %v22487_v52  ;;  %v26791_v17 = vand.u32 4294901760, %v23046_v49 }
 0x102   :  { %18666 = vmatprep.subr.bf16.mxu1 %v22974_v22 }
 0x103   :  { %v23008_v18 = vpop.f32.mrb[8].mxu1  ;;  %1201 = vmatmul.mubr.f32.vlgmr.msra.gmra.mrb[0].mxu0 %v22392_v10  ;;  %v23102_v41 = vpack.c.bf16 %v26792_v4, %v26791_v17  ;;  %v23118_v4 = vld [vmem:[#allocation3 + $0x140] sm:$0xff] }
 0x104   :  { %26778 = vst [vmem:[#allocation25_spill] sm:$0xff] %v23008_v18  ;;  %16747 = vmatmul.mubr.f32.gmra.mrb[34].mxu1 %v22419_v23  ;;  %v23016_v52 = vpop.f32.mrb[9].mxu1  ;;  %18476 = vmatpush1.bf16.msra.mxu0 %v22990_v27  ;;  %v23072_v18 = vld [vmem:[#allocation3 + $0xc0] sm:$0xff]  ;;  %26799 = vst [vmem:[#allocation42_spill] sm:$0xff] %v23118_v4  ;;  %v26813_v27 = vand.u32 4294901760, %v23118_v4 }
 0x105   :  { %26779 = vst [vmem:[#allocation26_spill] sm:$0xff] %v23016_v52  ;;  %1206 = vmatprep.mubr.f32.mxu0 %v26748_v1  ;;  %16749 = vmatprep.mubr.f32.mxu1 %v22440_v31  ;;  %v26789_v52 = vand.u32 4294901760, %v23040_v58  ;;  %26793 = vst [vmem:[#allocation36_spill] sm:$0xff] %v23102_v41  ;;  %v2513_v17 = vld [vmem:[#allocation3 + $0x40] sm:$0xff]  ;;  %v26800_v37 = vand.u32 4294901760, %v23072_v18 }
 0x106   :  { %18478 = vmatprep.subr.bf16.mxu0 %v22996_v47 }
 0x107   :  { %v23042_v5 = vpop.f32.mrb[10].mxu1  ;;  %1208 = vmatmul.mubr.f32.gmra.mrb[2].mxu0 %v22399_v14 }
 0x108   :  { %26782 = vst [vmem:[#allocation29_spill] sm:$0xff] %v23042_v5  ;;  %16750 = vmatmul.mubr.f32.gmra.mrb[36].mxu1 %v22471_v45  ;;  %v23050_v3 = vpop.f32.mrb[11].mxu1  ;;  %1213 = vmatprep.mubr.f32.mxu0 %v26748_v1 }
 0x109   :  { %26783 = vst [vmem:[#allocation30_spill] sm:$0xff] %v23050_v3  ;;  %16752 = vmatprep.mubr.f32.mxu1 %v22501_v57  ;;  %18480 = vmatpush1.bf16.msra.mxu0 %v23026_v30  ;;  %v23068_v3 = vpack.c.bf16 %v26318_v12, %v26319_v13  ;;  %v23084_v12 = vld [vmem:[#allocation3 + $0x110] sm:$0xff]  ;;  %v26788_v13 = vand.u32 4294901760, %v23038_v59 }
 0x10a   :  { %18482 = vmatprep.subr.bf16.mxu0 %v23034_v38  ;;  %v26804_v54 = vand.u32 4294901760, %v23084_v12  ;;  %v23140_v38 = vld [vmem:[#allocation3 + $0x120] sm:$0xff] }
 0x10b   :  { %26785 = vst [vmem:[#allocation32_spill] sm:$0xff] %v23068_v3  ;;  %v23076_v28 = vpop.f32.mrb[12].mxu1  ;;  %1215 = vmatmul.mubr.f32.gmra.mrb[4].mxu0 %v22411_v20  ;;  %v23093_v5 = vpack.c.bf16 %v26789_v52, %v26788_v13  ;;  %v23108_v13 = vld [vmem:[#allocation3 + $0xf0] sm:$0xff]  ;;  %v23110_v52 = vld [vmem:[#allocation3 + $0x108] sm:$0xff]  ;;  %26806 = vst [vmem:[#allocation45_spill] sm:$0xff] %v23140_v38 }
 0x10c   :  { %26786 = vst [vmem:[#allocation33_spill] sm:$0xff] %v23076_v28  ;;  %16753 = vmatmul.mubr.f32.gmra.mrb[38].mxu1 %v26753_v19  ;;  %v23080_v9 = vpop.f32.mrb[13].mxu1  ;;  %1220 = vmatprep.mubr.f32.mxu0 %v26748_v1  ;;  %26795 = vst [vmem:[#allocation38_spill] sm:$0xff] %v23108_v13  ;;  %v23116_v28 = vld [vmem:[#allocation3 + $0x128] sm:$0xff]  ;;  %v26343_v29 = vand.u32 4294901760, %v23108_v13  ;;  %v23196_v13 = vld [vmem:[#allocation3 + $0xd0] sm:$0xff] }
 0x10d   :  { %26787 = vst [vmem:[#allocation34_spill] sm:$0xff] %v23080_v9  ;;  %16755 = vmatprep.mubr.f32.mxu1 %v22545_v8  ;;  %18484 = vmatpush1.bf16.msra.mxu0 %v23059_v51  ;;  %26790 = vst [vmem:[#allocation35_spill] sm:$0xff] %v23093_v5  ;;  %v26810_v51 = vand.u32 4294901760, %v23110_v52  ;;  %v26812_v47 = vand.u32 4294901760, %v23116_v28 }
 0x10e   :  { %18486 = vmatprep.subr.bf16.mxu0 %v23068_v3  ;;  %26796 = vst [vmem:[#allocation39_spill] sm:$0xff] %v23110_v52  ;;  %26798 = vst [vmem:[#allocation41_spill] sm:$0xff] %v23116_v28  ;;  %v23136_v3 = vpack.c.bf16 %v26804_v54, %v26803_v61  ;;  %v3451_v54 = vand.u32 4294901760, %v2513_v17  ;;  %v3454_v61 = vand.u32 4294901760, %v2516_v25  ;;  %v23192_v28 = vld [vmem:[#allocation3 + $0xa0] sm:$0xff]  ;;  %v23194_v52 = vld [vmem:[#allocation3 + $0xb8] sm:$0xff] }
 0x10f   :  { %v23104_v21 = vpop.f32.mrb[14].mxu1  ;;  %1222 = vmatmul.mubr.f32.gmra.mrb[6].mxu0 %v22419_v23  ;;  %v23166_v42 = vpack.c.bf16 %v26813_v27, %v26812_v47  ;;  %v2519_v27 = vld [vmem:[#allocation3 + $0x70] sm:$0xff]  ;;  %v2522_v47 = vld [vmem:[#allocation3 + $0x88] sm:$0xff] }
 0x110   :  { %26794 = vst [vmem:[#allocation37_spill] sm:$0xff] %v23104_v21  ;;  %16756 = vmatmul.mubr.f32.gmra.mrb[40].mxu1 %v22566_v32  ;;  %v23114_v9 = vpop.f32.mrb[15].mxu1  ;;  %1227 = vmatprep.mubr.f32.mxu0 %v26748_v1  ;;  %v23127_v21 = vpack.c.bf16 %v26801_v44, %v26800_v37  ;;  %26805 = vst [vmem:[#allocation44_spill] sm:$0xff] %v23136_v3  ;;  %v23142_v37 = vld [vmem:[#allocation3 + $0x138] sm:$0xff]  ;;  %v23178_v30 = vpack.c.bf16 %v3454_v61, %v3451_v54 }
 0x111   :  { %26797 = vst [vmem:[#allocation40_spill] sm:$0xff] %v23114_v9  ;;  %16758 = vmatprep.mubr.f32.mxu1 %v22573_v34  ;;  %18488 = vmatpush1.bf16.msra.mxu0 %v23093_v5  ;;  %26807 = vst [vmem:[#allocation46_spill] sm:$0xff] %v23142_v37  ;;  %v23146_v44 = vld [vmem:[#allocation3 + $0x158] sm:$0xff]  ;;  %v23148_v9 = vld [vmem:[#allocation3 + $0x170] sm:$0xff]  ;;  %v23157_v5 = vpack.c.bf16 %v26810_v51, %v26343_v29  ;;  %v26817_v0 = vand.u32 4294901760, %v23142_v37 }
 0x112   :  { %26802 = vst [vmem:[#allocation43_spill] sm:$0xff] %v23127_v21  ;;  %18490 = vmatprep.subr.bf16.mxu0 %v23102_v41  ;;  %26808 = vst [vmem:[#allocation47_spill] sm:$0xff] %v23146_v44  ;;  %v26360_v41 = vand.u32 4294901760, %v23140_v38  ;;  %v23172_v51 = vld [vmem:[#allocation3 + $0x150] sm:$0xff]  ;;  %v23174_v29 = vld [vmem:[#allocation3 + $0x168] sm:$0xff]  ;;  %v26822_v38 = vand.u32 4294901760, %v23148_v9 }
 0x113   :  { %1229 = vmatmul.mubr.f32.gmra.mrb[8].mxu0 %v22440_v31  ;;  %26809 = vst [vmem:[#allocation48_spill] sm:$0xff] %v23148_v9  ;;  %26811 = vst [vmem:[#allocation49_spill] sm:$0xff] %v23157_v5  ;;  %v23218_v9 = vsub.f32 %v2516_v25, %v3454_v61 }
 0x114   :  { %16759 = vmatmul.mubr.f32.gmra.mrb[42].mxu1 %v22593_v48  ;;  %1234 = vmatprep.mubr.f32.mxu0 %v26748_v1  ;;  %26814 = vst [vmem:[#allocation50_spill] sm:$0xff] %v23166_v42  ;;  %26815 = vst [vmem:[#allocation51_spill] sm:$0xff] %v23174_v29 }
 0x115   :  { %16761 = vmatprep.mubr.f32.mxu1 %v22613_v2  ;;  %18492 = vmatpush1.bf16.msra.mxu0 %v23127_v21  ;;  %26816 = vst [vmem:[#allocation52_spill] sm:$0xff] %v23178_v30  ;;  %v23185_v21 = vpack.c.bf16 %v26817_v0, %v26360_v41  ;;  %26827 = vst [vmem:[#allocation58_spill] sm:$0xff] %v23218_v9  ;;  %v26829_v41 = vand.u32 4294901760, %v22944_v63 }
 0x116   :  { %18494 = vmatprep.subr.bf16.mxu0 %v23136_v3  ;;  %v26819_v3 = vand.u32 4294901760, %v22936_v53 }
 0x117   :  { %1236 = vmatmul.mubr.f32.gmra.mrb[10].mxu0 %v22471_v45  ;;  %26818 = vst [vmem:[#allocation53_spill] sm:$0xff] %v23185_v21  ;;  %v23230_v0 = vsub.f32 %v22944_v63, %v26829_v41  ;;  %v26836_v41 = vand.u32 4294901760, %v23174_v29  ;;  %v26839_v63 = vand.u32 4294901760, %v23192_v28  ;;  %v26848_v29 = vand.u32 4294901760, %v23218_v9 }
 0x118   :  { %16762 = vmatmul.mubr.f32.gmra.mrb[44].mxu1 %v22645_v55  ;;  %1241 = vmatprep.mubr.f32.mxu0 %v26748_v1  ;;  %v23190_v4 = vsub.f32 %v22936_v53, %v26819_v3  ;;  %v26824_v53 = vand.u32 4294901760, %v22938_v56 }
 0x119   :  { %16764 = vmatprep.mubr.f32.mxu1 %v22665_v16  ;;  %18496 = vmatpush1.bf16.msra.mxu0 %v23157_v5  ;;  %v26821_v5 = vand.u32 4294901760, %v23146_v44  ;;  %v23216_v44 = vsub.f32 %v2513_v17, %v3451_v54  ;;  %26830 = vst [vmem:[#allocation59_spill] sm:$0xff] %v23230_v0  ;;  %v26831_v17 = vand.u32 4294901760, %v22946_v6  ;;  %v26840_v54 = vand.u32 4294901760, %v23194_v52 }
 0x11a   :  { %26820 = vst [vmem:[#allocation54_spill] sm:$0xff] %v23190_v4  ;;  %18498 = vmatprep.subr.bf16.mxu0 %v23166_v42  ;;  %v23210_v3 = vsub.f32 %v22938_v56, %v26824_v53  ;;  %v23214_v42 = vld [vmem:[#allocation3 + $0xe8] sm:$0xff]  ;;  %v3457_v56 = vand.u32 4294901760, %v2519_v27  ;;  %v3460_v53 = vand.u32 4294901760, %v2522_v47 }
 0x11b   :  { %v23203_v37 = vpack.c.bf16 %v26822_v38, %v26821_v5  ;;  %1243 = vmatmul.mubr.f32.gmra.mrb[12].mxu0 %v22501_v57  ;;  %26826 = vst [vmem:[#allocation57_spill] sm:$0xff] %v23216_v44  ;;  %v26828_v38 = vand.u32 4294901760, %v22942_v60  ;;  %v23235_v25 = vsub.f32 %v22946_v6, %v26831_v17  ;;  %v26835_v6 = vand.u32 4294901760, %v23172_v51 }
 0x11c   :  { %26825 = vst [vmem:[#allocation56_spill] sm:$0xff] %v23210_v3  ;;  %16765 = vmatmul.mubr.f32.gmra.mrb[46].mxu1 %v22685_v62  ;;  %1248 = vmatprep.mubr.f32.mxu0 %v26748_v1 }
 0x11d   :  { %26823 = vst [vmem:[#allocation55_spill] sm:$0xff] %v23203_v37  ;;  %v23223_v5 = vsub.f32 %v22942_v60, %v26828_v38  ;;  %16769 = vmatprep.mubr.f32.mxu1 %v22392_v10  ;;  %26832 = vst [vmem:[#allocation60_spill] sm:$0xff] %v23235_v25  ;;  %18500 = vmatpush1.bf16.msra.mxu0 %v23185_v21  ;;  %v26833_v10 = vand.u32 4294901760, %v22948_v7  ;;  %v23252_v17 = vpack.c.bf16 %v26836_v41, %v26835_v6  ;;  %v23267_v41 = vld [vmem:[#allocation3 + $0x118] sm:$0xff]  ;;  %v23279_v60 = vld [vmem:[#allocation3 + $0x130] sm:$0xff] }
 0x11e   :  { %18502 = vmatprep.subr.bf16.mxu0 %v23203_v37  ;;  %v23265_v6 = vpack.c.bf16 %v3460_v53, %v3457_v56  ;;  %v23282_v21 = vsub.f32 %v2519_v27, %v3457_v56  ;;  %v26846_v37 = vand.u32 4294901760, %v23210_v3  ;;  %v23303_v56 = vld [vmem:[#allocation3 + $0x148] sm:$0xff] }
 0x11f   :  { %v23244_v38 = vsub.f32 %v22948_v7, %v26833_v10  ;;  %26837 = vst [vmem:[#allocation62_spill] sm:$0xff] %v23252_v17  ;;  %1250 = vmatmul.mubr.f32.gmra.mrb[14].mxu0 %v26753_v19  ;;  %v23258_v7 = vld [vmem:[#allocation3 + $0x100] sm:$0xff]  ;;  %v23277_v10 = vpack.c.bf16 %v26840_v54, %v26839_v63  ;;  %v26845_v54 = vand.u32 4294901760, %v23190_v4 }
 0x120   :  { %16770 = vmatmul.mubr.f32.vlgmr.msra.gmra.mrb[32].mxu1 %v22399_v14  ;;  %1255 = vmatprep.mubr.f32.mxu0 %v26748_v1  ;;  %26838 = vst [vmem:[#allocation63_spill] sm:$0xff] %v23265_v6  ;;  %v26842_v14 = vand.u32 4294901760, %v23196_v13  ;;  %v3546_v27 = vsub.f32 %v23210_v3, %v26846_v37  ;;  %v3560_v37 = vsub.f32 %v23218_v9, %v26848_v29  ;;  %v26850_v3 = vand.u32 4294901760, %v23230_v0 }
 0x121   :  { %26834 = vst [vmem:[#allocation61_spill] sm:$0xff] %v23244_v38  ;;  %18668 = vmatpush3.bf16.msra.mxu1 %v22974_v22  ;;  %16772 = vmatprep.mubr.f32.mxu1 %v22411_v20  ;;  %26841 = vst [vmem:[#allocation64_spill] sm:$0xff] %v23277_v10  ;;  %v23284_v22 = vsub.f32 %v2522_v47, %v3460_v53  ;;  %v26843_v20 = vand.u32 4294901760, %v23214_v42  ;;  %v3539_v63 = vsub.f32 %v23190_v4, %v26845_v54  ;;  %v23305_v53 = vld [vmem:[#allocation3 + $0x160] sm:$0xff] }
 0x122   :  { %18670 = vmatprep.subr.bf16.mxu1 %v23178_v30  ;;  %18504 = vmatpush1.bf16.msra.mxu0 %v23252_v17  ;;  %v26849_v17 = vand.u32 4294901760, %v23223_v5  ;;  %v2696_v4 = vsub.f32 %v23230_v0, %v26850_v3  ;;  %v26852_v29 = vand.u32 4294901760, %v22964_v33  ;;  %v26854_v0 = vand.u32 4294901760, %v22966_v46 }
 0x123   :  { %v23290_v61 = vpack.c.bf16 %v26843_v20, %v26842_v14  ;;  %1257 = vmatmul.mubr.f32.gmra.mrb[16].mxu0 %v22545_v8  ;;  %v23307_v14 = vld [vmem:[#allocation3 + $0x178] sm:$0xff]  ;;  %v26847_v20 = vand.u32 4294901760, %v23216_v44  ;;  %18506 = vmatprep.subr.bf16.mxu0 %v22863_v36 }
 0x124   :  { %16773 = vmatmul.mubr.f32.gmra.mrb[34].mxu1 %v22419_v23  ;;  %v2684_v23 = vsub.f32 %v23223_v5, %v26849_v17  ;;  %1262 = vmatprep.mubr.f32.mxu0 %v26748_v1  ;;  %v23330_v9 = vsub.f32 %v22964_v33, %v26852_v29  ;;  %v26853_v17 = vand.u32 4294901760, %v23244_v38  ;;  %v26395_v33 = vand.u32 4294901760, %v23303_v56 }
 0x125   :  { %26844 = vst [vmem:[#allocation65_spill] sm:$0xff] %v23290_v61  ;;  %v3553_v54 = vsub.f32 %v23216_v44, %v26847_v20  ;;  %18672 = vmatpush3.bf16.msra.mxu1 %v23178_v30  ;;  %v26851_v20 = vand.u32 4294901760, %v23235_v25  ;;  %16775 = vmatprep.mubr.f32.mxu1 %v22440_v31  ;;  %v3561_v30 = vand.u32 4294901760, %v3560_v37  ;;  %v26857_v37 = vand.u32 4294901760, %v23284_v22 }
 0x126   :  { %18674 = vmatprep.subr.bf16.mxu1 %v23265_v6  ;;  %v2714_v47 = vsub.f32 %v23244_v38, %v26853_v17  ;;  %v3547_v17 = vand.u32 4294901760, %v3546_v27  ;;  %v2685_v38 = vand.u32 4294901760, %v2684_v23  ;;  %v26856_v27 = vand.u32 4294901760, %v23282_v21 }
 0x127   :  { %v2702_v44 = vsub.f32 %v23235_v25, %v26851_v20  ;;  %v23342_v20 = vsub.f32 %v22966_v46, %v26854_v0  ;;  %v3540_v25 = vand.u32 4294901760, %v3539_v63  ;;  %1264 = vmatmul.mubr.f32.gmra.mrb[18].mxu0 %v22566_v32  ;;  %v3554_v3 = vand.u32 4294901760, %v3553_v54 }
 0x128   :  { %16776 = vmatmul.mubr.f32.gmra.mrb[36].mxu1 %v22471_v45  ;;  %1269 = vmatprep.mubr.f32.mxu0 %v26748_v1  ;;  %v2697_v46 = vand.u32 4294901760, %v2696_v4  ;;  %v26855_v63 = vand.u32 4294901760, %v22978_v35  ;;  %v2715_v45 = vand.u32 4294901760, %v2714_v47  ;;  %v3567_v54 = vsub.f32 %v23282_v21, %v26856_v27 }
 0x129   :  { %18676 = vmatpush3.bf16.msra.mxu1 %v23265_v6  ;;  %v2703_v0 = vand.u32 4294901760, %v2702_v44  ;;  %16778 = vmatprep.mubr.f32.mxu1 %v22501_v57  ;;  %v3574_v4 = vsub.f32 %v23284_v22, %v26857_v37  ;;  %v26858_v23 = vand.u32 4294901760, %v23258_v7  ;;  %v26861_v57 = vand.u32 4294901760, %v23279_v60 }
 0x12a   :  { %v23356_v31 = vsub.f32 %v22978_v35, %v26855_v63  ;;  %18678 = vmatprep.subr.bf16.mxu1 %v23277_v10  ;;  %v26859_v35 = vand.u32 4294901760, %v23267_v41  ;;  %v26863_v27 = vand.u32 4294901760, %v22980_v50  ;;  %v26864_v37 = vand.u32 4294901760, %v23305_v53 }
 0x12b   :  { %v23377_v47 = vpack.c.bf16 %v26395_v33, %v26861_v57  ;;  %1271 = vmatmul.mubr.f32.gmra.mrb[20].mxu0 %v22573_v34  ;;  %v23392_v44 = vpack.c.bf16 %v3547_v17, %v3540_v25  ;;  %v23394_v36 = vpack.c.bf16 %v3561_v30, %v3554_v3  ;;  %v26870_v57 = vand.u32 4294901760, %v23330_v9 }
 0x12c   :  { %v23371_v63 = vpack.c.bf16 %v26859_v35, %v26858_v23  ;;  %v23382_v29 = vsub.f32 %v22980_v50, %v26863_v27  ;;  %16779 = vmatmul.mubr.f32.gmra.mrb[38].mxu1 %v26753_v19  ;;  %v26865_v23 = vand.u32 4294901760, %v23307_v14  ;;  %1276 = vmatprep.mubr.f32.mxu0 %v26748_v1  ;;  %v23398_v50 = vpack.c.bf16 %v2697_v46, %v2685_v38 }
 0x12d   :  { %26862 = vst [vmem:[#allocation67_spill] sm:$0xff] %v23377_v47  ;;  %26867 = vst [vmem:[#allocation69_spill] sm:$0xff] %v23392_v44  ;;  %18680 = vmatpush3.bf16.msra.mxu1 %v23277_v10  ;;  %v23403_v19 = vsub.f32 %v23330_v9, %v26870_v57  ;;  %v26397_v27 = vand.u32 4294901760, %v23356_v31  ;;  %16781 = vmatprep.mubr.f32.mxu1 %v22545_v8  ;;  %v23413_v30 = vpack.c.bf16 %v2715_v45, %v2703_v0 }
 0x12e   :  { %26860 = vst [vmem:[#allocation66_spill] sm:$0xff] %v23371_v63  ;;  %v23390_v35 = vpack.c.bf16 %v26865_v23, %v26864_v37  ;;  %26868 = vst [vmem:[#allocation70_spill] sm:$0xff] %v23394_v36  ;;  %v26871_v37 = vand.u32 4294901760, %v23192_v28  ;;  %18682 = vmatprep.subr.bf16.mxu1 %v23290_v61  ;;  %v3568_v38 = vand.u32 4294901760, %v3567_v54  ;;  %v3575_v3 = vand.u32 4294901760, %v3574_v4 }
 0x12f   :  { %26869 = vst [vmem:[#allocation71_spill] sm:$0xff] %v23398_v50  ;;  %26872 = vst [vmem:[#allocation72_spill] sm:$0xff] %v23413_v30  ;;  %v26873_v17 = vand.u32 4294901760, %v23342_v20  ;;  %v26396_v23 = vand.u32 4294901760, %v23382_v29  ;;  %v26874_v57 = vand.u32 4294901760, %v23194_v52  ;;  %v26876_v0 = vand.u32 4294901760, %v23005_v15  ;;  %1278 = vmatmul.mubr.f32.gmra.mrb[22].mxu0 %v22593_v48 }
 0x130   :  { %26866 = vst [vmem:[#allocation68_spill] sm:$0xff] %v23390_v35  ;;  %v23409_v25 = vsub.f32 %v23192_v28, %v26871_v37  ;;  %v26875_v28 = vand.u32 4294901760, %v23003_v40  ;;  %16782 = vmatmul.mubr.f32.gmra.mrb[40].mxu1 %v22566_v32  ;;  %v26877_v54 = vand.u32 4294901760, %v23012_v11  ;;  %1283 = vmatprep.mubr.f32.mxu0 %v26748_v1  ;;  %v2709_v32 = vand.u32 4294901760, %v23403_v19 }
 0x131   :  { %v2720_v46 = vsub.f32 %v23342_v20, %v26873_v17  ;;  %v23422_v33 = vsub.f32 %v23194_v52, %v26874_v57  ;;  %v23432_v45 = vsub.f32 %v23005_v15, %v26876_v0  ;;  %v26878_v52 = vand.u32 4294901760, %v23014_v26  ;;  %18684 = vmatpush3.bf16.msra.mxu1 %v23290_v61  ;;  %16784 = vmatprep.mubr.f32.mxu1 %v22573_v34 }
 0x132   :  { %v23427_v8 = vsub.f32 %v23003_v40, %v26875_v28  ;;  %v23439_v4 = vsub.f32 %v23012_v11, %v26877_v54  ;;  %v26879_v40 = vand.u32 4294901760, %v23196_v13  ;;  %v2726_v15 = vsub.f32 %v23356_v31, %v26397_v27  ;;  %18686 = vmatprep.subr.bf16.mxu1 %v23371_v63 }
 0x133   :  { %v23444_v37 = vsub.f32 %v23014_v26, %v26878_v52  ;;  %v26398_v11 = vand.u32 4294901760, %v23409_v25  ;;  %v26880_v26 = vand.u32 4294901760, %v23214_v42  ;;  %v2721_v28 = vand.u32 4294901760, %v2720_v46  ;;  %1285 = vmatmul.mubr.f32.gmra.mrb[24].mxu0 %v22613_v2 }
 0x134   :  { %v23449_v17 = vsub.f32 %v23196_v13, %v26879_v40  ;;  %v23465_v13 = vpack.c.bf16 %v3575_v3, %v3568_v38  ;;  %v26882_v19 = vand.u32 4294901760, %v23038_v59  ;;  %v26883_v54 = vand.u32 4294901760, %v23040_v58  ;;  %v23477_v40 = vpop.f32.mrb[16].mxu1  ;;  %16785 = vmatmul.mubr.f32.gmra.mrb[42].mxu1 %v22593_v48  ;;  %1290 = vmatprep.mubr.f32.mxu0 %v26748_v1 }
 0x135   :  { %v23461_v57 = vsub.f32 %v23214_v42, %v26880_v26  ;;  %26884 = vst [vmem:[#allocation74_spill] sm:$0xff] %v23477_v40  ;;  %v2738_v34 = vsub.f32 %v23382_v29, %v26396_v23  ;;  %v26399_v42 = vand.u32 4294901760, %v23422_v33  ;;  %v26400_v38 = vand.u32 4294901760, %v23427_v8  ;;  %v23485_v46 = vpop.f32.mrb[17].mxu1  ;;  %18688 = vmatpush3.bf16.msra.mxu1 %v23371_v63  ;;  %16787 = vmatprep.mubr.f32.mxu1 %v22613_v2 }
 0x136   :  { %26881 = vst [vmem:[#allocation73_spill] sm:$0xff] %v23465_v13  ;;  %v23470_v0 = vsub.f32 %v23038_v59, %v26882_v19  ;;  %v23475_v52 = vsub.f32 %v23040_v58, %v26883_v54  ;;  %v26401_v3 = vand.u32 4294901760, %v23432_v45  ;;  %26885 = vst [vmem:[#allocation75_spill] sm:$0xff] %v23485_v46  ;;  %v26886_v19 = vand.u32 4294901760, %v23046_v49  ;;  %18690 = vmatprep.subr.bf16.mxu1 %v23377_v47 }
 0x137   :  { %v2727_v23 = vand.u32 4294901760, %v2726_v15  ;;  %v23502_v48 = vsub.f32 %v23409_v25, %v26398_v11  ;;  %v26887_v59 = vand.u32 4294901760, %v23048_v43  ;;  %v26889_v27 = vand.u32 4294901760, %v23267_v41  ;;  %1292 = vmatmul.mubr.f32.gmra.mrb[26].mxu0 %v22645_v55 }
 0x138   :  { %v23495_v54 = vsub.f32 %v23046_v49, %v26886_v19  ;;  %v26888_v19 = vand.u32 4294901760, %v23258_v7  ;;  %v3588_v2 = vsub.f32 %v23422_v33, %v26399_v42  ;;  %v2732_v15 = vsub.f32 %v23427_v8, %v26400_v38  ;;  %16788 = vmatmul.mubr.f32.gmra.mrb[44].mxu1 %v22645_v55  ;;  %1297 = vmatprep.mubr.f32.mxu0 %v26748_v1 }
 0x139   :  { %v23508_v26 = vsub.f32 %v23048_v43, %v26887_v59  ;;  %v23522_v58 = vsub.f32 %v23267_v41, %v26889_v27  ;;  %v23524_v43 = vpop.f32.mrb[18].mxu1  ;;  %v2739_v59 = vand.u32 4294901760, %v2738_v34  ;;  %v26892_v41 = vand.u32 4294901760, %v23439_v4  ;;  %18692 = vmatpush3.bf16.msra.mxu1 %v23377_v47  ;;  %16790 = vmatprep.mubr.f32.mxu1 %v22665_v16 }
 0x13a   :  { %v23517_v11 = vsub.f32 %v23258_v7, %v26888_v19  ;;  %26890 = vst [vmem:[#allocation76_spill] sm:$0xff] %v23524_v43  ;;  %v2744_v7 = vsub.f32 %v23432_v45, %v26401_v3  ;;  %v23535_v19 = vpop.f32.mrb[19].mxu1  ;;  %v26893_v34 = vand.u32 4294901760, %v23444_v37  ;;  %v26894_v38 = vand.u32 4294901760, %v23449_v17  ;;  %18694 = vmatprep.subr.bf16.mxu1 %v23390_v35 }
 0x13b   :  { %26891 = vst [vmem:[#allocation77_spill] sm:$0xff] %v23535_v19  ;;  %v2750_v27 = vsub.f32 %v23439_v4, %v26892_v41  ;;  %v23551_v19 = vpack.c.bf16 %v2721_v28, %v2709_v32  ;;  %v3582_v55 = vand.u32 4294901760, %v23502_v48  ;;  %v26896_v41 = vand.u32 4294901760, %v23461_v57  ;;  %v23568_v40 = vpop.f32.mrb[20].mxu1  ;;  %1299 = vmatmul.mubr.f32.gmra.mrb[28].mxu0 %v22665_v16 }
 0x13c   :  { %v2762_v42 = vsub.f32 %v23444_v37, %v26893_v34  ;;  %v3595_v49 = vsub.f32 %v23449_v17, %v26894_v38  ;;  %v26897_v38 = vand.u32 4294901760, %v23470_v0  ;;  %v26898_v46 = vand.u32 4294901760, %v23475_v52  ;;  %26899 = vst [vmem:[#allocation79_spill] sm:$0xff] %v23568_v40  ;;  %v23572_v61 = vpop.f32.mrb[21].mxu1  ;;  %16791 = vmatmul.mubr.f32.gmra.mrb[46].mxu1 %v22685_v62  ;;  %1304 = vmatprep.mubr.f32.mxu0 %v26748_v1 }
 0x13d   :  { %26895 = vst [vmem:[#allocation78_spill] sm:$0xff] %v23551_v19  ;;  %v3602_v43 = vsub.f32 %v23461_v57, %v26896_v41  ;;  %v23570_v41 = vpack.c.bf16 %v2739_v59, %v2727_v23  ;;  %v3589_v34 = vand.u32 4294901760, %v3588_v2  ;;  %v2733_v47 = vand.u32 4294901760, %v2732_v15  ;;  %26901 = vst [vmem:[#allocation81_spill] sm:$0xff] %v23572_v61  ;;  %18696 = vmatpush3.bf16.msra.mxu1 %v23390_v35 }
 0x13e   :  { %v2756_v3 = vsub.f32 %v23470_v0, %v26897_v38  ;;  %v2768_v32 = vsub.f32 %v23475_v52, %v26898_v46  ;;  %v2745_v63 = vand.u32 4294901760, %v2744_v7  ;;  %v2751_v38 = vand.u32 4294901760, %v2750_v27  ;;  %16825 = vmatprep.mubr.f32.mxu1 %v26748_v1  ;;  %18698 = vmatprep.subr.bf16.mxu1 %v23392_v44 }
 0x13f   :  { %26900 = vst [vmem:[#allocation80_spill] sm:$0xff] %v23570_v41  ;;  %v2763_v10 = vand.u32 4294901760, %v2762_v42  ;;  %v3596_v46 = vand.u32 4294901760, %v3595_v49  ;;  %v26902_v28 = vand.u32 4294901760, %v23495_v54  ;;  %v3603_v23 = vand.u32 4294901760, %v3602_v43  ;;  %1306 = vmatmul.mubr.f32.gmra.mrb[30].mxu0 %v22685_v62 }
 0x140   :  { %v26903_v15 = vand.u32 4294901760, %v23508_v26  ;;  %v26904_v16 = vand.u32 4294901760, %v23072_v18  ;;  %v26905_v42 = vand.u32 4294901760, %v23074_v39  ;;  %v2757_v7 = vand.u32 4294901760, %v2756_v3  ;;  %16826 = vmatmul.mubr.f32.vlgmr.msra.gmra.mrb[48].mxu1 %v26748_v1  ;;  %2662 = vmatprep.mubr.f32.mxu0 %v26748_v1 }
 0x141   :  { %v2774_v48 = vsub.f32 %v23495_v54, %v26902_v28  ;;  %v2769_v43 = vand.u32 4294901760, %v2768_v32  ;;  %v26906_v27 = vand.u32 4294901760, %v23517_v11  ;;  %v26909_v61 = vand.u32 4294901760, %v23082_v24  ;;  %18700 = vmatpush3.bf16.msra.mxu1 %v23392_v44  ;;  %16860 = vmatprep.mubr.f32.mxu1 %v26748_v1 }
 0x142   :  { %v2786_v59 = vsub.f32 %v23508_v26, %v26903_v15  ;;  %v23587_v2 = vsub.f32 %v23072_v18, %v26904_v16  ;;  %v23592_v49 = vsub.f32 %v23074_v39, %v26905_v42  ;;  %v26907_v15 = vand.u32 4294901760, %v23522_v58  ;;  %v23602_v16 = vpop.f32.mrb[22].mxu1  ;;  %18702 = vmatprep.subr.bf16.mxu1 %v23394_v36 }
 0x143   :  { %v3609_v28 = vsub.f32 %v23517_v11, %v26906_v27  ;;  %26908 = vst [vmem:[#allocation82_spill] sm:$0xff] %v23602_v16  ;;  %v23607_v39 = vsub.f32 %v23082_v24, %v26909_v61  ;;  %v26910_v42 = vand.u32 4294901760, %v23084_v12  ;;  %v26911_v32 = vand.u32 4294901760, %v23279_v60  ;;  %v23624_v16 = vpop.f32.mrb[23].mxu1  ;;  %2663 = vmatmul.mubr.f32.vlgmr.msra.gmra.mrb[0].mxu0 %v26748_v1 }
 0x144   :  { %v3616_v18 = vsub.f32 %v23522_v58, %v26907_v15  ;;  %v26912_v40 = vand.u32 4294901760, %v23303_v56  ;;  %26913 = vst [vmem:[#allocation83_spill] sm:$0xff] %v23624_v16  ;;  %v23628_v24 = vpack.c.bf16 %v3589_v34, %v3582_v55  ;;  %v23632_v61 = vpack.c.bf16 %v2763_v10, %v2751_v38  ;;  %v23644_v10 = vpop.f32.mrb[24].mxu1  ;;  %v26926_v34 = vld [vmem:[#allocation41_spill] sm:$0xff]  ;;  %18508 = vmatpush1.bf16.msra.mxu0 %v23398_v50 }
 0x145   :  { %v23612_v3 = vsub.f32 %v23084_v12, %v26910_v42  ;;  %v23617_v27 = vsub.f32 %v23279_v60, %v26911_v32  ;;  %v23630_v12 = vpack.c.bf16 %v2745_v63, %v2733_v47  ;;  %v2775_v60 = vand.u32 4294901760, %v2774_v48  ;;  %26919 = vst [vmem:[#allocation89_spill] sm:$0xff] %v23644_v10  ;;  %v23650_v32 = vpop.f32.mrb[25].mxu1  ;;  %18704 = vmatpush3.bf16.msra.mxu1 %v23394_v36  ;;  %v26945_v36 = vld [vmem:[#allocation45_spill] sm:$0xff] }
 0x146   :  { %v23622_v15 = vsub.f32 %v23303_v56, %v26912_v40  ;;  %26914 = vst [vmem:[#allocation84_spill] sm:$0xff] %v23628_v24  ;;  %26916 = vst [vmem:[#allocation86_spill] sm:$0xff] %v23632_v61  ;;  %v2787_v42 = vand.u32 4294901760, %v2786_v59  ;;  %v23639_v62 = vpack.c.bf16 %v3603_v23, %v3596_v46  ;;  %v23641_v55 = vpack.c.bf16 %v2769_v43, %v2757_v7  ;;  %v26921_v46 = vld [vmem:[#allocation38_spill] sm:$0xff]  ;;  %v26923_v43 = vld [vmem:[#allocation39_spill] sm:$0xff] }
 0x147   :  { %26915 = vst [vmem:[#allocation85_spill] sm:$0xff] %v23630_v12  ;;  %v3610_v63 = vand.u32 4294901760, %v3609_v28  ;;  %v3617_v47 = vand.u32 4294901760, %v3616_v18  ;;  %26920 = vst [vmem:[#allocation90_spill] sm:$0xff] %v23650_v32  ;;  %v26922_v23 = vand.u32 4294901760, %v26921_v46  ;;  %v26924_v28 = vand.u32 4294901760, %v26923_v43  ;;  %18510 = vmatprep.subr.bf16.mxu0 %v23413_v30  ;;  %18706 = vmatprep.subr.bf16.mxu1 %v23465_v13 }
 0x148   :  { %26917 = vst [vmem:[#allocation87_spill] sm:$0xff] %v23639_v62  ;;  %26918 = vst [vmem:[#allocation88_spill] sm:$0xff] %v23641_v55  ;;  %v26927_v48 = vand.u32 4294901760, %v26926_v34  ;;  %v26929_v59 = vld [vmem:[#allocation42_spill] sm:$0xff]  ;;  %v26941_v10 = vand.u32 4294901760, %v23612_v3  ;;  %2668 = vmatprep.mubr.f32.mxu0 %v26748_v1  ;;  %18512 = vmatpush1.bf16.msra.mxu0 %v23551_v19  ;;  %v26946_v30 = vand.u32 4294901760, %v26945_v36 }
 0x149   :  { %v23656_v7 = vsub.f32 %v26921_v46, %v26922_v23  ;;  %v23661_v18 = vsub.f32 %v26923_v43, %v26924_v28  ;;  %v26930_v40 = vand.u32 4294901760, %v26929_v59  ;;  %v23675_v46 = vpack.c.bf16 %v2787_v42, %v2775_v60  ;;  %2669 = vmatmul.mubr.f32.gmra.mrb[2].mxu0 %v26748_v1  ;;  %18708 = vmatpush3.bf16.msra.mxu1 %v23465_v13 }
 0x14a   :  { %v23666_v38 = vsub.f32 %v26926_v34, %v26927_v48  ;;  %v26933_v23 = vand.u32 4294901760, %v23587_v2  ;;  %v26934_v28 = vand.u32 4294901760, %v23592_v49  ;;  %v26936_v48 = vand.u32 4294901760, %v23305_v53  ;;  %18514 = vmatprep.subr.bf16.mxu0 %v23570_v41  ;;  %18710 = vmatprep.subr.bf16.mxu1 %v23628_v24 }
 0x14b   :  { %26925 = vst [vmem:[#allocation38_spill] sm:$0xff] %v23661_v18  ;;  %v23671_v56 = vsub.f32 %v26929_v59, %v26930_v40  ;;  %26932 = vst [vmem:[#allocation42_spill] sm:$0xff] %v23675_v46  ;;  %v23685_v40 = vpack.c.bf16 %v3617_v47, %v3610_v63  ;;  %v26938_v60 = vand.u32 4294901760, %v23307_v14  ;;  %v2810_v63 = vsub.f32 %v23612_v3, %v26941_v10 }
 0x14c   :  { %26928 = vst [vmem:[#allocation39_spill] sm:$0xff] %v23666_v38  ;;  %v2780_v43 = vsub.f32 %v23587_v2, %v26933_v23  ;;  %v2792_v34 = vsub.f32 %v23592_v49, %v26934_v28  ;;  %v23690_v59 = vsub.f32 %v23305_v53, %v26936_v48  ;;  %v23697_v23 = vpop.f32.mrb[26].mxu1  ;;  %v26940_v28 = vand.u32 4294901760, %v23607_v39  ;;  %2899 = vmatprep.mubr.f32.mxu0 %v26748_v1 }
 0x14d   :  { %26931 = vst [vmem:[#allocation41_spill] sm:$0xff] %v23671_v56  ;;  %26935 = vst [vmem:[#allocation91_spill] sm:$0xff] %v23685_v40  ;;  %v23695_v42 = vsub.f32 %v23307_v14, %v26938_v60  ;;  %v26942_v47 = vand.u32 4294901760, %v23617_v27  ;;  %v26943_v48 = vand.u32 4294901760, %v23622_v15  ;;  %v23712_v14 = vpop.f32.mrb[27].mxu1  ;;  %v26947_v60 = vld [vmem:[#allocation46_spill] sm:$0xff]  ;;  %18516 = vmatpush1.bf16.msra.mxu0 %v23630_v12  ;;  %18712 = vmatpush3.bf16.msra.mxu1 %v23628_v24 }
 0x14e   :  { %26937 = vst [vmem:[#allocation92_spill] sm:$0xff] %v23690_v59  ;;  %26939 = vst [vmem:[#allocation93_spill] sm:$0xff] %v23697_v23  ;;  %v2798_v32 = vsub.f32 %v23607_v39, %v26940_v28  ;;  %v26948_v50 = vand.u32 4294901760, %v26947_v60  ;;  %v2811_v41 = vand.u32 4294901760, %v2810_v63  ;;  %v26955_v23 = vand.u32 4294901760, %v23656_v7  ;;  %18518 = vmatprep.subr.bf16.mxu0 %v23632_v61  ;;  %18714 = vmatprep.subr.bf16.mxu1 %v23639_v62 }
 0x14f   :  { %v3623_v53 = vsub.f32 %v23617_v27, %v26942_v47  ;;  %v3630_v16 = vsub.f32 %v23622_v15, %v26943_v48  ;;  %26944 = vst [vmem:[#allocation94_spill] sm:$0xff] %v23712_v14  ;;  %v2781_v47 = vand.u32 4294901760, %v2780_v43  ;;  %v2793_v48 = vand.u32 4294901760, %v2792_v34  ;;  %v26949_v43 = vld [vmem:[#allocation47_spill] sm:$0xff] }
 0x150   :  { %v23724_v14 = vsub.f32 %v26945_v36, %v26946_v30  ;;  %v23729_v28 = vsub.f32 %v26947_v60, %v26948_v50  ;;  %v26950_v34 = vand.u32 4294901760, %v26949_v43  ;;  %v26951_v36 = vld [vmem:[#allocation48_spill] sm:$0xff]  ;;  %v23745_v50 = vpop.f32.mrb[28].mxu1  ;;  %v2799_v60 = vand.u32 4294901760, %v2798_v32 }
 0x151   :  { %v26952_v30 = vand.u32 4294901760, %v26951_v36  ;;  %26953 = vst [vmem:[#allocation45_spill] sm:$0xff] %v23745_v50  ;;  %v3624_v44 = vand.u32 4294901760, %v3623_v53  ;;  %v3631_v35 = vand.u32 4294901760, %v3630_v16  ;;  %v23748_v10 = vpop.f32.mrb[29].mxu1  ;;  %v26958_v32 = vand.u32 4294901760, %v23671_v56  ;;  %18520 = vmatpush1.bf16.msra.mxu0 %v23641_v55  ;;  %18716 = vmatpush3.bf16.msra.mxu1 %v23639_v62 }
 0x152   :  { %v23738_v13 = vsub.f32 %v26949_v43, %v26950_v34  ;;  %26954 = vst [vmem:[#allocation46_spill] sm:$0xff] %v23748_v10  ;;  %v2804_v43 = vsub.f32 %v23656_v7, %v26955_v23  ;;  %v26956_v34 = vand.u32 4294901760, %v23661_v18  ;;  %v26959_v53 = vand.u32 4294901760, %v23172_v51  ;;  %v26960_v10 = vld [vmem:[#allocation51_spill] sm:$0xff]  ;;  %v23786_v12 = vpop.f32.mrb[30].mxu1  ;;  %18522 = vmatprep.subr.bf16.mxu0 %v23675_v46  ;;  %18718 = vmatprep.subr.bf16.mxu1 %v23685_v40  ;;  %v27029_v55 = vld [vmem:[#allocation44_spill] sm:$0xff] }
 0x153   :  { %v23743_v19 = vsub.f32 %v26951_v36, %v26952_v30  ;;  %v26957_v36 = vand.u32 4294901760, %v23666_v38  ;;  %v2834_v16 = vsub.f32 %v23671_v56, %v26958_v32  ;;  %v26961_v50 = vand.u32 4294901760, %v26960_v10  ;;  %26964 = vst [vmem:[#allocation47_spill] sm:$0xff] %v23786_v12  ;;  %v23794_v56 = vpop.f32.mrb[31].mxu1  ;;  %v27025_v62 = vld [vmem:[#allocation35_spill] sm:$0xff] }
 0x154   :  { %v2816_v6 = vsub.f32 %v23661_v18, %v26956_v34  ;;  %v23769_v34 = vsub.f32 %v23172_v51, %v26959_v53  ;;  %v26962_v32 = vand.u32 4294901760, %v23690_v59  ;;  %v26963_v23 = vand.u32 4294901760, %v23695_v42  ;;  %26968 = vst [vmem:[#allocation96_spill] sm:$0xff] %v23794_v56  ;;  %v27028_v46 = vld [vmem:[#allocation43_spill] sm:$0xff] }
 0x155   :  { %v2822_v30 = vsub.f32 %v23666_v38, %v26957_v36  ;;  %v23774_v36 = vsub.f32 %v26960_v10, %v26961_v50  ;;  %v26442_v51 = vand.u32 4294901760, %v23738_v13  ;;  %v23788_v10 = vpack.c.bf16 %v2793_v48, %v2781_v47  ;;  %18720 = vmatpush3.bf16.msra.mxu1 %v23685_v40  ;;  %v27022_v40 = vld [vmem:[#allocation31_spill] sm:$0xff] }
 0x156   :  { %v3637_v63 = vsub.f32 %v23690_v59, %v26962_v32  ;;  %v3644_v24 = vsub.f32 %v23695_v42, %v26963_v23  ;;  %v23790_v50 = vpack.c.bf16 %v2811_v41, %v2799_v60  ;;  %v23792_v61 = vpack.c.bf16 %v3631_v35, %v3624_v44 }
 0x157   :  { %26965 = vst [vmem:[#allocation48_spill] sm:$0xff] %v23788_v10  ;;  %v2805_v38 = vand.u32 4294901760, %v2804_v43  ;;  %v2817_v32 = vand.u32 4294901760, %v2816_v6  ;;  %v2823_v59 = vand.u32 4294901760, %v2822_v30  ;;  %v2835_v18 = vand.u32 4294901760, %v2834_v16  ;;  %18524 = vmatpush1.bf16.msra.mxu0 %v23788_v10  ;;  %v27027_v10 = vld [vmem:[#allocation66_spill] sm:$0xff] }
 0x158   :  { %26966 = vst [vmem:[#allocation51_spill] sm:$0xff] %v23790_v50  ;;  %26967 = vst [vmem:[#allocation95_spill] sm:$0xff] %v23792_v61  ;;  %v26969_v23 = vand.u32 4294901760, %v23724_v14  ;;  %v26970_v47 = vand.u32 4294901760, %v23729_v28  ;;  %v26443_v44 = vand.u32 4294901760, %v23769_v34  ;;  %v26444_v35 = vand.u32 4294901760, %v23774_v36  ;;  %18526 = vmatprep.subr.bf16.mxu0 %v23790_v50  ;;  %18722 = vmatprep.subr.bf16.mxu1 %v23792_v61 }
 0x159   :  { %v3638_v6 = vand.u32 4294901760, %v3637_v63  ;;  %v3645_v48 = vand.u32 4294901760, %v3644_v24  ;;  %v2846_v60 = vsub.f32 %v23738_v13, %v26442_v51  ;;  %v26971_v43 = vand.u32 4294901760, %v23743_v19  ;;  %18724 = vmatpush3.bf16.msra.mxu1 %v23792_v61  ;;  %v27026_v50 = vld [vmem:[#allocation36_spill] sm:$0xff] }
 0x15a   :  { %v2828_v53 = vsub.f32 %v23724_v14, %v26969_v23  ;;  %v2840_v41 = vsub.f32 %v23729_v28, %v26970_v47  ;;  %v23814_v16 = vpack.c.bf16 %v2817_v32, %v2805_v38  ;;  %v2852_v24 = vsub.f32 %v23769_v34, %v26443_v44 }
 0x15b   :  { %v2858_v30 = vsub.f32 %v23743_v19, %v26971_v43  ;;  %v2864_v63 = vsub.f32 %v23774_v36, %v26444_v35  ;;  %v23826_v38 = vpack.c.bf16 %v2835_v18, %v2823_v59  ;;  %v23828_v32 = vpack.c.bf16 %v3645_v48, %v3638_v6  ;;  %v26977_v18 = vld [vmem:[#allocation54_spill] sm:$0xff]  ;;  %v26978_v59 = vld [vmem:[#allocation56_spill] sm:$0xff] }
 0x15c   :  { %26972 = vst [vmem:[#allocation97_spill] sm:$0xff] %v23814_v16  ;;  %v2829_v23 = vand.u32 4294901760, %v2828_v53  ;;  %v2841_v47 = vand.u32 4294901760, %v2840_v41  ;;  %v2847_v43 = vand.u32 4294901760, %v2846_v60  ;;  %18528 = vmatpush1.bf16.msra.mxu0 %v23814_v16  ;;  %v2853_v41 = vand.u32 4294901760, %v2852_v24  ;;  %v26981_v60 = vld [vmem:[#allocation57_spill] sm:$0xff] }
 0x15d   :  { %26973 = vst [vmem:[#allocation98_spill] sm:$0xff] %v23826_v38  ;;  %26974 = vst [vmem:[#allocation99_spill] sm:$0xff] %v23828_v32  ;;  %v2859_v51 = vand.u32 4294901760, %v2858_v30  ;;  %v2865_v44 = vand.u32 4294901760, %v2864_v63  ;;  %18530 = vmatprep.subr.bf16.mxu0 %v23826_v38  ;;  %18726 = vmatprep.subr.bf16.mxu1 %v23828_v32  ;;  %v23840_v6 = vpack.c.bf16 %v26978_v59, %v26977_v18  ;;  %v26982_v30 = vld [vmem:[#allocation58_spill] sm:$0xff]  ;;  %v26987_v24 = vld [vmem:[#allocation60_spill] sm:$0xff] }
 0x15e   :  { %v23832_v53 = vpack.c.bf16 %v2841_v47, %v2829_v23  ;;  %18728 = vmatpush3.bf16.msra.mxu1 %v23828_v32  ;;  %v23850_v23 = vpack.c.bf16 %v26982_v30, %v26981_v60  ;;  %v26988_v63 = vld [vmem:[#allocation61_spill] sm:$0xff]  ;;  %v23875_v56 = vpack.c.bf16 %v23342_v20, %v23330_v9  ;;  %v23881_v12 = vpack.c.bf16 %v23382_v29, %v23356_v31  ;;  %v27023_v38 = vld [vmem:[#allocation32_spill] sm:$0xff] }
 0x15f   :  { %v23836_v35 = vpack.c.bf16 %v2859_v51, %v2847_v43  ;;  %26979 = vst [vmem:[#allocation54_spill] sm:$0xff] %v23840_v6  ;;  %v23844_v48 = vpack.c.bf16 %v2865_v44, %v2853_v41  ;;  %18730 = vmatprep.subr.bf16.mxu1 %v23840_v6  ;;  %v26984_v51 = vld [vmem:[#allocation59_spill] sm:$0xff]  ;;  %v26986_v44 = vld [vmem:[#allocation10_spill] sm:$0xff]  ;;  %v23863_v43 = vpack.c.bf16 %v26988_v63, %v26987_v24  ;;  %v27006_v32 = vld [vmem:[#allocation41_spill] sm:$0xff] }
 0x160   :  { %26975 = vst [vmem:[#allocation100_spill] sm:$0xff] %v23832_v53  ;;  %18532 = vmatpush1.bf16.msra.mxu0 %v23832_v53  ;;  %26983 = vst [vmem:[#allocation57_spill] sm:$0xff] %v23850_v23  ;;  %v23857_v47 = vpack.c.bf16 %v26984_v51, %v23223_v5  ;;  %v23867_v41 = vpack.c.bf16 %v23284_v22, %v23282_v21  ;;  %v27021_v53 = vld [vmem:[#allocation64_spill] sm:$0xff]  ;;  %v27024_v16 = vld [vmem:[#allocation65_spill] sm:$0xff] }
 0x161   :  { %26976 = vst [vmem:[#allocation101_spill] sm:$0xff] %v23836_v35  ;;  %26980 = vst [vmem:[#allocation56_spill] sm:$0xff] %v23844_v48  ;;  %18534 = vmatprep.subr.bf16.mxu0 %v23836_v35  ;;  %16861 = vmatmul.mubr.f32.vlgmr.msra.gmra.mrb[48].mxu1 %v26748_v1  ;;  %v27020_v35 = vld [vmem:[#allocation28_spill] sm:$0xff] }
 0x162   :  { %18732 = vmatpush3.bf16.msra.mxu1 %v23840_v6  ;;  %26985 = vst [vmem:[#allocation58_spill] sm:$0xff] %v23857_v47  ;;  %26989 = vst [vmem:[#allocation59_spill] sm:$0xff] %v23863_v43  ;;  %16895 = vmatprep.mubr.f32.mxu1 %v26748_v1  ;;  %v23885_v6 = vpack.c.bf16 %v23422_v33, %v23409_v25 }
 0x163   :  { %18734 = vmatprep.subr.bf16.mxu1 %v23850_v23  ;;  %26990 = vst [vmem:[#allocation60_spill] sm:$0xff] %v23867_v41  ;;  %26991 = vst [vmem:[#allocation61_spill] sm:$0xff] %v23875_v56 }
 0x164   :  { %18536 = vmatpush1.bf16.msra.mxu0 %v23844_v48  ;;  %26992 = vst [vmem:[#allocation102_spill] sm:$0xff] %v23881_v12  ;;  %26993 = vst [vmem:[#allocation103_spill] sm:$0xff] %v23885_v6  ;;  %v27008_v48 = vld [vmem:[#allocation92_spill] sm:$0xff] }
 0x165   :  { %18538 = vmatprep.subr.bf16.mxu0 %v26986_v44  ;;  %v23952_v61 = vpack.c.bf16 %v23695_v42, %v27008_v48 }
 0x166   :  { %18736 = vmatpush3.bf16.msra.mxu1 %v23850_v23  ;;  %v23893_v23 = vpack.c.bf16 %v23432_v45, %v23427_v8 }
 0x167   :  { %2900 = vmatmul.mubr.f32.vlgmr.msra.gmra.mrb[0].mxu0 %v26748_v1  ;;  %18738 = vmatprep.subr.bf16.mxu1 %v23867_v41  ;;  %27009 = vst [vmem:[#allocation41_spill] sm:$0xff] %v23952_v61 }
 0x168   :  { %18540 = vmatpush1.bf16.msra.mxu0 %v23857_v47  ;;  %2905 = vmatprep.mubr.f32.mxu0 %v26748_v1  ;;  %26994 = vst [vmem:[#allocation104_spill] sm:$0xff] %v23893_v23  ;;  %v23903_v47 = vpack.c.bf16 %v23461_v57, %v23449_v17 }
 0x169   :  { %18542 = vmatprep.subr.bf16.mxu0 %v23863_v43  ;;  %v23899_v43 = vpack.c.bf16 %v23444_v37, %v23439_v4 }
 0x16a   :  { %18740 = vmatpush3.bf16.msra.mxu1 %v23867_v41  ;;  %26996 = vst [vmem:[#allocation106_spill] sm:$0xff] %v23903_v47  ;;  %v23910_v41 = vpack.c.bf16 %v23475_v52, %v23470_v0 }
 0x16b   :  { %2906 = vmatmul.mubr.f32.gmra.mrb[2].mxu0 %v26748_v1  ;;  %18742 = vmatprep.subr.bf16.mxu1 %v23885_v6  ;;  %26995 = vst [vmem:[#allocation105_spill] sm:$0xff] %v23899_v43 }
 0x16c   :  { %18544 = vmatpush1.bf16.msra.mxu0 %v23875_v56  ;;  %3040 = vmatprep.mubr.f32.mxu0 %v26748_v1  ;;  %26997 = vst [vmem:[#allocation107_spill] sm:$0xff] %v23910_v41  ;;  %v23920_v56 = vpack.c.bf16 %v23522_v58, %v23517_v11 }
 0x16d   :  { %18546 = vmatprep.subr.bf16.mxu0 %v23881_v12  ;;  %v23916_v12 = vpack.c.bf16 %v23508_v26, %v23495_v54 }
 0x16e   :  { %18744 = vmatpush3.bf16.msra.mxu1 %v23885_v6  ;;  %26999 = vst [vmem:[#allocation109_spill] sm:$0xff] %v23920_v56  ;;  %v23926_v6 = vpack.c.bf16 %v23592_v49, %v23587_v2 }
 0x16f   :  { %18746 = vmatprep.subr.bf16.mxu1 %v23903_v47  ;;  %26998 = vst [vmem:[#allocation108_spill] sm:$0xff] %v23916_v12 }
 0x170   :  { %18548 = vmatpush1.bf16.msra.mxu0 %v23893_v23  ;;  %27000 = vst [vmem:[#allocation110_spill] sm:$0xff] %v23926_v6  ;;  %v23936_v23 = vpack.c.bf16 %v23622_v15, %v23617_v27 }
 0x171   :  { %18550 = vmatprep.subr.bf16.mxu0 %v23899_v43  ;;  %v23932_v43 = vpack.c.bf16 %v23612_v3, %v23607_v39 }
 0x172   :  { %18748 = vmatpush3.bf16.msra.mxu1 %v23903_v47  ;;  %27002 = vst [vmem:[#allocation112_spill] sm:$0xff] %v23936_v23  ;;  %v27003_v47 = vld [vmem:[#allocation38_spill] sm:$0xff] }
 0x173   :  { %18750 = vmatprep.subr.bf16.mxu1 %v23920_v56  ;;  %27001 = vst [vmem:[#allocation111_spill] sm:$0xff] %v23932_v43 }
 0x174   :  { %18552 = vmatpush1.bf16.msra.mxu0 %v23910_v41  ;;  %v23942_v41 = vpack.c.bf16 %v27003_v47, %v23656_v7 }
 0x175   :  { %18554 = vmatprep.subr.bf16.mxu0 %v23916_v12  ;;  %v27005_v12 = vld [vmem:[#allocation39_spill] sm:$0xff] }
 0x176   :  { %18752 = vmatpush3.bf16.msra.mxu1 %v23920_v56  ;;  %27004 = vst [vmem:[#allocation38_spill] sm:$0xff] %v23942_v41  ;;  %v23948_v44 = vpack.c.bf16 %v27006_v32, %v27005_v12  ;;  %v23958_v56 = vpack.c.bf16 %v23729_v28, %v23724_v14 }
 0x177   :  { %18754 = vmatprep.subr.bf16.mxu1 %v23936_v23 }
 0x178   :  { %18556 = vmatpush1.bf16.msra.mxu0 %v23926_v6  ;;  %27007 = vst [vmem:[#allocation39_spill] sm:$0xff] %v23948_v44  ;;  %27010 = vst [vmem:[#allocation92_spill] sm:$0xff] %v23958_v56  ;;  %v27015_v6 = vld [vmem:[#allocation52_spill] sm:$0xff] }
 0x179   :  { %18558 = vmatprep.subr.bf16.mxu0 %v23932_v43  ;;  %v23964_v43 = vpack.c.bf16 %v23743_v19, %v23738_v13 }
 0x17a   :  { %18756 = vmatpush3.bf16.msra.mxu1 %v23936_v23  ;;  %v27013_v23 = vld [vmem:[#allocation21_spill] sm:$0xff] }
 0x17b   :  { %18758 = vmatprep.subr.bf16.mxu1 %v23952_v61  ;;  %27011 = vst [vmem:[#allocation113_spill] sm:$0xff] %v23964_v43 }
 0x17c   :  { %18560 = vmatpush1.bf16.msra.mxu0 %v23942_v41  ;;  %v23970_v41 = vpack.c.bf16 %v23774_v36, %v23769_v34 }
 0x17d   :  { %18562 = vmatprep.subr.bf16.mxu0 %v23948_v44  ;;  %v27014_v44 = vld [vmem:[#allocation17_spill] sm:$0xff] }
 0x17e   :  { %18760 = vmatpush3.bf16.msra.mxu1 %v23952_v61  ;;  %27012 = vst [vmem:[#allocation114_spill] sm:$0xff] %v23970_v41  ;;  %v27016_v61 = vld [vmem:[#allocation23_spill] sm:$0xff] }
 0x17f   :  { %18762 = vmatprep.subr.bf16.mxu1 %v27013_v23 }
 0x180   :  { %18564 = vmatpush1.bf16.msra.mxu0 %v23958_v56  ;;  %v27018_v56 = vld [vmem:[#allocation63_spill] sm:$0xff] }
 0x181   :  { %18566 = vmatprep.subr.bf16.mxu0 %v23964_v43  ;;  %16896 = vmatmul.mubr.f32.vlgmr.msra.gmra.mrb[48].mxu1 %v26748_v1  ;;  %v27017_v43 = vld [vmem:[#allocation24_spill] sm:$0xff] }
 0x182   :  { %18764 = vmatpush3.bf16.msra.mxu1 %v27013_v23  ;;  %16930 = vmatprep.mubr.f32.mxu1 %v26748_v1 }
 0x183   :  { %18766 = vmatprep.subr.bf16.mxu1 %v27015_v6 }
 0x184   :  { %18568 = vmatpush1.bf16.msra.mxu0 %v23970_v41  ;;  %v27019_v41 = vld [vmem:[#allocation27_spill] sm:$0xff] }
 0x185   :  { %18570 = vmatprep.subr.bf16.mxu0 %v27014_v44 }
 0x186   :  { %18768 = vmatpush3.bf16.msra.mxu1 %v27015_v6 }
 0x187   :  { %3041 = vmatmul.mubr.f32.vlgmr.msra.gmra.mrb[0].mxu0 %v26748_v1  ;;  %18770 = vmatprep.subr.bf16.mxu1 %v27018_v56 }
 0x188   :  { %18572 = vmatpush1.bf16.msra.mxu0 %v27016_v61  ;;  %3046 = vmatprep.mubr.f32.mxu0 %v26748_v1 }
 0x189   :  { %18574 = vmatprep.subr.bf16.mxu0 %v27017_v43 }
 0x18a   :  { %18772 = vmatpush3.bf16.msra.mxu1 %v27018_v56 }
 0x18b   :  { %3047 = vmatmul.mubr.f32.gmra.mrb[2].mxu0 %v26748_v1  ;;  %18774 = vmatprep.subr.bf16.mxu1 %v27021_v53 }
 0x18c   :  { %18576 = vmatpush1.bf16.msra.mxu0 %v27019_v41  ;;  %3149 = vmatprep.mubr.f32.mxu0 %v26748_v1 }
 0x18d   :  { %18578 = vmatprep.subr.bf16.mxu0 %v27020_v35 }
 0x18e   :  { %18776 = vmatpush3.bf16.msra.mxu1 %v27021_v53  ;;  %v27031_v53 = vld [vmem:[#allocation49_spill] sm:$0xff] }
 0x18f   :  { %18778 = vmatprep.subr.bf16.mxu1 %v27024_v16 }
 0x190   :  { %18580 = vmatpush1.bf16.msra.mxu0 %v27022_v40  ;;  %v27030_v40 = vld [vmem:[#allocation67_spill] sm:$0xff] }
 0x191   :  { %18582 = vmatprep.subr.bf16.mxu0 %v27023_v38  ;;  %v27032_v38 = vld [vmem:[#allocation50_spill] sm:$0xff] }
 0x192   :  { %18780 = vmatpush3.bf16.msra.mxu1 %v27024_v16  ;;  %v27035_v16 = vand.u32 4294901760, %v26978_v59  ;;  %v27045_v59 = vand.u32 4294901760, %v26982_v30  ;;  %v27055_v30 = vand.u32 4294901760, %v23284_v22  ;;  %v27061_v22 = vand.u32 4294901760, %v23382_v29 }
 0x193   :  { %18782 = vmatprep.subr.bf16.mxu1 %v27027_v10 }
 0x194   :  { %18584 = vmatpush1.bf16.msra.mxu0 %v27025_v62  ;;  %v27033_v62 = vld [vmem:[#allocation68_spill] sm:$0xff] }
 0x195   :  { %18586 = vmatprep.subr.bf16.mxu0 %v27026_v50  ;;  %v27034_v50 = vand.u32 4294901760, %v26977_v18  ;;  %v27044_v18 = vand.u32 4294901760, %v26981_v60  ;;  %v27054_v60 = vand.u32 4294901760, %v23282_v21  ;;  %v27060_v21 = vand.u32 4294901760, %v23356_v31 }
 0x196   :  { %18784 = vmatpush3.bf16.msra.mxu1 %v27027_v10  ;;  %v27041_v10 = vld [vmem:[#allocation15_spill] sm:$0xff]  ;;  %v27070_v31 = vand.u32 4294901760, %v23444_v37  ;;  %v27078_v37 = vand.u32 4294901760, %v23495_v54  ;;  %v27090_v54 = vand.u32 4294901760, %v23617_v27 }
 0x197   :  { %18786 = vmatprep.subr.bf16.mxu1 %v27030_v40  ;;  %v24012_v35 = vpack.c.bf16 %v27035_v16, %v27034_v50  ;;  %v24028_v50 = vpack.c.bf16 %v27045_v59, %v27044_v18  ;;  %v27047_v16 = vld [vmem:[#allocation62_spill] sm:$0xff]  ;;  %v24051_v18 = vpack.c.bf16 %v27055_v30, %v27054_v60  ;;  %v27064_v59 = vand.u32 4294901760, %v23422_v33 }
 0x198   :  { %18588 = vmatpush1.bf16.msra.mxu0 %v27028_v46  ;;  %v27037_v46 = vld [vmem:[#allocation53_spill] sm:$0xff]  ;;  %v27069_v33 = vand.u32 4294901760, %v23439_v4  ;;  %v27081_v30 = vand.u32 4294901760, %v23517_v11  ;;  %v27087_v11 = vand.u32 4294901760, %v23607_v39  ;;  %v27096_v39 = vand.u32 4294901760, %v27005_v12 }
 0x199   :  { %18590 = vmatprep.subr.bf16.mxu0 %v27029_v55  ;;  %27036 = vst [vmem:[#allocation21_spill] sm:$0xff] %v24012_v35  ;;  %v27038_v55 = vld [vmem:[#allocation55_spill] sm:$0xff]  ;;  %27046 = vst [vmem:[#allocation52_spill] sm:$0xff] %v24028_v50  ;;  %v27105_v12 = vand.u32 4294901760, %v23738_v13 }
 0x19a   :  { %18788 = vmatpush3.bf16.msra.mxu1 %v27030_v40  ;;  %27056 = vst [vmem:[#allocation63_spill] sm:$0xff] %v24051_v18  ;;  %v27111_v13 = vld [vmem:[#allocation27_spill] sm:$0xff] }
 0x19b   :  { %18790 = vmatprep.subr.bf16.mxu1 %v27033_v62 }
 0x19c   :  { %18592 = vmatpush1.bf16.msra.mxu0 %v27031_v53  ;;  %v27039_v53 = vld [vmem:[#allocation16_spill] sm:$0xff] }
 0x19d   :  { %18594 = vmatprep.subr.bf16.mxu0 %v27032_v38  ;;  %v27040_v40 = vand.u32 4294901760, %v27039_v53  ;;  %v27042_v38 = vand.u32 4294901760, %v27041_v10  ;;  %v27049_v53 = vand.u32 4294901760, %v26984_v51  ;;  %v27052_v10 = vand.u32 4294901760, %v26988_v63 }
 0x19e   :  { %18792 = vmatpush3.bf16.msra.mxu1 %v27033_v62  ;;  %v27063_v63 = vand.u32 4294901760, %v23409_v25  ;;  %v24093_v25 = vpack.c.bf16 %v27070_v31, %v27069_v33  ;;  %v27115_v31 = vld [vmem:[#allocation32_spill] sm:$0xff] }
 0x19f   :  { %18794 = vmatprep.subr.bf16.mxu1 %v24012_v35  ;;  %v24022_v41 = vpack.c.bf16 %v27042_v38, %v27040_v40  ;;  %v27051_v40 = vand.u32 4294901760, %v26987_v24  ;;  %v24069_v24 = vpack.c.bf16 %v27061_v22, %v27060_v21  ;;  %v27091_v22 = vand.u32 4294901760, %v23622_v15 }
 0x1a0   :  { %18596 = vmatpush1.bf16.msra.mxu0 %v27037_v46  ;;  %27071 = vst [vmem:[#allocation117_spill] sm:$0xff] %v24093_v25  ;;  %v27099_v15 = vand.u32 4294901760, %v27008_v48 }
 0x1a1   :  { %18598 = vmatprep.subr.bf16.mxu0 %v27038_v55  ;;  %27043 = vst [vmem:[#allocation17_spill] sm:$0xff] %v24022_v41  ;;  %16931 = vmatmul.mubr.f32.vlgmr.msra.gmra.mrb[48].mxu1 %v26748_v1  ;;  %v27048_v55 = vand.u32 4294901760, %v23223_v5  ;;  %v24045_v38 = vpack.c.bf16 %v27052_v10, %v27051_v40  ;;  %v27057_v5 = vand.u32 4294901760, %v23330_v9  ;;  %27062 = vst [vmem:[#allocation15_spill] sm:$0xff] %v24069_v24  ;;  %v27066_v9 = vand.u32 4294901760, %v23427_v8 }
 0x1a2   :  { %18796 = vmatpush3.bf16.msra.mxu1 %v24012_v35  ;;  %16965 = vmatprep.mubr.f32.mxu1 %v26748_v1  ;;  %v27072_v40 = vand.u32 4294901760, %v23449_v17  ;;  %v27073_v10 = vand.u32 4294901760, %v23461_v57  ;;  %v27075_v8 = vand.u32 4294901760, %v23470_v0  ;;  %v27079_v17 = vand.u32 4294901760, %v23508_v26 }
 0x1a3   :  { %v24037_v46 = vpack.c.bf16 %v27049_v53, %v27048_v55  ;;  %18798 = vmatprep.subr.bf16.mxu1 %v24028_v50  ;;  %27053 = vst [vmem:[#allocation24_spill] sm:$0xff] %v24045_v38  ;;  %v27058_v55 = vand.u32 4294901760, %v23342_v20  ;;  %v24075_v53 = vpack.c.bf16 %v27064_v59, %v27063_v63  ;;  %v27067_v20 = vand.u32 4294901760, %v23432_v45 }
 0x1a4   :  { %18600 = vmatpush1.bf16.msra.mxu0 %v27047_v16  ;;  %v24099_v60 = vpack.c.bf16 %v27073_v10, %v27072_v40  ;;  %v27076_v45 = vand.u32 4294901760, %v23475_v52  ;;  %v24116_v57 = vpack.c.bf16 %v27079_v17, %v27078_v37  ;;  %v27084_v0 = vand.u32 4294901760, %v23587_v2  ;;  %v27116_v40 = vld [vmem:[#allocation65_spill] sm:$0xff]  ;;  %v27117_v10 = vld [vmem:[#allocation35_spill] sm:$0xff]  ;;  %v27121_v17 = vld [vmem:[#allocation44_spill] sm:$0xff] }
 0x1a5   :  { %27050 = vst [vmem:[#allocation23_spill] sm:$0xff] %v24037_v46  ;;  %18602 = vmatprep.subr.bf16.mxu0 %v24022_v41  ;;  %v24061_v51 = vpack.c.bf16 %v27058_v55, %v27057_v5  ;;  %27065 = vst [vmem:[#allocation115_spill] sm:$0xff] %v24075_v53  ;;  %v24085_v29 = vpack.c.bf16 %v27067_v20, %v27066_v9  ;;  %v27082_v5 = vand.u32 4294901760, %v23522_v58  ;;  %v27085_v52 = vand.u32 4294901760, %v23592_v49  ;;  %v27120_v37 = vld [vmem:[#allocation43_spill] sm:$0xff] }
 0x1a6   :  { %18800 = vmatpush3.bf16.msra.mxu1 %v24028_v50  ;;  %27074 = vst [vmem:[#allocation118_spill] sm:$0xff] %v24099_v60  ;;  %v24108_v4 = vpack.c.bf16 %v27076_v45, %v27075_v8  ;;  %27080 = vst [vmem:[#allocation120_spill] sm:$0xff] %v24116_v57  ;;  %v27088_v58 = vand.u32 4294901760, %v23612_v3  ;;  %v24144_v63 = vpack.c.bf16 %v27091_v22, %v27090_v54  ;;  %v27093_v2 = vand.u32 4294901760, %v23656_v7  ;;  %v27118_v8 = vld [vmem:[#allocation36_spill] sm:$0xff]  ;;  %v27119_v45 = vld [vmem:[#allocation66_spill] sm:$0xff] }
 0x1a7   :  { %3150 = vmatmul.mubr.f32.vlgmr.msra.gmra.mrb[0].mxu0 %v26748_v1  ;;  %27059 = vst [vmem:[#allocation16_spill] sm:$0xff] %v24061_v51  ;;  %18802 = vmatprep.subr.bf16.mxu1 %v24051_v18  ;;  %27068 = vst [vmem:[#allocation116_spill] sm:$0xff] %v24085_v29  ;;  %v24122_v55 = vpack.c.bf16 %v27082_v5, %v27081_v30  ;;  %v24130_v21 = vpack.c.bf16 %v27085_v52, %v27084_v0  ;;  %v27094_v49 = vand.u32 4294901760, %v27003_v47  ;;  %v27122_v30 = vld [vmem:[#allocation67_spill] sm:$0xff]  ;;  %v27123_v5 = vld [vmem:[#allocation49_spill] sm:$0xff] }
 0x1a8   :  { %18604 = vmatpush1.bf16.msra.mxu0 %v24037_v46  ;;  %3155 = vmatprep.mubr.f32.mxu0 %v26748_v1  ;;  %27077 = vst [vmem:[#allocation119_spill] sm:$0xff] %v24108_v4  ;;  %v24138_v26 = vpack.c.bf16 %v27088_v58, %v27087_v11  ;;  %27092 = vst [vmem:[#allocation124_spill] sm:$0xff] %v24144_v63  ;;  %v27097_v3 = vand.u32 4294901760, %v27006_v32  ;;  %v27100_v9 = vand.u32 4294901760, %v23695_v42  ;;  %v27102_v7 = vand.u32 4294901760, %v23724_v14  ;;  %v27124_v0 = vld [vmem:[#allocation50_spill] sm:$0xff] }
 0x1a9   :  { %18606 = vmatprep.subr.bf16.mxu0 %v24045_v38  ;;  %27083 = vst [vmem:[#allocation121_spill] sm:$0xff] %v24122_v55  ;;  %27086 = vst [vmem:[#allocation122_spill] sm:$0xff] %v24130_v21  ;;  %v24152_v59 = vpack.c.bf16 %v27094_v49, %v27093_v2  ;;  %v27103_v47 = vand.u32 4294901760, %v23729_v28  ;;  %v27106_v42 = vand.u32 4294901760, %v23743_v19  ;;  %v27108_v14 = vand.u32 4294901760, %v23769_v34  ;;  %v27112_v19 = vld [vmem:[#allocation28_spill] sm:$0xff] }
 0x1aa   :  { %18804 = vmatpush3.bf16.msra.mxu1 %v24051_v18  ;;  %27089 = vst [vmem:[#allocation123_spill] sm:$0xff] %v24138_v26  ;;  %v24160_v27 = vpack.c.bf16 %v27097_v3, %v27096_v39  ;;  %v24166_v20 = vpack.c.bf16 %v27100_v9, %v27099_v15  ;;  %v27109_v28 = vand.u32 4294901760, %v23774_v36  ;;  %v27113_v34 = vld [vmem:[#allocation64_spill] sm:$0xff]  ;;  %v27114_v36 = vld [vmem:[#allocation31_spill] sm:$0xff]  ;;  %v27125_v52 = vld [vmem:[#allocation53_spill] sm:$0xff] }
 0x1ab   :  { %3156 = vmatmul.mubr.f32.gmra.mrb[2].mxu0 %v26748_v1  ;;  %18806 = vmatprep.subr.bf16.mxu1 %v24075_v53  ;;  %27095 = vst [vmem:[#allocation125_spill] sm:$0xff] %v24152_v59  ;;  %v24174_v33 = vpack.c.bf16 %v27103_v47, %v27102_v7  ;;  %v24182_v32 = vpack.c.bf16 %v27106_v42, %v27105_v12  ;;  %v27126_v11 = vld [vmem:[#allocation55_spill] sm:$0xff]  ;;  %v24267_v22 = vld [vmem:[%s26283_s3 + $0x28] sm:$0xff]  ;;  %v24273_v49 = vld [vmem:[%s26283_s3 + $0x10] sm:$0xff] }
 0x1ac   :  { %18608 = vmatpush1.bf16.msra.mxu0 %v24061_v51  ;;  %3322 = vmatprep.mubr.f32.mxu0 %v26748_v1  ;;  %27098 = vst [vmem:[#allocation126_spill] sm:$0xff] %v24160_v27  ;;  %27101 = vst [vmem:[#allocation127_spill] sm:$0xff] %v24166_v20  ;;  %v24190_v48 = vpack.c.bf16 %v27109_v28, %v27108_v14  ;;  %v27131_v14 = vld [vmem:[#allocation69_spill] sm:$0xff] }
 0x1ad   :  { %18610 = vmatprep.subr.bf16.mxu0 %v24069_v24  ;;  %27104 = vst [vmem:[#allocation128_spill] sm:$0xff] %v24174_v33  ;;  %27107 = vst [vmem:[#allocation129_spill] sm:$0xff] %v24182_v32 }
 0x1ae   :  { %18808 = vmatpush3.bf16.msra.mxu1 %v24075_v53  ;;  %27110 = vst [vmem:[#allocation130_spill] sm:$0xff] %v24190_v48 }
 0x1af   :  { %18810 = vmatprep.subr.bf16.mxu1 %v24099_v60 }
 0x1b0   :  { %18612 = vmatpush1.bf16.msra.mxu0 %v24085_v29 }
 0x1b1   :  { %18614 = vmatprep.subr.bf16.mxu0 %v24093_v25 }
 0x1b2   :  { %18812 = vmatpush3.bf16.msra.mxu1 %v24099_v60 }
 0x1b3   :  { %18814 = vmatprep.subr.bf16.mxu1 %v24122_v55 }
 0x1b4   :  { %18616 = vmatpush1.bf16.msra.mxu0 %v24108_v4 }
 0x1b5   :  { %18618 = vmatprep.subr.bf16.mxu0 %v24116_v57 }
 0x1b6   :  { %18816 = vmatpush3.bf16.msra.mxu1 %v24122_v55  ;;  %v27148_v55 = vld [vmem:[#allocation9_spill] sm:$0xff] }
 0x1b7   :  { %18818 = vmatprep.subr.bf16.mxu1 %v24144_v63 }
 0x1b8   :  { %18620 = vmatpush1.bf16.msra.mxu0 %v24130_v21 }
 0x1b9   :  { %18622 = vmatprep.subr.bf16.mxu0 %v24138_v26 }
 0x1ba   :  { %18820 = vmatpush3.bf16.msra.mxu1 %v24144_v63 }
 0x1bb   :  { %18822 = vmatprep.subr.bf16.mxu1 %v24166_v20 }
 0x1bc   :  { %18624 = vmatpush1.bf16.msra.mxu0 %v24152_v59 }
 0x1bd   :  { %18626 = vmatprep.subr.bf16.mxu0 %v24160_v27 }
 0x1be   :  { %18824 = vmatpush3.bf16.msra.mxu1 %v24166_v20 }
 0x1bf   :  { %18826 = vmatprep.subr.bf16.mxu1 %v27013_v23 }
 0x1c0   :  { %18628 = vmatpush1.bf16.msra.mxu0 %v24174_v33  ;;  %v27147_v33 = vld [vmem:[#allocation13_spill] sm:$0xff] }
 0x1c1   :  { %18630 = vmatprep.subr.bf16.mxu0 %v24182_v32  ;;  %16966 = vmatmul.mubr.f32.vlgmr.msra.gmra.mrb[48].mxu1 %v26748_v1 }
 0x1c2   :  { %18828 = vmatpush3.bf16.msra.mxu1 %v27013_v23  ;;  %17000 = vmatprep.mubr.f32.mxu1 %v26748_v1 }
 0x1c3   :  { %18830 = vmatprep.subr.bf16.mxu1 %v27015_v6 }
 0x1c4   :  { %18632 = vmatpush1.bf16.msra.mxu0 %v24190_v48 }
 0x1c5   :  { %18634 = vmatprep.subr.bf16.mxu0 %v27014_v44 }
 0x1c6   :  { %18832 = vmatpush3.bf16.msra.mxu1 %v27015_v6 }
 0x1c7   :  { %3323 = vmatmul.mubr.f32.vlgmr.msra.gmra.mrb[0].mxu0 %v26748_v1  ;;  %18834 = vmatprep.subr.bf16.mxu1 %v27018_v56 }
 0x1c8   :  { %18636 = vmatpush1.bf16.msra.mxu0 %v27016_v61  ;;  %3328 = vmatprep.mubr.f32.mxu0 %v26748_v1 }
 0x1c9   :  { %18638 = vmatprep.subr.bf16.mxu0 %v27017_v43 }
 0x1ca   :  { %18836 = vmatpush3.bf16.msra.mxu1 %v27018_v56 }
 0x1cb   :  { %3329 = vmatmul.mubr.f32.gmra.mrb[2].mxu0 %v26748_v1  ;;  %18838 = vmatprep.subr.bf16.mxu1 %v27113_v34 }
 0x1cc   :  { %18640 = vmatpush1.bf16.msra.mxu0 %v27111_v13  ;;  %3431 = vmatprep.mubr.f32.mxu0 %v26748_v1 }
 0x1cd   :  { %18642 = vmatprep.subr.bf16.mxu0 %v27112_v19 }
 0x1ce   :  { %18840 = vmatpush3.bf16.msra.mxu1 %v27113_v34 }
 0x1cf   :  { %18842 = vmatprep.subr.bf16.mxu1 %v27116_v40 }
 0x1d0   :  { %18644 = vmatpush1.bf16.msra.mxu0 %v27114_v36 }
 0x1d1   :  { %18646 = vmatprep.subr.bf16.mxu0 %v27115_v31 }
 0x1d2   :  { %18844 = vmatpush3.bf16.msra.mxu1 %v27116_v40 }
 0x1d3   :  { %18846 = vmatprep.subr.bf16.mxu1 %v27119_v45 }
 0x1d4   :  { %18648 = vmatpush1.bf16.msra.mxu0 %v27117_v10 }
 0x1d5   :  { %18650 = vmatprep.subr.bf16.mxu0 %v27118_v8 }
 0x1d6   :  { %18848 = vmatpush3.bf16.msra.mxu1 %v27119_v45 }
 0x1d7   :  { %18850 = vmatprep.subr.bf16.mxu1 %v27122_v30 }
 0x1d8   :  { %18652 = vmatpush1.bf16.msra.mxu0 %v27120_v37 }
 0x1d9   :  { %18654 = vmatprep.subr.bf16.mxu0 %v27121_v17 }
 0x1da   :  { %18852 = vmatpush3.bf16.msra.mxu1 %v27122_v30 }
 0x1db   :  { %18854 = vmatprep.subr.bf16.mxu1 %v27033_v62 }
 0x1dc   :  { %18656 = vmatpush1.bf16.msra.mxu0 %v27123_v5 }
 0x1dd   :  { %18658 = vmatprep.subr.bf16.mxu0 %v27124_v0 }
 0x1de   :  { %18856 = vmatpush3.bf16.msra.mxu1 %v27033_v62 }
 0x1df   :  { %19050 = vmatprep.subr.bf16.mxu1 %v27013_v23 }
 0x1e0   :  { %18660 = vmatpush1.bf16.msra.mxu0 %v27125_v52 }
 0x1e1   :  { %18662 = vmatprep.subr.bf16.mxu0 %v27126_v11  ;;  %17001 = vmatmul.mubr.f32.vlgmr.msra.gmra.mrb[48].mxu1 %v26748_v1 }
 0x1e2   :  { %19052 = vmatpush3.bf16.msra.mxu1 %v27013_v23 }
 0x1e3   :  { %19054 = vmatprep.subr.bf16.mxu1 %v27015_v6 }
 0x1e4   :  { %18664 = vmatpush1.bf16.msra.mxu0 %v27047_v16 }
 0x1e5   :  { %18858 = vmatprep.subr.bf16.mxu0 %v27014_v44 }
 0x1e6   :  { %19056 = vmatpush3.bf16.msra.mxu1 %v27015_v6 }
 0x1e7   :  { %3432 = vmatmul.mubr.f32.vlgmr.msra.gmra.mrb[0].mxu0 %v26748_v1  ;;  %19058 = vmatprep.subr.bf16.mxu1 %v27018_v56 }
 0x1e8   :  { %3437 = vmatprep.mubr.f32.mxu0 %v26748_v1  ;;  %18860 = vmatpush1.bf16.msra.mxu0 %v27016_v61 }
 0x1e9   :  { %18862 = vmatprep.subr.bf16.mxu0 %v27017_v43 }
 0x1ea   :  { %19060 = vmatpush3.bf16.msra.mxu1 %v27018_v56 }
 0x1eb   :  { %3438 = vmatmul.mubr.f32.gmra.mrb[2].mxu0 %v26748_v1  ;;  %19062 = vmatprep.subr.bf16.mxu1 %v27113_v34 }
 0x1ec   :  { %18864 = vmatpush1.bf16.msra.mxu0 %v27111_v13  ;;  %4249 = vmatprep.mubr.f32.mxu0 %v26748_v1 }
 0x1ed   :  { %18866 = vmatprep.subr.bf16.mxu0 %v27112_v19 }
 0x1ee   :  { %19064 = vmatpush3.bf16.msra.mxu1 %v27113_v34 }
 0x1ef   :  { %19066 = vmatprep.subr.bf16.mxu1 %v27116_v40 }
 0x1f0   :  { %18868 = vmatpush1.bf16.msra.mxu0 %v27114_v36 }
 0x1f1   :  { %18870 = vmatprep.subr.bf16.mxu0 %v27115_v31 }
 0x1f2   :  { %19068 = vmatpush3.bf16.msra.mxu1 %v27116_v40 }
 0x1f3   :  { %v24256_v58 = vpop.f32.mrb[32].mxu1  ;;  %19070 = vmatprep.subr.bf16.mxu1 %v27119_v45 }
 0x1f4   :  { %18872 = vmatpush1.bf16.msra.mxu0 %v27117_v10  ;;  %v24259_v54 = vpop.f32.mrb[33].mxu1 }
 0x1f5   :  { %18874 = vmatprep.subr.bf16.mxu0 %v27118_v8 }
 0x1f6   :  { %19072 = vmatpush3.bf16.msra.mxu1 %v27119_v45 }
 0x1f7   :  { %v16774_v2 = vpop.f32.mrb[34].mxu1  ;;  %19074 = vmatprep.subr.bf16.mxu1 %v27122_v30 }
 0x1f8   :  { %18876 = vmatpush1.bf16.msra.mxu0 %v27120_v37  ;;  %v24276_v39 = vadd.f32 %v16774_v2, %v24267_v22  ;;  %v2321_v3 = vpop.f32.mrb[35].mxu1 }
 0x1f9   :  { %18878 = vmatprep.subr.bf16.mxu0 %v27121_v17  ;;  %v24279_v15 = vadd.f32 %v24273_v49, %v2321_v3 }
 0x1fa   :  { %27127 = vst [vmem:[#allocation27_spill] sm:$0xff] %v24276_v39  ;;  %19076 = vmatpush3.bf16.msra.mxu1 %v27122_v30 }
 0x1fb   :  { %27128 = vst [vmem:[#allocation28_spill] sm:$0xff] %v24279_v15  ;;  %v16777_v9 = vpop.f32.mrb[36].mxu1  ;;  %19078 = vmatprep.subr.bf16.mxu1 %v27033_v62 }
 0x1fc   :  { %18880 = vmatpush1.bf16.msra.mxu0 %v27123_v5  ;;  %v24286_v7 = vadd.f32 %v16777_v9, %v24267_v22  ;;  %v2333_v47 = vpop.f32.mrb[37].mxu1  ;;  %v27134_v9 = vld [vmem:[#allocation18_spill] sm:$0xff] }
 0x1fd   :  { %18882 = vmatprep.subr.bf16.mxu0 %v27124_v0  ;;  %v24289_v12 = vadd.f32 %v24273_v49, %v2333_v47 }
 0x1fe   :  { %27129 = vst [vmem:[#allocation64_spill] sm:$0xff] %v24286_v7  ;;  %19080 = vmatpush3.bf16.msra.mxu1 %v27033_v62 }
 0x1ff   :  { %27130 = vst [vmem:[#allocation31_spill] sm:$0xff] %v24289_v12  ;;  %v16780_v42 = vpop.f32.mrb[38].mxu1  ;;  %19082 = vmatprep.subr.bf16.mxu1 %v27131_v14 }
 0x200   :  { %18884 = vmatpush1.bf16.msra.mxu0 %v27125_v52  ;;  %v24296_v28 = vadd.f32 %v16780_v42, %v24267_v22  ;;  %v2345_v2 = vpop.f32.mrb[39].mxu1 }
 0x201   :  { %18886 = vmatprep.subr.bf16.mxu0 %v27126_v11  ;;  %v24299_v3 = vadd.f32 %v24273_v49, %v2345_v2 }
 0x202   :  { %27132 = vst [vmem:[#allocation32_spill] sm:$0xff] %v24296_v28 }
 0x203   :  { %27133 = vst [vmem:[#allocation35_spill] sm:$0xff] %v24299_v3  ;;  %v16783_v47 = vpop.f32.mrb[40].mxu1 }
 0x204   :  { %18888 = vmatpush1.bf16.msra.mxu0 %v27047_v16  ;;  %v24304_v7 = vadd.f32 %v16783_v47, %v24267_v22  ;;  %v2357_v12 = vpop.f32.mrb[41].mxu1 }
 0x205   :  { %18890 = vmatprep.subr.bf16.mxu0 %v27134_v9  ;;  %v24307_v39 = vadd.f32 %v24273_v49, %v2357_v12 }
 0x206   :  { %27135 = vst [vmem:[#allocation36_spill] sm:$0xff] %v24304_v7 }
 0x207   :  { %27136 = vst [vmem:[#allocation69_spill] sm:$0xff] %v24307_v39  ;;  %v16786_v15 = vpop.f32.mrb[42].mxu1 }
 0x208   :  { %v24310_v42 = vadd.f32 %v16786_v15, %v24267_v22  ;;  %v2369_v28 = vpop.f32.mrb[43].mxu1 }
 0x209   :  { %v24313_v2 = vadd.f32 %v24273_v49, %v2369_v28  ;;  %v24330_v28 = vld [vmem:[%s26283_s3] sm:$0xff] }
 0x20a   :  { %27137 = vst [vmem:[#allocation131_spill] sm:$0xff] %v24310_v42  ;;  %27143 = vst [vmem:[#allocation137_spill] sm:$0xff] %v24330_v28 }
 0x20b   :  { %27138 = vst [vmem:[#allocation132_spill] sm:$0xff] %v24313_v2  ;;  %v16789_v3 = vpop.f32.mrb[44].mxu1  ;;  %v24349_v2 = vld [vmem:[%s26283_s3 + $0x20] sm:$0xff] }
 0x20c   :  { %v24316_v20 = vadd.f32 %v16789_v3, %v24267_v22  ;;  %v2381_v9 = vpop.f32.mrb[45].mxu1  ;;  %v24335_v3 = vld [vmem:[%s26283_s3 + $0x8] sm:$0xff] }
 0x20d   :  { %v24319_v47 = vadd.f32 %v24273_v49, %v2381_v9  ;;  %27144 = vst [vmem:[#allocation138_spill] sm:$0xff] %v24335_v3 }
 0x20e   :  { %27139 = vst [vmem:[#allocation133_spill] sm:$0xff] %v24316_v20  ;;  %v27145_v20 = vld [vmem:[#allocation11_spill] sm:$0xff] }
 0x20f   :  { %27140 = vst [vmem:[#allocation134_spill] sm:$0xff] %v24319_v47  ;;  %v16792_v7 = vpop.f32.mrb[46].mxu1 }
 0x210   :  { %v24322_v12 = vadd.f32 %v16792_v7, %v24267_v22  ;;  %v2393_v39 = vpop.f32.mrb[47].mxu1  ;;  %v21547_v7 = vadd.f32 %v24330_v28, %v27145_v20 }
 0x211   :  { %v24325_v15 = vadd.f32 %v24273_v49, %v2393_v39  ;;  %v24344_v39 = vld [vmem:[%s26283_s3 + $0x18] sm:$0xff] }
 0x212   :  { %27141 = vst [vmem:[#allocation135_spill] sm:$0xff] %v24322_v12  ;;  %v27146_v12 = vld [vmem:[#allocation12_spill] sm:$0xff]  ;;  %v21551_v20 = vadd.f32 %v24344_v39, %v27147_v33 }
 0x213   :  { %27142 = vst [vmem:[#allocation136_spill] sm:$0xff] %v24325_v15  ;;  %v21549_v47 = vadd.f32 %v24335_v3, %v27146_v12  ;;  %v21553_v12 = vadd.f32 %v24349_v2, %v27148_v55  ;;  %v24358_v55 = vld [vmem:[%s26284_s4] ss:$0 sm:$0xff] }
 0x2b4   :  { %v17002_v42 = vpop.f32.mrb[48].mxu1 }
 0x2b5   :  { %v4093_v9 = vpop.f32.mrb[49].mxu1 }
 0x2ba   :  { %v3433_v15 = vpop.f32.mrb[0].mxu0 }
 0x2bb   :  { %v21548_v48 = vadd.f32 %v21547_v7, %v3433_v15  ;;  %v3435_v63 = vpop.f32.mrb[1].mxu0 }
 0x2bc   :  { %v21550_v32 = vadd.f32 %v21549_v47, %v3435_v63 }
 0x2bd   :  { %v15639_v28 = vmul.f32 -1.442695, %v21548_v48 }
 0x2be   :  { %v3439_v3 = vpop.f32.mrb[2].mxu0  ;;  %v15641_v21 = vmul.f32 -1.442695, %v21550_v32  ;;  %v4131_v32 = vadd.f32 %v17002_v42, %v24358_v55 }
 0x2bf   :  { %22099 = vpow2.f32 %v15639_v28  ;;  %v21552_v27 = vadd.f32 %v21551_v20, %v3439_v3  ;;  %v3441_v59 = vpop.f32.mrb[3].mxu0  ;;  %v2414_v20 = vadd.f32 %v24256_v58, %v24267_v22 }
 0x2c0   :  { %v21554_v60 = vadd.f32 %v21553_v12, %v3441_v59 }
 0x2c1   :  { %v15640_v26 = vmul.f32 -1.442695, %v21552_v27  ;;  %v4130_v27 = vadd.f32 %v24358_v55, %v4093_v9 }
 0x2c2   :  { %v15642_v53 = vmul.f32 -1.442695, %v21554_v60 }
 0x2c3   :  { %22101 = vpow2.f32 %v15640_v26 }
 0x2c4   :  { %22103 = vpow2.f32 %v15641_v21 }
 0x2c5   :  { %22105 = vpow2.f32 %v15642_v53  ;;  %v2411_v53 = vadd.f32 %v24273_v49, %v24259_v54 }
 0x2c9   :  { %v22100_v15 = vpop.eup %22099 }
 0x2ca   :  { %v4110_v63 = vadd.f32 1.0, %v22100_v15 }
 0x2cc   :  { %22107 = vrcp.f32 %v4110_v63 }
 0x2cd   :  { %v22102_v47 = vpop.eup %22101 }
 0x2ce   :  { %v4111_v33 = vadd.f32 1.0, %v22102_v47  ;;  %v22104_v48 = vpop.eup %22103 }
 0x2cf   :  { %v22106_v28 = vpop.eup %22105  ;;  %v4124_v59 = vadd.f32 1.0, %v22104_v48 }
 0x2d0   :  { %22109 = vrcp.f32 %v4111_v33  ;;  %v4125_v60 = vadd.f32 1.0, %v22106_v28 }
 0x2d1   :  { %22111 = vrcp.f32 %v4124_v59 }
 0x2d2   :  { %22113 = vrcp.f32 %v4125_v60 }
 0x2d6   :  { %v22108_v26 = vpop.eup %22107 }
 0x2d7   :  { %v4132_v21 = vmul.f32 %v22108_v26, %v4130_v27 }
 0x2d9   :  { %v4134_v3 = vadd.f32 %v4132_v21, %v2411_v53 }
 0x2da   :  { %v22110_v7 = vpop.eup %22109 }
 0x2db   :  { %22115 = vtanh.f32 %v4134_v3  ;;  %v4133_v12 = vmul.f32 %v22110_v7, %v4131_v32  ;;  %v22112_v9 = vpop.eup %22111 }
 0x2dc   :  { %v22114_v63 = vpop.eup %22113  ;;  %v4138_v47 = vsub.f32 1.0, %v22112_v9  ;;  %v4142_v54 = vmul.f32 0.0, %v22112_v9 }
 0x2dd   :  { %v4135_v15 = vadd.f32 %v4133_v12, %v2414_v20  ;;  %v4139_v28 = vsub.f32 1.0, %v22114_v63  ;;  %v4143_v26 = vmul.f32 0.0, %v22114_v63  ;;  %v27149_v12 = vld [vmem:[#allocation71_spill] sm:$0xff]  ;;  %v27151_v63 = vld [vmem:[#allocation78_spill] sm:$0xff] }
 0x2df   :  { %22117 = vtanh.f32 %v4135_v15  ;;  %v27150_v15 = vld [vmem:[#allocation72_spill] sm:$0xff] }
 0x2e5   :  { %v22116_v33 = vpop.eup %22115 }
 0x2e6   :  { %v4140_v48 = vmul.f32 %v22116_v33, %v4138_v47  ;;  %v27152_v47 = vld [vmem:[#allocation80_spill] sm:$0xff]  ;;  %v27153_v33 = vld [vmem:[#allocation70_spill] sm:$0xff] }
 0x2e8   :  { %v24366_v49 = vadd.f32 %v4142_v54, %v4140_v48  ;;  %v27154_v48 = vld [vmem:[#allocation85_spill] sm:$0xff]  ;;  %v27155_v54 = vld [vmem:[#allocation86_spill] sm:$0xff] }
 0x2e9   :  { %v22118_v42 = vpop.eup %22117 }
 0x2ea   :  { %v24369_v59 = vand.u32 4294901760, %v24366_v49  ;;  %v4141_v27 = vmul.f32 %v22118_v42, %v4139_v28  ;;  %v27156_v28 = vld [vmem:[#allocation73_spill] sm:$0xff]  ;;  %v27157_v42 = vld [vmem:[#allocation88_spill] sm:$0xff] }
 0x2ec   :  { %v24373_v58 = vsub.f32 %v24366_v49, %v24369_v59  ;;  %v24375_v22 = vadd.f32 %v4143_v26, %v4141_v27  ;;  %v27158_v27 = vld [vmem:[#allocation42_spill] sm:$0xff]  ;;  %v27159_v26 = vld [vmem:[#allocation84_spill] sm:$0xff] }
 0x2ee   :  { %v24378_v60 = vand.u32 4294901760, %v24373_v58  ;;  %v24381_v53 = vand.u32 4294901760, %v24375_v22 }
 0x2f0   :  { %v4253_v21 = vsub.f32 %v24373_v58, %v24378_v60  ;;  %v24387_v32 = vsub.f32 %v24375_v22, %v24381_v53 }
 0x2f2   :  { %v4254_v3 = vand.u32 4294901760, %v4253_v21  ;;  %v24390_v7 = vand.u32 4294901760, %v24387_v32  ;;  %v27160_v21 = vld [vmem:[#allocation48_spill] sm:$0xff] }
 0x2f4   :  { %4255 = vmatmul.mubr.f32.vlgmr.msra.gmra.mrb[4].mxu0 %v4254_v3  ;;  %17035 = vmatprep.mubr.f32.mxu1 %v4254_v3  ;;  %v4264_v20 = vsub.f32 %v24387_v32, %v24390_v7  ;;  %v27161_v3 = vld [vmem:[#allocation51_spill] sm:$0xff] }
 0x2f5   :  { %18892 = vmatpush1.bf16.msra.mxu0 %v27149_v12  ;;  %4260 = vmatprep.mubr.f32.mxu0 %v26748_v1 }
 0x2f6   :  { %18894 = vmatprep.subr.bf16.mxu0 %v27150_v15  ;;  %v4265_v9 = vand.u32 4294901760, %v4264_v20  ;;  %v27162_v20 = vld [vmem:[#allocation87_spill] sm:$0xff] }
 0x2f8   :  { %4266 = vmatmul.mubr.f32.gmra.mrb[6].mxu0 %v4265_v9  ;;  %17036 = vmatmul.mubr.f32.vlgmr.msra.gmra.mrb[50].mxu1 %v4265_v9  ;;  %v27163_v9 = vld [vmem:[#allocation97_spill] sm:$0xff] }
 0x2f9   :  { %18896 = vmatpush1.bf16.msra.mxu0 %v27151_v63  ;;  %19084 = vmatpush3.bf16.msra.mxu1 %v27131_v14 }
 0x2fa   :  { %17070 = vmatprep.mubr.f32.mxu1 %v24369_v59  ;;  %18898 = vmatprep.subr.bf16.mxu0 %v27152_v47 }
 0x2fb   :  { %19086 = vmatprep.subr.bf16.mxu1 %v27153_v33  ;;  %4496 = vmatprep.mubr.f32.mxu0 %v26748_v1 }
 0x2fd   :  { %18900 = vmatpush1.bf16.msra.mxu0 %v27154_v48  ;;  %19088 = vmatpush3.bf16.msra.mxu1 %v27153_v33 }
 0x2fe   :  { %18902 = vmatprep.subr.bf16.mxu0 %v27155_v54  ;;  %19090 = vmatprep.subr.bf16.mxu1 %v27156_v28  ;;  %v27164_v54 = vld [vmem:[#allocation98_spill] sm:$0xff] }
 0x301   :  { %18904 = vmatpush1.bf16.msra.mxu0 %v27157_v42  ;;  %19092 = vmatpush3.bf16.msra.mxu1 %v27156_v28  ;;  %v27165_v42 = vld [vmem:[#allocation91_spill] sm:$0xff]  ;;  %v27166_v28 = vld [vmem:[#allocation100_spill] sm:$0xff] }
 0x302   :  { %18906 = vmatprep.subr.bf16.mxu0 %v27158_v27  ;;  %19094 = vmatprep.subr.bf16.mxu1 %v27159_v26  ;;  %v27167_v27 = vld [vmem:[#allocation101_spill] sm:$0xff] }
 0x305   :  { %18908 = vmatpush1.bf16.msra.mxu0 %v27160_v21  ;;  %19096 = vmatpush3.bf16.msra.mxu1 %v27159_v26  ;;  %v27168_v21 = vld [vmem:[#allocation95_spill] sm:$0xff]  ;;  %v27169_v26 = vld [vmem:[#allocation56_spill] sm:$0xff] }
 0x306   :  { %18910 = vmatprep.subr.bf16.mxu0 %v27161_v3  ;;  %19098 = vmatprep.subr.bf16.mxu1 %v27162_v20  ;;  %v27170_v3 = vld [vmem:[#allocation10_spill] sm:$0xff] }
 0x309   :  { %18912 = vmatpush1.bf16.msra.mxu0 %v27163_v9  ;;  %19100 = vmatpush3.bf16.msra.mxu1 %v27162_v20  ;;  %v27171_v9 = vld [vmem:[#allocation99_spill] sm:$0xff] }
 0x30a   :  { %18914 = vmatprep.subr.bf16.mxu0 %v27164_v54  ;;  %19102 = vmatprep.subr.bf16.mxu1 %v27165_v42  ;;  %v27172_v54 = vld [vmem:[#allocation58_spill] sm:$0xff]  ;;  %v27185_v20 = vld [vmem:[#allocation111_spill] sm:$0xff] }
 0x30d   :  { %18916 = vmatpush1.bf16.msra.mxu0 %v27166_v28  ;;  %19104 = vmatpush3.bf16.msra.mxu1 %v27165_v42  ;;  %v27173_v28 = vld [vmem:[#allocation59_spill] sm:$0xff] }
 0x30e   :  { %18918 = vmatprep.subr.bf16.mxu0 %v27167_v27  ;;  %19106 = vmatprep.subr.bf16.mxu1 %v27168_v21  ;;  %v27174_v27 = vld [vmem:[#allocation54_spill] sm:$0xff]  ;;  %v27181_v42 = vld [vmem:[#allocation107_spill] sm:$0xff] }
 0x311   :  { %18920 = vmatpush1.bf16.msra.mxu0 %v27169_v26  ;;  %19108 = vmatpush3.bf16.msra.mxu1 %v27168_v21  ;;  %v27175_v26 = vld [vmem:[#allocation61_spill] sm:$0xff]  ;;  %v27180_v21 = vld [vmem:[#allocation60_spill] sm:$0xff] }
 0x312   :  { %18922 = vmatprep.subr.bf16.mxu0 %v27170_v3  ;;  %19110 = vmatprep.subr.bf16.mxu1 %v27171_v9  ;;  %v27176_v3 = vld [vmem:[#allocation102_spill] sm:$0xff] }
 0x314   :  { %4498 = vmatmul.mubr.f32.vlgmr.msra.gmra.mrb[4].mxu0 %v24369_v59 }
 0x315   :  { %18924 = vmatpush1.bf16.msra.mxu0 %v27172_v54  ;;  %19112 = vmatpush3.bf16.msra.mxu1 %v27171_v9  ;;  %v27177_v54 = vld [vmem:[#allocation57_spill] sm:$0xff]  ;;  %v27178_v9 = vld [vmem:[#allocation104_spill] sm:$0xff] }
 0x316   :  { %4503 = vmatprep.mubr.f32.mxu0 %v26748_v1  ;;  %18926 = vmatprep.subr.bf16.mxu0 %v27173_v28  ;;  %v27179_v28 = vld [vmem:[#allocation105_spill] sm:$0xff] }
 0x317   :  { %19114 = vmatprep.subr.bf16.mxu1 %v27174_v27 }
 0x318   :  { %4505 = vmatmul.mubr.f32.gmra.mrb[6].mxu0 %v24381_v53  ;;  %17071 = vmatmul.mubr.f32.vlgmr.msra.gmra.mrb[50].mxu1 %v24381_v53 }
 0x319   :  { %18928 = vmatpush1.bf16.msra.mxu0 %v27175_v26  ;;  %19116 = vmatpush3.bf16.msra.mxu1 %v27174_v27  ;;  %v27182_v26 = vld [vmem:[#allocation108_spill] sm:$0xff]  ;;  %v27183_v27 = vld [vmem:[#allocation103_spill] sm:$0xff] }
 0x31a   :  { %17105 = vmatprep.mubr.f32.mxu1 %v24373_v58  ;;  %18930 = vmatprep.subr.bf16.mxu0 %v27176_v3  ;;  %v27184_v3 = vld [vmem:[#allocation110_spill] sm:$0xff] }
 0x31b   :  { %19118 = vmatprep.subr.bf16.mxu1 %v27177_v54  ;;  %4639 = vmatprep.mubr.f32.mxu0 %v26748_v1 }
 0x31d   :  { %18932 = vmatpush1.bf16.msra.mxu0 %v27178_v9  ;;  %19120 = vmatpush3.bf16.msra.mxu1 %v27177_v54  ;;  %v27186_v9 = vld [vmem:[#allocation106_spill] sm:$0xff] }
 0x31e   :  { %18934 = vmatprep.subr.bf16.mxu0 %v27179_v28  ;;  %19122 = vmatprep.subr.bf16.mxu1 %v27180_v21  ;;  %v27187_v54 = vld [vmem:[#allocation38_spill] sm:$0xff]  ;;  %v27188_v28 = vld [vmem:[#allocation39_spill] sm:$0xff] }
 0x321   :  { %18936 = vmatpush1.bf16.msra.mxu0 %v27181_v42  ;;  %19124 = vmatpush3.bf16.msra.mxu1 %v27180_v21  ;;  %v27189_v42 = vld [vmem:[#allocation109_spill] sm:$0xff]  ;;  %v27190_v21 = vld [vmem:[#allocation92_spill] sm:$0xff] }
 0x322   :  { %18938 = vmatprep.subr.bf16.mxu0 %v27182_v26  ;;  %19126 = vmatprep.subr.bf16.mxu1 %v27183_v27  ;;  %v27191_v26 = vld [vmem:[#allocation113_spill] sm:$0xff] }
 0x325   :  { %18940 = vmatpush1.bf16.msra.mxu0 %v27184_v3  ;;  %19128 = vmatpush3.bf16.msra.mxu1 %v27183_v27  ;;  %v27192_v3 = vld [vmem:[#allocation112_spill] sm:$0xff]  ;;  %v27193_v27 = vld [vmem:[#allocation114_spill] sm:$0xff] }
 0x326   :  { %18942 = vmatprep.subr.bf16.mxu0 %v27185_v20  ;;  %19130 = vmatprep.subr.bf16.mxu1 %v27186_v9 }
 0x329   :  { %18944 = vmatpush1.bf16.msra.mxu0 %v27187_v54  ;;  %19132 = vmatpush3.bf16.msra.mxu1 %v27186_v9  ;;  %v27194_v54 = vld [vmem:[#allocation41_spill] sm:$0xff] }
 0x32a   :  { %18946 = vmatprep.subr.bf16.mxu0 %v27188_v28  ;;  %19134 = vmatprep.subr.bf16.mxu1 %v27189_v42 }
 0x32d   :  { %18948 = vmatpush1.bf16.msra.mxu0 %v27190_v21  ;;  %19136 = vmatpush3.bf16.msra.mxu1 %v27189_v42 }
 0x32e   :  { %18950 = vmatprep.subr.bf16.mxu0 %v27191_v26  ;;  %19138 = vmatprep.subr.bf16.mxu1 %v27192_v3 }
 0x331   :  { %18952 = vmatpush1.bf16.msra.mxu0 %v27193_v27  ;;  %19140 = vmatpush3.bf16.msra.mxu1 %v27192_v3 }
 0x332   :  { %18954 = vmatprep.subr.bf16.mxu0 %v27014_v44  ;;  %19142 = vmatprep.subr.bf16.mxu1 %v27194_v54 }
 0x334   :  { %4642 = vmatmul.mubr.f32.vlgmr.msra.gmra.mrb[4].mxu0 %v24373_v58  ;;  %v27195_v58 = vld [vmem:[#allocation115_spill] sm:$0xff] }
 0x335   :  { %18956 = vmatpush1.bf16.msra.mxu0 %v27016_v61  ;;  %19144 = vmatpush3.bf16.msra.mxu1 %v27194_v54 }
 0x336   :  { %4647 = vmatprep.mubr.f32.mxu0 %v26748_v1  ;;  %18958 = vmatprep.subr.bf16.mxu0 %v27017_v43 }
 0x337   :  { %19146 = vmatprep.subr.bf16.mxu1 %v27013_v23 }
 0x338   :  { %4650 = vmatmul.mubr.f32.gmra.mrb[6].mxu0 %v24387_v32  ;;  %17106 = vmatmul.mubr.f32.vlgmr.msra.gmra.mrb[50].mxu1 %v24387_v32  ;;  %v27197_v32 = vld [vmem:[#allocation123_spill] sm:$0xff] }
 0x339   :  { %18960 = vmatpush1.bf16.msra.mxu0 %v27111_v13  ;;  %19148 = vmatpush3.bf16.msra.mxu1 %v27013_v23 }
 0x33a   :  { %17140 = vmatprep.mubr.f32.mxu1 %v24378_v60  ;;  %18962 = vmatprep.subr.bf16.mxu0 %v27112_v19 }
 0x33b   :  { %19150 = vmatprep.subr.bf16.mxu1 %v27015_v6  ;;  %4752 = vmatprep.mubr.f32.mxu0 %v26748_v1 }
 0x33d   :  { %18964 = vmatpush1.bf16.msra.mxu0 %v27114_v36  ;;  %19152 = vmatpush3.bf16.msra.mxu1 %v27015_v6 }
 0x33e   :  { %18966 = vmatprep.subr.bf16.mxu0 %v27115_v31  ;;  %19154 = vmatprep.subr.bf16.mxu1 %v27018_v56 }
 0x341   :  { %18968 = vmatpush1.bf16.msra.mxu0 %v27117_v10  ;;  %19156 = vmatpush3.bf16.msra.mxu1 %v27018_v56 }
 0x342   :  { %18970 = vmatprep.subr.bf16.mxu0 %v27118_v8  ;;  %19158 = vmatprep.subr.bf16.mxu1 %v27113_v34 }
 0x345   :  { %18972 = vmatpush1.bf16.msra.mxu0 %v27120_v37  ;;  %19160 = vmatpush3.bf16.msra.mxu1 %v27113_v34 }
 0x346   :  { %18974 = vmatprep.subr.bf16.mxu0 %v27121_v17  ;;  %19162 = vmatprep.subr.bf16.mxu1 %v27116_v40 }
 0x349   :  { %18976 = vmatpush1.bf16.msra.mxu0 %v27123_v5  ;;  %19164 = vmatpush3.bf16.msra.mxu1 %v27116_v40 }
 0x34a   :  { %18978 = vmatprep.subr.bf16.mxu0 %v27124_v0  ;;  %19166 = vmatprep.subr.bf16.mxu1 %v27119_v45 }
 0x34d   :  { %18980 = vmatpush1.bf16.msra.mxu0 %v27125_v52  ;;  %19168 = vmatpush3.bf16.msra.mxu1 %v27119_v45 }
 0x34e   :  { %18982 = vmatprep.subr.bf16.mxu0 %v27126_v11  ;;  %19170 = vmatprep.subr.bf16.mxu1 %v27122_v30 }
 0x351   :  { %18984 = vmatpush1.bf16.msra.mxu0 %v27047_v16  ;;  %19172 = vmatpush3.bf16.msra.mxu1 %v27122_v30 }
 0x352   :  { %18986 = vmatprep.subr.bf16.mxu0 %v24022_v41  ;;  %19174 = vmatprep.subr.bf16.mxu1 %v27033_v62 }
 0x354   :  { %4756 = vmatmul.mubr.f32.vlgmr.msra.gmra.mrb[4].mxu0 %v24378_v60  ;;  %v27196_v60 = vld [vmem:[#allocation122_spill] sm:$0xff] }
 0x355   :  { %18988 = vmatpush1.bf16.msra.mxu0 %v24037_v46  ;;  %19176 = vmatpush3.bf16.msra.mxu1 %v27033_v62 }
 0x356   :  { %4761 = vmatprep.mubr.f32.mxu0 %v26748_v1  ;;  %18990 = vmatprep.subr.bf16.mxu0 %v24045_v38 }
 0x357   :  { %19178 = vmatprep.subr.bf16.mxu1 %v24012_v35 }
 0x358   :  { %4765 = vmatmul.mubr.f32.gmra.mrb[6].mxu0 %v24390_v7  ;;  %17141 = vmatmul.mubr.f32.vlgmr.msra.gmra.mrb[50].mxu1 %v24390_v7  ;;  %v27198_v7 = vld [vmem:[#allocation118_spill] sm:$0xff] }
 0x359   :  { %18992 = vmatpush1.bf16.msra.mxu0 %v24061_v51  ;;  %19180 = vmatpush3.bf16.msra.mxu1 %v24012_v35  ;;  %v27213_v35 = vld [vmem:[#allocation22_spill] sm:$0xff] }
 0x35a   :  { %17175 = vmatprep.mubr.f32.mxu1 %v24369_v59  ;;  %18994 = vmatprep.subr.bf16.mxu0 %v24069_v24 }
 0x35b   :  { %19182 = vmatprep.subr.bf16.mxu1 %v24028_v50  ;;  %4931 = vmatprep.mubr.f32.mxu0 %v26748_v1 }
 0x35d   :  { %18996 = vmatpush1.bf16.msra.mxu0 %v24085_v29  ;;  %19184 = vmatpush3.bf16.msra.mxu1 %v24028_v50  ;;  %v27199_v29 = vld [vmem:[#allocation125_spill] sm:$0xff]  ;;  %v27212_v50 = vld [vmem:[#allocation20_spill] sm:$0xff] }
 0x35e   :  { %18998 = vmatprep.subr.bf16.mxu0 %v24093_v25  ;;  %19186 = vmatprep.subr.bf16.mxu1 %v24051_v18  ;;  %v27200_v25 = vld [vmem:[#allocation126_spill] sm:$0xff]  ;;  %v21559_v24 = vadd.f32 %v24344_v39, %v27212_v50 }
 0x361   :  { %19000 = vmatpush1.bf16.msra.mxu0 %v24108_v4  ;;  %19188 = vmatpush3.bf16.msra.mxu1 %v24051_v18  ;;  %v27201_v4 = vld [vmem:[#allocation121_spill] sm:$0xff]  ;;  %v27202_v18 = vld [vmem:[#allocation128_spill] sm:$0xff] }
 0x362   :  { %19002 = vmatprep.subr.bf16.mxu0 %v24116_v57  ;;  %19190 = vmatprep.subr.bf16.mxu1 %v27195_v58  ;;  %v27203_v57 = vld [vmem:[#allocation129_spill] sm:$0xff] }
 0x365   :  { %19004 = vmatpush1.bf16.msra.mxu0 %v27196_v60  ;;  %19192 = vmatpush3.bf16.msra.mxu1 %v27195_v58  ;;  %v27204_v60 = vld [vmem:[#allocation124_spill] sm:$0xff]  ;;  %v27205_v58 = vld [vmem:[#allocation130_spill] sm:$0xff] }
 0x366   :  { %19006 = vmatprep.subr.bf16.mxu0 %v27197_v32  ;;  %19194 = vmatprep.subr.bf16.mxu1 %v27198_v7 }
 0x369   :  { %19008 = vmatpush1.bf16.msra.mxu0 %v27199_v29  ;;  %19196 = vmatpush3.bf16.msra.mxu1 %v27198_v7  ;;  %v27206_v29 = vld [vmem:[#allocation127_spill] sm:$0xff] }
 0x36a   :  { %19010 = vmatprep.subr.bf16.mxu0 %v27200_v25  ;;  %19198 = vmatprep.subr.bf16.mxu1 %v27201_v4 }
 0x36d   :  { %19012 = vmatpush1.bf16.msra.mxu0 %v27202_v18  ;;  %19200 = vmatpush3.bf16.msra.mxu1 %v27201_v4 }
 0x36e   :  { %19014 = vmatprep.subr.bf16.mxu0 %v27203_v57  ;;  %19202 = vmatprep.subr.bf16.mxu1 %v27204_v60  ;;  %v27211_v57 = vld [vmem:[#allocation138_spill] sm:$0xff] }
 0x371   :  { %19016 = vmatpush1.bf16.msra.mxu0 %v27205_v58  ;;  %19204 = vmatpush3.bf16.msra.mxu1 %v27204_v60  ;;  %v27210_v60 = vld [vmem:[#allocation19_spill] sm:$0xff] }
 0x372   :  { %19018 = vmatprep.subr.bf16.mxu0 %v27014_v44  ;;  %19206 = vmatprep.subr.bf16.mxu1 %v27206_v29  ;;  %v21557_v18 = vadd.f32 %v27211_v57, %v27210_v60 }
 0x374   :  { %4933 = vmatmul.mubr.f32.vlgmr.msra.gmra.mrb[4].mxu0 %v24369_v59 }
 0x375   :  { %19020 = vmatpush1.bf16.msra.mxu0 %v27016_v61  ;;  %19208 = vmatpush3.bf16.msra.mxu1 %v27206_v29  ;;  %v27209_v29 = vld [vmem:[#allocation137_spill] sm:$0xff] }
 0x376   :  { %4938 = vmatprep.mubr.f32.mxu0 %v26748_v1  ;;  %19022 = vmatprep.subr.bf16.mxu0 %v27017_v43 }
 0x377   :  { %19210 = vmatprep.subr.bf16.mxu1 %v27013_v23 }
 0x378   :  { %4940 = vmatmul.mubr.f32.gmra.mrb[6].mxu0 %v24381_v53  ;;  %17176 = vmatmul.mubr.f32.vlgmr.msra.gmra.mrb[50].mxu1 %v24381_v53 }
 0x379   :  { %19024 = vmatpush1.bf16.msra.mxu0 %v27111_v13  ;;  %19212 = vmatpush3.bf16.msra.mxu1 %v27013_v23 }
 0x37a   :  { %17210 = vmatprep.mubr.f32.mxu1 %v24369_v59  ;;  %19026 = vmatprep.subr.bf16.mxu0 %v27112_v19 }
 0x37b   :  { %19214 = vmatprep.subr.bf16.mxu1 %v27015_v6  ;;  %5042 = vmatprep.mubr.f32.mxu0 %v26748_v1 }
 0x37d   :  { %19028 = vmatpush1.bf16.msra.mxu0 %v27114_v36  ;;  %19216 = vmatpush3.bf16.msra.mxu1 %v27015_v6 }
 0x37e   :  { %19030 = vmatprep.subr.bf16.mxu0 %v27115_v31  ;;  %19218 = vmatprep.subr.bf16.mxu1 %v27018_v56 }
 0x381   :  { %19032 = vmatpush1.bf16.msra.mxu0 %v27117_v10  ;;  %19220 = vmatpush3.bf16.msra.mxu1 %v27018_v56 }
 0x382   :  { %19034 = vmatprep.subr.bf16.mxu0 %v27118_v8  ;;  %19222 = vmatprep.subr.bf16.mxu1 %v27113_v34 }
 0x385   :  { %19036 = vmatpush1.bf16.msra.mxu0 %v27120_v37  ;;  %19224 = vmatpush3.bf16.msra.mxu1 %v27113_v34 }
 0x386   :  { %19038 = vmatprep.subr.bf16.mxu0 %v27121_v17  ;;  %19226 = vmatprep.subr.bf16.mxu1 %v27116_v40 }
 0x389   :  { %19040 = vmatpush1.bf16.msra.mxu0 %v27123_v5  ;;  %19228 = vmatpush3.bf16.msra.mxu1 %v27116_v40 }
 0x38a   :  { %19042 = vmatprep.subr.bf16.mxu0 %v27124_v0  ;;  %19230 = vmatprep.subr.bf16.mxu1 %v27119_v45 }
 0x38d   :  { %19044 = vmatpush1.bf16.msra.mxu0 %v27125_v52  ;;  %19232 = vmatpush3.bf16.msra.mxu1 %v27119_v45 }
 0x38e   :  { %19046 = vmatprep.subr.bf16.mxu0 %v27126_v11  ;;  %19234 = vmatprep.subr.bf16.mxu1 %v27122_v30 }
 0x391   :  { %19048 = vmatpush1.bf16.msra.mxu0 %v27047_v16  ;;  %19236 = vmatpush3.bf16.msra.mxu1 %v27122_v30 }
 0x392   :  { %19238 = vmatprep.subr.bf16.mxu1 %v27033_v62  ;;  %19242 = vmatprep.subr.bf16.mxu0 %v27014_v44 }
 0x394   :  { %5044 = vmatmul.mubr.f32.vlgmr.msra.gmra.mrb[4].mxu0 %v24369_v59  ;;  %v27207_v59 = vld [vmem:[#allocation18_spill] sm:$0xff] }
 0x395   :  { %19240 = vmatpush3.bf16.msra.mxu1 %v27033_v62  ;;  %5049 = vmatprep.mubr.f32.mxu0 %v26748_v1 }
 0x396   :  { %19244 = vmatpush1.bf16.msra.mxu0 %v27016_v61  ;;  %19434 = vmatprep.subr.bf16.mxu1 %v27013_v23 }
 0x397   :  { %19246 = vmatprep.subr.bf16.mxu0 %v27017_v43 }
 0x398   :  { %5051 = vmatmul.mubr.f32.gmra.mrb[6].mxu0 %v24381_v53  ;;  %17211 = vmatmul.mubr.f32.vlgmr.msra.gmra.mrb[50].mxu1 %v24381_v53  ;;  %v27208_v53 = vld [vmem:[#allocation14_spill] sm:$0xff] }
 0x399   :  { %19436 = vmatpush3.bf16.msra.mxu1 %v27013_v23  ;;  %5888 = vmatprep.mubr.f32.mxu0 %v26748_v1  ;;  %v21555_v58 = vadd.f32 %v27209_v29, %v27208_v53 }
 0x39a   :  { %19248 = vmatpush1.bf16.msra.mxu0 %v27111_v13  ;;  %19438 = vmatprep.subr.bf16.mxu1 %v27015_v6 }
 0x39b   :  { %19250 = vmatprep.subr.bf16.mxu0 %v27112_v19 }
 0x39d   :  { %19440 = vmatpush3.bf16.msra.mxu1 %v27015_v6 }
 0x39e   :  { %19252 = vmatpush1.bf16.msra.mxu0 %v27114_v36  ;;  %19442 = vmatprep.subr.bf16.mxu1 %v27018_v56 }
 0x39f   :  { %19254 = vmatprep.subr.bf16.mxu0 %v27115_v31 }
 0x3a1   :  { %19444 = vmatpush3.bf16.msra.mxu1 %v27018_v56 }
 0x3a2   :  { %19256 = vmatpush1.bf16.msra.mxu0 %v27117_v10  ;;  %19446 = vmatprep.subr.bf16.mxu1 %v27113_v34 }
 0x3a3   :  { %19258 = vmatprep.subr.bf16.mxu0 %v27118_v8 }
 0x3a5   :  { %19448 = vmatpush3.bf16.msra.mxu1 %v27113_v34 }
 0x3a6   :  { %19260 = vmatpush1.bf16.msra.mxu0 %v27120_v37  ;;  %19450 = vmatprep.subr.bf16.mxu1 %v27116_v40 }
 0x3a7   :  { %19262 = vmatprep.subr.bf16.mxu0 %v27121_v17 }
 0x3a9   :  { %19452 = vmatpush3.bf16.msra.mxu1 %v27116_v40 }
 0x3aa   :  { %19264 = vmatpush1.bf16.msra.mxu0 %v27123_v5  ;;  %19454 = vmatprep.subr.bf16.mxu1 %v27119_v45 }
 0x3ab   :  { %19266 = vmatprep.subr.bf16.mxu0 %v27124_v0 }
 0x3ad   :  { %19456 = vmatpush3.bf16.msra.mxu1 %v27119_v45 }
 0x3ae   :  { %19268 = vmatpush1.bf16.msra.mxu0 %v27125_v52  ;;  %19458 = vmatprep.subr.bf16.mxu1 %v27122_v30 }
 0x3af   :  { %19270 = vmatprep.subr.bf16.mxu0 %v27126_v11 }
 0x3b1   :  { %19460 = vmatpush3.bf16.msra.mxu1 %v27122_v30 }
 0x3b2   :  { %19272 = vmatpush1.bf16.msra.mxu0 %v27047_v16  ;;  %19462 = vmatprep.subr.bf16.mxu1 %v27033_v62 }
 0x3b3   :  { %19274 = vmatprep.subr.bf16.mxu0 %v27207_v59  ;;  %v21561_v59 = vadd.f32 %v24349_v2, %v27213_v35 }
 0x3b5   :  { %19464 = vmatpush3.bf16.msra.mxu1 %v27033_v62 }
 0x3b6   :  { %19466 = vmatprep.subr.bf16.mxu1 %v27131_v14 }
 0x467   :  { %v5045_v4 = vpop.f32.mrb[4].mxu0 }
 0x468   :  { %v21556_v25 = vadd.f32 %v21555_v58, %v5045_v4  ;;  %v5047_v7 = vpop.f32.mrb[5].mxu0 }
 0x469   :  { %v21558_v32 = vadd.f32 %v21557_v18, %v5047_v7 }
 0x46a   :  { %v15643_v51 = vmul.f32 -1.442695, %v21556_v25 }
 0x46b   :  { %v5052_v38 = vpop.f32.mrb[6].mxu0  ;;  %v17212_v46 = vpop.f32.mrb[50].mxu1  ;;  %v15645_v57 = vmul.f32 -1.442695, %v21558_v32 }
 0x46c   :  { %22119 = vpow2.f32 %v15643_v51  ;;  %v21560_v62 = vadd.f32 %v21559_v24, %v5052_v38  ;;  %v5054_v41 = vpop.f32.mrb[7].mxu0  ;;  %v5731_v29 = vpop.f32.mrb[51].mxu1 }
 0x46d   :  { %v21562_v53 = vadd.f32 %v21561_v59, %v5054_v41  ;;  %v5769_v38 = vadd.f32 %v24358_v55, %v5731_v29  ;;  %v5770_v41 = vadd.f32 %v17212_v46, %v24358_v55  ;;  %v27215_v59 = vld [vmem:[#allocation27_spill] sm:$0xff] }
 0x46e   :  { %v15644_v16 = vmul.f32 -1.442695, %v21560_v62 }
 0x46f   :  { %v15646_v4 = vmul.f32 -1.442695, %v21562_v53 }
 0x470   :  { %22121 = vpow2.f32 %v15644_v16  ;;  %v27214_v16 = vld [vmem:[#allocation28_spill] sm:$0xff] }
 0x471   :  { %22123 = vpow2.f32 %v15645_v57 }
 0x472   :  { %22125 = vpow2.f32 %v15646_v4 }
 0x476   :  { %v22120_v18 = vpop.eup %22119 }
 0x477   :  { %v5749_v58 = vadd.f32 1.0, %v22120_v18 }
 0x479   :  { %22127 = vrcp.f32 %v5749_v58 }
 0x47a   :  { %v22122_v50 = vpop.eup %22121 }
 0x47b   :  { %v5750_v25 = vadd.f32 1.0, %v22122_v50  ;;  %v22124_v39 = vpop.eup %22123 }
 0x47c   :  { %v22126_v35 = vpop.eup %22125  ;;  %v5763_v2 = vadd.f32 1.0, %v22124_v39 }
 0x47d   :  { %22129 = vrcp.f32 %v5750_v25  ;;  %v5764_v24 = vadd.f32 1.0, %v22126_v35 }
 0x47e   :  { %22131 = vrcp.f32 %v5763_v2 }
 0x47f   :  { %22133 = vrcp.f32 %v5764_v24 }
 0x483   :  { %v22128_v51 = vpop.eup %22127 }
 0x484   :  { %v5771_v62 = vmul.f32 %v22128_v51, %v5769_v38 }
 0x486   :  { %v5773_v60 = vadd.f32 %v5771_v62, %v27214_v16 }
 0x487   :  { %v22130_v32 = vpop.eup %22129 }
 0x488   :  { %v5772_v7 = vmul.f32 %v22130_v32, %v5770_v41  ;;  %22135 = vtanh.f32 %v5773_v60  ;;  %v22132_v57 = vpop.eup %22131 }
 0x489   :  { %v22134_v4 = vpop.eup %22133  ;;  %v5777_v18 = vsub.f32 1.0, %v22132_v57  ;;  %v5781_v29 = vmul.f32 %v22132_v57, %v24366_v49  ;;  %v27219_v57 = vld [vmem:[#allocation42_spill] sm:$0xff] }
 0x48a   :  { %v5774_v53 = vadd.f32 %v5772_v7, %v27215_v59  ;;  %v5778_v25 = vsub.f32 1.0, %v22134_v4  ;;  %v5782_v35 = vmul.f32 %v22134_v4, %v24375_v22  ;;  %v27216_v7 = vld [vmem:[#allocation86_spill] sm:$0xff]  ;;  %v27217_v59 = vld [vmem:[#allocation73_spill] sm:$0xff]  ;;  %v27220_v4 = vld [vmem:[#allocation84_spill] sm:$0xff] }
 0x48c   :  { %22137 = vtanh.f32 %v5774_v53  ;;  %v27218_v53 = vld [vmem:[#allocation88_spill] sm:$0xff] }
 0x492   :  { %v22136_v58 = vpop.eup %22135 }
 0x493   :  { %v5779_v50 = vmul.f32 %v22136_v58, %v5777_v18  ;;  %v27221_v18 = vld [vmem:[#allocation48_spill] sm:$0xff]  ;;  %v27222_v58 = vld [vmem:[#allocation51_spill] sm:$0xff] }
 0x495   :  { %v24631_v39 = vadd.f32 %v5781_v29, %v5779_v50  ;;  %v27223_v29 = vld [vmem:[#allocation87_spill] sm:$0xff]  ;;  %v27224_v50 = vld [vmem:[#allocation97_spill] sm:$0xff] }
 0x496   :  { %v22138_v46 = vpop.eup %22137 }
 0x497   :  { %v5780_v55 = vmul.f32 %v22138_v46, %v5778_v25  ;;  %v24635_v2 = vand.u32 4294901760, %v24631_v39  ;;  %v27225_v25 = vld [vmem:[#allocation98_spill] sm:$0xff]  ;;  %v27226_v46 = vld [vmem:[#allocation91_spill] sm:$0xff] }
 0x499   :  { %v24639_v38 = vsub.f32 %v24631_v39, %v24635_v2  ;;  %v24641_v51 = vadd.f32 %v5782_v35, %v5780_v55  ;;  %v27227_v55 = vld [vmem:[#allocation100_spill] sm:$0xff]  ;;  %v27228_v35 = vld [vmem:[#allocation101_spill] sm:$0xff] }
 0x49b   :  { %v24644_v24 = vand.u32 4294901760, %v24639_v38  ;;  %v24647_v49 = vand.u32 4294901760, %v24641_v51 }
 0x49d   :  { %v5892_v62 = vsub.f32 %v24639_v38, %v24644_v24  ;;  %v24653_v22 = vsub.f32 %v24641_v51, %v24647_v49 }
 0x49f   :  { %v5893_v41 = vand.u32 4294901760, %v5892_v62  ;;  %v24656_v16 = vand.u32 4294901760, %v24653_v22  ;;  %v27229_v62 = vld [vmem:[#allocation95_spill] sm:$0xff] }
 0x4a1   :  { %5894 = vmatmul.mubr.f32.vlgmr.msra.gmra.mrb[8].mxu0 %v5893_v41  ;;  %17245 = vmatprep.mubr.f32.mxu1 %v5893_v41  ;;  %v5903_v60 = vsub.f32 %v24653_v22, %v24656_v16  ;;  %v27230_v41 = vld [vmem:[#allocation56_spill] sm:$0xff] }
 0x4a2   :  { %19276 = vmatpush1.bf16.msra.mxu0 %v27149_v12  ;;  %5899 = vmatprep.mubr.f32.mxu0 %v26748_v1 }
 0x4a3   :  { %19278 = vmatprep.subr.bf16.mxu0 %v27150_v15  ;;  %v5904_v32 = vand.u32 4294901760, %v5903_v60  ;;  %v27231_v60 = vld [vmem:[#allocation10_spill] sm:$0xff] }
 0x4a5   :  { %5905 = vmatmul.mubr.f32.gmra.mrb[10].mxu0 %v5904_v32  ;;  %17246 = vmatmul.mubr.f32.vlgmr.msra.gmra.mrb[52].mxu1 %v5904_v32  ;;  %v27232_v32 = vld [vmem:[#allocation99_spill] sm:$0xff] }
 0x4a6   :  { %19280 = vmatpush1.bf16.msra.mxu0 %v27151_v63  ;;  %19468 = vmatpush3.bf16.msra.mxu1 %v27131_v14 }
 0x4a7   :  { %17280 = vmatprep.mubr.f32.mxu1 %v24635_v2  ;;  %19282 = vmatprep.subr.bf16.mxu0 %v27152_v47 }
 0x4a8   :  { %19470 = vmatprep.subr.bf16.mxu1 %v27153_v33  ;;  %6135 = vmatprep.mubr.f32.mxu0 %v26748_v1 }
 0x4aa   :  { %19284 = vmatpush1.bf16.msra.mxu0 %v27154_v48  ;;  %19472 = vmatpush3.bf16.msra.mxu1 %v27153_v33 }
 0x4ab   :  { %19286 = vmatprep.subr.bf16.mxu0 %v27216_v7  ;;  %19474 = vmatprep.subr.bf16.mxu1 %v27217_v59 }
 0x4ae   :  { %19288 = vmatpush1.bf16.msra.mxu0 %v27218_v53  ;;  %19476 = vmatpush3.bf16.msra.mxu1 %v27217_v59 }
 0x4af   :  { %19290 = vmatprep.subr.bf16.mxu0 %v27219_v57  ;;  %19478 = vmatprep.subr.bf16.mxu1 %v27220_v4 }
 0x4b2   :  { %19292 = vmatpush1.bf16.msra.mxu0 %v27221_v18  ;;  %19480 = vmatpush3.bf16.msra.mxu1 %v27220_v4 }
 0x4b3   :  { %19294 = vmatprep.subr.bf16.mxu0 %v27222_v58  ;;  %19482 = vmatprep.subr.bf16.mxu1 %v27223_v29 }
 0x4b6   :  { %19296 = vmatpush1.bf16.msra.mxu0 %v27224_v50  ;;  %19484 = vmatpush3.bf16.msra.mxu1 %v27223_v29 }
 0x4b7   :  { %19298 = vmatprep.subr.bf16.mxu0 %v27225_v25  ;;  %19486 = vmatprep.subr.bf16.mxu1 %v27226_v46  ;;  %v27233_v25 = vld [vmem:[#allocation58_spill] sm:$0xff] }
 0x4ba   :  { %19300 = vmatpush1.bf16.msra.mxu0 %v27227_v55  ;;  %19488 = vmatpush3.bf16.msra.mxu1 %v27226_v46  ;;  %v27234_v55 = vld [vmem:[#allocation59_spill] sm:$0xff] }
 0x4bb   :  { %19302 = vmatprep.subr.bf16.mxu0 %v27228_v35  ;;  %19490 = vmatprep.subr.bf16.mxu1 %v27229_v62  ;;  %v27235_v35 = vld [vmem:[#allocation54_spill] sm:$0xff]  ;;  %v27242_v46 = vld [vmem:[#allocation107_spill] sm:$0xff] }
 0x4be   :  { %19304 = vmatpush1.bf16.msra.mxu0 %v27230_v41  ;;  %19492 = vmatpush3.bf16.msra.mxu1 %v27229_v62  ;;  %v27236_v41 = vld [vmem:[#allocation61_spill] sm:$0xff]  ;;  %v27241_v62 = vld [vmem:[#allocation60_spill] sm:$0xff] }
 0x4bf   :  { %19306 = vmatprep.subr.bf16.mxu0 %v27231_v60  ;;  %19494 = vmatprep.subr.bf16.mxu1 %v27232_v32  ;;  %v27237_v60 = vld [vmem:[#allocation102_spill] sm:$0xff] }
 0x4c1   :  { %6137 = vmatmul.mubr.f32.vlgmr.msra.gmra.mrb[8].mxu0 %v24635_v2 }
 0x4c2   :  { %19308 = vmatpush1.bf16.msra.mxu0 %v27233_v25  ;;  %19496 = vmatpush3.bf16.msra.mxu1 %v27232_v32  ;;  %v27238_v25 = vld [vmem:[#allocation57_spill] sm:$0xff]  ;;  %v27239_v32 = vld [vmem:[#allocation104_spill] sm:$0xff] }
 0x4c3   :  { %6142 = vmatprep.mubr.f32.mxu0 %v26748_v1  ;;  %19310 = vmatprep.subr.bf16.mxu0 %v27234_v55  ;;  %v27240_v55 = vld [vmem:[#allocation105_spill] sm:$0xff] }
 0x4c4   :  { %19498 = vmatprep.subr.bf16.mxu1 %v27235_v35 }
 0x4c5   :  { %6144 = vmatmul.mubr.f32.gmra.mrb[10].mxu0 %v24647_v49  ;;  %17281 = vmatmul.mubr.f32.vlgmr.msra.gmra.mrb[52].mxu1 %v24647_v49 }
 0x4c6   :  { %19312 = vmatpush1.bf16.msra.mxu0 %v27236_v41  ;;  %19500 = vmatpush3.bf16.msra.mxu1 %v27235_v35  ;;  %v27243_v41 = vld [vmem:[#allocation108_spill] sm:$0xff]  ;;  %v27244_v35 = vld [vmem:[#allocation103_spill] sm:$0xff] }
 0x4c7   :  { %17315 = vmatprep.mubr.f32.mxu1 %v24639_v38  ;;  %19314 = vmatprep.subr.bf16.mxu0 %v27237_v60  ;;  %v27245_v60 = vld [vmem:[#allocation110_spill] sm:$0xff] }
 0x4c8   :  { %19502 = vmatprep.subr.bf16.mxu1 %v27238_v25  ;;  %6278 = vmatprep.mubr.f32.mxu0 %v26748_v1 }
 0x4ca   :  { %19316 = vmatpush1.bf16.msra.mxu0 %v27239_v32  ;;  %19504 = vmatpush3.bf16.msra.mxu1 %v27238_v25  ;;  %v27246_v32 = vld [vmem:[#allocation38_spill] sm:$0xff] }
 0x4cb   :  { %19318 = vmatprep.subr.bf16.mxu0 %v27240_v55  ;;  %19506 = vmatprep.subr.bf16.mxu1 %v27241_v62 }
 0x4ce   :  { %19320 = vmatpush1.bf16.msra.mxu0 %v27242_v46  ;;  %19508 = vmatpush3.bf16.msra.mxu1 %v27241_v62 }
 0x4cf   :  { %19322 = vmatprep.subr.bf16.mxu0 %v27243_v41  ;;  %19510 = vmatprep.subr.bf16.mxu1 %v27244_v35 }
 0x4d2   :  { %19324 = vmatpush1.bf16.msra.mxu0 %v27245_v60  ;;  %19512 = vmatpush3.bf16.msra.mxu1 %v27244_v35 }
 0x4d3   :  { %19326 = vmatprep.subr.bf16.mxu0 %v27185_v20  ;;  %19514 = vmatprep.subr.bf16.mxu1 %v27186_v9 }
 0x4d6   :  { %19328 = vmatpush1.bf16.msra.mxu0 %v27246_v32  ;;  %19516 = vmatpush3.bf16.msra.mxu1 %v27186_v9 }
 0x4d7   :  { %19330 = vmatprep.subr.bf16.mxu0 %v27188_v28  ;;  %19518 = vmatprep.subr.bf16.mxu1 %v27189_v42  ;;  %v27263_v28 = vld [vmem:[#allocation123_spill] sm:$0xff] }
 0x4da   :  { %19332 = vmatpush1.bf16.msra.mxu0 %v27190_v21  ;;  %19520 = vmatpush3.bf16.msra.mxu1 %v27189_v42  ;;  %v27253_v21 = vld [vmem:[#allocation16_spill] sm:$0xff]  ;;  %v27258_v42 = vld [vmem:[#allocation63_spill] sm:$0xff] }
 0x4db   :  { %19334 = vmatprep.subr.bf16.mxu0 %v27191_v26  ;;  %19522 = vmatprep.subr.bf16.mxu1 %v27192_v3  ;;  %v27252_v26 = vld [vmem:[#allocation21_spill] sm:$0xff] }
 0x4de   :  { %19336 = vmatpush1.bf16.msra.mxu0 %v27193_v27  ;;  %19524 = vmatpush3.bf16.msra.mxu1 %v27192_v3  ;;  %v27250_v27 = vld [vmem:[#allocation23_spill] sm:$0xff]  ;;  %v27251_v3 = vld [vmem:[#allocation24_spill] sm:$0xff] }
 0x4df   :  { %19338 = vmatprep.subr.bf16.mxu0 %v27014_v44  ;;  %19526 = vmatprep.subr.bf16.mxu1 %v27194_v54 }
 0x4e1   :  { %6281 = vmatmul.mubr.f32.vlgmr.msra.gmra.mrb[8].mxu0 %v24639_v38  ;;  %v27247_v38 = vld [vmem:[#allocation62_spill] sm:$0xff] }
 0x4e2   :  { %19340 = vmatpush1.bf16.msra.mxu0 %v27016_v61  ;;  %19528 = vmatpush3.bf16.msra.mxu1 %v27194_v54  ;;  %v27249_v54 = vld [vmem:[#allocation68_spill] sm:$0xff] }
 0x4e3   :  { %6286 = vmatprep.mubr.f32.mxu0 %v26748_v1  ;;  %19342 = vmatprep.subr.bf16.mxu0 %v27017_v43 }
 0x4e4   :  { %19530 = vmatprep.subr.bf16.mxu1 %v27013_v23 }
 0x4e5   :  { %6289 = vmatmul.mubr.f32.gmra.mrb[10].mxu0 %v24653_v22  ;;  %17316 = vmatmul.mubr.f32.vlgmr.msra.gmra.mrb[52].mxu1 %v24653_v22  ;;  %v27248_v22 = vld [vmem:[#allocation17_spill] sm:$0xff] }
 0x4e6   :  { %19344 = vmatpush1.bf16.msra.mxu0 %v27111_v13  ;;  %19532 = vmatpush3.bf16.msra.mxu1 %v27013_v23 }
 0x4e7   :  { %17350 = vmatprep.mubr.f32.mxu1 %v24644_v24  ;;  %19346 = vmatprep.subr.bf16.mxu0 %v27112_v19 }
 0x4e8   :  { %19534 = vmatprep.subr.bf16.mxu1 %v27015_v6  ;;  %6391 = vmatprep.mubr.f32.mxu0 %v26748_v1 }
 0x4ea   :  { %19348 = vmatpush1.bf16.msra.mxu0 %v27114_v36  ;;  %19536 = vmatpush3.bf16.msra.mxu1 %v27015_v6 }
 0x4eb   :  { %19350 = vmatprep.subr.bf16.mxu0 %v27115_v31  ;;  %19538 = vmatprep.subr.bf16.mxu1 %v27018_v56 }
 0x4ee   :  { %19352 = vmatpush1.bf16.msra.mxu0 %v27117_v10  ;;  %19540 = vmatpush3.bf16.msra.mxu1 %v27018_v56 }
 0x4ef   :  { %19354 = vmatprep.subr.bf16.mxu0 %v27118_v8  ;;  %19542 = vmatprep.subr.bf16.mxu1 %v27113_v34 }
 0x4f2   :  { %19356 = vmatpush1.bf16.msra.mxu0 %v27120_v37  ;;  %19544 = vmatpush3.bf16.msra.mxu1 %v27113_v34 }
 0x4f3   :  { %19358 = vmatprep.subr.bf16.mxu0 %v27121_v17  ;;  %19546 = vmatprep.subr.bf16.mxu1 %v27116_v40 }
 0x4f6   :  { %19360 = vmatpush1.bf16.msra.mxu0 %v27123_v5  ;;  %19548 = vmatpush3.bf16.msra.mxu1 %v27116_v40 }
 0x4f7   :  { %19362 = vmatprep.subr.bf16.mxu0 %v27124_v0  ;;  %19550 = vmatprep.subr.bf16.mxu1 %v27119_v45 }
 0x4fa   :  { %19364 = vmatpush1.bf16.msra.mxu0 %v27125_v52  ;;  %19552 = vmatpush3.bf16.msra.mxu1 %v27119_v45 }
 0x4fb   :  { %19366 = vmatprep.subr.bf16.mxu0 %v27126_v11  ;;  %19554 = vmatprep.subr.bf16.mxu1 %v27122_v30 }
 0x4fe   :  { %19368 = vmatpush1.bf16.msra.mxu0 %v27247_v38  ;;  %19556 = vmatpush3.bf16.msra.mxu1 %v27122_v30 }
 0x4ff   :  { %19370 = vmatprep.subr.bf16.mxu0 %v27248_v22  ;;  %19558 = vmatprep.subr.bf16.mxu1 %v27249_v54  ;;  %v27256_v22 = vld [vmem:[#allocation116_spill] sm:$0xff] }
 0x501   :  { %6395 = vmatmul.mubr.f32.vlgmr.msra.gmra.mrb[8].mxu0 %v24644_v24  ;;  %v27254_v24 = vld [vmem:[#allocation15_spill] sm:$0xff] }
 0x502   :  { %19372 = vmatpush1.bf16.msra.mxu0 %v27250_v27  ;;  %19560 = vmatpush3.bf16.msra.mxu1 %v27249_v54  ;;  %v27255_v27 = vld [vmem:[#allocation52_spill] sm:$0xff] }
 0x503   :  { %6400 = vmatprep.mubr.f32.mxu0 %v26748_v1  ;;  %19374 = vmatprep.subr.bf16.mxu0 %v27251_v3  ;;  %v27257_v3 = vld [vmem:[#allocation117_spill] sm:$0xff] }
 0x504   :  { %19562 = vmatprep.subr.bf16.mxu1 %v27252_v26 }
 0x505   :  { %6404 = vmatmul.mubr.f32.gmra.mrb[10].mxu0 %v24656_v16  ;;  %17351 = vmatmul.mubr.f32.vlgmr.msra.gmra.mrb[52].mxu1 %v24656_v16  ;;  %v27259_v16 = vld [vmem:[#allocation119_spill] sm:$0xff] }
 0x506   :  { %19376 = vmatpush1.bf16.msra.mxu0 %v27253_v21  ;;  %19564 = vmatpush3.bf16.msra.mxu1 %v27252_v26  ;;  %v27260_v21 = vld [vmem:[#allocation120_spill] sm:$0xff]  ;;  %v27261_v26 = vld [vmem:[#allocation115_spill] sm:$0xff] }
 0x507   :  { %17385 = vmatprep.mubr.f32.mxu1 %v24635_v2  ;;  %19378 = vmatprep.subr.bf16.mxu0 %v27254_v24  ;;  %v27262_v24 = vld [vmem:[#allocation122_spill] sm:$0xff] }
 0x508   :  { %19566 = vmatprep.subr.bf16.mxu1 %v27255_v27  ;;  %6570 = vmatprep.mubr.f32.mxu0 %v26748_v1 }
 0x50a   :  { %19380 = vmatpush1.bf16.msra.mxu0 %v27256_v22  ;;  %19568 = vmatpush3.bf16.msra.mxu1 %v27255_v27  ;;  %v27264_v22 = vld [vmem:[#allocation118_spill] sm:$0xff]  ;;  %v27265_v27 = vld [vmem:[#allocation125_spill] sm:$0xff] }
 0x50b   :  { %19382 = vmatprep.subr.bf16.mxu0 %v27257_v3  ;;  %19570 = vmatprep.subr.bf16.mxu1 %v27258_v42  ;;  %v27266_v3 = vld [vmem:[#allocation126_spill] sm:$0xff] }
 0x50e   :  { %19384 = vmatpush1.bf16.msra.mxu0 %v27259_v16  ;;  %19572 = vmatpush3.bf16.msra.mxu1 %v27258_v42  ;;  %v27267_v16 = vld [vmem:[#allocation121_spill] sm:$0xff]  ;;  %v27268_v42 = vld [vmem:[#allocation128_spill] sm:$0xff] }
 0x50f   :  { %19386 = vmatprep.subr.bf16.mxu0 %v27260_v21  ;;  %19574 = vmatprep.subr.bf16.mxu1 %v27261_v26  ;;  %v27269_v21 = vld [vmem:[#allocation129_spill] sm:$0xff] }
 0x512   :  { %19388 = vmatpush1.bf16.msra.mxu0 %v27262_v24  ;;  %19576 = vmatpush3.bf16.msra.mxu1 %v27261_v26  ;;  %v27270_v24 = vld [vmem:[#allocation124_spill] sm:$0xff]  ;;  %v27271_v26 = vld [vmem:[#allocation130_spill] sm:$0xff] }
 0x513   :  { %19390 = vmatprep.subr.bf16.mxu0 %v27263_v28  ;;  %19578 = vmatprep.subr.bf16.mxu1 %v27264_v22  ;;  %v24901_v28 = vld [vmem:[%s26283_s3 + $0x18] sm:$0xff] }
 0x514   :  { %27278 = vst [vmem:[#allocation13_spill] sm:$0xff] %v24901_v28 }
 0x516   :  { %19392 = vmatpush1.bf16.msra.mxu0 %v27265_v27  ;;  %19580 = vmatpush3.bf16.msra.mxu1 %v27264_v22  ;;  %v27272_v27 = vld [vmem:[#allocation127_spill] sm:$0xff] }
 0x517   :  { %19394 = vmatprep.subr.bf16.mxu0 %v27266_v3  ;;  %19582 = vmatprep.subr.bf16.mxu1 %v27267_v16 }
 0x51a   :  { %19396 = vmatpush1.bf16.msra.mxu0 %v27268_v42  ;;  %19584 = vmatpush3.bf16.msra.mxu1 %v27267_v16 }
 0x51b   :  { %19398 = vmatprep.subr.bf16.mxu0 %v27269_v21  ;;  %19586 = vmatprep.subr.bf16.mxu1 %v27270_v24  ;;  %v27277_v21 = vld [vmem:[#allocation26_spill] sm:$0xff] }
 0x51e   :  { %19400 = vmatpush1.bf16.msra.mxu0 %v27271_v26  ;;  %19588 = vmatpush3.bf16.msra.mxu1 %v27270_v24  ;;  %v24894_v24 = vld [vmem:[%s26283_s3 + $0x8] sm:$0xff] }
 0x51f   :  { %19402 = vmatprep.subr.bf16.mxu0 %v27014_v44  ;;  %19590 = vmatprep.subr.bf16.mxu1 %v27272_v27  ;;  %27276 = vst [vmem:[#allocation12_spill] sm:$0xff] %v24894_v24 }
 0x521   :  { %6572 = vmatmul.mubr.f32.vlgmr.msra.gmra.mrb[8].mxu0 %v24635_v2 }
 0x522   :  { %19404 = vmatpush1.bf16.msra.mxu0 %v27016_v61  ;;  %19592 = vmatpush3.bf16.msra.mxu1 %v27272_v27  ;;  %v27275_v27 = vld [vmem:[#allocation25_spill] sm:$0xff] }
 0x523   :  { %6577 = vmatprep.mubr.f32.mxu0 %v26748_v1  ;;  %19406 = vmatprep.subr.bf16.mxu0 %v27017_v43 }
 0x524   :  { %19594 = vmatprep.subr.bf16.mxu1 %v27013_v23 }
 0x525   :  { %6579 = vmatmul.mubr.f32.gmra.mrb[10].mxu0 %v24647_v49  ;;  %17386 = vmatmul.mubr.f32.vlgmr.msra.gmra.mrb[52].mxu1 %v24647_v49 }
 0x526   :  { %19408 = vmatpush1.bf16.msra.mxu0 %v27111_v13  ;;  %19596 = vmatpush3.bf16.msra.mxu1 %v27013_v23 }
 0x527   :  { %17420 = vmatprep.mubr.f32.mxu1 %v24635_v2  ;;  %19410 = vmatprep.subr.bf16.mxu0 %v27112_v19 }
 0x528   :  { %19598 = vmatprep.subr.bf16.mxu1 %v27015_v6  ;;  %6681 = vmatprep.mubr.f32.mxu0 %v26748_v1 }
 0x52a   :  { %19412 = vmatpush1.bf16.msra.mxu0 %v27114_v36  ;;  %19600 = vmatpush3.bf16.msra.mxu1 %v27015_v6 }
 0x52b   :  { %19414 = vmatprep.subr.bf16.mxu0 %v27115_v31  ;;  %19602 = vmatprep.subr.bf16.mxu1 %v27018_v56 }
 0x52e   :  { %19416 = vmatpush1.bf16.msra.mxu0 %v27117_v10  ;;  %19604 = vmatpush3.bf16.msra.mxu1 %v27018_v56 }
 0x52f   :  { %19418 = vmatprep.subr.bf16.mxu0 %v27118_v8  ;;  %19606 = vmatprep.subr.bf16.mxu1 %v27113_v34 }
 0x532   :  { %19420 = vmatpush1.bf16.msra.mxu0 %v27120_v37  ;;  %19608 = vmatpush3.bf16.msra.mxu1 %v27113_v34 }
 0x533   :  { %19422 = vmatprep.subr.bf16.mxu0 %v27121_v17  ;;  %19610 = vmatprep.subr.bf16.mxu1 %v27116_v40 }
 0x536   :  { %19424 = vmatpush1.bf16.msra.mxu0 %v27123_v5  ;;  %19612 = vmatpush3.bf16.msra.mxu1 %v27116_v40 }
 0x537   :  { %19426 = vmatprep.subr.bf16.mxu0 %v27124_v0  ;;  %19614 = vmatprep.subr.bf16.mxu1 %v27119_v45 }
 0x53a   :  { %19428 = vmatpush1.bf16.msra.mxu0 %v27125_v52  ;;  %19616 = vmatpush3.bf16.msra.mxu1 %v27119_v45 }
 0x53b   :  { %19430 = vmatprep.subr.bf16.mxu0 %v27126_v11  ;;  %19618 = vmatprep.subr.bf16.mxu1 %v27122_v30 }
 0x53e   :  { %19432 = vmatpush1.bf16.msra.mxu0 %v27247_v38  ;;  %19620 = vmatpush3.bf16.msra.mxu1 %v27122_v30 }
 0x53f   :  { %19622 = vmatprep.subr.bf16.mxu1 %v27249_v54  ;;  %19626 = vmatprep.subr.bf16.mxu0 %v27014_v44 }
 0x541   :  { %6683 = vmatmul.mubr.f32.vlgmr.msra.gmra.mrb[8].mxu0 %v24635_v2  ;;  %v27273_v2 = vld [vmem:[#allocation18_spill] sm:$0xff] }
 0x542   :  { %19624 = vmatpush3.bf16.msra.mxu1 %v27249_v54  ;;  %6688 = vmatprep.mubr.f32.mxu0 %v26748_v1 }
 0x543   :  { %19628 = vmatpush1.bf16.msra.mxu0 %v27016_v61  ;;  %19818 = vmatprep.subr.bf16.mxu1 %v27013_v23 }
 0x544   :  { %19630 = vmatprep.subr.bf16.mxu0 %v27017_v43 }
 0x545   :  { %6690 = vmatmul.mubr.f32.gmra.mrb[10].mxu0 %v24647_v49  ;;  %17421 = vmatmul.mubr.f32.vlgmr.msra.gmra.mrb[52].mxu1 %v24647_v49  ;;  %v24887_v49 = vld [vmem:[%s26283_s3] sm:$0xff] }
 0x546   :  { %19820 = vmatpush3.bf16.msra.mxu1 %v27013_v23  ;;  %7527 = vmatprep.mubr.f32.mxu0 %v26748_v1  ;;  %27274 = vst [vmem:[#allocation11_spill] sm:$0xff] %v24887_v49  ;;  %v21563_v26 = vadd.f32 %v24887_v49, %v27275_v27 }
 0x547   :  { %19632 = vmatpush1.bf16.msra.mxu0 %v27111_v13  ;;  %19822 = vmatprep.subr.bf16.mxu1 %v27015_v6 }
 0x548   :  { %19634 = vmatprep.subr.bf16.mxu0 %v27112_v19 }
 0x54a   :  { %19824 = vmatpush3.bf16.msra.mxu1 %v27015_v6 }
 0x54b   :  { %19636 = vmatpush1.bf16.msra.mxu0 %v27114_v36  ;;  %19826 = vmatprep.subr.bf16.mxu1 %v27018_v56 }
 0x54c   :  { %19638 = vmatprep.subr.bf16.mxu0 %v27115_v31 }
 0x54e   :  { %19828 = vmatpush3.bf16.msra.mxu1 %v27018_v56 }
 0x54f   :  { %19640 = vmatpush1.bf16.msra.mxu0 %v27117_v10  ;;  %19830 = vmatprep.subr.bf16.mxu1 %v27113_v34 }
 0x550   :  { %19642 = vmatprep.subr.bf16.mxu0 %v27118_v8 }
 0x552   :  { %19832 = vmatpush3.bf16.msra.mxu1 %v27113_v34 }
 0x553   :  { %19644 = vmatpush1.bf16.msra.mxu0 %v27120_v37  ;;  %19834 = vmatprep.subr.bf16.mxu1 %v27116_v40 }
 0x554   :  { %19646 = vmatprep.subr.bf16.mxu0 %v27121_v17 }
 0x556   :  { %19836 = vmatpush3.bf16.msra.mxu1 %v27116_v40 }
 0x557   :  { %19648 = vmatpush1.bf16.msra.mxu0 %v27123_v5  ;;  %19838 = vmatprep.subr.bf16.mxu1 %v27119_v45 }
 0x558   :  { %19650 = vmatprep.subr.bf16.mxu0 %v27124_v0 }
 0x55a   :  { %19840 = vmatpush3.bf16.msra.mxu1 %v27119_v45 }
 0x55b   :  { %19652 = vmatpush1.bf16.msra.mxu0 %v27125_v52  ;;  %19842 = vmatprep.subr.bf16.mxu1 %v27122_v30 }
 0x55c   :  { %19654 = vmatprep.subr.bf16.mxu0 %v27126_v11 }
 0x55e   :  { %19844 = vmatpush3.bf16.msra.mxu1 %v27122_v30  ;;  %v27281_v30 = vld [vmem:[#allocation30_spill] sm:$0xff] }
 0x55f   :  { %19656 = vmatpush1.bf16.msra.mxu0 %v27247_v38  ;;  %19846 = vmatprep.subr.bf16.mxu1 %v27249_v54  ;;  %v24908_v38 = vld [vmem:[%s26283_s3 + $0x20] sm:$0xff] }
 0x560   :  { %19658 = vmatprep.subr.bf16.mxu0 %v27273_v2  ;;  %v21565_v2 = vadd.f32 %v24894_v24, %v27277_v21  ;;  %27280 = vst [vmem:[#allocation9_spill] sm:$0xff] %v24908_v38  ;;  %v21569_v21 = vadd.f32 %v24908_v38, %v27281_v30 }
 0x562   :  { %19848 = vmatpush3.bf16.msra.mxu1 %v27249_v54  ;;  %v27279_v54 = vld [vmem:[#allocation29_spill] sm:$0xff] }
 0x563   :  { %19850 = vmatprep.subr.bf16.mxu1 %v27131_v14  ;;  %v21567_v27 = vadd.f32 %v24901_v28, %v27279_v54 }
 0x614   :  { %v6684_v42 = vpop.f32.mrb[8].mxu0 }
 0x615   :  { %v21564_v16 = vadd.f32 %v21563_v26, %v6684_v42  ;;  %v6686_v3 = vpop.f32.mrb[9].mxu0 }
 0x616   :  { %v21566_v22 = vadd.f32 %v21565_v2, %v6686_v3 }
 0x617   :  { %v15647_v49 = vmul.f32 -1.442695, %v21564_v16 }
 0x618   :  { %v6691_v42 = vpop.f32.mrb[10].mxu0  ;;  %v17422_v26 = vpop.f32.mrb[52].mxu1  ;;  %v15649_v45 = vmul.f32 -1.442695, %v21566_v22 }
 0x619   :  { %22139 = vpow2.f32 %v15647_v49  ;;  %v21568_v3 = vadd.f32 %v21567_v27, %v6691_v42  ;;  %v6693_v2 = vpop.f32.mrb[11].mxu0  ;;  %v7370_v24 = vpop.f32.mrb[53].mxu1  ;;  %v24915_v49 = vld [vmem:[%s26284_s4] ss:$0 sm:$0xff] }
 0x61a   :  { %v21570_v11 = vadd.f32 %v21569_v21, %v6693_v2  ;;  %v7408_v22 = vadd.f32 %v24915_v49, %v7370_v24  ;;  %v7409_v27 = vadd.f32 %v24915_v49, %v17422_v26 }
 0x61b   :  { %v15648_v52 = vmul.f32 -1.442695, %v21568_v3 }
 0x61c   :  { %v15650_v54 = vmul.f32 -1.442695, %v21570_v11 }
 0x61d   :  { %22141 = vpow2.f32 %v15648_v52 }
 0x61e   :  { %22143 = vpow2.f32 %v15649_v45 }
 0x61f   :  { %22145 = vpow2.f32 %v15650_v54 }
 0x623   :  { %v22140_v16 = vpop.eup %22139 }
 0x624   :  { %v7388_v28 = vadd.f32 1.0, %v22140_v16 }
 0x626   :  { %22147 = vrcp.f32 %v7388_v28  ;;  %v27282_v28 = vld [vmem:[#allocation31_spill] sm:$0xff] }
 0x627   :  { %v22142_v0 = vpop.eup %22141 }
 0x628   :  { %v7389_v5 = vadd.f32 1.0, %v22142_v0  ;;  %v22144_v40 = vpop.eup %22143 }
 0x629   :  { %v22146_v30 = vpop.eup %22145  ;;  %v7402_v38 = vadd.f32 1.0, %v22144_v40  ;;  %v27283_v40 = vld [vmem:[#allocation64_spill] sm:$0xff] }
 0x62a   :  { %22149 = vrcp.f32 %v7389_v5  ;;  %v7403_v11 = vadd.f32 1.0, %v22146_v30 }
 0x62b   :  { %22151 = vrcp.f32 %v7402_v38 }
 0x62c   :  { %22153 = vrcp.f32 %v7403_v11 }
 0x630   :  { %v22148_v52 = vpop.eup %22147 }
 0x631   :  { %v7410_v45 = vmul.f32 %v22148_v52, %v7408_v22 }
 0x633   :  { %v7412_v21 = vadd.f32 %v7410_v45, %v27282_v28 }
 0x634   :  { %v22150_v0 = vpop.eup %22149 }
 0x635   :  { %v7411_v5 = vmul.f32 %v22150_v0, %v7409_v27  ;;  %22155 = vtanh.f32 %v7412_v21  ;;  %v22152_v3 = vpop.eup %22151 }
 0x636   :  { %v22154_v2 = vpop.eup %22153  ;;  %v7416_v54 = vsub.f32 1.0, %v22152_v3  ;;  %v7420_v24 = vmul.f32 %v22152_v3, %v24631_v39 }
 0x637   :  { %v7413_v42 = vadd.f32 %v7411_v5, %v27283_v40  ;;  %v7417_v38 = vsub.f32 1.0, %v22154_v2  ;;  %v7421_v45 = vmul.f32 %v22154_v2, %v24641_v51  ;;  %v27284_v2 = vld [vmem:[#allocation98_spill] sm:$0xff] }
 0x639   :  { %22157 = vtanh.f32 %v7413_v42 }
 0x63f   :  { %v22156_v16 = vpop.eup %22155 }
 0x640   :  { %v7418_v30 = vmul.f32 %v22156_v16, %v7416_v54  ;;  %v27285_v54 = vld [vmem:[#allocation91_spill] sm:$0xff]  ;;  %v27286_v16 = vld [vmem:[#allocation100_spill] sm:$0xff] }
 0x642   :  { %v24922_v22 = vadd.f32 %v7420_v24, %v7418_v30  ;;  %v27287_v24 = vld [vmem:[#allocation101_spill] sm:$0xff]  ;;  %v27288_v30 = vld [vmem:[#allocation95_spill] sm:$0xff] }
 0x643   :  { %v22158_v26 = vpop.eup %22157 }
 0x644   :  { %v7419_v52 = vmul.f32 %v22158_v26, %v7417_v38  ;;  %v24926_v11 = vand.u32 4294901760, %v24922_v22  ;;  %v27289_v38 = vld [vmem:[#allocation56_spill] sm:$0xff]  ;;  %v27290_v26 = vld [vmem:[#allocation10_spill] sm:$0xff] }
 0x646   :  { %v24930_v27 = vsub.f32 %v24922_v22, %v24926_v11  ;;  %v24932_v28 = vadd.f32 %v7421_v45, %v7419_v52  ;;  %v27291_v52 = vld [vmem:[#allocation99_spill] sm:$0xff]  ;;  %v27292_v45 = vld [vmem:[#allocation58_spill] sm:$0xff] }
 0x648   :  { %v24935_v21 = vand.u32 4294901760, %v24930_v27  ;;  %v24938_v39 = vand.u32 4294901760, %v24932_v28 }
 0x64a   :  { %v7531_v0 = vsub.f32 %v24930_v27, %v24935_v21  ;;  %v24944_v51 = vsub.f32 %v24932_v28, %v24938_v39 }
 0x64c   :  { %v7532_v5 = vand.u32 4294901760, %v7531_v0  ;;  %v24947_v40 = vand.u32 4294901760, %v24944_v51  ;;  %v27293_v0 = vld [vmem:[#allocation59_spill] sm:$0xff] }
 0x64e   :  { %7533 = vmatmul.mubr.f32.vlgmr.msra.gmra.mrb[12].mxu0 %v7532_v5  ;;  %17455 = vmatprep.mubr.f32.mxu1 %v7532_v5  ;;  %v7542_v42 = vsub.f32 %v24944_v51, %v24947_v40  ;;  %v27294_v5 = vld [vmem:[#allocation54_spill] sm:$0xff] }
 0x64f   :  { %19660 = vmatpush1.bf16.msra.mxu0 %v27149_v12  ;;  %7538 = vmatprep.mubr.f32.mxu0 %v26748_v1 }
 0x650   :  { %19662 = vmatprep.subr.bf16.mxu0 %v27150_v15  ;;  %v7543_v3 = vand.u32 4294901760, %v7542_v42  ;;  %v27295_v42 = vld [vmem:[#allocation61_spill] sm:$0xff] }
 0x652   :  { %7544 = vmatmul.mubr.f32.gmra.mrb[14].mxu0 %v7543_v3  ;;  %17456 = vmatmul.mubr.f32.vlgmr.msra.gmra.mrb[54].mxu1 %v7543_v3  ;;  %v27296_v3 = vld [vmem:[#allocation102_spill] sm:$0xff] }
 0x653   :  { %19664 = vmatpush1.bf16.msra.mxu0 %v27151_v63  ;;  %19852 = vmatpush3.bf16.msra.mxu1 %v27131_v14 }
 0x654   :  { %17490 = vmatprep.mubr.f32.mxu1 %v24926_v11  ;;  %19666 = vmatprep.subr.bf16.mxu0 %v27152_v47 }
 0x655   :  { %19854 = vmatprep.subr.bf16.mxu1 %v27153_v33  ;;  %7774 = vmatprep.mubr.f32.mxu0 %v26748_v1 }
 0x657   :  { %19668 = vmatpush1.bf16.msra.mxu0 %v27154_v48  ;;  %19856 = vmatpush3.bf16.msra.mxu1 %v27153_v33 }
 0x658   :  { %19670 = vmatprep.subr.bf16.mxu0 %v27216_v7  ;;  %19858 = vmatprep.subr.bf16.mxu1 %v27217_v59 }
 0x65b   :  { %19672 = vmatpush1.bf16.msra.mxu0 %v27218_v53  ;;  %19860 = vmatpush3.bf16.msra.mxu1 %v27217_v59 }
 0x65c   :  { %19674 = vmatprep.subr.bf16.mxu0 %v27219_v57  ;;  %19862 = vmatprep.subr.bf16.mxu1 %v27220_v4 }
 0x65f   :  { %19676 = vmatpush1.bf16.msra.mxu0 %v27221_v18  ;;  %19864 = vmatpush3.bf16.msra.mxu1 %v27220_v4 }
 0x660   :  { %19678 = vmatprep.subr.bf16.mxu0 %v27222_v58  ;;  %19866 = vmatprep.subr.bf16.mxu1 %v27223_v29 }
 0x663   :  { %19680 = vmatpush1.bf16.msra.mxu0 %v27224_v50  ;;  %19868 = vmatpush3.bf16.msra.mxu1 %v27223_v29 }
 0x664   :  { %19682 = vmatprep.subr.bf16.mxu0 %v27284_v2  ;;  %19870 = vmatprep.subr.bf16.mxu1 %v27285_v54 }
 0x667   :  { %19684 = vmatpush1.bf16.msra.mxu0 %v27286_v16  ;;  %19872 = vmatpush3.bf16.msra.mxu1 %v27285_v54 }
 0x668   :  { %19686 = vmatprep.subr.bf16.mxu0 %v27287_v24  ;;  %19874 = vmatprep.subr.bf16.mxu1 %v27288_v30 }
 0x66b   :  { %19688 = vmatpush1.bf16.msra.mxu0 %v27289_v38  ;;  %19876 = vmatpush3.bf16.msra.mxu1 %v27288_v30 }
 0x66c   :  { %19690 = vmatprep.subr.bf16.mxu0 %v27290_v26  ;;  %19878 = vmatprep.subr.bf16.mxu1 %v27291_v52 }
 0x66e   :  { %7776 = vmatmul.mubr.f32.vlgmr.msra.gmra.mrb[12].mxu0 %v24926_v11 }
 0x66f   :  { %19692 = vmatpush1.bf16.msra.mxu0 %v27292_v45  ;;  %19880 = vmatpush3.bf16.msra.mxu1 %v27291_v52  ;;  %v27297_v45 = vld [vmem:[#allocation104_spill] sm:$0xff] }
 0x670   :  { %7781 = vmatprep.mubr.f32.mxu0 %v26748_v1  ;;  %19694 = vmatprep.subr.bf16.mxu0 %v27293_v0 }
 0x671   :  { %19882 = vmatprep.subr.bf16.mxu1 %v27294_v5 }
 0x672   :  { %7783 = vmatmul.mubr.f32.gmra.mrb[14].mxu0 %v24938_v39  ;;  %17491 = vmatmul.mubr.f32.vlgmr.msra.gmra.mrb[54].mxu1 %v24938_v39 }
 0x673   :  { %19696 = vmatpush1.bf16.msra.mxu0 %v27295_v42  ;;  %19884 = vmatpush3.bf16.msra.mxu1 %v27294_v5  ;;  %v27323_v42 = vld [vmem:[#allocation63_spill] sm:$0xff] }
 0x674   :  { %17525 = vmatprep.mubr.f32.mxu1 %v24930_v27  ;;  %19698 = vmatprep.subr.bf16.mxu0 %v27296_v3  ;;  %v27318_v3 = vld [vmem:[#allocation16_spill] sm:$0xff]  ;;  %v27328_v5 = vld [vmem:[#allocation123_spill] sm:$0xff] }
 0x675   :  { %19886 = vmatprep.subr.bf16.mxu1 %v27238_v25  ;;  %7917 = vmatprep.mubr.f32.mxu0 %v26748_v1 }
 0x677   :  { %19700 = vmatpush1.bf16.msra.mxu0 %v27297_v45  ;;  %19888 = vmatpush3.bf16.msra.mxu1 %v27238_v25  ;;  %v27316_v45 = vld [vmem:[#allocation24_spill] sm:$0xff]  ;;  %v27317_v25 = vld [vmem:[#allocation21_spill] sm:$0xff] }
 0x678   :  { %19702 = vmatprep.subr.bf16.mxu0 %v27240_v55  ;;  %19890 = vmatprep.subr.bf16.mxu1 %v27241_v62  ;;  %v27298_v55 = vld [vmem:[#allocation39_spill] sm:$0xff] }
 0x67b   :  { %19704 = vmatpush1.bf16.msra.mxu0 %v27242_v46  ;;  %19892 = vmatpush3.bf16.msra.mxu1 %v27241_v62  ;;  %v27299_v46 = vld [vmem:[#allocation109_spill] sm:$0xff]  ;;  %v27300_v62 = vld [vmem:[#allocation92_spill] sm:$0xff] }
 0x67c   :  { %19706 = vmatprep.subr.bf16.mxu0 %v27243_v41  ;;  %19894 = vmatprep.subr.bf16.mxu1 %v27244_v35  ;;  %v27301_v41 = vld [vmem:[#allocation113_spill] sm:$0xff] }
 0x67f   :  { %19708 = vmatpush1.bf16.msra.mxu0 %v27245_v60  ;;  %19896 = vmatpush3.bf16.msra.mxu1 %v27244_v35  ;;  %v27302_v60 = vld [vmem:[#allocation112_spill] sm:$0xff]  ;;  %v27303_v35 = vld [vmem:[#allocation114_spill] sm:$0xff] }
 0x680   :  { %19710 = vmatprep.subr.bf16.mxu0 %v27185_v20  ;;  %19898 = vmatprep.subr.bf16.mxu1 %v27186_v9  ;;  %v27315_v20 = vld [vmem:[#allocation23_spill] sm:$0xff] }
 0x683   :  { %19712 = vmatpush1.bf16.msra.mxu0 %v27246_v32  ;;  %19900 = vmatpush3.bf16.msra.mxu1 %v27186_v9  ;;  %v27304_v32 = vld [vmem:[#allocation41_spill] sm:$0xff]  ;;  %v27314_v9 = vld [vmem:[#allocation68_spill] sm:$0xff] }
 0x684   :  { %19714 = vmatprep.subr.bf16.mxu0 %v27298_v55  ;;  %19902 = vmatprep.subr.bf16.mxu1 %v27299_v46  ;;  %v27313_v55 = vld [vmem:[#allocation17_spill] sm:$0xff] }
 0x687   :  { %19716 = vmatpush1.bf16.msra.mxu0 %v27300_v62  ;;  %19904 = vmatpush3.bf16.msra.mxu1 %v27299_v46  ;;  %v27311_v62 = vld [vmem:[#allocation67_spill] sm:$0xff]  ;;  %v27312_v46 = vld [vmem:[#allocation62_spill] sm:$0xff] }
 0x688   :  { %19718 = vmatprep.subr.bf16.mxu0 %v27301_v41  ;;  %19906 = vmatprep.subr.bf16.mxu1 %v27302_v60  ;;  %v27310_v41 = vld [vmem:[#allocation55_spill] sm:$0xff] }
 0x68b   :  { %19720 = vmatpush1.bf16.msra.mxu0 %v27303_v35  ;;  %19908 = vmatpush3.bf16.msra.mxu1 %v27302_v60  ;;  %v27308_v35 = vld [vmem:[#allocation66_spill] sm:$0xff]  ;;  %v27309_v60 = vld [vmem:[#allocation53_spill] sm:$0xff] }
 0x68c   :  { %19722 = vmatprep.subr.bf16.mxu0 %v27014_v44  ;;  %19910 = vmatprep.subr.bf16.mxu1 %v27304_v32 }
 0x68e   :  { %7920 = vmatmul.mubr.f32.vlgmr.msra.gmra.mrb[12].mxu0 %v24930_v27  ;;  %v27305_v27 = vld [vmem:[#allocation65_spill] sm:$0xff] }
 0x68f   :  { %19724 = vmatpush1.bf16.msra.mxu0 %v27016_v61  ;;  %19912 = vmatpush3.bf16.msra.mxu1 %v27304_v32  ;;  %v27307_v32 = vld [vmem:[#allocation50_spill] sm:$0xff] }
 0x690   :  { %7925 = vmatprep.mubr.f32.mxu0 %v26748_v1  ;;  %19726 = vmatprep.subr.bf16.mxu0 %v27017_v43 }
 0x691   :  { %19914 = vmatprep.subr.bf16.mxu1 %v27013_v23 }
 0x692   :  { %7928 = vmatmul.mubr.f32.gmra.mrb[14].mxu0 %v24944_v51  ;;  %17526 = vmatmul.mubr.f32.vlgmr.msra.gmra.mrb[54].mxu1 %v24944_v51  ;;  %v27306_v51 = vld [vmem:[#allocation49_spill] sm:$0xff] }
 0x693   :  { %19728 = vmatpush1.bf16.msra.mxu0 %v27111_v13  ;;  %19916 = vmatpush3.bf16.msra.mxu1 %v27013_v23 }
 0x694   :  { %17560 = vmatprep.mubr.f32.mxu1 %v24935_v21  ;;  %19730 = vmatprep.subr.bf16.mxu0 %v27112_v19 }
 0x695   :  { %19918 = vmatprep.subr.bf16.mxu1 %v27015_v6  ;;  %8030 = vmatprep.mubr.f32.mxu0 %v26748_v1 }
 0x697   :  { %19732 = vmatpush1.bf16.msra.mxu0 %v27114_v36  ;;  %19920 = vmatpush3.bf16.msra.mxu1 %v27015_v6 }
 0x698   :  { %19734 = vmatprep.subr.bf16.mxu0 %v27115_v31  ;;  %19922 = vmatprep.subr.bf16.mxu1 %v27018_v56 }
 0x69b   :  { %19736 = vmatpush1.bf16.msra.mxu0 %v27117_v10  ;;  %19924 = vmatpush3.bf16.msra.mxu1 %v27018_v56 }
 0x69c   :  { %19738 = vmatprep.subr.bf16.mxu0 %v27118_v8  ;;  %19926 = vmatprep.subr.bf16.mxu1 %v27113_v34 }
 0x69f   :  { %19740 = vmatpush1.bf16.msra.mxu0 %v27120_v37  ;;  %19928 = vmatpush3.bf16.msra.mxu1 %v27113_v34 }
 0x6a0   :  { %19742 = vmatprep.subr.bf16.mxu0 %v27121_v17  ;;  %19930 = vmatprep.subr.bf16.mxu1 %v27305_v27 }
 0x6a3   :  { %19744 = vmatpush1.bf16.msra.mxu0 %v27306_v51  ;;  %19932 = vmatpush3.bf16.msra.mxu1 %v27305_v27 }
 0x6a4   :  { %19746 = vmatprep.subr.bf16.mxu0 %v27307_v32  ;;  %19934 = vmatprep.subr.bf16.mxu1 %v27308_v35 }
 0x6a7   :  { %19748 = vmatpush1.bf16.msra.mxu0 %v27309_v60  ;;  %19936 = vmatpush3.bf16.msra.mxu1 %v27308_v35 }
 0x6a8   :  { %19750 = vmatprep.subr.bf16.mxu0 %v27310_v41  ;;  %19938 = vmatprep.subr.bf16.mxu1 %v27311_v62 }
 0x6ab   :  { %19752 = vmatpush1.bf16.msra.mxu0 %v27312_v46  ;;  %19940 = vmatpush3.bf16.msra.mxu1 %v27311_v62 }
 0x6ac   :  { %19754 = vmatprep.subr.bf16.mxu0 %v27313_v55  ;;  %19942 = vmatprep.subr.bf16.mxu1 %v27314_v9  ;;  %v27321_v55 = vld [vmem:[#allocation116_spill] sm:$0xff] }
 0x6ae   :  { %8034 = vmatmul.mubr.f32.vlgmr.msra.gmra.mrb[12].mxu0 %v24935_v21  ;;  %v27319_v21 = vld [vmem:[#allocation15_spill] sm:$0xff] }
 0x6af   :  { %19756 = vmatpush1.bf16.msra.mxu0 %v27315_v20  ;;  %19944 = vmatpush3.bf16.msra.mxu1 %v27314_v9  ;;  %v27320_v20 = vld [vmem:[#allocation52_spill] sm:$0xff] }
 0x6b0   :  { %8039 = vmatprep.mubr.f32.mxu0 %v26748_v1  ;;  %19758 = vmatprep.subr.bf16.mxu0 %v27316_v45  ;;  %v27322_v45 = vld [vmem:[#allocation117_spill] sm:$0xff] }
 0x6b1   :  { %19946 = vmatprep.subr.bf16.mxu1 %v27317_v25 }
 0x6b2   :  { %8043 = vmatmul.mubr.f32.gmra.mrb[14].mxu0 %v24947_v40  ;;  %17561 = vmatmul.mubr.f32.vlgmr.msra.gmra.mrb[54].mxu1 %v24947_v40  ;;  %v27324_v40 = vld [vmem:[#allocation119_spill] sm:$0xff] }
 0x6b3   :  { %19760 = vmatpush1.bf16.msra.mxu0 %v27318_v3  ;;  %19948 = vmatpush3.bf16.msra.mxu1 %v27317_v25  ;;  %v27325_v3 = vld [vmem:[#allocation120_spill] sm:$0xff]  ;;  %v27326_v25 = vld [vmem:[#allocation115_spill] sm:$0xff] }
 0x6b4   :  { %17595 = vmatprep.mubr.f32.mxu1 %v24926_v11  ;;  %19762 = vmatprep.subr.bf16.mxu0 %v27319_v21  ;;  %v27327_v21 = vld [vmem:[#allocation122_spill] sm:$0xff] }
 0x6b5   :  { %19950 = vmatprep.subr.bf16.mxu1 %v27320_v20  ;;  %8209 = vmatprep.mubr.f32.mxu0 %v26748_v1 }
 0x6b7   :  { %19764 = vmatpush1.bf16.msra.mxu0 %v27321_v55  ;;  %19952 = vmatpush3.bf16.msra.mxu1 %v27320_v20  ;;  %v27329_v55 = vld [vmem:[#allocation118_spill] sm:$0xff]  ;;  %v27330_v20 = vld [vmem:[#allocation125_spill] sm:$0xff] }
 0x6b8   :  { %19766 = vmatprep.subr.bf16.mxu0 %v27322_v45  ;;  %19954 = vmatprep.subr.bf16.mxu1 %v27323_v42  ;;  %v27331_v45 = vld [vmem:[#allocation126_spill] sm:$0xff] }
 0x6bb   :  { %19768 = vmatpush1.bf16.msra.mxu0 %v27324_v40  ;;  %19956 = vmatpush3.bf16.msra.mxu1 %v27323_v42  ;;  %v27332_v40 = vld [vmem:[#allocation121_spill] sm:$0xff]  ;;  %v27333_v42 = vld [vmem:[#allocation128_spill] sm:$0xff] }
 0x6bc   :  { %19770 = vmatprep.subr.bf16.mxu0 %v27325_v3  ;;  %19958 = vmatprep.subr.bf16.mxu1 %v27326_v25  ;;  %v27334_v3 = vld [vmem:[#allocation129_spill] sm:$0xff] }
 0x6bf   :  { %19772 = vmatpush1.bf16.msra.mxu0 %v27327_v21  ;;  %19960 = vmatpush3.bf16.msra.mxu1 %v27326_v25  ;;  %v27335_v21 = vld [vmem:[#allocation124_spill] sm:$0xff]  ;;  %v27336_v25 = vld [vmem:[#allocation130_spill] sm:$0xff] }
 0x6c0   :  { %19774 = vmatprep.subr.bf16.mxu0 %v27328_v5  ;;  %19962 = vmatprep.subr.bf16.mxu1 %v27329_v55 }
 0x6c3   :  { %19776 = vmatpush1.bf16.msra.mxu0 %v27330_v20  ;;  %19964 = vmatpush3.bf16.msra.mxu1 %v27329_v55  ;;  %v27337_v20 = vld [vmem:[#allocation127_spill] sm:$0xff] }
 0x6c4   :  { %19778 = vmatprep.subr.bf16.mxu0 %v27331_v45  ;;  %19966 = vmatprep.subr.bf16.mxu1 %v27332_v40 }
 0x6c7   :  { %19780 = vmatpush1.bf16.msra.mxu0 %v27333_v42  ;;  %19968 = vmatpush3.bf16.msra.mxu1 %v27332_v40 }
 0x6c8   :  { %19782 = vmatprep.subr.bf16.mxu0 %v27334_v3  ;;  %19970 = vmatprep.subr.bf16.mxu1 %v27335_v21  ;;  %v27342_v3 = vld [vmem:[#allocation12_spill] sm:$0xff] }
 0x6cb   :  { %19784 = vmatpush1.bf16.msra.mxu0 %v27336_v25  ;;  %19972 = vmatpush3.bf16.msra.mxu1 %v27335_v21  ;;  %v27341_v21 = vld [vmem:[#allocation34_spill] sm:$0xff] }
 0x6cc   :  { %19786 = vmatprep.subr.bf16.mxu0 %v27014_v44  ;;  %19974 = vmatprep.subr.bf16.mxu1 %v27337_v20  ;;  %v21573_v42 = vadd.f32 %v27342_v3, %v27341_v21 }
 0x6ce   :  { %8211 = vmatmul.mubr.f32.vlgmr.msra.gmra.mrb[12].mxu0 %v24926_v11 }
 0x6cf   :  { %19788 = vmatpush1.bf16.msra.mxu0 %v27016_v61  ;;  %19976 = vmatpush3.bf16.msra.mxu1 %v27337_v20  ;;  %v27340_v20 = vld [vmem:[#allocation11_spill] sm:$0xff] }
 0x6d0   :  { %8216 = vmatprep.mubr.f32.mxu0 %v26748_v1  ;;  %19790 = vmatprep.subr.bf16.mxu0 %v27017_v43 }
 0x6d1   :  { %19978 = vmatprep.subr.bf16.mxu1 %v27013_v23 }
 0x6d2   :  { %8218 = vmatmul.mubr.f32.gmra.mrb[14].mxu0 %v24938_v39  ;;  %17596 = vmatmul.mubr.f32.vlgmr.msra.gmra.mrb[54].mxu1 %v24938_v39 }
 0x6d3   :  { %19792 = vmatpush1.bf16.msra.mxu0 %v27111_v13  ;;  %19980 = vmatpush3.bf16.msra.mxu1 %v27013_v23 }
 0x6d4   :  { %17630 = vmatprep.mubr.f32.mxu1 %v24926_v11  ;;  %19794 = vmatprep.subr.bf16.mxu0 %v27112_v19 }
 0x6d5   :  { %19982 = vmatprep.subr.bf16.mxu1 %v27015_v6  ;;  %8320 = vmatprep.mubr.f32.mxu0 %v26748_v1 }
 0x6d7   :  { %19796 = vmatpush1.bf16.msra.mxu0 %v27114_v36  ;;  %19984 = vmatpush3.bf16.msra.mxu1 %v27015_v6 }
 0x6d8   :  { %19798 = vmatprep.subr.bf16.mxu0 %v27115_v31  ;;  %19986 = vmatprep.subr.bf16.mxu1 %v27018_v56 }
 0x6db   :  { %19800 = vmatpush1.bf16.msra.mxu0 %v27117_v10  ;;  %19988 = vmatpush3.bf16.msra.mxu1 %v27018_v56 }
 0x6dc   :  { %19802 = vmatprep.subr.bf16.mxu0 %v27118_v8  ;;  %19990 = vmatprep.subr.bf16.mxu1 %v27113_v34 }
 0x6df   :  { %19804 = vmatpush1.bf16.msra.mxu0 %v27120_v37  ;;  %19992 = vmatpush3.bf16.msra.mxu1 %v27113_v34 }
 0x6e0   :  { %19806 = vmatprep.subr.bf16.mxu0 %v27121_v17  ;;  %19994 = vmatprep.subr.bf16.mxu1 %v27305_v27 }
 0x6e3   :  { %19808 = vmatpush1.bf16.msra.mxu0 %v27306_v51  ;;  %19996 = vmatpush3.bf16.msra.mxu1 %v27305_v27 }
 0x6e4   :  { %19810 = vmatprep.subr.bf16.mxu0 %v27307_v32  ;;  %19998 = vmatprep.subr.bf16.mxu1 %v27308_v35 }
 0x6e7   :  { %19812 = vmatpush1.bf16.msra.mxu0 %v27309_v60  ;;  %20000 = vmatpush3.bf16.msra.mxu1 %v27308_v35 }
 0x6e8   :  { %19814 = vmatprep.subr.bf16.mxu0 %v27310_v41  ;;  %20002 = vmatprep.subr.bf16.mxu1 %v27311_v62 }
 0x6eb   :  { %19816 = vmatpush1.bf16.msra.mxu0 %v27312_v46  ;;  %20004 = vmatpush3.bf16.msra.mxu1 %v27311_v62 }
 0x6ec   :  { %20006 = vmatprep.subr.bf16.mxu1 %v27314_v9  ;;  %20010 = vmatprep.subr.bf16.mxu0 %v27014_v44 }
 0x6ee   :  { %8322 = vmatmul.mubr.f32.vlgmr.msra.gmra.mrb[12].mxu0 %v24926_v11  ;;  %v27338_v11 = vld [vmem:[#allocation18_spill] sm:$0xff] }
 0x6ef   :  { %20008 = vmatpush3.bf16.msra.mxu1 %v27314_v9  ;;  %8327 = vmatprep.mubr.f32.mxu0 %v26748_v1 }
 0x6f0   :  { %20012 = vmatpush1.bf16.msra.mxu0 %v27016_v61  ;;  %20202 = vmatprep.subr.bf16.mxu1 %v27013_v23 }
 0x6f1   :  { %20014 = vmatprep.subr.bf16.mxu0 %v27017_v43 }
 0x6f2   :  { %8329 = vmatmul.mubr.f32.gmra.mrb[14].mxu0 %v24938_v39  ;;  %17631 = vmatmul.mubr.f32.vlgmr.msra.gmra.mrb[54].mxu1 %v24938_v39  ;;  %v27339_v39 = vld [vmem:[#allocation33_spill] sm:$0xff] }
 0x6f3   :  { %20204 = vmatpush3.bf16.msra.mxu1 %v27013_v23  ;;  %9166 = vmatprep.mubr.f32.mxu0 %v26748_v1  ;;  %v21571_v25 = vadd.f32 %v27340_v20, %v27339_v39 }
 0x6f4   :  { %20016 = vmatpush1.bf16.msra.mxu0 %v27111_v13  ;;  %20206 = vmatprep.subr.bf16.mxu1 %v27015_v6 }
 0x6f5   :  { %20018 = vmatprep.subr.bf16.mxu0 %v27112_v19 }
 0x6f7   :  { %20208 = vmatpush3.bf16.msra.mxu1 %v27015_v6 }
 0x6f8   :  { %20020 = vmatpush1.bf16.msra.mxu0 %v27114_v36  ;;  %20210 = vmatprep.subr.bf16.mxu1 %v27018_v56 }
 0x6f9   :  { %20022 = vmatprep.subr.bf16.mxu0 %v27115_v31 }
 0x6fb   :  { %20212 = vmatpush3.bf16.msra.mxu1 %v27018_v56 }
 0x6fc   :  { %20024 = vmatpush1.bf16.msra.mxu0 %v27117_v10  ;;  %20214 = vmatprep.subr.bf16.mxu1 %v27113_v34 }
 0x6fd   :  { %20026 = vmatprep.subr.bf16.mxu0 %v27118_v8 }
 0x6ff   :  { %20216 = vmatpush3.bf16.msra.mxu1 %v27113_v34 }
 0x700   :  { %20028 = vmatpush1.bf16.msra.mxu0 %v27120_v37  ;;  %20218 = vmatprep.subr.bf16.mxu1 %v27305_v27 }
 0x701   :  { %20030 = vmatprep.subr.bf16.mxu0 %v27121_v17 }
 0x703   :  { %20220 = vmatpush3.bf16.msra.mxu1 %v27305_v27 }
 0x704   :  { %20032 = vmatpush1.bf16.msra.mxu0 %v27306_v51  ;;  %20222 = vmatprep.subr.bf16.mxu1 %v27308_v35 }
 0x705   :  { %20034 = vmatprep.subr.bf16.mxu0 %v27307_v32 }
 0x707   :  { %20224 = vmatpush3.bf16.msra.mxu1 %v27308_v35  ;;  %v27345_v35 = vld [vmem:[#allocation40_spill] sm:$0xff] }
 0x708   :  { %20036 = vmatpush1.bf16.msra.mxu0 %v27309_v60  ;;  %20226 = vmatprep.subr.bf16.mxu1 %v27311_v62 }
 0x709   :  { %20038 = vmatprep.subr.bf16.mxu0 %v27310_v41 }
 0x70b   :  { %20228 = vmatpush3.bf16.msra.mxu1 %v27311_v62  ;;  %v27343_v62 = vld [vmem:[#allocation37_spill] sm:$0xff] }
 0x70c   :  { %20040 = vmatpush1.bf16.msra.mxu0 %v27312_v46  ;;  %20230 = vmatprep.subr.bf16.mxu1 %v27314_v9  ;;  %v27344_v46 = vld [vmem:[#allocation13_spill] sm:$0xff] }
 0x70d   :  { %20042 = vmatprep.subr.bf16.mxu0 %v27338_v11  ;;  %v21575_v41 = vadd.f32 %v27344_v46, %v27343_v62  ;;  %v27346_v11 = vld [vmem:[#allocation9_spill] sm:$0xff] }
 0x70e   :  { %v21577_v32 = vadd.f32 %v27346_v11, %v27345_v35  ;;  %v27348_v11 = vld [vmem:[#allocation32_spill] sm:$0xff] }
 0x70f   :  { %20232 = vmatpush3.bf16.msra.mxu1 %v27314_v9 }
 0x710   :  { %20234 = vmatprep.subr.bf16.mxu1 %v27131_v14 }
 0x7c1   :  { %v8323_v40 = vpop.f32.mrb[12].mxu0 }
 0x7c2   :  { %v21572_v45 = vadd.f32 %v21571_v25, %v8323_v40  ;;  %v8325_v55 = vpop.f32.mrb[13].mxu0 }
 0x7c3   :  { %v21574_v5 = vadd.f32 %v21573_v42, %v8325_v55 }
 0x7c4   :  { %v15651_v60 = vmul.f32 -1.442695, %v21572_v45 }
 0x7c5   :  { %v8330_v9 = vpop.f32.mrb[14].mxu0  ;;  %v17632_v51 = vpop.f32.mrb[54].mxu1  ;;  %v15653_v3 = vmul.f32 -1.442695, %v21574_v5 }
 0x7c6   :  { %22159 = vpow2.f32 %v15651_v60  ;;  %v21576_v27 = vadd.f32 %v21575_v41, %v8330_v9  ;;  %v8332_v17 = vpop.f32.mrb[15].mxu0  ;;  %v9009_v20 = vpop.f32.mrb[55].mxu1 }
 0x7c7   :  { %v21578_v39 = vadd.f32 %v21577_v32, %v8332_v17  ;;  %v9047_v9 = vadd.f32 %v24915_v49, %v9009_v20  ;;  %v27347_v32 = vld [vmem:[#allocation35_spill] sm:$0xff] }
 0x7c8   :  { %v15652_v37 = vmul.f32 -1.442695, %v21576_v27 }
 0x7c9   :  { %v15654_v25 = vmul.f32 -1.442695, %v21578_v39 }
 0x7ca   :  { %22161 = vpow2.f32 %v15652_v37  ;;  %v9048_v37 = vadd.f32 %v24915_v49, %v17632_v51 }
 0x7cb   :  { %22163 = vpow2.f32 %v15653_v3 }
 0x7cc   :  { %22165 = vpow2.f32 %v15654_v25 }
 0x7d0   :  { %v22160_v55 = vpop.eup %22159 }
 0x7d1   :  { %v9027_v42 = vadd.f32 1.0, %v22160_v55 }
 0x7d3   :  { %22167 = vrcp.f32 %v9027_v42 }
 0x7d4   :  { %v22162_v46 = vpop.eup %22161 }
 0x7d5   :  { %v9028_v62 = vadd.f32 1.0, %v22162_v46  ;;  %v22164_v45 = vpop.eup %22163 }
 0x7d6   :  { %v22166_v35 = vpop.eup %22165  ;;  %v9041_v21 = vadd.f32 1.0, %v22164_v45 }
 0x7d7   :  { %22169 = vrcp.f32 %v9028_v62  ;;  %v9042_v60 = vadd.f32 1.0, %v22166_v35 }
 0x7d8   :  { %22171 = vrcp.f32 %v9041_v21 }
 0x7d9   :  { %22173 = vrcp.f32 %v9042_v60 }
 0x7dd   :  { %v22168_v41 = vpop.eup %22167 }
 0x7de   :  { %v9049_v17 = vmul.f32 %v22168_v41, %v9047_v9 }
 0x7e0   :  { %v9051_v5 = vadd.f32 %v9049_v17, %v27347_v32 }
 0x7e1   :  { %v22170_v27 = vpop.eup %22169 }
 0x7e2   :  { %v9050_v40 = vmul.f32 %v22170_v27, %v9048_v37  ;;  %22175 = vtanh.f32 %v9051_v5  ;;  %v22172_v3 = vpop.eup %22171 }
 0x7e3   :  { %v22174_v25 = vpop.eup %22173  ;;  %v9055_v55 = vsub.f32 1.0, %v22172_v3  ;;  %v9059_v20 = vmul.f32 %v22172_v3, %v24922_v22  ;;  %v27352_v3 = vld [vmem:[#allocation102_spill] sm:$0xff] }
 0x7e4   :  { %v9052_v39 = vadd.f32 %v9050_v40, %v27348_v11  ;;  %v9056_v62 = vsub.f32 1.0, %v22174_v25  ;;  %v9060_v35 = vmul.f32 %v22174_v25, %v24932_v28  ;;  %v27349_v40 = vld [vmem:[#allocation58_spill] sm:$0xff]  ;;  %v27353_v25 = vld [vmem:[#allocation57_spill] sm:$0xff] }
 0x7e5   :  { %v27350_v11 = vld [vmem:[#allocation54_spill] sm:$0xff] }
 0x7e6   :  { %22177 = vtanh.f32 %v9052_v39  ;;  %v27351_v39 = vld [vmem:[#allocation61_spill] sm:$0xff] }
 0x7ec   :  { %v22176_v42 = vpop.eup %22175 }
 0x7ed   :  { %v9057_v46 = vmul.f32 %v22176_v42, %v9055_v55  ;;  %v27354_v55 = vld [vmem:[#allocation104_spill] sm:$0xff]  ;;  %v27355_v42 = vld [vmem:[#allocation105_spill] sm:$0xff] }
 0x7ef   :  { %v25188_v45 = vadd.f32 %v9059_v20, %v9057_v46  ;;  %v27356_v20 = vld [vmem:[#allocation60_spill] sm:$0xff]  ;;  %v27357_v46 = vld [vmem:[#allocation107_spill] sm:$0xff] }
 0x7f0   :  { %v22178_v49 = vpop.eup %22177 }
 0x7f1   :  { %v9058_v51 = vmul.f32 %v22178_v49, %v9056_v62  ;;  %v25192_v21 = vand.u32 4294901760, %v25188_v45  ;;  %v27358_v62 = vld [vmem:[#allocation108_spill] sm:$0xff]  ;;  %v27359_v49 = vld [vmem:[#allocation103_spill] sm:$0xff] }
 0x7f3   :  { %v25196_v9 = vsub.f32 %v25188_v45, %v25192_v21  ;;  %v25198_v41 = vadd.f32 %v9060_v35, %v9058_v51  ;;  %v27360_v51 = vld [vmem:[#allocation110_spill] sm:$0xff]  ;;  %v27361_v35 = vld [vmem:[#allocation111_spill] sm:$0xff] }
 0x7f5   :  { %v25201_v60 = vand.u32 4294901760, %v25196_v9  ;;  %v25204_v22 = vand.u32 4294901760, %v25198_v41 }
 0x7f7   :  { %v9170_v17 = vsub.f32 %v25196_v9, %v25201_v60  ;;  %v25210_v28 = vsub.f32 %v25198_v41, %v25204_v22 }
 0x7f9   :  { %v9171_v37 = vand.u32 4294901760, %v9170_v17  ;;  %v25213_v32 = vand.u32 4294901760, %v25210_v28  ;;  %v27362_v17 = vld [vmem:[#allocation106_spill] sm:$0xff] }
 0x7fb   :  { %9172 = vmatmul.mubr.f32.vlgmr.msra.gmra.mrb[16].mxu0 %v9171_v37  ;;  %17665 = vmatprep.mubr.f32.mxu1 %v9171_v37  ;;  %v9181_v5 = vsub.f32 %v25210_v28, %v25213_v32  ;;  %v27363_v37 = vld [vmem:[#allocation38_spill] sm:$0xff] }
 0x7fc   :  { %20044 = vmatpush1.bf16.msra.mxu0 %v27149_v12  ;;  %9177 = vmatprep.mubr.f32.mxu0 %v26748_v1 }
 0x7fd   :  { %20046 = vmatprep.subr.bf16.mxu0 %v27150_v15  ;;  %v9182_v27 = vand.u32 4294901760, %v9181_v5  ;;  %v27364_v5 = vld [vmem:[#allocation39_spill] sm:$0xff] }
 0x7ff   :  { %9183 = vmatmul.mubr.f32.gmra.mrb[18].mxu0 %v9182_v27  ;;  %17666 = vmatmul.mubr.f32.vlgmr.msra.gmra.mrb[56].mxu1 %v9182_v27  ;;  %v27365_v27 = vld [vmem:[#allocation109_spill] sm:$0xff] }
 0x800   :  { %20048 = vmatpush1.bf16.msra.mxu0 %v27151_v63  ;;  %20236 = vmatpush3.bf16.msra.mxu1 %v27131_v14 }
 0x801   :  { %17700 = vmatprep.mubr.f32.mxu1 %v25192_v21  ;;  %20050 = vmatprep.subr.bf16.mxu0 %v27152_v47 }
 0x802   :  { %20238 = vmatprep.subr.bf16.mxu1 %v27153_v33  ;;  %9413 = vmatprep.mubr.f32.mxu0 %v26748_v1 }
 0x804   :  { %20052 = vmatpush1.bf16.msra.mxu0 %v27154_v48  ;;  %20240 = vmatpush3.bf16.msra.mxu1 %v27153_v33 }
 0x805   :  { %20054 = vmatprep.subr.bf16.mxu0 %v27216_v7  ;;  %20242 = vmatprep.subr.bf16.mxu1 %v27217_v59 }
 0x808   :  { %20056 = vmatpush1.bf16.msra.mxu0 %v27218_v53  ;;  %20244 = vmatpush3.bf16.msra.mxu1 %v27217_v59 }
 0x809   :  { %20058 = vmatprep.subr.bf16.mxu0 %v27219_v57  ;;  %20246 = vmatprep.subr.bf16.mxu1 %v27220_v4 }
 0x80c   :  { %20060 = vmatpush1.bf16.msra.mxu0 %v27221_v18  ;;  %20248 = vmatpush3.bf16.msra.mxu1 %v27220_v4 }
 0x80d   :  { %20062 = vmatprep.subr.bf16.mxu0 %v27222_v58  ;;  %20250 = vmatprep.subr.bf16.mxu1 %v27223_v29 }
 0x810   :  { %20064 = vmatpush1.bf16.msra.mxu0 %v27224_v50  ;;  %20252 = vmatpush3.bf16.msra.mxu1 %v27223_v29 }
 0x811   :  { %20066 = vmatprep.subr.bf16.mxu0 %v27284_v2  ;;  %20254 = vmatprep.subr.bf16.mxu1 %v27285_v54 }
 0x814   :  { %20068 = vmatpush1.bf16.msra.mxu0 %v27286_v16  ;;  %20256 = vmatpush3.bf16.msra.mxu1 %v27285_v54 }
 0x815   :  { %20070 = vmatprep.subr.bf16.mxu0 %v27287_v24  ;;  %20258 = vmatprep.subr.bf16.mxu1 %v27288_v30 }
 0x818   :  { %20072 = vmatpush1.bf16.msra.mxu0 %v27289_v38  ;;  %20260 = vmatpush3.bf16.msra.mxu1 %v27288_v30 }
 0x819   :  { %20074 = vmatprep.subr.bf16.mxu0 %v27290_v26  ;;  %20262 = vmatprep.subr.bf16.mxu1 %v27291_v52 }
 0x81b   :  { %9415 = vmatmul.mubr.f32.vlgmr.msra.gmra.mrb[16].mxu0 %v25192_v21 }
 0x81c   :  { %20076 = vmatpush1.bf16.msra.mxu0 %v27349_v40  ;;  %20264 = vmatpush3.bf16.msra.mxu1 %v27291_v52 }
 0x81d   :  { %9420 = vmatprep.mubr.f32.mxu0 %v26748_v1  ;;  %20078 = vmatprep.subr.bf16.mxu0 %v27293_v0 }
 0x81e   :  { %20266 = vmatprep.subr.bf16.mxu1 %v27350_v11 }
 0x81f   :  { %9422 = vmatmul.mubr.f32.gmra.mrb[18].mxu0 %v25204_v22  ;;  %17701 = vmatmul.mubr.f32.vlgmr.msra.gmra.mrb[56].mxu1 %v25204_v22 }
 0x820   :  { %20080 = vmatpush1.bf16.msra.mxu0 %v27351_v39  ;;  %20268 = vmatpush3.bf16.msra.mxu1 %v27350_v11  ;;  %v27391_v39 = vld [vmem:[#allocation63_spill] sm:$0xff] }
 0x821   :  { %17735 = vmatprep.mubr.f32.mxu1 %v25196_v9  ;;  %20082 = vmatprep.subr.bf16.mxu0 %v27352_v3  ;;  %v27386_v3 = vld [vmem:[#allocation16_spill] sm:$0xff]  ;;  %v27396_v11 = vld [vmem:[#allocation123_spill] sm:$0xff] }
 0x822   :  { %20270 = vmatprep.subr.bf16.mxu1 %v27353_v25  ;;  %9556 = vmatprep.mubr.f32.mxu0 %v26748_v1 }
 0x824   :  { %20084 = vmatpush1.bf16.msra.mxu0 %v27354_v55  ;;  %20272 = vmatpush3.bf16.msra.mxu1 %v27353_v25  ;;  %v27384_v55 = vld [vmem:[#allocation24_spill] sm:$0xff]  ;;  %v27385_v25 = vld [vmem:[#allocation21_spill] sm:$0xff] }
 0x825   :  { %20086 = vmatprep.subr.bf16.mxu0 %v27355_v42  ;;  %20274 = vmatprep.subr.bf16.mxu1 %v27356_v20  ;;  %v27383_v42 = vld [vmem:[#allocation23_spill] sm:$0xff] }
 0x828   :  { %20088 = vmatpush1.bf16.msra.mxu0 %v27357_v46  ;;  %20276 = vmatpush3.bf16.msra.mxu1 %v27356_v20  ;;  %v27366_v46 = vld [vmem:[#allocation92_spill] sm:$0xff] }
 0x829   :  { %20090 = vmatprep.subr.bf16.mxu0 %v27358_v62  ;;  %20278 = vmatprep.subr.bf16.mxu1 %v27359_v49  ;;  %v27367_v62 = vld [vmem:[#allocation113_spill] sm:$0xff]  ;;  %v27382_v20 = vld [vmem:[#allocation68_spill] sm:$0xff] }
 0x82c   :  { %20092 = vmatpush1.bf16.msra.mxu0 %v27360_v51  ;;  %20280 = vmatpush3.bf16.msra.mxu1 %v27359_v49  ;;  %v27368_v51 = vld [vmem:[#allocation112_spill] sm:$0xff]  ;;  %v27369_v49 = vld [vmem:[#allocation114_spill] sm:$0xff] }
 0x82d   :  { %20094 = vmatprep.subr.bf16.mxu0 %v27361_v35  ;;  %20282 = vmatprep.subr.bf16.mxu1 %v27362_v17  ;;  %v27381_v35 = vld [vmem:[#allocation17_spill] sm:$0xff] }
 0x830   :  { %20096 = vmatpush1.bf16.msra.mxu0 %v27363_v37  ;;  %20284 = vmatpush3.bf16.msra.mxu1 %v27362_v17  ;;  %v27370_v37 = vld [vmem:[#allocation41_spill] sm:$0xff]  ;;  %v27380_v17 = vld [vmem:[#allocation62_spill] sm:$0xff] }
 0x831   :  { %20098 = vmatprep.subr.bf16.mxu0 %v27364_v5  ;;  %20286 = vmatprep.subr.bf16.mxu1 %v27365_v27  ;;  %v27379_v5 = vld [vmem:[#allocation67_spill] sm:$0xff] }
 0x834   :  { %20100 = vmatpush1.bf16.msra.mxu0 %v27366_v46  ;;  %20288 = vmatpush3.bf16.msra.mxu1 %v27365_v27  ;;  %v27377_v46 = vld [vmem:[#allocation53_spill] sm:$0xff]  ;;  %v27378_v27 = vld [vmem:[#allocation55_spill] sm:$0xff] }
 0x835   :  { %20102 = vmatprep.subr.bf16.mxu0 %v27367_v62  ;;  %20290 = vmatprep.subr.bf16.mxu1 %v27368_v51  ;;  %v27376_v62 = vld [vmem:[#allocation66_spill] sm:$0xff] }
 0x838   :  { %20104 = vmatpush1.bf16.msra.mxu0 %v27369_v49  ;;  %20292 = vmatpush3.bf16.msra.mxu1 %v27368_v51  ;;  %v27374_v49 = vld [vmem:[#allocation49_spill] sm:$0xff]  ;;  %v27375_v51 = vld [vmem:[#allocation50_spill] sm:$0xff] }
 0x839   :  { %20106 = vmatprep.subr.bf16.mxu0 %v27014_v44  ;;  %20294 = vmatprep.subr.bf16.mxu1 %v27370_v37 }
 0x83b   :  { %9559 = vmatmul.mubr.f32.vlgmr.msra.gmra.mrb[16].mxu0 %v25196_v9  ;;  %v27371_v9 = vld [vmem:[#allocation43_spill] sm:$0xff] }
 0x83c   :  { %20108 = vmatpush1.bf16.msra.mxu0 %v27016_v61  ;;  %20296 = vmatpush3.bf16.msra.mxu1 %v27370_v37  ;;  %v27373_v37 = vld [vmem:[#allocation65_spill] sm:$0xff] }
 0x83d   :  { %9564 = vmatprep.mubr.f32.mxu0 %v26748_v1  ;;  %20110 = vmatprep.subr.bf16.mxu0 %v27017_v43 }
 0x83e   :  { %20298 = vmatprep.subr.bf16.mxu1 %v27013_v23 }
 0x83f   :  { %9567 = vmatmul.mubr.f32.gmra.mrb[18].mxu0 %v25210_v28  ;;  %17736 = vmatmul.mubr.f32.vlgmr.msra.gmra.mrb[56].mxu1 %v25210_v28  ;;  %v27372_v28 = vld [vmem:[#allocation44_spill] sm:$0xff] }
 0x840   :  { %20112 = vmatpush1.bf16.msra.mxu0 %v27111_v13  ;;  %20300 = vmatpush3.bf16.msra.mxu1 %v27013_v23 }
 0x841   :  { %17770 = vmatprep.mubr.f32.mxu1 %v25201_v60  ;;  %20114 = vmatprep.subr.bf16.mxu0 %v27112_v19 }
 0x842   :  { %20302 = vmatprep.subr.bf16.mxu1 %v27015_v6  ;;  %9669 = vmatprep.mubr.f32.mxu0 %v26748_v1 }
 0x844   :  { %20116 = vmatpush1.bf16.msra.mxu0 %v27114_v36  ;;  %20304 = vmatpush3.bf16.msra.mxu1 %v27015_v6 }
 0x845   :  { %20118 = vmatprep.subr.bf16.mxu0 %v27115_v31  ;;  %20306 = vmatprep.subr.bf16.mxu1 %v27018_v56 }
 0x848   :  { %20120 = vmatpush1.bf16.msra.mxu0 %v27117_v10  ;;  %20308 = vmatpush3.bf16.msra.mxu1 %v27018_v56 }
 0x849   :  { %20122 = vmatprep.subr.bf16.mxu0 %v27118_v8  ;;  %20310 = vmatprep.subr.bf16.mxu1 %v27113_v34 }
 0x84c   :  { %20124 = vmatpush1.bf16.msra.mxu0 %v27371_v9  ;;  %20312 = vmatpush3.bf16.msra.mxu1 %v27113_v34 }
 0x84d   :  { %20126 = vmatprep.subr.bf16.mxu0 %v27372_v28  ;;  %20314 = vmatprep.subr.bf16.mxu1 %v27373_v37 }
 0x850   :  { %20128 = vmatpush1.bf16.msra.mxu0 %v27374_v49  ;;  %20316 = vmatpush3.bf16.msra.mxu1 %v27373_v37 }
 0x851   :  { %20130 = vmatprep.subr.bf16.mxu0 %v27375_v51  ;;  %20318 = vmatprep.subr.bf16.mxu1 %v27376_v62 }
 0x854   :  { %20132 = vmatpush1.bf16.msra.mxu0 %v27377_v46  ;;  %20320 = vmatpush3.bf16.msra.mxu1 %v27376_v62 }
 0x855   :  { %20134 = vmatprep.subr.bf16.mxu0 %v27378_v27  ;;  %20322 = vmatprep.subr.bf16.mxu1 %v27379_v5 }
 0x858   :  { %20136 = vmatpush1.bf16.msra.mxu0 %v27380_v17  ;;  %20324 = vmatpush3.bf16.msra.mxu1 %v27379_v5 }
 0x859   :  { %20138 = vmatprep.subr.bf16.mxu0 %v27381_v35  ;;  %20326 = vmatprep.subr.bf16.mxu1 %v27382_v20  ;;  %v27389_v35 = vld [vmem:[#allocation116_spill] sm:$0xff] }
 0x85b   :  { %9673 = vmatmul.mubr.f32.vlgmr.msra.gmra.mrb[16].mxu0 %v25201_v60  ;;  %v27387_v60 = vld [vmem:[#allocation15_spill] sm:$0xff] }
 0x85c   :  { %20140 = vmatpush1.bf16.msra.mxu0 %v27383_v42  ;;  %20328 = vmatpush3.bf16.msra.mxu1 %v27382_v20  ;;  %v27388_v42 = vld [vmem:[#allocation52_spill] sm:$0xff] }
 0x85d   :  { %9678 = vmatprep.mubr.f32.mxu0 %v26748_v1  ;;  %20142 = vmatprep.subr.bf16.mxu0 %v27384_v55  ;;  %v27390_v55 = vld [vmem:[#allocation117_spill] sm:$0xff] }
 0x85e   :  { %20330 = vmatprep.subr.bf16.mxu1 %v27385_v25 }
 0x85f   :  { %9682 = vmatmul.mubr.f32.gmra.mrb[18].mxu0 %v25213_v32  ;;  %17771 = vmatmul.mubr.f32.vlgmr.msra.gmra.mrb[56].mxu1 %v25213_v32  ;;  %v27392_v32 = vld [vmem:[#allocation119_spill] sm:$0xff] }
 0x860   :  { %20144 = vmatpush1.bf16.msra.mxu0 %v27386_v3  ;;  %20332 = vmatpush3.bf16.msra.mxu1 %v27385_v25  ;;  %v27393_v3 = vld [vmem:[#allocation120_spill] sm:$0xff]  ;;  %v27394_v25 = vld [vmem:[#allocation115_spill] sm:$0xff] }
 0x861   :  { %17805 = vmatprep.mubr.f32.mxu1 %v25192_v21  ;;  %20146 = vmatprep.subr.bf16.mxu0 %v27387_v60  ;;  %v27395_v60 = vld [vmem:[#allocation122_spill] sm:$0xff] }
 0x862   :  { %20334 = vmatprep.subr.bf16.mxu1 %v27388_v42  ;;  %9848 = vmatprep.mubr.f32.mxu0 %v26748_v1 }
 0x864   :  { %20148 = vmatpush1.bf16.msra.mxu0 %v27389_v35  ;;  %20336 = vmatpush3.bf16.msra.mxu1 %v27388_v42  ;;  %v27397_v35 = vld [vmem:[#allocation118_spill] sm:$0xff]  ;;  %v27398_v42 = vld [vmem:[#allocation125_spill] sm:$0xff] }
 0x865   :  { %20150 = vmatprep.subr.bf16.mxu0 %v27390_v55  ;;  %20338 = vmatprep.subr.bf16.mxu1 %v27391_v39  ;;  %v27399_v55 = vld [vmem:[#allocation126_spill] sm:$0xff] }
 0x868   :  { %20152 = vmatpush1.bf16.msra.mxu0 %v27392_v32  ;;  %20340 = vmatpush3.bf16.msra.mxu1 %v27391_v39  ;;  %v27400_v32 = vld [vmem:[#allocation121_spill] sm:$0xff]  ;;  %v27401_v39 = vld [vmem:[#allocation128_spill] sm:$0xff] }
 0x869   :  { %20154 = vmatprep.subr.bf16.mxu0 %v27393_v3  ;;  %20342 = vmatprep.subr.bf16.mxu1 %v27394_v25  ;;  %v27402_v3 = vld [vmem:[#allocation129_spill] sm:$0xff] }
 0x86c   :  { %20156 = vmatpush1.bf16.msra.mxu0 %v27395_v60  ;;  %20344 = vmatpush3.bf16.msra.mxu1 %v27394_v25  ;;  %v27403_v60 = vld [vmem:[#allocation124_spill] sm:$0xff]  ;;  %v27404_v25 = vld [vmem:[#allocation130_spill] sm:$0xff] }
 0x86d   :  { %20158 = vmatprep.subr.bf16.mxu0 %v27396_v11  ;;  %20346 = vmatprep.subr.bf16.mxu1 %v27397_v35  ;;  %v25458_v11 = vld [vmem:[%s26283_s3 + $0x18] sm:$0xff] }
 0x86e   :  { %27411 = vst [vmem:[#allocation78_spill] sm:$0xff] %v25458_v11 }
 0x870   :  { %20160 = vmatpush1.bf16.msra.mxu0 %v27398_v42  ;;  %20348 = vmatpush3.bf16.msra.mxu1 %v27397_v35  ;;  %v27405_v42 = vld [vmem:[#allocation127_spill] sm:$0xff] }
 0x871   :  { %20162 = vmatprep.subr.bf16.mxu0 %v27399_v55  ;;  %20350 = vmatprep.subr.bf16.mxu1 %v27400_v32 }
 0x874   :  { %20164 = vmatpush1.bf16.msra.mxu0 %v27401_v39  ;;  %20352 = vmatpush3.bf16.msra.mxu1 %v27400_v32 }
 0x875   :  { %20166 = vmatprep.subr.bf16.mxu0 %v27402_v3  ;;  %20354 = vmatprep.subr.bf16.mxu1 %v27403_v60  ;;  %v27410_v3 = vld [vmem:[#allocation75_spill] sm:$0xff] }
 0x878   :  { %20168 = vmatpush1.bf16.msra.mxu0 %v27404_v25  ;;  %20356 = vmatpush3.bf16.msra.mxu1 %v27403_v60  ;;  %v25451_v60 = vld [vmem:[%s26283_s3 + $0x8] sm:$0xff] }
 0x879   :  { %20170 = vmatprep.subr.bf16.mxu0 %v27014_v44  ;;  %20358 = vmatprep.subr.bf16.mxu1 %v27405_v42  ;;  %27409 = vst [vmem:[#allocation72_spill] sm:$0xff] %v25451_v60 }
 0x87b   :  { %9850 = vmatmul.mubr.f32.vlgmr.msra.gmra.mrb[16].mxu0 %v25192_v21 }
 0x87c   :  { %20172 = vmatpush1.bf16.msra.mxu0 %v27016_v61  ;;  %20360 = vmatpush3.bf16.msra.mxu1 %v27405_v42  ;;  %v27408_v42 = vld [vmem:[#allocation74_spill] sm:$0xff] }
 0x87d   :  { %9855 = vmatprep.mubr.f32.mxu0 %v26748_v1  ;;  %20174 = vmatprep.subr.bf16.mxu0 %v27017_v43 }
 0x87e   :  { %20362 = vmatprep.subr.bf16.mxu1 %v27013_v23 }
 0x87f   :  { %9857 = vmatmul.mubr.f32.gmra.mrb[18].mxu0 %v25204_v22  ;;  %17806 = vmatmul.mubr.f32.vlgmr.msra.gmra.mrb[56].mxu1 %v25204_v22 }
 0x880   :  { %20176 = vmatpush1.bf16.msra.mxu0 %v27111_v13  ;;  %20364 = vmatpush3.bf16.msra.mxu1 %v27013_v23 }
 0x881   :  { %17840 = vmatprep.mubr.f32.mxu1 %v25192_v21  ;;  %20178 = vmatprep.subr.bf16.mxu0 %v27112_v19 }
 0x882   :  { %20366 = vmatprep.subr.bf16.mxu1 %v27015_v6  ;;  %9959 = vmatprep.mubr.f32.mxu0 %v26748_v1 }
 0x884   :  { %20180 = vmatpush1.bf16.msra.mxu0 %v27114_v36  ;;  %20368 = vmatpush3.bf16.msra.mxu1 %v27015_v6 }
 0x885   :  { %20182 = vmatprep.subr.bf16.mxu0 %v27115_v31  ;;  %20370 = vmatprep.subr.bf16.mxu1 %v27018_v56 }
 0x888   :  { %20184 = vmatpush1.bf16.msra.mxu0 %v27117_v10  ;;  %20372 = vmatpush3.bf16.msra.mxu1 %v27018_v56 }
 0x889   :  { %20186 = vmatprep.subr.bf16.mxu0 %v27118_v8  ;;  %20374 = vmatprep.subr.bf16.mxu1 %v27113_v34 }
 0x88c   :  { %20188 = vmatpush1.bf16.msra.mxu0 %v27371_v9  ;;  %20376 = vmatpush3.bf16.msra.mxu1 %v27113_v34 }
 0x88d   :  { %20190 = vmatprep.subr.bf16.mxu0 %v27372_v28  ;;  %20378 = vmatprep.subr.bf16.mxu1 %v27373_v37 }
 0x890   :  { %20192 = vmatpush1.bf16.msra.mxu0 %v27374_v49  ;;  %20380 = vmatpush3.bf16.msra.mxu1 %v27373_v37 }
 0x891   :  { %20194 = vmatprep.subr.bf16.mxu0 %v27375_v51  ;;  %20382 = vmatprep.subr.bf16.mxu1 %v27376_v62 }
 0x894   :  { %20196 = vmatpush1.bf16.msra.mxu0 %v27377_v46  ;;  %20384 = vmatpush3.bf16.msra.mxu1 %v27376_v62 }
 0x895   :  { %20198 = vmatprep.subr.bf16.mxu0 %v27378_v27  ;;  %20386 = vmatprep.subr.bf16.mxu1 %v27379_v5 }
 0x898   :  { %20200 = vmatpush1.bf16.msra.mxu0 %v27380_v17  ;;  %20388 = vmatpush3.bf16.msra.mxu1 %v27379_v5 }
 0x899   :  { %20390 = vmatprep.subr.bf16.mxu1 %v27382_v20  ;;  %20394 = vmatprep.subr.bf16.mxu0 %v27014_v44 }
 0x89b   :  { %9961 = vmatmul.mubr.f32.vlgmr.msra.gmra.mrb[16].mxu0 %v25192_v21  ;;  %v27406_v21 = vld [vmem:[#allocation18_spill] sm:$0xff] }
 0x89c   :  { %20392 = vmatpush3.bf16.msra.mxu1 %v27382_v20  ;;  %9966 = vmatprep.mubr.f32.mxu0 %v26748_v1 }
 0x89d   :  { %20396 = vmatpush1.bf16.msra.mxu0 %v27016_v61  ;;  %20586 = vmatprep.subr.bf16.mxu1 %v27013_v23 }
 0x89e   :  { %20398 = vmatprep.subr.bf16.mxu0 %v27017_v43 }
 0x89f   :  { %9968 = vmatmul.mubr.f32.gmra.mrb[18].mxu0 %v25204_v22  ;;  %17841 = vmatmul.mubr.f32.vlgmr.msra.gmra.mrb[56].mxu1 %v25204_v22  ;;  %v25444_v22 = vld [vmem:[%s26283_s3] sm:$0xff] }
 0x8a0   :  { %20588 = vmatpush3.bf16.msra.mxu1 %v27013_v23  ;;  %10805 = vmatprep.mubr.f32.mxu0 %v26748_v1  ;;  %27407 = vst [vmem:[#allocation71_spill] sm:$0xff] %v25444_v22  ;;  %v21579_v25 = vadd.f32 %v25444_v22, %v27408_v42 }
 0x8a1   :  { %20400 = vmatpush1.bf16.msra.mxu0 %v27111_v13  ;;  %20590 = vmatprep.subr.bf16.mxu1 %v27015_v6 }
 0x8a2   :  { %20402 = vmatprep.subr.bf16.mxu0 %v27112_v19 }
 0x8a4   :  { %20592 = vmatpush3.bf16.msra.mxu1 %v27015_v6 }
 0x8a5   :  { %20404 = vmatpush1.bf16.msra.mxu0 %v27114_v36  ;;  %20594 = vmatprep.subr.bf16.mxu1 %v27018_v56 }
 0x8a6   :  { %20406 = vmatprep.subr.bf16.mxu0 %v27115_v31 }
 0x8a8   :  { %20596 = vmatpush3.bf16.msra.mxu1 %v27018_v56 }
 0x8a9   :  { %20408 = vmatpush1.bf16.msra.mxu0 %v27117_v10  ;;  %20598 = vmatprep.subr.bf16.mxu1 %v27113_v34 }
 0x8aa   :  { %20410 = vmatprep.subr.bf16.mxu0 %v27118_v8 }
 0x8ac   :  { %20600 = vmatpush3.bf16.msra.mxu1 %v27113_v34 }
 0x8ad   :  { %20412 = vmatpush1.bf16.msra.mxu0 %v27371_v9  ;;  %20602 = vmatprep.subr.bf16.mxu1 %v27373_v37 }
 0x8ae   :  { %20414 = vmatprep.subr.bf16.mxu0 %v27372_v28 }
 0x8b0   :  { %20604 = vmatpush3.bf16.msra.mxu1 %v27373_v37 }
 0x8b1   :  { %20416 = vmatpush1.bf16.msra.mxu0 %v27374_v49  ;;  %20606 = vmatprep.subr.bf16.mxu1 %v27376_v62 }
 0x8b2   :  { %20418 = vmatprep.subr.bf16.mxu0 %v27375_v51 }
 0x8b4   :  { %20608 = vmatpush3.bf16.msra.mxu1 %v27376_v62 }
 0x8b5   :  { %20420 = vmatpush1.bf16.msra.mxu0 %v27377_v46  ;;  %20610 = vmatprep.subr.bf16.mxu1 %v27379_v5 }
 0x8b6   :  { %20422 = vmatprep.subr.bf16.mxu0 %v27378_v27 }
 0x8b8   :  { %20612 = vmatpush3.bf16.msra.mxu1 %v27379_v5  ;;  %v27414_v5 = vld [vmem:[#allocation77_spill] sm:$0xff] }
 0x8b9   :  { %20424 = vmatpush1.bf16.msra.mxu0 %v27380_v17  ;;  %20614 = vmatprep.subr.bf16.mxu1 %v27382_v20  ;;  %v25465_v17 = vld [vmem:[%s26283_s3 + $0x20] sm:$0xff] }
 0x8ba   :  { %20426 = vmatprep.subr.bf16.mxu0 %v27406_v21  ;;  %v21581_v21 = vadd.f32 %v25451_v60, %v27410_v3  ;;  %27413 = vst [vmem:[#allocation80_spill] sm:$0xff] %v25465_v17  ;;  %v21585_v3 = vadd.f32 %v25465_v17, %v27414_v5 }
 0x8bc   :  { %20616 = vmatpush3.bf16.msra.mxu1 %v27382_v20  ;;  %v27412_v20 = vld [vmem:[#allocation76_spill] sm:$0xff] }
 0x8bd   :  { %20618 = vmatprep.subr.bf16.mxu1 %v27131_v14  ;;  %v21583_v42 = vadd.f32 %v25458_v11, %v27412_v20 }
 0x96e   :  { %v9962_v39 = vpop.f32.mrb[16].mxu0 }
 0x96f   :  { %v21580_v32 = vadd.f32 %v21579_v25, %v9962_v39  ;;  %v9964_v55 = vpop.f32.mrb[17].mxu0 }
 0x970   :  { %v21582_v35 = vadd.f32 %v21581_v21, %v9964_v55 }
 0x971   :  { %v15655_v22 = vmul.f32 -1.442695, %v21580_v32 }
 0x972   :  { %v9969_v39 = vpop.f32.mrb[18].mxu0  ;;  %v17842_v25 = vpop.f32.mrb[56].mxu1  ;;  %v15657_v62 = vmul.f32 -1.442695, %v21582_v35 }
 0x973   :  { %22179 = vpow2.f32 %v15655_v22  ;;  %v21584_v55 = vadd.f32 %v21583_v42, %v9969_v39  ;;  %v9971_v21 = vpop.f32.mrb[19].mxu0  ;;  %v10648_v60 = vpop.f32.mrb[57].mxu1  ;;  %v25472_v22 = vld [vmem:[%s26284_s4] ss:$0 sm:$0xff] }
 0x974   :  { %v21586_v27 = vadd.f32 %v21585_v3, %v9971_v21  ;;  %v10686_v35 = vadd.f32 %v25472_v22, %v10648_v60  ;;  %v10687_v42 = vadd.f32 %v25472_v22, %v17842_v25 }
 0x975   :  { %v15656_v46 = vmul.f32 -1.442695, %v21584_v55 }
 0x976   :  { %v15658_v20 = vmul.f32 -1.442695, %v21586_v27 }
 0x977   :  { %22181 = vpow2.f32 %v15656_v46 }
 0x978   :  { %22183 = vpow2.f32 %v15657_v62 }
 0x979   :  { %22185 = vpow2.f32 %v15658_v20 }
 0x97d   :  { %v22180_v32 = vpop.eup %22179 }
 0x97e   :  { %v10666_v11 = vadd.f32 1.0, %v22180_v32 }
 0x980   :  { %22187 = vrcp.f32 %v10666_v11  ;;  %v27415_v11 = vld [vmem:[#allocation69_spill] sm:$0xff] }
 0x981   :  { %v22182_v51 = vpop.eup %22181 }
 0x982   :  { %v10667_v49 = vadd.f32 1.0, %v22182_v51  ;;  %v22184_v37 = vpop.eup %22183 }
 0x983   :  { %v22186_v5 = vpop.eup %22185  ;;  %v10680_v17 = vadd.f32 1.0, %v22184_v37  ;;  %v27416_v37 = vld [vmem:[#allocation36_spill] sm:$0xff] }
 0x984   :  { %22189 = vrcp.f32 %v10667_v49  ;;  %v10681_v27 = vadd.f32 1.0, %v22186_v5 }
 0x985   :  { %22191 = vrcp.f32 %v10680_v17 }
 0x986   :  { %22193 = vrcp.f32 %v10681_v27 }
 0x98a   :  { %v22188_v46 = vpop.eup %22187 }
 0x98b   :  { %v10688_v62 = vmul.f32 %v22188_v46, %v10686_v35 }
 0x98d   :  { %v10690_v3 = vadd.f32 %v10688_v62, %v27415_v11 }
 0x98e   :  { %v22190_v51 = vpop.eup %22189 }
 0x98f   :  { %v10689_v49 = vmul.f32 %v22190_v51, %v10687_v42  ;;  %22195 = vtanh.f32 %v10690_v3  ;;  %v22192_v55 = vpop.eup %22191 }
 0x990   :  { %v22194_v21 = vpop.eup %22193  ;;  %v10694_v20 = vsub.f32 1.0, %v22192_v55  ;;  %v10698_v60 = vmul.f32 %v22192_v55, %v25188_v45 }
 0x991   :  { %v10691_v39 = vadd.f32 %v10689_v49, %v27416_v37  ;;  %v10695_v17 = vsub.f32 1.0, %v22194_v21  ;;  %v10699_v62 = vmul.f32 %v22194_v21, %v25198_v41  ;;  %v27417_v21 = vld [vmem:[#allocation54_spill] sm:$0xff] }
 0x993   :  { %22197 = vtanh.f32 %v10691_v39 }
 0x999   :  { %v22196_v32 = vpop.eup %22195 }
 0x99a   :  { %v10696_v5 = vmul.f32 %v22196_v32, %v10694_v20  ;;  %v27418_v20 = vld [vmem:[#allocation61_spill] sm:$0xff]  ;;  %v27419_v32 = vld [vmem:[#allocation102_spill] sm:$0xff] }
 0x99c   :  { %v25479_v35 = vadd.f32 %v10698_v60, %v10696_v5  ;;  %v27420_v60 = vld [vmem:[#allocation57_spill] sm:$0xff]  ;;  %v27421_v5 = vld [vmem:[#allocation104_spill] sm:$0xff] }
 0x99d   :  { %v22198_v25 = vpop.eup %22197 }
 0x99e   :  { %v10697_v46 = vmul.f32 %v22198_v25, %v10695_v17  ;;  %v25483_v27 = vand.u32 4294901760, %v25479_v35  ;;  %v27422_v17 = vld [vmem:[#allocation105_spill] sm:$0xff]  ;;  %v27423_v25 = vld [vmem:[#allocation60_spill] sm:$0xff] }
 0x9a0   :  { %v25487_v42 = vsub.f32 %v25479_v35, %v25483_v27  ;;  %v25489_v11 = vadd.f32 %v10699_v62, %v10697_v46  ;;  %v27424_v46 = vld [vmem:[#allocation107_spill] sm:$0xff]  ;;  %v27425_v62 = vld [vmem:[#allocation108_spill] sm:$0xff] }
 0x9a2   :  { %v25492_v3 = vand.u32 4294901760, %v25487_v42  ;;  %v25495_v45 = vand.u32 4294901760, %v25489_v11 }
 0x9a4   :  { %v10809_v51 = vsub.f32 %v25487_v42, %v25492_v3  ;;  %v25501_v41 = vsub.f32 %v25489_v11, %v25495_v45 }
 0x9a6   :  { %v10810_v49 = vand.u32 4294901760, %v10809_v51  ;;  %v25504_v37 = vand.u32 4294901760, %v25501_v41  ;;  %v27426_v51 = vld [vmem:[#allocation103_spill] sm:$0xff] }
 0x9a8   :  { %10811 = vmatmul.mubr.f32.vlgmr.msra.gmra.mrb[20].mxu0 %v10810_v49  ;;  %17875 = vmatprep.mubr.f32.mxu1 %v10810_v49  ;;  %v10820_v39 = vsub.f32 %v25501_v41, %v25504_v37  ;;  %v27427_v49 = vld [vmem:[#allocation110_spill] sm:$0xff] }
 0x9a9   :  { %20428 = vmatpush1.bf16.msra.mxu0 %v27149_v12  ;;  %10816 = vmatprep.mubr.f32.mxu0 %v26748_v1 }
 0x9aa   :  { %20430 = vmatprep.subr.bf16.mxu0 %v27150_v15  ;;  %v10821_v55 = vand.u32 4294901760, %v10820_v39  ;;  %v27428_v39 = vld [vmem:[#allocation111_spill] sm:$0xff] }
 0x9ac   :  { %10822 = vmatmul.mubr.f32.gmra.mrb[22].mxu0 %v10821_v55  ;;  %17876 = vmatmul.mubr.f32.vlgmr.msra.gmra.mrb[58].mxu1 %v10821_v55  ;;  %v27429_v55 = vld [vmem:[#allocation106_spill] sm:$0xff] }
 0x9ad   :  { %20432 = vmatpush1.bf16.msra.mxu0 %v27151_v63  ;;  %20620 = vmatpush3.bf16.msra.mxu1 %v27131_v14 }
 0x9ae   :  { %17910 = vmatprep.mubr.f32.mxu1 %v25483_v27  ;;  %20434 = vmatprep.subr.bf16.mxu0 %v27152_v47 }
 0x9af   :  { %20622 = vmatprep.subr.bf16.mxu1 %v27153_v33  ;;  %11052 = vmatprep.mubr.f32.mxu0 %v26748_v1 }
 0x9b1   :  { %20436 = vmatpush1.bf16.msra.mxu0 %v27154_v48  ;;  %20624 = vmatpush3.bf16.msra.mxu1 %v27153_v33 }
 0x9b2   :  { %20438 = vmatprep.subr.bf16.mxu0 %v27216_v7  ;;  %20626 = vmatprep.subr.bf16.mxu1 %v27217_v59 }
 0x9b5   :  { %20440 = vmatpush1.bf16.msra.mxu0 %v27218_v53  ;;  %20628 = vmatpush3.bf16.msra.mxu1 %v27217_v59 }
 0x9b6   :  { %20442 = vmatprep.subr.bf16.mxu0 %v27219_v57  ;;  %20630 = vmatprep.subr.bf16.mxu1 %v27220_v4 }
 0x9b9   :  { %20444 = vmatpush1.bf16.msra.mxu0 %v27221_v18  ;;  %20632 = vmatpush3.bf16.msra.mxu1 %v27220_v4 }
 0x9ba   :  { %20446 = vmatprep.subr.bf16.mxu0 %v27222_v58  ;;  %20634 = vmatprep.subr.bf16.mxu1 %v27223_v29 }
 0x9bd   :  { %20448 = vmatpush1.bf16.msra.mxu0 %v27224_v50  ;;  %20636 = vmatpush3.bf16.msra.mxu1 %v27223_v29 }
 0x9be   :  { %20450 = vmatprep.subr.bf16.mxu0 %v27284_v2  ;;  %20638 = vmatprep.subr.bf16.mxu1 %v27285_v54 }
 0x9c1   :  { %20452 = vmatpush1.bf16.msra.mxu0 %v27286_v16  ;;  %20640 = vmatpush3.bf16.msra.mxu1 %v27285_v54 }
 0x9c2   :  { %20454 = vmatprep.subr.bf16.mxu0 %v27287_v24  ;;  %20642 = vmatprep.subr.bf16.mxu1 %v27288_v30 }
 0x9c5   :  { %20456 = vmatpush1.bf16.msra.mxu0 %v27289_v38  ;;  %20644 = vmatpush3.bf16.msra.mxu1 %v27288_v30 }
 0x9c6   :  { %20458 = vmatprep.subr.bf16.mxu0 %v27290_v26  ;;  %20646 = vmatprep.subr.bf16.mxu1 %v27291_v52 }
 0x9c8   :  { %11054 = vmatmul.mubr.f32.vlgmr.msra.gmra.mrb[20].mxu0 %v25483_v27 }
 0x9c9   :  { %20460 = vmatpush1.bf16.msra.mxu0 %v27349_v40  ;;  %20648 = vmatpush3.bf16.msra.mxu1 %v27291_v52 }
 0x9ca   :  { %11059 = vmatprep.mubr.f32.mxu0 %v26748_v1  ;;  %20462 = vmatprep.subr.bf16.mxu0 %v27293_v0  ;;  %v27461_v0 = vld [vmem:[#allocation123_spill] sm:$0xff] }
 0x9cb   :  { %20650 = vmatprep.subr.bf16.mxu1 %v27417_v21 }
 0x9cc   :  { %11061 = vmatmul.mubr.f32.gmra.mrb[22].mxu0 %v25495_v45  ;;  %17911 = vmatmul.mubr.f32.vlgmr.msra.gmra.mrb[58].mxu1 %v25495_v45 }
 0x9cd   :  { %20464 = vmatpush1.bf16.msra.mxu0 %v27418_v20  ;;  %20652 = vmatpush3.bf16.msra.mxu1 %v27417_v21  ;;  %v27451_v20 = vld [vmem:[#allocation16_spill] sm:$0xff]  ;;  %v27456_v21 = vld [vmem:[#allocation63_spill] sm:$0xff] }
 0x9ce   :  { %17945 = vmatprep.mubr.f32.mxu1 %v25487_v42  ;;  %20466 = vmatprep.subr.bf16.mxu0 %v27419_v32  ;;  %v27450_v32 = vld [vmem:[#allocation21_spill] sm:$0xff] }
 0x9cf   :  { %20654 = vmatprep.subr.bf16.mxu1 %v27420_v60  ;;  %11195 = vmatprep.mubr.f32.mxu0 %v26748_v1 }
 0x9d1   :  { %20468 = vmatpush1.bf16.msra.mxu0 %v27421_v5  ;;  %20656 = vmatpush3.bf16.msra.mxu1 %v27420_v60  ;;  %v27430_v5 = vld [vmem:[#allocation38_spill] sm:$0xff]  ;;  %v27449_v60 = vld [vmem:[#allocation24_spill] sm:$0xff] }
 0x9d2   :  { %20470 = vmatprep.subr.bf16.mxu0 %v27422_v17  ;;  %20658 = vmatprep.subr.bf16.mxu1 %v27423_v25  ;;  %v27431_v17 = vld [vmem:[#allocation39_spill] sm:$0xff] }
 0x9d5   :  { %20472 = vmatpush1.bf16.msra.mxu0 %v27424_v46  ;;  %20660 = vmatpush3.bf16.msra.mxu1 %v27423_v25  ;;  %v27432_v46 = vld [vmem:[#allocation109_spill] sm:$0xff]  ;;  %v27433_v25 = vld [vmem:[#allocation92_spill] sm:$0xff] }
 0x9d6   :  { %20474 = vmatprep.subr.bf16.mxu0 %v27425_v62  ;;  %20662 = vmatprep.subr.bf16.mxu1 %v27426_v51  ;;  %v27434_v62 = vld [vmem:[#allocation113_spill] sm:$0xff] }
 0x9d9   :  { %20476 = vmatpush1.bf16.msra.mxu0 %v27427_v49  ;;  %20664 = vmatpush3.bf16.msra.mxu1 %v27426_v51  ;;  %v27435_v49 = vld [vmem:[#allocation112_spill] sm:$0xff]  ;;  %v27436_v51 = vld [vmem:[#allocation114_spill] sm:$0xff] }
 0x9da   :  { %20478 = vmatprep.subr.bf16.mxu0 %v27428_v39  ;;  %20666 = vmatprep.subr.bf16.mxu1 %v27429_v55  ;;  %v27448_v39 = vld [vmem:[#allocation23_spill] sm:$0xff] }
 0x9dd   :  { %20480 = vmatpush1.bf16.msra.mxu0 %v27430_v5  ;;  %20668 = vmatpush3.bf16.msra.mxu1 %v27429_v55  ;;  %v27437_v5 = vld [vmem:[#allocation41_spill] sm:$0xff]  ;;  %v27447_v55 = vld [vmem:[#allocation68_spill] sm:$0xff] }
 0x9de   :  { %20482 = vmatprep.subr.bf16.mxu0 %v27431_v17  ;;  %20670 = vmatprep.subr.bf16.mxu1 %v27432_v46  ;;  %v27446_v17 = vld [vmem:[#allocation17_spill] sm:$0xff] }
 0x9e1   :  { %20484 = vmatpush1.bf16.msra.mxu0 %v27433_v25  ;;  %20672 = vmatpush3.bf16.msra.mxu1 %v27432_v46  ;;  %v27444_v25 = vld [vmem:[#allocation67_spill] sm:$0xff]  ;;  %v27445_v46 = vld [vmem:[#allocation62_spill] sm:$0xff] }
 0x9e2   :  { %20486 = vmatprep.subr.bf16.mxu0 %v27434_v62  ;;  %20674 = vmatprep.subr.bf16.mxu1 %v27435_v49  ;;  %v27443_v62 = vld [vmem:[#allocation55_spill] sm:$0xff] }
 0x9e5   :  { %20488 = vmatpush1.bf16.msra.mxu0 %v27436_v51  ;;  %20676 = vmatpush3.bf16.msra.mxu1 %v27435_v49  ;;  %v27441_v51 = vld [vmem:[#allocation66_spill] sm:$0xff]  ;;  %v27442_v49 = vld [vmem:[#allocation53_spill] sm:$0xff] }
 0x9e6   :  { %20490 = vmatprep.subr.bf16.mxu0 %v27014_v44  ;;  %20678 = vmatprep.subr.bf16.mxu1 %v27437_v5 }
 0x9e8   :  { %11198 = vmatmul.mubr.f32.vlgmr.msra.gmra.mrb[20].mxu0 %v25487_v42  ;;  %v27438_v42 = vld [vmem:[#allocation65_spill] sm:$0xff] }
 0x9e9   :  { %20492 = vmatpush1.bf16.msra.mxu0 %v27016_v61  ;;  %20680 = vmatpush3.bf16.msra.mxu1 %v27437_v5  ;;  %v27440_v5 = vld [vmem:[#allocation50_spill] sm:$0xff] }
 0x9ea   :  { %11203 = vmatprep.mubr.f32.mxu0 %v26748_v1  ;;  %20494 = vmatprep.subr.bf16.mxu0 %v27017_v43 }
 0x9eb   :  { %20682 = vmatprep.subr.bf16.mxu1 %v27013_v23 }
 0x9ec   :  { %11206 = vmatmul.mubr.f32.gmra.mrb[22].mxu0 %v25501_v41  ;;  %17946 = vmatmul.mubr.f32.vlgmr.msra.gmra.mrb[58].mxu1 %v25501_v41  ;;  %v27439_v41 = vld [vmem:[#allocation49_spill] sm:$0xff] }
 0x9ed   :  { %20496 = vmatpush1.bf16.msra.mxu0 %v27111_v13  ;;  %20684 = vmatpush3.bf16.msra.mxu1 %v27013_v23 }
 0x9ee   :  { %17980 = vmatprep.mubr.f32.mxu1 %v25492_v3  ;;  %20498 = vmatprep.subr.bf16.mxu0 %v27112_v19 }
 0x9ef   :  { %20686 = vmatprep.subr.bf16.mxu1 %v27015_v6  ;;  %11308 = vmatprep.mubr.f32.mxu0 %v26748_v1 }
 0x9f1   :  { %20500 = vmatpush1.bf16.msra.mxu0 %v27114_v36  ;;  %20688 = vmatpush3.bf16.msra.mxu1 %v27015_v6 }
 0x9f2   :  { %20502 = vmatprep.subr.bf16.mxu0 %v27115_v31  ;;  %20690 = vmatprep.subr.bf16.mxu1 %v27018_v56 }
 0x9f5   :  { %20504 = vmatpush1.bf16.msra.mxu0 %v27117_v10  ;;  %20692 = vmatpush3.bf16.msra.mxu1 %v27018_v56 }
 0x9f6   :  { %20506 = vmatprep.subr.bf16.mxu0 %v27118_v8  ;;  %20694 = vmatprep.subr.bf16.mxu1 %v27113_v34 }
 0x9f9   :  { %20508 = vmatpush1.bf16.msra.mxu0 %v27371_v9  ;;  %20696 = vmatpush3.bf16.msra.mxu1 %v27113_v34 }
 0x9fa   :  { %20510 = vmatprep.subr.bf16.mxu0 %v27372_v28  ;;  %20698 = vmatprep.subr.bf16.mxu1 %v27438_v42 }
 0x9fd   :  { %20512 = vmatpush1.bf16.msra.mxu0 %v27439_v41  ;;  %20700 = vmatpush3.bf16.msra.mxu1 %v27438_v42 }
 0x9fe   :  { %20514 = vmatprep.subr.bf16.mxu0 %v27440_v5  ;;  %20702 = vmatprep.subr.bf16.mxu1 %v27441_v51 }
 0xa01   :  { %20516 = vmatpush1.bf16.msra.mxu0 %v27442_v49  ;;  %20704 = vmatpush3.bf16.msra.mxu1 %v27441_v51 }
 0xa02   :  { %20518 = vmatprep.subr.bf16.mxu0 %v27443_v62  ;;  %20706 = vmatprep.subr.bf16.mxu1 %v27444_v25 }
 0xa05   :  { %20520 = vmatpush1.bf16.msra.mxu0 %v27445_v46  ;;  %20708 = vmatpush3.bf16.msra.mxu1 %v27444_v25 }
 0xa06   :  { %20522 = vmatprep.subr.bf16.mxu0 %v27446_v17  ;;  %20710 = vmatprep.subr.bf16.mxu1 %v27447_v55  ;;  %v27454_v17 = vld [vmem:[#allocation116_spill] sm:$0xff] }
 0xa08   :  { %11312 = vmatmul.mubr.f32.vlgmr.msra.gmra.mrb[20].mxu0 %v25492_v3  ;;  %v27452_v3 = vld [vmem:[#allocation15_spill] sm:$0xff] }
 0xa09   :  { %20524 = vmatpush1.bf16.msra.mxu0 %v27448_v39  ;;  %20712 = vmatpush3.bf16.msra.mxu1 %v27447_v55  ;;  %v27453_v39 = vld [vmem:[#allocation52_spill] sm:$0xff] }
 0xa0a   :  { %11317 = vmatprep.mubr.f32.mxu0 %v26748_v1  ;;  %20526 = vmatprep.subr.bf16.mxu0 %v27449_v60  ;;  %v27455_v60 = vld [vmem:[#allocation117_spill] sm:$0xff] }
 0xa0b   :  { %20714 = vmatprep.subr.bf16.mxu1 %v27450_v32 }
 0xa0c   :  { %11321 = vmatmul.mubr.f32.gmra.mrb[22].mxu0 %v25504_v37  ;;  %17981 = vmatmul.mubr.f32.vlgmr.msra.gmra.mrb[58].mxu1 %v25504_v37  ;;  %v27457_v37 = vld [vmem:[#allocation119_spill] sm:$0xff] }
 0xa0d   :  { %20528 = vmatpush1.bf16.msra.mxu0 %v27451_v20  ;;  %20716 = vmatpush3.bf16.msra.mxu1 %v27450_v32  ;;  %v27458_v20 = vld [vmem:[#allocation120_spill] sm:$0xff]  ;;  %v27459_v32 = vld [vmem:[#allocation115_spill] sm:$0xff] }
 0xa0e   :  { %18015 = vmatprep.mubr.f32.mxu1 %v25483_v27  ;;  %20530 = vmatprep.subr.bf16.mxu0 %v27452_v3  ;;  %v27460_v3 = vld [vmem:[#allocation122_spill] sm:$0xff] }
 0xa0f   :  { %20718 = vmatprep.subr.bf16.mxu1 %v27453_v39  ;;  %11487 = vmatprep.mubr.f32.mxu0 %v26748_v1 }
 0xa11   :  { %20532 = vmatpush1.bf16.msra.mxu0 %v27454_v17  ;;  %20720 = vmatpush3.bf16.msra.mxu1 %v27453_v39  ;;  %v27462_v17 = vld [vmem:[#allocation118_spill] sm:$0xff]  ;;  %v27463_v39 = vld [vmem:[#allocation125_spill] sm:$0xff] }
 0xa12   :  { %20534 = vmatprep.subr.bf16.mxu0 %v27455_v60  ;;  %20722 = vmatprep.subr.bf16.mxu1 %v27456_v21  ;;  %v27464_v60 = vld [vmem:[#allocation126_spill] sm:$0xff] }
 0xa15   :  { %20536 = vmatpush1.bf16.msra.mxu0 %v27457_v37  ;;  %20724 = vmatpush3.bf16.msra.mxu1 %v27456_v21  ;;  %v27465_v37 = vld [vmem:[#allocation121_spill] sm:$0xff]  ;;  %v27466_v21 = vld [vmem:[#allocation128_spill] sm:$0xff] }
 0xa16   :  { %20538 = vmatprep.subr.bf16.mxu0 %v27458_v20  ;;  %20726 = vmatprep.subr.bf16.mxu1 %v27459_v32  ;;  %v27467_v20 = vld [vmem:[#allocation129_spill] sm:$0xff] }
 0xa19   :  { %20540 = vmatpush1.bf16.msra.mxu0 %v27460_v3  ;;  %20728 = vmatpush3.bf16.msra.mxu1 %v27459_v32  ;;  %v27468_v3 = vld [vmem:[#allocation124_spill] sm:$0xff]  ;;  %v27469_v32 = vld [vmem:[#allocation130_spill] sm:$0xff] }
 0xa1a   :  { %20542 = vmatprep.subr.bf16.mxu0 %v27461_v0  ;;  %20730 = vmatprep.subr.bf16.mxu1 %v27462_v17 }
 0xa1d   :  { %20544 = vmatpush1.bf16.msra.mxu0 %v27463_v39  ;;  %20732 = vmatpush3.bf16.msra.mxu1 %v27462_v17  ;;  %v27470_v39 = vld [vmem:[#allocation127_spill] sm:$0xff] }
 0xa1e   :  { %20546 = vmatprep.subr.bf16.mxu0 %v27464_v60  ;;  %20734 = vmatprep.subr.bf16.mxu1 %v27465_v37 }
 0xa21   :  { %20548 = vmatpush1.bf16.msra.mxu0 %v27466_v21  ;;  %20736 = vmatpush3.bf16.msra.mxu1 %v27465_v37 }
 0xa22   :  { %20550 = vmatprep.subr.bf16.mxu0 %v27467_v20  ;;  %20738 = vmatprep.subr.bf16.mxu1 %v27468_v3  ;;  %v27475_v20 = vld [vmem:[#allocation72_spill] sm:$0xff] }
 0xa25   :  { %20552 = vmatpush1.bf16.msra.mxu0 %v27469_v32  ;;  %20740 = vmatpush3.bf16.msra.mxu1 %v27468_v3  ;;  %v27474_v3 = vld [vmem:[#allocation81_spill] sm:$0xff] }
 0xa26   :  { %20554 = vmatprep.subr.bf16.mxu0 %v27014_v44  ;;  %20742 = vmatprep.subr.bf16.mxu1 %v27470_v39  ;;  %v21589_v21 = vadd.f32 %v27475_v20, %v27474_v3 }
 0xa28   :  { %11489 = vmatmul.mubr.f32.vlgmr.msra.gmra.mrb[20].mxu0 %v25483_v27 }
 0xa29   :  { %20556 = vmatpush1.bf16.msra.mxu0 %v27016_v61  ;;  %20744 = vmatpush3.bf16.msra.mxu1 %v27470_v39  ;;  %v27473_v39 = vld [vmem:[#allocation71_spill] sm:$0xff] }
 0xa2a   :  { %11494 = vmatprep.mubr.f32.mxu0 %v26748_v1  ;;  %20558 = vmatprep.subr.bf16.mxu0 %v27017_v43 }
 0xa2b   :  { %20746 = vmatprep.subr.bf16.mxu1 %v27013_v23 }
 0xa2c   :  { %11496 = vmatmul.mubr.f32.gmra.mrb[22].mxu0 %v25495_v45  ;;  %18016 = vmatmul.mubr.f32.vlgmr.msra.gmra.mrb[58].mxu1 %v25495_v45 }
 0xa2d   :  { %20560 = vmatpush1.bf16.msra.mxu0 %v27111_v13  ;;  %20748 = vmatpush3.bf16.msra.mxu1 %v27013_v23 }
 0xa2e   :  { %18050 = vmatprep.mubr.f32.mxu1 %v25483_v27  ;;  %20562 = vmatprep.subr.bf16.mxu0 %v27112_v19 }
 0xa2f   :  { %20750 = vmatprep.subr.bf16.mxu1 %v27015_v6  ;;  %11598 = vmatprep.mubr.f32.mxu0 %v26748_v1 }
 0xa31   :  { %20564 = vmatpush1.bf16.msra.mxu0 %v27114_v36  ;;  %20752 = vmatpush3.bf16.msra.mxu1 %v27015_v6 }
 0xa32   :  { %20566 = vmatprep.subr.bf16.mxu0 %v27115_v31  ;;  %20754 = vmatprep.subr.bf16.mxu1 %v27018_v56 }
 0xa35   :  { %20568 = vmatpush1.bf16.msra.mxu0 %v27117_v10  ;;  %20756 = vmatpush3.bf16.msra.mxu1 %v27018_v56 }
 0xa36   :  { %20570 = vmatprep.subr.bf16.mxu0 %v27118_v8  ;;  %20758 = vmatprep.subr.bf16.mxu1 %v27113_v34 }
 0xa39   :  { %20572 = vmatpush1.bf16.msra.mxu0 %v27371_v9  ;;  %20760 = vmatpush3.bf16.msra.mxu1 %v27113_v34 }
 0xa3a   :  { %20574 = vmatprep.subr.bf16.mxu0 %v27372_v28  ;;  %20762 = vmatprep.subr.bf16.mxu1 %v27438_v42 }
 0xa3d   :  { %20576 = vmatpush1.bf16.msra.mxu0 %v27439_v41  ;;  %20764 = vmatpush3.bf16.msra.mxu1 %v27438_v42 }
 0xa3e   :  { %20578 = vmatprep.subr.bf16.mxu0 %v27440_v5  ;;  %20766 = vmatprep.subr.bf16.mxu1 %v27441_v51 }
 0xa41   :  { %20580 = vmatpush1.bf16.msra.mxu0 %v27442_v49  ;;  %20768 = vmatpush3.bf16.msra.mxu1 %v27441_v51 }
 0xa42   :  { %20582 = vmatprep.subr.bf16.mxu0 %v27443_v62  ;;  %20770 = vmatprep.subr.bf16.mxu1 %v27444_v25 }
 0xa45   :  { %20584 = vmatpush1.bf16.msra.mxu0 %v27445_v46  ;;  %20772 = vmatpush3.bf16.msra.mxu1 %v27444_v25 }
 0xa46   :  { %20774 = vmatprep.subr.bf16.mxu1 %v27447_v55  ;;  %20778 = vmatprep.subr.bf16.mxu0 %v27014_v44 }
 0xa48   :  { %11600 = vmatmul.mubr.f32.vlgmr.msra.gmra.mrb[20].mxu0 %v25483_v27  ;;  %v27471_v27 = vld [vmem:[#allocation18_spill] sm:$0xff] }
 0xa49   :  { %20776 = vmatpush3.bf16.msra.mxu1 %v27447_v55  ;;  %11605 = vmatprep.mubr.f32.mxu0 %v26748_v1 }
 0xa4a   :  { %20780 = vmatpush1.bf16.msra.mxu0 %v27016_v61  ;;  %20970 = vmatprep.subr.bf16.mxu1 %v27013_v23 }
 0xa4b   :  { %20782 = vmatprep.subr.bf16.mxu0 %v27017_v43 }
 0xa4c   :  { %11607 = vmatmul.mubr.f32.gmra.mrb[22].mxu0 %v25495_v45  ;;  %18051 = vmatmul.mubr.f32.vlgmr.msra.gmra.mrb[58].mxu1 %v25495_v45  ;;  %v27472_v45 = vld [vmem:[#allocation79_spill] sm:$0xff] }
 0xa4d   :  { %20972 = vmatpush3.bf16.msra.mxu1 %v27013_v23  ;;  %12444 = vmatprep.mubr.f32.mxu0 %v26748_v1  ;;  %v21587_v32 = vadd.f32 %v27473_v39, %v27472_v45 }
 0xa4e   :  { %20784 = vmatpush1.bf16.msra.mxu0 %v27111_v13  ;;  %20974 = vmatprep.subr.bf16.mxu1 %v27015_v6 }
 0xa4f   :  { %20786 = vmatprep.subr.bf16.mxu0 %v27112_v19 }
 0xa51   :  { %20976 = vmatpush3.bf16.msra.mxu1 %v27015_v6 }
 0xa52   :  { %20788 = vmatpush1.bf16.msra.mxu0 %v27114_v36  ;;  %20978 = vmatprep.subr.bf16.mxu1 %v27018_v56 }
 0xa53   :  { %20790 = vmatprep.subr.bf16.mxu0 %v27115_v31 }
 0xa55   :  { %20980 = vmatpush3.bf16.msra.mxu1 %v27018_v56 }
 0xa56   :  { %20792 = vmatpush1.bf16.msra.mxu0 %v27117_v10  ;;  %20982 = vmatprep.subr.bf16.mxu1 %v27113_v34 }
 0xa57   :  { %20794 = vmatprep.subr.bf16.mxu0 %v27118_v8 }
 0xa59   :  { %20984 = vmatpush3.bf16.msra.mxu1 %v27113_v34 }
 0xa5a   :  { %20796 = vmatpush1.bf16.msra.mxu0 %v27371_v9  ;;  %20986 = vmatprep.subr.bf16.mxu1 %v27438_v42 }
 0xa5b   :  { %20798 = vmatprep.subr.bf16.mxu0 %v27372_v28 }
 0xa5d   :  { %20988 = vmatpush3.bf16.msra.mxu1 %v27438_v42 }
 0xa5e   :  { %20800 = vmatpush1.bf16.msra.mxu0 %v27439_v41  ;;  %20990 = vmatprep.subr.bf16.mxu1 %v27441_v51 }
 0xa5f   :  { %20802 = vmatprep.subr.bf16.mxu0 %v27440_v5 }
 0xa61   :  { %20992 = vmatpush3.bf16.msra.mxu1 %v27441_v51  ;;  %v27478_v51 = vld [vmem:[#allocation83_spill] sm:$0xff] }
 0xa62   :  { %20804 = vmatpush1.bf16.msra.mxu0 %v27442_v49  ;;  %20994 = vmatprep.subr.bf16.mxu1 %v27444_v25 }
 0xa63   :  { %20806 = vmatprep.subr.bf16.mxu0 %v27443_v62 }
 0xa65   :  { %20996 = vmatpush3.bf16.msra.mxu1 %v27444_v25  ;;  %v27476_v25 = vld [vmem:[#allocation82_spill] sm:$0xff] }
 0xa66   :  { %20808 = vmatpush1.bf16.msra.mxu0 %v27445_v46  ;;  %20998 = vmatprep.subr.bf16.mxu1 %v27447_v55  ;;  %v27477_v46 = vld [vmem:[#allocation78_spill] sm:$0xff] }
 0xa67   :  { %20810 = vmatprep.subr.bf16.mxu0 %v27471_v27  ;;  %v21591_v62 = vadd.f32 %v27477_v46, %v27476_v25  ;;  %v27479_v27 = vld [vmem:[#allocation80_spill] sm:$0xff] }
 0xa68   :  { %v21593_v5 = vadd.f32 %v27479_v27, %v27478_v51  ;;  %v27481_v27 = vld [vmem:[#allocation131_spill] sm:$0xff] }
 0xa69   :  { %21000 = vmatpush3.bf16.msra.mxu1 %v27447_v55 }
 0xa6a   :  { %21002 = vmatprep.subr.bf16.mxu1 %v27131_v14 }
 0xb1b   :  { %v11601_v37 = vpop.f32.mrb[20].mxu0 }
 0xb1c   :  { %v21588_v60 = vadd.f32 %v21587_v32, %v11601_v37  ;;  %v11603_v17 = vpop.f32.mrb[21].mxu0 }
 0xb1d   :  { %v21590_v0 = vadd.f32 %v21589_v21, %v11603_v17 }
 0xb1e   :  { %v15659_v49 = vmul.f32 -1.442695, %v21588_v60 }
 0xb1f   :  { %v11608_v55 = vpop.f32.mrb[22].mxu0  ;;  %v18052_v41 = vpop.f32.mrb[58].mxu1  ;;  %v15661_v20 = vmul.f32 -1.442695, %v21590_v0 }
 0xb20   :  { %22199 = vpow2.f32 %v15659_v49  ;;  %v21592_v42 = vadd.f32 %v21591_v62, %v11608_v55  ;;  %v11610_v28 = vpop.f32.mrb[23].mxu0  ;;  %v12287_v39 = vpop.f32.mrb[59].mxu1  ;;  %v12326_v0 = vadd.f32 %v25472_v22, %v18052_v41 }
 0xb21   :  { %v21594_v45 = vadd.f32 %v21593_v5, %v11610_v28  ;;  %v12325_v62 = vadd.f32 %v25472_v22, %v12287_v39 }
 0xb22   :  { %v15660_v9 = vmul.f32 -1.442695, %v21592_v42 }
 0xb23   :  { %v15662_v32 = vmul.f32 -1.442695, %v21594_v45 }
 0xb24   :  { %22201 = vpow2.f32 %v15660_v9  ;;  %v27480_v9 = vld [vmem:[#allocation132_spill] sm:$0xff] }
 0xb25   :  { %22203 = vpow2.f32 %v15661_v20 }
 0xb26   :  { %22205 = vpow2.f32 %v15662_v32 }
 0xb2a   :  { %v22200_v21 = vpop.eup %22199 }
 0xb2b   :  { %v12305_v17 = vadd.f32 1.0, %v22200_v21 }
 0xb2d   :  { %22207 = vrcp.f32 %v12305_v17 }
 0xb2e   :  { %v22202_v60 = vpop.eup %22201 }
 0xb2f   :  { %v12306_v25 = vadd.f32 1.0, %v22202_v60  ;;  %v22204_v46 = vpop.eup %22203 }
 0xb30   :  { %v22206_v51 = vpop.eup %22205  ;;  %v12319_v3 = vadd.f32 1.0, %v22204_v46 }
 0xb31   :  { %22209 = vrcp.f32 %v12306_v25  ;;  %v12320_v55 = vadd.f32 1.0, %v22206_v51 }
 0xb32   :  { %22211 = vrcp.f32 %v12319_v3 }
 0xb33   :  { %22213 = vrcp.f32 %v12320_v55 }
 0xb37   :  { %v22208_v49 = vpop.eup %22207 }
 0xb38   :  { %v12327_v28 = vmul.f32 %v22208_v49, %v12325_v62 }
 0xb3a   :  { %v12329_v5 = vadd.f32 %v12327_v28, %v27480_v9 }
 0xb3b   :  { %v22210_v42 = vpop.eup %22209 }
 0xb3c   :  { %v12328_v37 = vmul.f32 %v22210_v42, %v12326_v0  ;;  %22215 = vtanh.f32 %v12329_v5  ;;  %v22212_v20 = vpop.eup %22211 }
 0xb3d   :  { %v22214_v32 = vpop.eup %22213  ;;  %v12333_v21 = vsub.f32 1.0, %v22212_v20  ;;  %v12337_v39 = vmul.f32 %v22212_v20, %v25479_v35  ;;  %v27485_v20 = vld [vmem:[#allocation102_spill] sm:$0xff] }
 0xb3e   :  { %v12330_v45 = vadd.f32 %v12328_v37, %v27481_v27  ;;  %v12334_v25 = vsub.f32 1.0, %v22214_v32  ;;  %v12338_v51 = vmul.f32 %v22214_v32, %v25489_v11  ;;  %v27482_v37 = vld [vmem:[#allocation59_spill] sm:$0xff]  ;;  %v27483_v27 = vld [vmem:[#allocation54_spill] sm:$0xff]  ;;  %v27486_v32 = vld [vmem:[#allocation57_spill] sm:$0xff] }
 0xb40   :  { %22217 = vtanh.f32 %v12330_v45  ;;  %v27484_v45 = vld [vmem:[#allocation61_spill] sm:$0xff] }
 0xb46   :  { %v22216_v17 = vpop.eup %22215 }
 0xb47   :  { %v12335_v60 = vmul.f32 %v22216_v17, %v12333_v21  ;;  %v27487_v21 = vld [vmem:[#allocation104_spill] sm:$0xff]  ;;  %v27488_v17 = vld [vmem:[#allocation105_spill] sm:$0xff] }
 0xb49   :  { %v25745_v46 = vadd.f32 %v12337_v39, %v12335_v60  ;;  %v27489_v39 = vld [vmem:[#allocation60_spill] sm:$0xff]  ;;  %v27490_v60 = vld [vmem:[#allocation107_spill] sm:$0xff] }
 0xb4a   :  { %v22218_v22 = vpop.eup %22217 }
 0xb4b   :  { %v12336_v41 = vmul.f32 %v22218_v22, %v12334_v25  ;;  %v25749_v3 = vand.u32 4294901760, %v25745_v46  ;;  %v27491_v25 = vld [vmem:[#allocation108_spill] sm:$0xff]  ;;  %v27492_v22 = vld [vmem:[#allocation103_spill] sm:$0xff] }
 0xb4d   :  { %v25753_v62 = vsub.f32 %v25745_v46, %v25749_v3  ;;  %v25755_v49 = vadd.f32 %v12338_v51, %v12336_v41  ;;  %v27493_v41 = vld [vmem:[#allocation110_spill] sm:$0xff]  ;;  %v27494_v51 = vld [vmem:[#allocation111_spill] sm:$0xff] }
 0xb4f   :  { %v25758_v55 = vand.u32 4294901760, %v25753_v62  ;;  %v25761_v35 = vand.u32 4294901760, %v25755_v49 }
 0xb51   :  { %v12448_v28 = vsub.f32 %v25753_v62, %v25758_v55  ;;  %v25767_v11 = vsub.f32 %v25755_v49, %v25761_v35 }
 0xb53   :  { %v12449_v0 = vand.u32 4294901760, %v12448_v28  ;;  %v25770_v9 = vand.u32 4294901760, %v25767_v11  ;;  %v27495_v28 = vld [vmem:[#allocation106_spill] sm:$0xff] }
 0xb55   :  { %12450 = vmatmul.mubr.f32.vlgmr.msra.gmra.mrb[24].mxu0 %v12449_v0  ;;  %18085 = vmatprep.mubr.f32.mxu1 %v12449_v0  ;;  %v12459_v5 = vsub.f32 %v25767_v11, %v25770_v9  ;;  %v27496_v0 = vld [vmem:[#allocation38_spill] sm:$0xff] }
 0xb56   :  { %20812 = vmatpush1.bf16.msra.mxu0 %v27149_v12  ;;  %12455 = vmatprep.mubr.f32.mxu0 %v26748_v1 }
 0xb57   :  { %20814 = vmatprep.subr.bf16.mxu0 %v27150_v15  ;;  %v12460_v42 = vand.u32 4294901760, %v12459_v5  ;;  %v27497_v5 = vld [vmem:[#allocation39_spill] sm:$0xff] }
 0xb59   :  { %12461 = vmatmul.mubr.f32.gmra.mrb[26].mxu0 %v12460_v42  ;;  %18086 = vmatmul.mubr.f32.vlgmr.msra.gmra.mrb[60].mxu1 %v12460_v42  ;;  %v27498_v42 = vld [vmem:[#allocation109_spill] sm:$0xff] }
 0xb5a   :  { %20816 = vmatpush1.bf16.msra.mxu0 %v27151_v63  ;;  %21004 = vmatpush3.bf16.msra.mxu1 %v27131_v14 }
 0xb5b   :  { %18120 = vmatprep.mubr.f32.mxu1 %v25749_v3  ;;  %20818 = vmatprep.subr.bf16.mxu0 %v27152_v47 }
 0xb5c   :  { %21006 = vmatprep.subr.bf16.mxu1 %v27153_v33  ;;  %12691 = vmatprep.mubr.f32.mxu0 %v26748_v1 }
 0xb5e   :  { %20820 = vmatpush1.bf16.msra.mxu0 %v27154_v48  ;;  %21008 = vmatpush3.bf16.msra.mxu1 %v27153_v33 }
 0xb5f   :  { %20822 = vmatprep.subr.bf16.mxu0 %v27216_v7  ;;  %21010 = vmatprep.subr.bf16.mxu1 %v27217_v59 }
 0xb62   :  { %20824 = vmatpush1.bf16.msra.mxu0 %v27218_v53  ;;  %21012 = vmatpush3.bf16.msra.mxu1 %v27217_v59 }
 0xb63   :  { %20826 = vmatprep.subr.bf16.mxu0 %v27219_v57  ;;  %21014 = vmatprep.subr.bf16.mxu1 %v27220_v4 }
 0xb66   :  { %20828 = vmatpush1.bf16.msra.mxu0 %v27221_v18  ;;  %21016 = vmatpush3.bf16.msra.mxu1 %v27220_v4 }
 0xb67   :  { %20830 = vmatprep.subr.bf16.mxu0 %v27222_v58  ;;  %21018 = vmatprep.subr.bf16.mxu1 %v27223_v29 }
 0xb6a   :  { %20832 = vmatpush1.bf16.msra.mxu0 %v27224_v50  ;;  %21020 = vmatpush3.bf16.msra.mxu1 %v27223_v29 }
 0xb6b   :  { %20834 = vmatprep.subr.bf16.mxu0 %v27284_v2  ;;  %21022 = vmatprep.subr.bf16.mxu1 %v27285_v54 }
 0xb6e   :  { %20836 = vmatpush1.bf16.msra.mxu0 %v27286_v16  ;;  %21024 = vmatpush3.bf16.msra.mxu1 %v27285_v54 }
 0xb6f   :  { %20838 = vmatprep.subr.bf16.mxu0 %v27287_v24  ;;  %21026 = vmatprep.subr.bf16.mxu1 %v27288_v30 }
 0xb72   :  { %20840 = vmatpush1.bf16.msra.mxu0 %v27289_v38  ;;  %21028 = vmatpush3.bf16.msra.mxu1 %v27288_v30 }
 0xb73   :  { %20842 = vmatprep.subr.bf16.mxu0 %v27290_v26  ;;  %21030 = vmatprep.subr.bf16.mxu1 %v27291_v52 }
 0xb75   :  { %12693 = vmatmul.mubr.f32.vlgmr.msra.gmra.mrb[24].mxu0 %v25749_v3 }
 0xb76   :  { %20844 = vmatpush1.bf16.msra.mxu0 %v27349_v40  ;;  %21032 = vmatpush3.bf16.msra.mxu1 %v27291_v52 }
 0xb77   :  { %12698 = vmatprep.mubr.f32.mxu0 %v26748_v1  ;;  %20846 = vmatprep.subr.bf16.mxu0 %v27482_v37 }
 0xb78   :  { %21034 = vmatprep.subr.bf16.mxu1 %v27483_v27 }
 0xb79   :  { %12700 = vmatmul.mubr.f32.gmra.mrb[26].mxu0 %v25761_v35  ;;  %18121 = vmatmul.mubr.f32.vlgmr.msra.gmra.mrb[60].mxu1 %v25761_v35 }
 0xb7a   :  { %20848 = vmatpush1.bf16.msra.mxu0 %v27484_v45  ;;  %21036 = vmatpush3.bf16.msra.mxu1 %v27483_v27  ;;  %v27524_v45 = vld [vmem:[#allocation63_spill] sm:$0xff] }
 0xb7b   :  { %18155 = vmatprep.mubr.f32.mxu1 %v25753_v62  ;;  %20850 = vmatprep.subr.bf16.mxu0 %v27485_v20  ;;  %v27519_v20 = vld [vmem:[#allocation16_spill] sm:$0xff]  ;;  %v27529_v27 = vld [vmem:[#allocation123_spill] sm:$0xff] }
 0xb7c   :  { %21038 = vmatprep.subr.bf16.mxu1 %v27486_v32  ;;  %12834 = vmatprep.mubr.f32.mxu0 %v26748_v1 }
 0xb7e   :  { %20852 = vmatpush1.bf16.msra.mxu0 %v27487_v21  ;;  %21040 = vmatpush3.bf16.msra.mxu1 %v27486_v32  ;;  %v27517_v21 = vld [vmem:[#allocation24_spill] sm:$0xff]  ;;  %v27518_v32 = vld [vmem:[#allocation21_spill] sm:$0xff] }
 0xb7f   :  { %20854 = vmatprep.subr.bf16.mxu0 %v27488_v17  ;;  %21042 = vmatprep.subr.bf16.mxu1 %v27489_v39  ;;  %v27516_v17 = vld [vmem:[#allocation23_spill] sm:$0xff] }
 0xb82   :  { %20856 = vmatpush1.bf16.msra.mxu0 %v27490_v60  ;;  %21044 = vmatpush3.bf16.msra.mxu1 %v27489_v39  ;;  %v27499_v60 = vld [vmem:[#allocation92_spill] sm:$0xff] }
 0xb83   :  { %20858 = vmatprep.subr.bf16.mxu0 %v27491_v25  ;;  %21046 = vmatprep.subr.bf16.mxu1 %v27492_v22  ;;  %v27500_v25 = vld [vmem:[#allocation113_spill] sm:$0xff]  ;;  %v27515_v39 = vld [vmem:[#allocation68_spill] sm:$0xff] }
 0xb86   :  { %20860 = vmatpush1.bf16.msra.mxu0 %v27493_v41  ;;  %21048 = vmatpush3.bf16.msra.mxu1 %v27492_v22  ;;  %v27501_v41 = vld [vmem:[#allocation112_spill] sm:$0xff]  ;;  %v27502_v22 = vld [vmem:[#allocation114_spill] sm:$0xff] }
 0xb87   :  { %20862 = vmatprep.subr.bf16.mxu0 %v27494_v51  ;;  %21050 = vmatprep.subr.bf16.mxu1 %v27495_v28  ;;  %v27514_v51 = vld [vmem:[#allocation17_spill] sm:$0xff] }
 0xb8a   :  { %20864 = vmatpush1.bf16.msra.mxu0 %v27496_v0  ;;  %21052 = vmatpush3.bf16.msra.mxu1 %v27495_v28  ;;  %v27503_v0 = vld [vmem:[#allocation41_spill] sm:$0xff]  ;;  %v27513_v28 = vld [vmem:[#allocation62_spill] sm:$0xff] }
 0xb8b   :  { %20866 = vmatprep.subr.bf16.mxu0 %v27497_v5  ;;  %21054 = vmatprep.subr.bf16.mxu1 %v27498_v42  ;;  %v27512_v5 = vld [vmem:[#allocation67_spill] sm:$0xff] }
 0xb8e   :  { %20868 = vmatpush1.bf16.msra.mxu0 %v27499_v60  ;;  %21056 = vmatpush3.bf16.msra.mxu1 %v27498_v42  ;;  %v27510_v60 = vld [vmem:[#allocation53_spill] sm:$0xff]  ;;  %v27511_v42 = vld [vmem:[#allocation55_spill] sm:$0xff] }
 0xb8f   :  { %20870 = vmatprep.subr.bf16.mxu0 %v27500_v25  ;;  %21058 = vmatprep.subr.bf16.mxu1 %v27501_v41  ;;  %v27509_v25 = vld [vmem:[#allocation66_spill] sm:$0xff] }
 0xb92   :  { %20872 = vmatpush1.bf16.msra.mxu0 %v27502_v22  ;;  %21060 = vmatpush3.bf16.msra.mxu1 %v27501_v41  ;;  %v27507_v22 = vld [vmem:[#allocation49_spill] sm:$0xff]  ;;  %v27508_v41 = vld [vmem:[#allocation50_spill] sm:$0xff] }
 0xb93   :  { %20874 = vmatprep.subr.bf16.mxu0 %v27014_v44  ;;  %21062 = vmatprep.subr.bf16.mxu1 %v27503_v0 }
 0xb95   :  { %12837 = vmatmul.mubr.f32.vlgmr.msra.gmra.mrb[24].mxu0 %v25753_v62  ;;  %v27504_v62 = vld [vmem:[#allocation43_spill] sm:$0xff] }
 0xb96   :  { %20876 = vmatpush1.bf16.msra.mxu0 %v27016_v61  ;;  %21064 = vmatpush3.bf16.msra.mxu1 %v27503_v0  ;;  %v27506_v0 = vld [vmem:[#allocation65_spill] sm:$0xff] }
 0xb97   :  { %12842 = vmatprep.mubr.f32.mxu0 %v26748_v1  ;;  %20878 = vmatprep.subr.bf16.mxu0 %v27017_v43 }
 0xb98   :  { %21066 = vmatprep.subr.bf16.mxu1 %v27013_v23 }
 0xb99   :  { %12845 = vmatmul.mubr.f32.gmra.mrb[26].mxu0 %v25767_v11  ;;  %18156 = vmatmul.mubr.f32.vlgmr.msra.gmra.mrb[60].mxu1 %v25767_v11  ;;  %v27505_v11 = vld [vmem:[#allocation44_spill] sm:$0xff] }
 0xb9a   :  { %20880 = vmatpush1.bf16.msra.mxu0 %v27111_v13  ;;  %21068 = vmatpush3.bf16.msra.mxu1 %v27013_v23 }
 0xb9b   :  { %18190 = vmatprep.mubr.f32.mxu1 %v25758_v55  ;;  %20882 = vmatprep.subr.bf16.mxu0 %v27112_v19 }
 0xb9c   :  { %21070 = vmatprep.subr.bf16.mxu1 %v27015_v6  ;;  %12947 = vmatprep.mubr.f32.mxu0 %v26748_v1 }
 0xb9e   :  { %20884 = vmatpush1.bf16.msra.mxu0 %v27114_v36  ;;  %21072 = vmatpush3.bf16.msra.mxu1 %v27015_v6 }
 0xb9f   :  { %20886 = vmatprep.subr.bf16.mxu0 %v27115_v31  ;;  %21074 = vmatprep.subr.bf16.mxu1 %v27018_v56 }
 0xba2   :  { %20888 = vmatpush1.bf16.msra.mxu0 %v27117_v10  ;;  %21076 = vmatpush3.bf16.msra.mxu1 %v27018_v56 }
 0xba3   :  { %20890 = vmatprep.subr.bf16.mxu0 %v27118_v8  ;;  %21078 = vmatprep.subr.bf16.mxu1 %v27113_v34 }
 0xba6   :  { %20892 = vmatpush1.bf16.msra.mxu0 %v27504_v62  ;;  %21080 = vmatpush3.bf16.msra.mxu1 %v27113_v34 }
 0xba7   :  { %20894 = vmatprep.subr.bf16.mxu0 %v27505_v11  ;;  %21082 = vmatprep.subr.bf16.mxu1 %v27506_v0 }
 0xbaa   :  { %20896 = vmatpush1.bf16.msra.mxu0 %v27507_v22  ;;  %21084 = vmatpush3.bf16.msra.mxu1 %v27506_v0 }
 0xbab   :  { %20898 = vmatprep.subr.bf16.mxu0 %v27508_v41  ;;  %21086 = vmatprep.subr.bf16.mxu1 %v27509_v25 }
 0xbae   :  { %20900 = vmatpush1.bf16.msra.mxu0 %v27510_v60  ;;  %21088 = vmatpush3.bf16.msra.mxu1 %v27509_v25 }
 0xbaf   :  { %20902 = vmatprep.subr.bf16.mxu0 %v27511_v42  ;;  %21090 = vmatprep.subr.bf16.mxu1 %v27512_v5 }
 0xbb2   :  { %20904 = vmatpush1.bf16.msra.mxu0 %v27513_v28  ;;  %21092 = vmatpush3.bf16.msra.mxu1 %v27512_v5 }
 0xbb3   :  { %20906 = vmatprep.subr.bf16.mxu0 %v27514_v51  ;;  %21094 = vmatprep.subr.bf16.mxu1 %v27515_v39  ;;  %v27522_v51 = vld [vmem:[#allocation116_spill] sm:$0xff] }
 0xbb5   :  { %12951 = vmatmul.mubr.f32.vlgmr.msra.gmra.mrb[24].mxu0 %v25758_v55  ;;  %v27520_v55 = vld [vmem:[#allocation15_spill] sm:$0xff] }
 0xbb6   :  { %20908 = vmatpush1.bf16.msra.mxu0 %v27516_v17  ;;  %21096 = vmatpush3.bf16.msra.mxu1 %v27515_v39  ;;  %v27521_v17 = vld [vmem:[#allocation52_spill] sm:$0xff] }
 0xbb7   :  { %12956 = vmatprep.mubr.f32.mxu0 %v26748_v1  ;;  %20910 = vmatprep.subr.bf16.mxu0 %v27517_v21  ;;  %v27523_v21 = vld [vmem:[#allocation117_spill] sm:$0xff] }
 0xbb8   :  { %21098 = vmatprep.subr.bf16.mxu1 %v27518_v32 }
 0xbb9   :  { %12960 = vmatmul.mubr.f32.gmra.mrb[26].mxu0 %v25770_v9  ;;  %18191 = vmatmul.mubr.f32.vlgmr.msra.gmra.mrb[60].mxu1 %v25770_v9  ;;  %v27525_v9 = vld [vmem:[#allocation119_spill] sm:$0xff] }
 0xbba   :  { %20912 = vmatpush1.bf16.msra.mxu0 %v27519_v20  ;;  %21100 = vmatpush3.bf16.msra.mxu1 %v27518_v32  ;;  %v27526_v20 = vld [vmem:[#allocation120_spill] sm:$0xff]  ;;  %v27527_v32 = vld [vmem:[#allocation115_spill] sm:$0xff] }
 0xbbb   :  { %18225 = vmatprep.mubr.f32.mxu1 %v25749_v3  ;;  %20914 = vmatprep.subr.bf16.mxu0 %v27520_v55  ;;  %v27528_v55 = vld [vmem:[#allocation122_spill] sm:$0xff] }
 0xbbc   :  { %21102 = vmatprep.subr.bf16.mxu1 %v27521_v17  ;;  %13126 = vmatprep.mubr.f32.mxu0 %v26748_v1 }
 0xbbe   :  { %20916 = vmatpush1.bf16.msra.mxu0 %v27522_v51  ;;  %21104 = vmatpush3.bf16.msra.mxu1 %v27521_v17  ;;  %v27530_v51 = vld [vmem:[#allocation118_spill] sm:$0xff]  ;;  %v27531_v17 = vld [vmem:[#allocation125_spill] sm:$0xff] }
 0xbbf   :  { %20918 = vmatprep.subr.bf16.mxu0 %v27523_v21  ;;  %21106 = vmatprep.subr.bf16.mxu1 %v27524_v45  ;;  %v27532_v21 = vld [vmem:[#allocation126_spill] sm:$0xff] }
 0xbc2   :  { %20920 = vmatpush1.bf16.msra.mxu0 %v27525_v9  ;;  %21108 = vmatpush3.bf16.msra.mxu1 %v27524_v45  ;;  %v27533_v9 = vld [vmem:[#allocation121_spill] sm:$0xff]  ;;  %v27534_v45 = vld [vmem:[#allocation128_spill] sm:$0xff] }
 0xbc3   :  { %20922 = vmatprep.subr.bf16.mxu0 %v27526_v20  ;;  %21110 = vmatprep.subr.bf16.mxu1 %v27527_v32  ;;  %v27535_v20 = vld [vmem:[#allocation129_spill] sm:$0xff] }
 0xbc6   :  { %20924 = vmatpush1.bf16.msra.mxu0 %v27528_v55  ;;  %21112 = vmatpush3.bf16.msra.mxu1 %v27527_v32  ;;  %v27536_v55 = vld [vmem:[#allocation124_spill] sm:$0xff]  ;;  %v27537_v32 = vld [vmem:[#allocation130_spill] sm:$0xff] }
 0xbc7   :  { %20926 = vmatprep.subr.bf16.mxu0 %v27529_v27  ;;  %21114 = vmatprep.subr.bf16.mxu1 %v27530_v51  ;;  %v26015_v27 = vld [vmem:[%s26283_s3 + $0x18] sm:$0xff] }
 0xbc8   :  { %27544 = vst [vmem:[#allocation14_spill] sm:$0xff] %v26015_v27 }
 0xbca   :  { %20928 = vmatpush1.bf16.msra.mxu0 %v27531_v17  ;;  %21116 = vmatpush3.bf16.msra.mxu1 %v27530_v51  ;;  %v27538_v17 = vld [vmem:[#allocation127_spill] sm:$0xff] }
 0xbcb   :  { %20930 = vmatprep.subr.bf16.mxu0 %v27532_v21  ;;  %21118 = vmatprep.subr.bf16.mxu1 %v27533_v9 }
 0xbce   :  { %20932 = vmatpush1.bf16.msra.mxu0 %v27534_v45  ;;  %21120 = vmatpush3.bf16.msra.mxu1 %v27533_v9 }
 0xbcf   :  { %20934 = vmatprep.subr.bf16.mxu0 %v27535_v20  ;;  %21122 = vmatprep.subr.bf16.mxu1 %v27536_v55  ;;  %v27543_v20 = vld [vmem:[#allocation90_spill] sm:$0xff] }
 0xbd2   :  { %20936 = vmatpush1.bf16.msra.mxu0 %v27537_v32  ;;  %21124 = vmatpush3.bf16.msra.mxu1 %v27536_v55  ;;  %v26008_v55 = vld [vmem:[%s26283_s3 + $0x8] sm:$0xff] }
 0xbd3   :  { %20938 = vmatprep.subr.bf16.mxu0 %v27014_v44  ;;  %21126 = vmatprep.subr.bf16.mxu1 %v27538_v17  ;;  %27542 = vst [vmem:[#allocation85_spill] sm:$0xff] %v26008_v55 }
 0xbd5   :  { %13128 = vmatmul.mubr.f32.vlgmr.msra.gmra.mrb[24].mxu0 %v25749_v3 }
 0xbd6   :  { %20940 = vmatpush1.bf16.msra.mxu0 %v27016_v61  ;;  %21128 = vmatpush3.bf16.msra.mxu1 %v27538_v17  ;;  %v27541_v17 = vld [vmem:[#allocation89_spill] sm:$0xff] }
 0xbd7   :  { %13133 = vmatprep.mubr.f32.mxu0 %v26748_v1  ;;  %20942 = vmatprep.subr.bf16.mxu0 %v27017_v43 }
 0xbd8   :  { %21130 = vmatprep.subr.bf16.mxu1 %v27013_v23 }
 0xbd9   :  { %13135 = vmatmul.mubr.f32.gmra.mrb[26].mxu0 %v25761_v35  ;;  %18226 = vmatmul.mubr.f32.vlgmr.msra.gmra.mrb[60].mxu1 %v25761_v35 }
 0xbda   :  { %20944 = vmatpush1.bf16.msra.mxu0 %v27111_v13  ;;  %21132 = vmatpush3.bf16.msra.mxu1 %v27013_v23 }
 0xbdb   :  { %18260 = vmatprep.mubr.f32.mxu1 %v25749_v3  ;;  %20946 = vmatprep.subr.bf16.mxu0 %v27112_v19 }
 0xbdc   :  { %21134 = vmatprep.subr.bf16.mxu1 %v27015_v6  ;;  %13237 = vmatprep.mubr.f32.mxu0 %v26748_v1 }
 0xbde   :  { %20948 = vmatpush1.bf16.msra.mxu0 %v27114_v36  ;;  %21136 = vmatpush3.bf16.msra.mxu1 %v27015_v6 }
 0xbdf   :  { %20950 = vmatprep.subr.bf16.mxu0 %v27115_v31  ;;  %21138 = vmatprep.subr.bf16.mxu1 %v27018_v56 }
 0xbe2   :  { %20952 = vmatpush1.bf16.msra.mxu0 %v27117_v10  ;;  %21140 = vmatpush3.bf16.msra.mxu1 %v27018_v56 }
 0xbe3   :  { %20954 = vmatprep.subr.bf16.mxu0 %v27118_v8  ;;  %21142 = vmatprep.subr.bf16.mxu1 %v27113_v34 }
 0xbe6   :  { %20956 = vmatpush1.bf16.msra.mxu0 %v27504_v62  ;;  %21144 = vmatpush3.bf16.msra.mxu1 %v27113_v34 }
 0xbe7   :  { %20958 = vmatprep.subr.bf16.mxu0 %v27505_v11  ;;  %21146 = vmatprep.subr.bf16.mxu1 %v27506_v0 }
 0xbea   :  { %20960 = vmatpush1.bf16.msra.mxu0 %v27507_v22  ;;  %21148 = vmatpush3.bf16.msra.mxu1 %v27506_v0 }
 0xbeb   :  { %20962 = vmatprep.subr.bf16.mxu0 %v27508_v41  ;;  %21150 = vmatprep.subr.bf16.mxu1 %v27509_v25 }
 0xbee   :  { %20964 = vmatpush1.bf16.msra.mxu0 %v27510_v60  ;;  %21152 = vmatpush3.bf16.msra.mxu1 %v27509_v25 }
 0xbef   :  { %20966 = vmatprep.subr.bf16.mxu0 %v27511_v42  ;;  %21154 = vmatprep.subr.bf16.mxu1 %v27512_v5 }
 0xbf2   :  { %20968 = vmatpush1.bf16.msra.mxu0 %v27513_v28  ;;  %21156 = vmatpush3.bf16.msra.mxu1 %v27512_v5 }
 0xbf3   :  { %21158 = vmatprep.subr.bf16.mxu1 %v27515_v39  ;;  %21162 = vmatprep.subr.bf16.mxu0 %v27014_v44 }
 0xbf5   :  { %13239 = vmatmul.mubr.f32.vlgmr.msra.gmra.mrb[24].mxu0 %v25749_v3  ;;  %v27539_v3 = vld [vmem:[#allocation18_spill] sm:$0xff] }
 0xbf6   :  { %21160 = vmatpush3.bf16.msra.mxu1 %v27515_v39  ;;  %13244 = vmatprep.mubr.f32.mxu0 %v26748_v1 }
 0xbf7   :  { %21164 = vmatpush1.bf16.msra.mxu0 %v27016_v61  ;;  %21354 = vmatprep.subr.bf16.mxu1 %v27013_v23 }
 0xbf8   :  { %21166 = vmatprep.subr.bf16.mxu0 %v27017_v43 }
 0xbf9   :  { %13246 = vmatmul.mubr.f32.gmra.mrb[26].mxu0 %v25761_v35  ;;  %18261 = vmatmul.mubr.f32.vlgmr.msra.gmra.mrb[60].mxu1 %v25761_v35  ;;  %v26001_v35 = vld [vmem:[%s26283_s3] sm:$0xff] }
 0xbfa   :  { %21356 = vmatpush3.bf16.msra.mxu1 %v27013_v23  ;;  %14083 = vmatprep.mubr.f32.mxu0 %v26748_v1  ;;  %27540 = vst [vmem:[#allocation70_spill] sm:$0xff] %v26001_v35  ;;  %v21595_v32 = vadd.f32 %v26001_v35, %v27541_v17 }
 0xbfb   :  { %21168 = vmatpush1.bf16.msra.mxu0 %v27111_v13  ;;  %21358 = vmatprep.subr.bf16.mxu1 %v27015_v6 }
 0xbfc   :  { %21170 = vmatprep.subr.bf16.mxu0 %v27112_v19 }
 0xbfe   :  { %21360 = vmatpush3.bf16.msra.mxu1 %v27015_v6 }
 0xbff   :  { %21172 = vmatpush1.bf16.msra.mxu0 %v27114_v36  ;;  %21362 = vmatprep.subr.bf16.mxu1 %v27018_v56 }
 0xc00   :  { %21174 = vmatprep.subr.bf16.mxu0 %v27115_v31 }
 0xc02   :  { %21364 = vmatpush3.bf16.msra.mxu1 %v27018_v56 }
 0xc03   :  { %21176 = vmatpush1.bf16.msra.mxu0 %v27117_v10  ;;  %21366 = vmatprep.subr.bf16.mxu1 %v27113_v34 }
 0xc04   :  { %21178 = vmatprep.subr.bf16.mxu0 %v27118_v8 }
 0xc06   :  { %21368 = vmatpush3.bf16.msra.mxu1 %v27113_v34 }
 0xc07   :  { %21180 = vmatpush1.bf16.msra.mxu0 %v27504_v62  ;;  %21370 = vmatprep.subr.bf16.mxu1 %v27506_v0 }
 0xc08   :  { %21182 = vmatprep.subr.bf16.mxu0 %v27505_v11 }
 0xc0a   :  { %21372 = vmatpush3.bf16.msra.mxu1 %v27506_v0 }
 0xc0b   :  { %21184 = vmatpush1.bf16.msra.mxu0 %v27507_v22  ;;  %21374 = vmatprep.subr.bf16.mxu1 %v27509_v25 }
 0xc0c   :  { %21186 = vmatprep.subr.bf16.mxu0 %v27508_v41 }
 0xc0e   :  { %21376 = vmatpush3.bf16.msra.mxu1 %v27509_v25 }
 0xc0f   :  { %21188 = vmatpush1.bf16.msra.mxu0 %v27510_v60  ;;  %21378 = vmatprep.subr.bf16.mxu1 %v27512_v5 }
 0xc10   :  { %21190 = vmatprep.subr.bf16.mxu0 %v27511_v42 }
 0xc12   :  { %21380 = vmatpush3.bf16.msra.mxu1 %v27512_v5  ;;  %v27547_v5 = vld [vmem:[#allocation94_spill] sm:$0xff] }
 0xc13   :  { %21192 = vmatpush1.bf16.msra.mxu0 %v27513_v28  ;;  %21382 = vmatprep.subr.bf16.mxu1 %v27515_v39  ;;  %v26022_v28 = vld [vmem:[%s26283_s3 + $0x20] sm:$0xff] }
 0xc14   :  { %21194 = vmatprep.subr.bf16.mxu0 %v27539_v3  ;;  %v21597_v3 = vadd.f32 %v26008_v55, %v27543_v20  ;;  %27546 = vst [vmem:[#allocation137_spill] sm:$0xff] %v26022_v28  ;;  %v21601_v20 = vadd.f32 %v26022_v28, %v27547_v5 }
 0xc16   :  { %21384 = vmatpush3.bf16.msra.mxu1 %v27515_v39  ;;  %v27545_v39 = vld [vmem:[#allocation93_spill] sm:$0xff] }
 0xc17   :  { %21386 = vmatprep.subr.bf16.mxu1 %v27131_v14  ;;  %v21599_v17 = vadd.f32 %v26015_v27, %v27545_v39 }
 0xcc8   :  { %v13240_v45 = vpop.f32.mrb[24].mxu0 }
 0xcc9   :  { %v21596_v9 = vadd.f32 %v21595_v32, %v13240_v45  ;;  %v13242_v21 = vpop.f32.mrb[25].mxu0 }
 0xcca   :  { %v21598_v51 = vadd.f32 %v21597_v3, %v13242_v21 }
 0xccb   :  { %v15663_v35 = vmul.f32 -1.442695, %v21596_v9 }
 0xccc   :  { %v13247_v45 = vpop.f32.mrb[26].mxu0  ;;  %v18262_v32 = vpop.f32.mrb[60].mxu1  ;;  %v15665_v25 = vmul.f32 -1.442695, %v21598_v51 }
 0xccd   :  { %22219 = vpow2.f32 %v15663_v35  ;;  %v21600_v21 = vadd.f32 %v21599_v17, %v13247_v45  ;;  %v13249_v3 = vpop.f32.mrb[27].mxu0  ;;  %v13926_v55 = vpop.f32.mrb[61].mxu1  ;;  %v26029_v35 = vld [vmem:[%s26284_s4] ss:$0 sm:$0xff]  ;;  %s22326_s4 = smov [#allocation6]  }
 0xcce   :  { %v21602_v42 = vadd.f32 %v21601_v20, %v13249_v3  ;;  %v13964_v51 = vadd.f32 %v26029_v35, %v13926_v55  ;;  %v13965_v17 = vadd.f32 %v26029_v35, %v18262_v32  ;;  %s15626_s28 = sshll.u32 %s22326_s4, 4  ;;  %s15627_s28 = int_to_ptr.vmem [resolvable:$true] %s15626_s28 }
 0xccf   :  { %v15664_v60 = vmul.f32 -1.442695, %v21600_v21  ;;  %s22296_s29 = scalar_lea.vmem %s15627_s28, 256  ;;  %p22301_p9 = scmp.lt.s32.totalorder %s15627_s28, %s15627_s28 }
 0xcd0   :  { %v15666_v39 = vmul.f32 -1.442695, %v21602_v42  ;;  %p22297_p8 = scmp.ne.s32.totalorder %s15627_s28, %s22296_s29  ;;  %p22302_p10 = scmp.lt.s32.totalorder %s22296_s29, %s22296_s29 }
 0xcd1   :  { %22221 = vpow2.f32 %v15664_v60 }
 0xcd2   :  { %22223 = vpow2.f32 %v15665_v25  ;;  %p22303_p11 = por %p22302_p10, %p22301_p9 }
 0xcd3   :  { %22225 = vpow2.f32 %v15666_v39 }
 0xcd4   :  { %p22304_p12 = pnand %p22303_p11, %p22297_p8 }
 0xcd7   :  { %v22220_v9 = vpop.eup %22219 }
 0xcd8   :  { %v13944_v27 = vadd.f32 1.0, %v22220_v9 }
 0xcda   :  { %22227 = vrcp.f32 %v13944_v27  ;;  %v27548_v27 = vld [vmem:[#allocation134_spill] sm:$0xff] }
 0xcdb   :  { %v22222_v41 = vpop.eup %22221 }
 0xcdc   :  { %v13945_v22 = vadd.f32 1.0, %v22222_v41  ;;  %v22224_v0 = vpop.eup %22223 }
 0xcdd   :  { %v22226_v5 = vpop.eup %22225  ;;  %v13958_v28 = vadd.f32 1.0, %v22224_v0  ;;  %v27549_v0 = vld [vmem:[#allocation133_spill] sm:$0xff] }
 0xcde   :  { %22229 = vrcp.f32 %v13945_v22  ;;  %v13959_v42 = vadd.f32 1.0, %v22226_v5 }
 0xcdf   :  { %22231 = vrcp.f32 %v13958_v28 }
 0xce0   :  { %22233 = vrcp.f32 %v13959_v42 }
 0xce4   :  { %v22228_v60 = vpop.eup %22227 }
 0xce5   :  { %v13966_v25 = vmul.f32 %v22228_v60, %v13964_v51 }
 0xce7   :  { %v13968_v20 = vadd.f32 %v13966_v25, %v27548_v27 }
 0xce8   :  { %v22230_v41 = vpop.eup %22229 }
 0xce9   :  { %v13967_v22 = vmul.f32 %v22230_v41, %v13965_v17  ;;  %22235 = vtanh.f32 %v13968_v20  ;;  %v22232_v21 = vpop.eup %22231 }
 0xcea   :  { %v22234_v3 = vpop.eup %22233  ;;  %v13972_v39 = vsub.f32 1.0, %v22232_v21  ;;  %v13976_v55 = vmul.f32 %v22232_v21, %v25745_v46 }
 0xceb   :  { %v13969_v45 = vadd.f32 %v13967_v22, %v27549_v0  ;;  %v13973_v28 = vsub.f32 1.0, %v22234_v3  ;;  %v13977_v25 = vmul.f32 %v22234_v3, %v25755_v49  ;;  %v27576_v3 = vld [vmem:[#allocation55_spill] sm:$0xff] }
 0xced   :  { %22237 = vtanh.f32 %v13969_v45 }
 0xcf3   :  { %v22236_v9 = vpop.eup %22235 }
 0xcf4   :  { %v13974_v5 = vmul.f32 %v22236_v9, %v13972_v39  ;;  %v27577_v39 = vld [vmem:[#allocation67_spill] sm:$0xff]  ;;  %v27578_v9 = vld [vmem:[#allocation62_spill] sm:$0xff] }
 0xcf6   :  { %v26036_v51 = vadd.f32 %v13976_v55, %v13974_v5  ;;  %v27579_v55 = vld [vmem:[#allocation17_spill] sm:$0xff]  ;;  %v27580_v5 = vld [vmem:[#allocation68_spill] sm:$0xff] }
 0xcf7   :  { %v22238_v32 = vpop.eup %22237 }
 0xcf8   :  { %v13975_v60 = vmul.f32 %v22238_v32, %v13973_v28  ;;  %v26040_v42 = vand.u32 4294901760, %v26036_v51  ;;  %v27581_v28 = vld [vmem:[#allocation23_spill] sm:$0xff]  ;;  %v27582_v32 = vld [vmem:[#allocation24_spill] sm:$0xff] }
 0xcfa   :  { %v26044_v17 = vsub.f32 %v26036_v51, %v26040_v42  ;;  %v26046_v27 = vadd.f32 %v13977_v25, %v13975_v60  ;;  %v27583_v60 = vld [vmem:[#allocation21_spill] sm:$0xff]  ;;  %v27584_v25 = vld [vmem:[#allocation16_spill] sm:$0xff] }
 0xcfc   :  { %v26049_v20 = vand.u32 4294901760, %v26044_v17  ;;  %v26052_v46 = vand.u32 4294901760, %v26046_v27 }
 0xcfe   :  { %v14087_v41 = vsub.f32 %v26044_v17, %v26049_v20  ;;  %v26058_v49 = vsub.f32 %v26046_v27, %v26052_v46 }
 0xd00   :  { %v14088_v22 = vand.u32 4294901760, %v14087_v41  ;;  %v26061_v0 = vand.u32 4294901760, %v26058_v49  ;;  %v27587_v41 = vld [vmem:[#allocation116_spill] sm:$0xff] }
 0xd02   :  { %14089 = vmatmul.mubr.f32.vlgmr.msra.gmra.mrb[28].mxu0 %v14088_v22  ;;  %18295 = vmatprep.mubr.f32.mxu1 %v14088_v22  ;;  %v14098_v45 = vsub.f32 %v26058_v49, %v26061_v0  ;;  %v27589_v22 = vld [vmem:[#allocation63_spill] sm:$0xff] }
 0xd03   :  { %21196 = vmatpush1.bf16.msra.mxu0 %v27149_v12  ;;  %14094 = vmatprep.mubr.f32.mxu0 %v26748_v1  ;;  %v27551_v12 = vld [vmem:[#allocation61_spill] sm:$0xff] }
 0xd04   :  { %21198 = vmatprep.subr.bf16.mxu0 %v27150_v15  ;;  %v14099_v21 = vand.u32 4294901760, %v14098_v45  ;;  %v27552_v15 = vld [vmem:[#allocation102_spill] sm:$0xff]  ;;  %v27591_v45 = vld [vmem:[#allocation120_spill] sm:$0xff] }
 0xd06   :  { %14100 = vmatmul.mubr.f32.gmra.mrb[30].mxu0 %v14099_v21  ;;  %18296 = vmatmul.mubr.f32.vlgmr.msra.gmra.mrb[62].mxu1 %v14099_v21  ;;  %v27592_v21 = vld [vmem:[#allocation115_spill] sm:$0xff] }
 0xd07   :  { %21200 = vmatpush1.bf16.msra.mxu0 %v27151_v63  ;;  %21388 = vmatpush3.bf16.msra.mxu1 %v27131_v14  ;;  %v27550_v14 = vld [vmem:[#allocation54_spill] sm:$0xff]  ;;  %v27553_v63 = vld [vmem:[#allocation57_spill] sm:$0xff] }
 0xd08   :  { %18330 = vmatprep.mubr.f32.mxu1 %v26040_v42  ;;  %21202 = vmatprep.subr.bf16.mxu0 %v27152_v47  ;;  %v27554_v47 = vld [vmem:[#allocation104_spill] sm:$0xff] }
 0xd09   :  { %21390 = vmatprep.subr.bf16.mxu1 %v27153_v33  ;;  %14330 = vmatprep.mubr.f32.mxu0 %v26748_v1 }
 0xd0b   :  { %21204 = vmatpush1.bf16.msra.mxu0 %v27154_v48  ;;  %21392 = vmatpush3.bf16.msra.mxu1 %v27153_v33  ;;  %v27555_v33 = vld [vmem:[#allocation105_spill] sm:$0xff]  ;;  %v27556_v48 = vld [vmem:[#allocation60_spill] sm:$0xff] }
 0xd0c   :  { %21206 = vmatprep.subr.bf16.mxu0 %v27216_v7  ;;  %21394 = vmatprep.subr.bf16.mxu1 %v27217_v59  ;;  %v27557_v7 = vld [vmem:[#allocation107_spill] sm:$0xff] }
 0xd0f   :  { %21208 = vmatpush1.bf16.msra.mxu0 %v27218_v53  ;;  %21396 = vmatpush3.bf16.msra.mxu1 %v27217_v59  ;;  %v27558_v59 = vld [vmem:[#allocation108_spill] sm:$0xff]  ;;  %v27559_v53 = vld [vmem:[#allocation103_spill] sm:$0xff] }
 0xd10   :  { %21210 = vmatprep.subr.bf16.mxu0 %v27219_v57  ;;  %21398 = vmatprep.subr.bf16.mxu1 %v27220_v4  ;;  %v27560_v57 = vld [vmem:[#allocation110_spill] sm:$0xff] }
 0xd13   :  { %21212 = vmatpush1.bf16.msra.mxu0 %v27221_v18  ;;  %21400 = vmatpush3.bf16.msra.mxu1 %v27220_v4  ;;  %v27561_v4 = vld [vmem:[#allocation111_spill] sm:$0xff]  ;;  %v27562_v18 = vld [vmem:[#allocation106_spill] sm:$0xff] }
 0xd14   :  { %21214 = vmatprep.subr.bf16.mxu0 %v27222_v58  ;;  %21402 = vmatprep.subr.bf16.mxu1 %v27223_v29  ;;  %v27563_v58 = vld [vmem:[#allocation38_spill] sm:$0xff] }
 0xd17   :  { %21216 = vmatpush1.bf16.msra.mxu0 %v27224_v50  ;;  %21404 = vmatpush3.bf16.msra.mxu1 %v27223_v29  ;;  %v27564_v29 = vld [vmem:[#allocation39_spill] sm:$0xff]  ;;  %v27565_v50 = vld [vmem:[#allocation109_spill] sm:$0xff] }
 0xd18   :  { %21218 = vmatprep.subr.bf16.mxu0 %v27284_v2  ;;  %21406 = vmatprep.subr.bf16.mxu1 %v27285_v54  ;;  %v27566_v2 = vld [vmem:[#allocation92_spill] sm:$0xff] }
 0xd1b   :  { %21220 = vmatpush1.bf16.msra.mxu0 %v27286_v16  ;;  %21408 = vmatpush3.bf16.msra.mxu1 %v27285_v54  ;;  %v27567_v54 = vld [vmem:[#allocation113_spill] sm:$0xff]  ;;  %v27568_v16 = vld [vmem:[#allocation112_spill] sm:$0xff] }
 0xd1c   :  { %21222 = vmatprep.subr.bf16.mxu0 %v27287_v24  ;;  %21410 = vmatprep.subr.bf16.mxu1 %v27288_v30  ;;  %v27569_v24 = vld [vmem:[#allocation114_spill] sm:$0xff] }
 0xd1f   :  { %21224 = vmatpush1.bf16.msra.mxu0 %v27289_v38  ;;  %21412 = vmatpush3.bf16.msra.mxu1 %v27288_v30  ;;  %v27570_v30 = vld [vmem:[#allocation41_spill] sm:$0xff] }
 0xd20   :  { %21226 = vmatprep.subr.bf16.mxu0 %v27290_v26  ;;  %21414 = vmatprep.subr.bf16.mxu1 %v27291_v52  ;;  %v27571_v38 = vld [vmem:[#allocation65_spill] sm:$0xff] }
 0xd21   :  { %v27572_v26 = vld [vmem:[#allocation49_spill] sm:$0xff] }
 0xd22   :  { %14332 = vmatmul.mubr.f32.vlgmr.msra.gmra.mrb[28].mxu0 %v26040_v42 }
 0xd23   :  { %21228 = vmatpush1.bf16.msra.mxu0 %v27349_v40  ;;  %21416 = vmatpush3.bf16.msra.mxu1 %v27291_v52  ;;  %v27573_v52 = vld [vmem:[#allocation50_spill] sm:$0xff] }
 0xd24   :  { %14337 = vmatprep.mubr.f32.mxu0 %v26748_v1  ;;  %21230 = vmatprep.subr.bf16.mxu0 %v27482_v37  ;;  %v27574_v40 = vld [vmem:[#allocation66_spill] sm:$0xff]  ;;  %v27575_v37 = vld [vmem:[#allocation53_spill] sm:$0xff] }
 0xd25   :  { %21418 = vmatprep.subr.bf16.mxu1 %v27550_v14 }
 0xd26   :  { %14339 = vmatmul.mubr.f32.gmra.mrb[30].mxu0 %v26052_v46  ;;  %18331 = vmatmul.mubr.f32.vlgmr.msra.gmra.mrb[62].mxu1 %v26052_v46 }
 0xd27   :  { %21232 = vmatpush1.bf16.msra.mxu0 %v27551_v12  ;;  %21420 = vmatpush3.bf16.msra.mxu1 %v27550_v14  ;;  %v27593_v14 = vld [vmem:[#allocation122_spill] sm:$0xff]  ;;  %v27594_v12 = vld [vmem:[#allocation123_spill] sm:$0xff] }
 0xd28   :  { %18365 = vmatprep.mubr.f32.mxu1 %v26044_v17  ;;  %21234 = vmatprep.subr.bf16.mxu0 %v27552_v15  ;;  %v27595_v15 = vld [vmem:[#allocation118_spill] sm:$0xff] }
 0xd29   :  { %21422 = vmatprep.subr.bf16.mxu1 %v27553_v63  ;;  %14473 = vmatprep.mubr.f32.mxu0 %v26748_v1 }
 0xd2b   :  { %21236 = vmatpush1.bf16.msra.mxu0 %v27554_v47  ;;  %21424 = vmatpush3.bf16.msra.mxu1 %v27553_v63  ;;  %v27596_v63 = vld [vmem:[#allocation125_spill] sm:$0xff]  ;;  %v27597_v47 = vld [vmem:[#allocation126_spill] sm:$0xff] }
 0xd2c   :  { %21238 = vmatprep.subr.bf16.mxu0 %v27555_v33  ;;  %21426 = vmatprep.subr.bf16.mxu1 %v27556_v48  ;;  %v27598_v33 = vld [vmem:[#allocation121_spill] sm:$0xff] }
 0xd2f   :  { %21240 = vmatpush1.bf16.msra.mxu0 %v27557_v7  ;;  %21428 = vmatpush3.bf16.msra.mxu1 %v27556_v48  ;;  %v27599_v48 = vld [vmem:[#allocation128_spill] sm:$0xff]  ;;  %v27600_v7 = vld [vmem:[#allocation129_spill] sm:$0xff] }
 0xd30   :  { %21242 = vmatprep.subr.bf16.mxu0 %v27558_v59  ;;  %21430 = vmatprep.subr.bf16.mxu1 %v27559_v53  ;;  %v27601_v59 = vld [vmem:[#allocation124_spill] sm:$0xff] }
 0xd33   :  { %21244 = vmatpush1.bf16.msra.mxu0 %v27560_v57  ;;  %21432 = vmatpush3.bf16.msra.mxu1 %v27559_v53  ;;  %v27602_v53 = vld [vmem:[#allocation130_spill] sm:$0xff]  ;;  %v27603_v57 = vld [vmem:[#allocation127_spill] sm:$0xff] }
 0xd34   :  { %21246 = vmatprep.subr.bf16.mxu0 %v27561_v4  ;;  %21434 = vmatprep.subr.bf16.mxu1 %v27562_v18 }
 0xd37   :  { %21248 = vmatpush1.bf16.msra.mxu0 %v27563_v58  ;;  %21436 = vmatpush3.bf16.msra.mxu1 %v27562_v18 }
 0xd38   :  { %21250 = vmatprep.subr.bf16.mxu0 %v27564_v29  ;;  %21438 = vmatprep.subr.bf16.mxu1 %v27565_v50 }
 0xd3b   :  { %21252 = vmatpush1.bf16.msra.mxu0 %v27566_v2  ;;  %21440 = vmatpush3.bf16.msra.mxu1 %v27565_v50 }
 0xd3c   :  { %21254 = vmatprep.subr.bf16.mxu0 %v27567_v54  ;;  %21442 = vmatprep.subr.bf16.mxu1 %v27568_v16 }
 0xd3f   :  { %21256 = vmatpush1.bf16.msra.mxu0 %v27569_v24  ;;  %21444 = vmatpush3.bf16.msra.mxu1 %v27568_v16 }
 0xd40   :  { %21258 = vmatprep.subr.bf16.mxu0 %v27014_v44  ;;  %21446 = vmatprep.subr.bf16.mxu1 %v27570_v30 }
 0xd42   :  { %14476 = vmatmul.mubr.f32.vlgmr.msra.gmra.mrb[28].mxu0 %v26044_v17  ;;  %v27585_v17 = vld [vmem:[#allocation15_spill] sm:$0xff] }
 0xd43   :  { %21260 = vmatpush1.bf16.msra.mxu0 %v27016_v61  ;;  %21448 = vmatpush3.bf16.msra.mxu1 %v27570_v30 }
 0xd44   :  { %14481 = vmatprep.mubr.f32.mxu0 %v26748_v1  ;;  %21262 = vmatprep.subr.bf16.mxu0 %v27017_v43 }
 0xd45   :  { %21450 = vmatprep.subr.bf16.mxu1 %v27013_v23 }
 0xd46   :  { %14484 = vmatmul.mubr.f32.gmra.mrb[30].mxu0 %v26058_v49  ;;  %18366 = vmatmul.mubr.f32.vlgmr.msra.gmra.mrb[62].mxu1 %v26058_v49  ;;  %v27588_v49 = vld [vmem:[#allocation117_spill] sm:$0xff] }
 0xd47   :  { %21264 = vmatpush1.bf16.msra.mxu0 %v27111_v13  ;;  %21452 = vmatpush3.bf16.msra.mxu1 %v27013_v23 }
 0xd48   :  { %18400 = vmatprep.mubr.f32.mxu1 %v26049_v20  ;;  %21266 = vmatprep.subr.bf16.mxu0 %v27112_v19 }
 0xd49   :  { %21454 = vmatprep.subr.bf16.mxu1 %v27015_v6  ;;  %14586 = vmatprep.mubr.f32.mxu0 %v26748_v1 }
 0xd4b   :  { %21268 = vmatpush1.bf16.msra.mxu0 %v27114_v36  ;;  %21456 = vmatpush3.bf16.msra.mxu1 %v27015_v6 }
 0xd4c   :  { %21270 = vmatprep.subr.bf16.mxu0 %v27115_v31  ;;  %21458 = vmatprep.subr.bf16.mxu1 %v27018_v56 }
 0xd4f   :  { %21272 = vmatpush1.bf16.msra.mxu0 %v27117_v10  ;;  %21460 = vmatpush3.bf16.msra.mxu1 %v27018_v56 }
 0xd50   :  { %21274 = vmatprep.subr.bf16.mxu0 %v27118_v8  ;;  %21462 = vmatprep.subr.bf16.mxu1 %v27113_v34 }
 0xd53   :  { %21276 = vmatpush1.bf16.msra.mxu0 %v27504_v62  ;;  %21464 = vmatpush3.bf16.msra.mxu1 %v27113_v34 }
 0xd54   :  { %21278 = vmatprep.subr.bf16.mxu0 %v27505_v11  ;;  %21466 = vmatprep.subr.bf16.mxu1 %v27571_v38 }
 0xd57   :  { %21280 = vmatpush1.bf16.msra.mxu0 %v27572_v26  ;;  %21468 = vmatpush3.bf16.msra.mxu1 %v27571_v38 }
 0xd58   :  { %21282 = vmatprep.subr.bf16.mxu0 %v27573_v52  ;;  %21470 = vmatprep.subr.bf16.mxu1 %v27574_v40 }
 0xd5b   :  { %21284 = vmatpush1.bf16.msra.mxu0 %v27575_v37  ;;  %21472 = vmatpush3.bf16.msra.mxu1 %v27574_v40 }
 0xd5c   :  { %21286 = vmatprep.subr.bf16.mxu0 %v27576_v3  ;;  %21474 = vmatprep.subr.bf16.mxu1 %v27577_v39 }
 0xd5f   :  { %21288 = vmatpush1.bf16.msra.mxu0 %v27578_v9  ;;  %21476 = vmatpush3.bf16.msra.mxu1 %v27577_v39 }
 0xd60   :  { %21290 = vmatprep.subr.bf16.mxu0 %v27579_v55  ;;  %21478 = vmatprep.subr.bf16.mxu1 %v27580_v5 }
 0xd62   :  { %14590 = vmatmul.mubr.f32.vlgmr.msra.gmra.mrb[28].mxu0 %v26049_v20  ;;  %v27586_v20 = vld [vmem:[#allocation52_spill] sm:$0xff] }
 0xd63   :  { %21292 = vmatpush1.bf16.msra.mxu0 %v27581_v28  ;;  %21480 = vmatpush3.bf16.msra.mxu1 %v27580_v5  ;;  %v27612_v28 = vld [vmem:[#allocation136_spill] sm:$0xff] }
 0xd64   :  { %14595 = vmatprep.mubr.f32.mxu0 %v26748_v1  ;;  %21294 = vmatprep.subr.bf16.mxu0 %v27582_v32 }
 0xd65   :  { %21482 = vmatprep.subr.bf16.mxu1 %v27583_v60 }
 0xd66   :  { %14599 = vmatmul.mubr.f32.gmra.mrb[30].mxu0 %v26061_v0  ;;  %18401 = vmatmul.mubr.f32.vlgmr.msra.gmra.mrb[62].mxu1 %v26061_v0  ;;  %v27590_v0 = vld [vmem:[#allocation119_spill] sm:$0xff] }
 0xd67   :  { %21296 = vmatpush1.bf16.msra.mxu0 %v27584_v25  ;;  %21484 = vmatpush3.bf16.msra.mxu1 %v27583_v60 }
 0xd68   :  { %18435 = vmatprep.mubr.f32.mxu1 %v26040_v42  ;;  %21298 = vmatprep.subr.bf16.mxu0 %v27585_v17  ;;  %v27613_v17 = vld [vmem:[#allocation135_spill] sm:$0xff] }
 0xd69   :  { %21486 = vmatprep.subr.bf16.mxu1 %v27586_v20  ;;  %14765 = vmatprep.mubr.f32.mxu0 %v26748_v1 }
 0xd6b   :  { %21300 = vmatpush1.bf16.msra.mxu0 %v27587_v41  ;;  %21488 = vmatpush3.bf16.msra.mxu1 %v27586_v20 }
 0xd6c   :  { %21302 = vmatprep.subr.bf16.mxu0 %v27588_v49  ;;  %21490 = vmatprep.subr.bf16.mxu1 %v27589_v22 }
 0xd6f   :  { %21304 = vmatpush1.bf16.msra.mxu0 %v27590_v0  ;;  %21492 = vmatpush3.bf16.msra.mxu1 %v27589_v22 }
 0xd70   :  { %21306 = vmatprep.subr.bf16.mxu0 %v27591_v45  ;;  %21494 = vmatprep.subr.bf16.mxu1 %v27592_v21 }
 0xd73   :  { %21308 = vmatpush1.bf16.msra.mxu0 %v27593_v14  ;;  %21496 = vmatpush3.bf16.msra.mxu1 %v27592_v21 }
 0xd74   :  { %21310 = vmatprep.subr.bf16.mxu0 %v27594_v12  ;;  %21498 = vmatprep.subr.bf16.mxu1 %v27595_v15 }
 0xd77   :  { %21312 = vmatpush1.bf16.msra.mxu0 %v27596_v63  ;;  %21500 = vmatpush3.bf16.msra.mxu1 %v27595_v15 }
 0xd78   :  { %21314 = vmatprep.subr.bf16.mxu0 %v27597_v47  ;;  %21502 = vmatprep.subr.bf16.mxu1 %v27598_v33 }
 0xd7b   :  { %21316 = vmatpush1.bf16.msra.mxu0 %v27599_v48  ;;  %21504 = vmatpush3.bf16.msra.mxu1 %v27598_v33 }
 0xd7c   :  { %21318 = vmatprep.subr.bf16.mxu0 %v27600_v7  ;;  %21506 = vmatprep.subr.bf16.mxu1 %v27601_v59 }
 0xd7f   :  { %21320 = vmatpush1.bf16.msra.mxu0 %v27602_v53  ;;  %21508 = vmatpush3.bf16.msra.mxu1 %v27601_v59 }
 0xd80   :  { %21322 = vmatprep.subr.bf16.mxu0 %v27014_v44  ;;  %21510 = vmatprep.subr.bf16.mxu1 %v27603_v57  ;;  %v27607_v44 = vld [vmem:[#allocation85_spill] sm:$0xff] }
 0xd82   :  { %14767 = vmatmul.mubr.f32.vlgmr.msra.gmra.mrb[28].mxu0 %v26040_v42 }
 0xd83   :  { %21324 = vmatpush1.bf16.msra.mxu0 %v27016_v61  ;;  %21512 = vmatpush3.bf16.msra.mxu1 %v27603_v57  ;;  %v27604_v61 = vld [vmem:[#allocation45_spill] sm:$0xff] }
 0xd84   :  { %14772 = vmatprep.mubr.f32.mxu0 %v26748_v1  ;;  %21326 = vmatprep.subr.bf16.mxu0 %v27017_v43 }
 0xd85   :  { %21514 = vmatprep.subr.bf16.mxu1 %v27013_v23 }
 0xd86   :  { %14774 = vmatmul.mubr.f32.gmra.mrb[30].mxu0 %v26052_v46  ;;  %18436 = vmatmul.mubr.f32.vlgmr.msra.gmra.mrb[62].mxu1 %v26052_v46 }
 0xd87   :  { %21328 = vmatpush1.bf16.msra.mxu0 %v27111_v13  ;;  %21516 = vmatpush3.bf16.msra.mxu1 %v27013_v23  ;;  %v27606_v23 = vld [vmem:[#allocation46_spill] sm:$0xff] }
 0xd88   :  { %18470 = vmatprep.mubr.f32.mxu1 %v26040_v42  ;;  %21330 = vmatprep.subr.bf16.mxu0 %v27112_v19  ;;  %v21605_v43 = vadd.f32 %v27607_v44, %v27606_v23 }
 0xd89   :  { %21518 = vmatprep.subr.bf16.mxu1 %v27015_v6  ;;  %14876 = vmatprep.mubr.f32.mxu0 %v26748_v1 }
 0xd8b   :  { %21332 = vmatpush1.bf16.msra.mxu0 %v27114_v36  ;;  %21520 = vmatpush3.bf16.msra.mxu1 %v27015_v6 }
 0xd8c   :  { %21334 = vmatprep.subr.bf16.mxu0 %v27115_v31  ;;  %21522 = vmatprep.subr.bf16.mxu1 %v27018_v56  ;;  %v27608_v31 = vld [vmem:[#allocation47_spill] sm:$0xff] }
 0xd8f   :  { %21336 = vmatpush1.bf16.msra.mxu0 %v27117_v10  ;;  %21524 = vmatpush3.bf16.msra.mxu1 %v27018_v56  ;;  %v27605_v56 = vld [vmem:[#allocation70_spill] sm:$0xff] }
 0xd90   :  { %21338 = vmatprep.subr.bf16.mxu0 %v27118_v8  ;;  %21526 = vmatprep.subr.bf16.mxu1 %v27113_v34  ;;  %v21603_v6 = vadd.f32 %v27605_v56, %v27604_v61  ;;  %v27609_v10 = vld [vmem:[#allocation14_spill] sm:$0xff] }
 0xd91   :  { %v21607_v8 = vadd.f32 %v27609_v10, %v27608_v31 }
 0xd93   :  { %21340 = vmatpush1.bf16.msra.mxu0 %v27504_v62  ;;  %21528 = vmatpush3.bf16.msra.mxu1 %v27113_v34 }
 0xd94   :  { %21342 = vmatprep.subr.bf16.mxu0 %v27505_v11  ;;  %21530 = vmatprep.subr.bf16.mxu1 %v27571_v38  ;;  %v27610_v11 = vld [vmem:[#allocation96_spill] sm:$0xff] }
 0xd97   :  { %21344 = vmatpush1.bf16.msra.mxu0 %v27572_v26  ;;  %21532 = vmatpush3.bf16.msra.mxu1 %v27571_v38 }
 0xd98   :  { %21346 = vmatprep.subr.bf16.mxu0 %v27573_v52  ;;  %21534 = vmatprep.subr.bf16.mxu1 %v27574_v40 }
 0xd9b   :  { %21348 = vmatpush1.bf16.msra.mxu0 %v27575_v37  ;;  %21536 = vmatpush3.bf16.msra.mxu1 %v27574_v40 }
 0xd9c   :  { %21350 = vmatprep.subr.bf16.mxu0 %v27576_v3  ;;  %21538 = vmatprep.subr.bf16.mxu1 %v27577_v39 }
 0xd9f   :  { %21352 = vmatpush1.bf16.msra.mxu0 %v27578_v9  ;;  %21540 = vmatpush3.bf16.msra.mxu1 %v27577_v39 }
 0xda0   :  { %21542 = vmatprep.subr.bf16.mxu1 %v27580_v5 }
 0xda2   :  { %14878 = vmatmul.mubr.f32.vlgmr.msra.gmra.mrb[28].mxu0 %v26040_v42 }
 0xda3   :  { %21544 = vmatpush3.bf16.msra.mxu1 %v27580_v5  ;;  %14883 = vmatprep.mubr.f32.mxu0 %v26748_v1  ;;  %v27611_v1 = vld [vmem:[#allocation137_spill] sm:$0xff] }
 0xda4   :  { %v21609_v42 = vadd.f32 %v27611_v1, %v27610_v11 }
 0xda6   :  { %14885 = vmatmul.mubr.f32.gmra.mrb[30].mxu0 %v26052_v46  ;;  %18471 = vmatmul.mubr.f32.vlgmr.msra.gmra.mrb[62].mxu1 %v26052_v46 }
 0xe75   :  { %v14879_v13 = vpop.f32.mrb[28].mxu0 }
 0xe76   :  { %v21604_v19 = vadd.f32 %v21603_v6, %v14879_v13  ;;  %v14881_v34 = vpop.f32.mrb[29].mxu0 }
 0xe77   :  { %v21606_v36 = vadd.f32 %v21605_v43, %v14881_v34 }
 0xe78   :  { %v15667_v62 = vmul.f32 -1.442695, %v21604_v19 }
 0xe79   :  { %v14886_v4 = vpop.f32.mrb[30].mxu0  ;;  %v18472_v18 = vpop.f32.mrb[62].mxu1  ;;  %v15669_v54 = vmul.f32 -1.442695, %v21606_v36 }
 0xe7a   :  { %22239 = vpow2.f32 %v15667_v62  ;;  %v21608_v46 = vadd.f32 %v21607_v8, %v14886_v4  ;;  %v14888_v58 = vpop.f32.mrb[31].mxu0  ;;  %v15565_v29 = vpop.f32.mrb[63].mxu1  ;;  %v15604_v5 = vadd.f32 %v26029_v35, %v18472_v18 }
 0xe7b   :  { %v21610_v50 = vadd.f32 %v21609_v42, %v14888_v58  ;;  %v15603_v3 = vadd.f32 %v26029_v35, %v15565_v29 }
 0xe7c   :  { %v15668_v2 = vmul.f32 -1.442695, %v21608_v46 }
 0xe7d   :  { %v15670_v16 = vmul.f32 -1.442695, %v21610_v50 }
 0xe7e   :  { %22241 = vpow2.f32 %v15668_v2 }
 0xe7f   :  { %22243 = vpow2.f32 %v15669_v54 }
 0xe80   :  { %22245 = vpow2.f32 %v15670_v16 }
 0xe84   :  { %v22240_v24 = vpop.eup %22239 }
 0xe85   :  { %v15583_v30 = vadd.f32 1.0, %v22240_v24 }
 0xe87   :  { %22247 = vrcp.f32 %v15583_v30 }
 0xe88   :  { %v22242_v38 = vpop.eup %22241 }
 0xe89   :  { %v15584_v26 = vadd.f32 1.0, %v22242_v38  ;;  %v22244_v52 = vpop.eup %22243 }
 0xe8a   :  { %v22246_v40 = vpop.eup %22245  ;;  %v15597_v37 = vadd.f32 1.0, %v22244_v52 }
 0xe8b   :  { %22249 = vrcp.f32 %v15584_v26  ;;  %v15598_v9 = vadd.f32 1.0, %v22246_v40 }
 0xe8c   :  { %22251 = vrcp.f32 %v15597_v37 }
 0xe8d   :  { %22253 = vrcp.f32 %v15598_v9 }
 0xe91   :  { %v22248_v39 = vpop.eup %22247 }
 0xe92   :  { %v15605_v55 = vmul.f32 %v22248_v39, %v15603_v3 }
 0xe94   :  { %v15607_v32 = vadd.f32 %v15605_v55, %v27612_v28 }
 0xe95   :  { %v22250_v60 = vpop.eup %22249 }
 0xe96   :  { %v15606_v25 = vmul.f32 %v22250_v60, %v15604_v5  ;;  %22255 = vtanh.f32 %v15607_v32  ;;  %v22252_v41 = vpop.eup %22251 }
 0xe97   :  { %v22254_v49 = vpop.eup %22253  ;;  %v15611_v22 = vsub.f32 1.0, %v22252_v41  ;;  %v15615_v21 = vmul.f32 %v22252_v41, %v26036_v51 }
 0xe98   :  { %v15608_v20 = vadd.f32 %v15606_v25, %v27613_v17  ;;  %v15612_v14 = vsub.f32 1.0, %v22254_v49  ;;  %v15616_v63 = vmul.f32 %v22254_v49, %v26046_v27 }
 0xe9a   :  { %22257 = vtanh.f32 %v15608_v20 }
 0xea0   :  { %v22256_v0 = vpop.eup %22255 }
 0xea1   :  { %v15613_v45 = vmul.f32 %v22256_v0, %v15611_v22 }
 0xea3   :  { %v15617_v12 = vadd.f32 %v15615_v21, %v15613_v45 }
 0xea4   :  { %v22258_v15 = vpop.eup %22257 }
 0xea5   :  { %v15614_v35 = vmul.f32 %v22258_v15, %v15612_v14  ;;  %15619 = vst [vmem:[#allocation6] sm:$0xff] %v15617_v12 }
 0xea7   :  { %v15618_v47 = vadd.f32 %v15616_v63, %v15614_v35 }
 0xea9   :  { %15620 = vst [vmem:[#allocation6 + $0x8] sm:$0xff] %v15618_v47 }
 0xeaa   :  { %22307 = shalt.err (!%p22304_p12)
}
 0xeab   :  { %s22308_s7 = scalar_lea.hbm %s26285_s5, 256 }
 0xeac   :  { %p22309_p13 = scmp.ne.s32.totalorder %s26285_s5, %s22308_s7  ;;  %p22312_p0 = scmp.lt.u32.totalorder %s22308_s7, %s26285_s5 }
 0xeae   :  { %p22314_p1 = pnand %p22312_p0, %p22309_p13 }
 0xeb0   :  { %22317 = shalt.err (!%p22314_p1)
}
 0xeb1   :  { %s22327_s11 = smov 128   ;;  %s22328_s12 = smov 8  }
 0xeb2   :  { %15632 = dma.vmem_to_hbm [thread:$0]  %s15627_s28, 256, %s26285_s5, [#allocation5], %s22327_s11, %s22327_s11, %s22328_s12  }
 0xeb3   :  { %22320 = dma.done.wait [#allocation5], 256  }
 0xeb4   :  { %22321 = vsyncadd [#allocation5], 4294967040 }
 0xeb5   :  { %15636 = vsyncpa [#allocation4], 1 }
 0xeb6   :  { %15637 = vsyncpa [#allocation5], 1 }

</bundles_post_ra>
